<compile_context>
chip_gen: v7x
topology: tpu7x:2x2x1
jax: 0.10.0
libtpu: 0.0.40
codegen_flags: <defaults>
</compile_context>

<pallas_src>
import functools

import jax
import jax.numpy as jnp
from jax import lax
from jax.experimental import pallas as pl
from jax.experimental.pallas import tpu as pltpu

IN_FEAT = 2352            # 3 * 28 * 28
IN_PAD = 2432             # 19 * 128, lane aligned


def _round_up(v, m):
    return -(-v // m) * m


# --------------------------------------------------------------------------- #
# Kernel                                                                      #
# --------------------------------------------------------------------------- #
def _joint_vae_kernel(inv_tau_ref,
                      x_ref,
                      w1_ref, b1_ref,
                      w2_ref, b2_ref,
                      wh_ref, bh_ref,
                      w3n_ref, w3d_ref, b3_ref,
                      w4_ref, b4_ref,
                      w5_ref, b5_ref,
                      gmat_ref, slow_ref, noise_ref,
                      xrec_ref, qy_ref, kl_ref,
                      *, N, K, z_dim, hard, batch):
    f32 = jnp.float32
    bf16 = jnp.bfloat16
    NK = N * K
    TB = x_ref.shape[0]
    NKP = qy_ref.shape[-1]                    # discrete slab width (>=NK, lane aligned)

    # Valid-row mask for the (possibly padded) batch tile: keeps KL exact.
    row0 = pl.program_id(0) * TB
    rid = lax.broadcasted_iota(jnp.int32, (TB, z_dim), 0) + row0
    valid = rid < batch

    # ---- shared encoder trunk (fc1 / fc2 shared by both heads) --------------
    x = x_ref[...]                                                   # bf16 stream
    h1 = jnp.maximum(
        jnp.dot(x, w1_ref[...], preferred_element_type=f32) + b1_ref[...], 0.0)
    h2 = jnp.maximum(
        jnp.dot(h1.astype(bf16), w2_ref[...], preferred_element_type=f32)
        + b2_ref[...], 0.0)

    # ---- fused heads: [discrete logits | mu | log_var | 0-pad] --------------
    h3 = jnp.dot(h2.astype(bf16), wh_ref[...], preferred_element_type=f32) \
        + bh_ref[...]
    mu = h3[:, NK:NK + z_dim]
    log_var = h3[:, NK + z_dim:NK + 2 * z_dim]
    # ReLU on the discrete logits matches the PyTorch reference
    # (q = self.relu(self.fc_to_d(h2))).  Pad lanes >= NK act as singleton
    # softmax groups; their values never reach the real outputs.
    q = jnp.maximum(h3[:, :NKP], 0.0)                               # (TB, NKP)

    # ---- Gaussian head: KL (per-tile partial) + reparametrization -----------
    kl_term = 1.0 + log_var - mu * mu - jnp.exp(log_var)
    kl_term = jnp.where(valid, kl_term, 0.0)
    kl_ref[...] = jnp.zeros(kl_ref.shape, f32) + (-0.5) * jnp.sum(kl_term)
    eps = noise_ref[:, NK:NK + z_dim]
    z_normal = mu + jnp.exp(0.5 * log_var) * eps                     # (TB, z_dim)

    # ---- discrete head: per-group softmax, fully vectorized ------------------
    gmat = gmat_ref[...]                                             # (NKP, NKP)
    # Posterior softmax over K (F.softmax(q_y, dim=-1)).  Subtracting the
    # row-wide max (constant within every group) leaves each per-group softmax
    # unchanged and keeps exp() in range.  Exact division for output parity.
    q_shift = jnp.exp(q - jnp.max(q, axis=-1, keepdims=True))
    q_den = jnp.dot(q_shift, gmat, preferred_element_type=f32)
    qy_ref[...] = q_shift / q_den

    # Gumbel-softmax sample (eps = 1e-10 as in the reference).  Lanes >= NK of
    # the fused noise slab hold eps / zeros, so mask them out of the gumbel.
    g_eps = 1e-10
    lane = lax.broadcasted_iota(jnp.int32, (TB, NKP), 1)
    u = noise_ref[:, :NKP]
    gumbel = jnp.where(lane < NK,
                       -jnp.log(g_eps - jnp.log(u + g_eps)), 0.0)
    y_logits = (q + gumbel) * inv_tau_ref[0]

    if hard:
        # TODO(synk): forward value of the straight-through estimator only; the
        # custom gradient (y_hard - y_soft.detach() + y_soft) is not represented.
        # argmax(softmax(y)) == argmax(y) per group, so skip the softmax here.
        # Per-group max via an XOR butterfly (K must be a power of two).
        gmax = y_logits
        d = 1
        while d < K:
            fwd = pltpu.roll(gmax, shift=NKP - d, axis=-1)   # value from lane i+d
            bwd = pltpu.roll(gmax, shift=d, axis=-1)         # value from lane i-d
            partner = jnp.where((lane & d) != 0, bwd, fwd)
            gmax = jnp.maximum(gmax, partner)
            d *= 2
        is_max = (y_logits >= gmax).astype(f32)
        # First-max tie-break (matches torch.argmax): exclusive prefix count of
        # maxima within the group, computed on the MXU with a resident constant.
        prefix = jnp.dot(is_max, slow_ref[...], preferred_element_type=f32)
        z_disc = jnp.where((is_max > 0.0) & (prefix == 0.0), 1.0, 0.0)
    else:
        y_shift = jnp.exp(y_logits - jnp.max(y_logits, axis=-1, keepdims=True))
        y_den = jnp.dot(y_shift, gmat, preferred_element_type=f32)
        z_disc = y_shift * pl.reciprocal(y_den, approx=True)        # (TB, NKP)

    # ---- decoder -------------------------------------------------------------
    # fc3 is split (z_normal / padded z_disc) so the latents are never
    # concatenated on the lane axis; pad rows of w3d are zero.
    d1 = jnp.maximum(
        jnp.dot(z_normal.astype(bf16), w3n_ref[...], preferred_element_type=f32)
        + jnp.dot(z_disc.astype(bf16), w3d_ref[...], preferred_element_type=f32)
        + b3_ref[...], 0.0)
    d2 = jnp.maximum(
        jnp.dot(d1.astype(bf16), w4_ref[...], preferred_element_type=f32)
        + b4_ref[...], 0.0)
    logits = jnp.dot(d2.astype(bf16), w5_ref[...], preferred_element_type=f32) \
        + b5_ref[...]
    xrec_ref[...] = jax.nn.sigmoid(logits).astype(xrec_ref.dtype)    # bf16 store


# --------------------------------------------------------------------------- #
# Parameter construction / padding                                            #
# --------------------------------------------------------------------------- #
def make_params(key, z_dim, N, K):
    """Deterministic nn.Linear-style init; weights stored as (in, out)."""
    layer_dims = [("fc1", IN_FEAT, 512), ("fc2", 512, 256),
                  ("fc_to_d", 256, N * K), ("fc_to_n", 256, 2 * z_dim),
                  ("fc3", z_dim + N * K, 256), ("fc4", 256, 512),
                  ("fc5", 512, IN_FEAT)]
    params = {}
    for name, fin, fout in layer_dims:
        key, kw, kb = jax.random.split(key, 3)
        bound = 1.0 / float(fin) ** 0.5
        w = jax.random.uniform(kw, (fin, fout), jnp.float32, -bound, bound)
        b = jax.random.uniform(kb, (1, fout), jnp.float32, -bound, bound)
        params[name] = (w, b)
    return params


def _prepare_weights(params, z_dim, N, K):
    """Pad to lane-aligned shapes, fuse the heads (disc first), split fc3."""
    bf16 = jnp.bfloat16
    NK = N * K
    NKP = _round_up(NK, 128)
    head = NK + 2 * z_dim
    head_pad = _round_up(head, 128)

    w1, b1 = params["fc1"]
    w2, b2 = params["fc2"]
    wd, bd = params["fc_to_d"]
    wn, bn = params["fc_to_n"]
    w3, b3 = params["fc3"]
    w4, b4 = params["fc4"]
    w5, b5 = params["fc5"]

    # fc1: pad input rows 2352 -> 2432 (padded x columns are zero, so no change)
    w1p = jnp.zeros((IN_PAD, w1.shape[1]), jnp.float32).at[:IN_FEAT].set(w1)
    # fused encoder heads: discrete logits at lane 0, then mu / log_var.
    wh = jnp.concatenate([wd, wn], axis=1)
    bh = jnp.concatenate([bd, bn], axis=1)
    whp = jnp.zeros((wh.shape[0], head_pad), jnp.float32).at[:, :head].set(wh)
    bhp = jnp.zeros((1, head_pad), jnp.float32).at[:, :head].set(bh)
    # fc3 split: rows 0:z_dim act on z_normal, rows z_dim: act on z_disc
    # (z_disc is carried at NKP lanes, so zero-pad its weight rows).
    w3d = jnp.zeros((NKP, w3.shape[1]), jnp.float32).at[:NK].set(w3[z_dim:])
    # fc5: pad output cols 2352 -> 2432 (sliced off in the wrapper)
    w5p = jnp.zeros((w5.shape[0], IN_PAD), jnp.float32).at[:, :IN_FEAT].set(w5)
    b5p = jnp.zeros((1, IN_PAD), jnp.float32).at[:, :IN_FEAT].set(b5)

    return dict(
        w1=w1p.astype(bf16), b1=b1,
        w2=w2.astype(bf16), b2=b2,
        wh=whp.astype(bf16), bh=bhp,
        w3n=w3[:z_dim].astype(bf16), w3d=w3d.astype(bf16), b3=b3,
        w4=w4.astype(bf16), b4=b4,
        w5=w5p.astype(bf16), b5=b5p)


def _group_constants(N, K, NKP):
    """Group-sum matrix and strict-lower (same-group, i<j) tie-break matrix."""
    NK = N * K
    idx = jnp.arange(NKP)
    grp = jnp.where(idx < NK, idx // K, NK + idx)     # pad lanes: singleton groups
    same = grp[:, None] == grp[None, :]
    gmat = same.astype(jnp.float32)
    strict_lower = (same & (idx[:, None] < idx[None, :])).astype(jnp.float32)
    return gmat, strict_lower


# --------------------------------------------------------------------------- #
# Device-aware tiling / VMEM budget                                           #
# --------------------------------------------------------------------------- #
def _device_kind():
    try:
        return jax.devices()[0].device_kind.lower()
    except Exception:
        return ""


def _is_v7(kind):
    return ("v7" in kind) or ("7x" in kind)


def _pick_batch_tile(batch, kind):
    if "v5" in kind:
        dev_tb = 256                        # 1 TC, 128 MiB VMEM, 128-row MXU
    elif _is_v7(kind):
        dev_tb = 128 if batch <= 256 else 256   # >=2 tiles so both TCs get work
    else:                                   # v6e / default: 1 TC, 128 MiB VMEM
        dev_tb = 512
    return max(16, min(dev_tb, _round_up(batch, 16)))   # multiple of 16 (bf16)


# --------------------------------------------------------------------------- #
# Host wrapper                                                                #
# --------------------------------------------------------------------------- #
def joint_vae_forward(params, x_nchw, temp, noise_key, *, z_dim, N, K, hard=False):
    NK = N * K
    NKP = _round_up(NK, 128)
    NOISE_W = _round_up(NK + z_dim, 128)
    if hard:
        assert K & (K - 1) == 0, "hard path assumes power-of-two K"

    B = x_nchw.shape[0]
    x = x_nchw.reshape(B, -1)
    assert x.shape[1] == IN_FEAT

    kind = _device_kind()
    TB = _pick_batch_tile(B, kind)
    B_pad = _round_up(B, TB)
    num_tiles = B_pad // TB

    # Lane-aligned, batch-padded bf16 input slab (halves HBM traffic).
    xp = jnp.zeros((B_pad, IN_PAD), jnp.bfloat16) \
        .at[:B, :IN_FEAT].set(x.astype(jnp.bfloat16))

    # Fused lane-dense noise slab: [gumbel uniforms | gaussian eps | 0-pad].
    ku, ke = jax.random.split(noise_key)
    u = jax.random.uniform(ku, (B, NK), jnp.float32)              # torch.rand
    eps = jax.random.normal(ke, (B, z_dim), jnp.float32)          # torch.randn_like
    noise = (jnp.zeros((B_pad, NOISE_W), jnp.float32)
             .at[:B, :NK].set(u)
             .at[:B, NK:NK + z_dim].set(eps))
    inv_tau = (1.0 / jnp.asarray(temp, jnp.float32)).reshape(1)

    w = _prepare_weights(params, z_dim, N, K)
    gmat, slower = _group_constants(N, K, NKP)
    head_pad = w["wh"].shape[1]

    kernel = functools.partial(_joint_vae_kernel, N=N, K=K, z_dim=z_dim,
                               hard=hard, batch=B)

    row_map = lambda i: (i, 0)
    fix_map = lambda i: (0, 0)
    # TODO(synk): when pipeline_mode=pl.Buffered(1) is confirmed on the target
    # jax build, mark these constant-index blocks single-buffered to reclaim
    # ~5.6 MB of VMEM on v7x.
    resident = lambda arr: pl.BlockSpec(arr.shape, fix_map)

    in_specs = [
        pl.BlockSpec(memory_space=pltpu.MemorySpace.SMEM),    # 1/tau scalar
        pl.BlockSpec((TB, IN_PAD), row_map),                  # x tile (bf16)
        resident(w["w1"]), resident(w["b1"]),
        resident(w["w2"]), resident(w["b2"]),
        resident(w["wh"]), resident(w["bh"]),
        resident(w["w3n"]), resident(w["w3d"]), resident(w["b3"]),
        resident(w["w4"]), resident(w["b4"]),
        resident(w["w5"]), resident(w["b5"]),
        resident(gmat), resident(slower),                     # group constants
        pl.BlockSpec((TB, NOISE_W), row_map),                 # fused noise
    ]
    out_specs = (
        pl.BlockSpec((TB, IN_PAD), row_map),                  # x_recon (bf16)
        pl.BlockSpec((TB, NKP), row_map),                     # q_y (lane dense)
        pl.BlockSpec((8, 128), lambda i: (i, 0)),             # per-tile KL partial
    )

    # VMEM budget from actual buffer sizes (conservatively assumes the resident
    # constants are double-buffered), capped for v7x's 64 MiB VMEM.
    const_arrays = list(w.values()) + [gmat, slower]
    const_bytes = sum(int(a.size) * a.dtype.itemsize for a in const_arrays)
    tile_stream = TB * (2 * IN_PAD * 2 + NOISE_W * 4 + NKP * 4) + 8 * 128 * 4
    inter_bytes = TB * ((512 + 256 + head_pad + 256 + 512 + IN_PAD) * 4
                        + 8 * NKP * 4)
    need = 2 * const_bytes + 2 * tile_stream + inter_bytes
    cap = (48 << 20) if _is_v7(kind) else (100 << 20)
    vmem_limit = int(min(cap, max(32 << 20, need + (8 << 20))))

    flops_per_row = 2 * (IN_PAD * 512 + 512 * 256 + 256 * head_pad
                         + 2 * NKP * NKP + z_dim * 256 + NKP * 256
                         + 256 * 512 + 512 * IN_PAD)
    io_bytes = const_bytes + B_pad * (2 * IN_PAD * 2 + NOISE_W * 4 + NKP * 4) \
        + num_tiles * 8 * 128 * 4
    cost = pl.CostEstimate(
        flops=int(flops_per_row * B_pad),
        transcendentals=int(B_pad * (IN_PAD + 4 * NKP + 2 * z_dim)),
        bytes_accessed=int(io_bytes))

    xrec, qy, kl_parts = pl.pallas_call(
        kernel,
        out_shape=(jax.ShapeDtypeStruct((B_pad, IN_PAD), jnp.bfloat16),
                   jax.ShapeDtypeStruct((B_pad, NKP), jnp.float32),
                   jax.ShapeDtypeStruct((num_tiles * 8, 128), jnp.float32)),
        grid=(num_tiles,),
        in_specs=in_specs,
        out_specs=out_specs,
        compiler_params=pltpu.CompilerParams(
            dimension_semantics=("parallel",),
            vmem_limit_bytes=vmem_limit),
        cost_estimate=cost,
    )(inv_tau, xp,
      w["w1"], w["b1"], w["w2"], w["b2"], w["wh"], w["bh"],
      w["w3n"], w["w3d"], w["b3"], w["w4"], w["b4"], w["w5"], w["b5"],
      gmat, slower, noise)

    x_img = xrec[:B, :IN_FEAT].astype(jnp.float32).reshape(B, 3, 28, 28)
    qy_out = qy[:B, :NK].reshape(B * N, K)                    # softmax(q_y).reshape
    kl = jnp.sum(kl_parts.reshape(num_tiles, 8, 128)[:, 0, 0])
    return x_img, qy_out, kl


if __name__ == "__main__":
    z_dim, N, K = 16, 8, 8
    B = 8
    temp = 0.7
    hard = False

    root = jax.random.PRNGKey(0)
    k_params, k_input, k_noise = jax.random.split(root, 3)

    params = make_params(k_params, z_dim, N, K)
    x = jax.random.uniform(k_input, (B, 3, 28, 28), jnp.float32)  # NCHW input

    x_recon, qy, kl = joint_vae_forward(
        params, x, temp, k_noise, z_dim=z_dim, N=N, K=K, hard=hard)
    jax.block_until_ready((x_recon, qy, kl))

    assert x_recon.shape == (B, 3, 28, 28)
    assert qy.shape == (B * N, K)
    assert kl.shape == ()
    print("KERNEL_OK")
</pallas_src>

<mosaic_0001>
module attributes {stable_mosaic.version = 11 : i64} {
  func.func @_joint_vae_kernel(%arg0: i32, %arg1: memref<1xf32, #tpu.memory_space<smem>>, %arg2: memref<16x2432xbf16, #tpu.memory_space<vmem>>, %arg3: memref<2432x512xbf16, #tpu.memory_space<vmem>>, %arg4: memref<1x512xf32, #tpu.memory_space<vmem>>, %arg5: memref<512x256xbf16, #tpu.memory_space<vmem>>, %arg6: memref<1x256xf32, #tpu.memory_space<vmem>>, %arg7: memref<256x128xbf16, #tpu.memory_space<vmem>>, %arg8: memref<1x128xf32, #tpu.memory_space<vmem>>, %arg9: memref<16x256xbf16, #tpu.memory_space<vmem>>, %arg10: memref<128x256xbf16, #tpu.memory_space<vmem>>, %arg11: memref<1x256xf32, #tpu.memory_space<vmem>>, %arg12: memref<256x512xbf16, #tpu.memory_space<vmem>>, %arg13: memref<1x512xf32, #tpu.memory_space<vmem>>, %arg14: memref<512x2432xbf16, #tpu.memory_space<vmem>>, %arg15: memref<1x2432xf32, #tpu.memory_space<vmem>>, %arg16: memref<128x128xf32, #tpu.memory_space<vmem>>, %arg17: memref<128x128xf32, #tpu.memory_space<vmem>>, %arg18: memref<16x128xf32, #tpu.memory_space<vmem>>, %arg19: memref<16x2432xbf16, #tpu.memory_space<vmem>>, %arg20: memref<16x128xf32, #tpu.memory_space<vmem>>, %arg21: memref<8x128xf32, #tpu.memory_space<vmem>>) attributes {dimension_semantics = [#tpu.dimension_semantics<parallel>], iteration_bounds = array<i64: 1>, scalar_prefetch = 0 : i64, scratch_operands = 0 : i64, tpu.core_type = #tpu.core_type<tc>, window_params = [{transform_indices = @transform_0, window_bounds = array<i64: 1>}, {transform_indices = @transform_1, window_bounds = array<i64: 16, 2432>}, {pipeline_mode = #tpu.pipeline_mode<synchronous>, transform_indices = @transform_2, window_bounds = array<i64: 2432, 512>}, {pipeline_mode = #tpu.pipeline_mode<synchronous>, transform_indices = @transform_3, window_bounds = array<i64: 1, 512>}, {pipeline_mode = #tpu.pipeline_mode<synchronous>, transform_indices = @transform_4, window_bounds = array<i64: 512, 256>}, {pipeline_mode = #tpu.pipeline_mode<synchronous>, transform_indices = @transform_5, window_bounds = array<i64: 1, 256>}, {pipeline_mode = #tpu.pipeline_mode<synchronous>, transform_indices = @transform_6, window_bounds = array<i64: 256, 128>}, {pipeline_mode = #tpu.pipeline_mode<synchronous>, transform_indices = @transform_7, window_bounds = array<i64: 1, 128>}, {pipeline_mode = #tpu.pipeline_mode<synchronous>, transform_indices = @transform_8, window_bounds = array<i64: 16, 256>}, {pipeline_mode = #tpu.pipeline_mode<synchronous>, transform_indices = @transform_9, window_bounds = array<i64: 128, 256>}, {pipeline_mode = #tpu.pipeline_mode<synchronous>, transform_indices = @transform_10, window_bounds = array<i64: 1, 256>}, {pipeline_mode = #tpu.pipeline_mode<synchronous>, transform_indices = @transform_11, window_bounds = array<i64: 256, 512>}, {pipeline_mode = #tpu.pipeline_mode<synchronous>, transform_indices = @transform_12, window_bounds = array<i64: 1, 512>}, {pipeline_mode = #tpu.pipeline_mode<synchronous>, transform_indices = @transform_13, window_bounds = array<i64: 512, 2432>}, {pipeline_mode = #tpu.pipeline_mode<synchronous>, transform_indices = @transform_14, window_bounds = array<i64: 1, 2432>}, {pipeline_mode = #tpu.pipeline_mode<synchronous>, transform_indices = @transform_15, window_bounds = array<i64: 128, 128>}, {pipeline_mode = #tpu.pipeline_mode<synchronous>, transform_indices = @transform_16, window_bounds = array<i64: 128, 128>}, {transform_indices = @transform_17, window_bounds = array<i64: 16, 128>}, {transform_indices = @transform_18, window_bounds = array<i64: 16, 2432>}, {transform_indices = @transform_19, window_bounds = array<i64: 16, 128>}, {transform_indices = @transform_20, window_bounds = array<i64: 8, 128>}]} {
    %c16_i32 = arith.constant 16 : i32
    %0 = arith.muli %arg0, %c16_i32 : i32
    %1 = tpu.iota {dimensions = array<i32: 0>} : vector<16x16xi32>
    %2 = vector.broadcast %0 : i32 to vector<16x16xi32>
    %3 = arith.addi %1, %2 : vector<16x16xi32>
    %c8_i32 = arith.constant 8 : i32
    %4 = vector.broadcast %c8_i32 : i32 to vector<16x16xi32>
    %5 = arith.cmpi slt, %3, %4 : vector<16x16xi32>
    %c0 = arith.constant 0 : index
    %c0_0 = arith.constant 0 : index
    %6 = vector.load %arg2[%c0, %c0_0] : memref<16x2432xbf16, #tpu.memory_space<vmem>>, vector<16x2432xbf16>
    %c0_1 = arith.constant 0 : index
    %c0_2 = arith.constant 0 : index
    %7 = vector.load %arg3[%c0_1, %c0_2] : memref<2432x512xbf16, #tpu.memory_space<vmem>>, vector<2432x512xbf16>
    %cst = arith.constant dense<0.000000e+00> : vector<16x512xf32>
    %8 = tpu.matmul %6, %7, %cst {dimension_numbers = #tpu.dot_dimension_numbers<[1], [0], [0], [1], [0, 0, 1, 1], [], []>} : vector<16x2432xbf16>, vector<2432x512xbf16>, vector<16x512xf32> -> vector<16x512xf32>
    %c0_3 = arith.constant 0 : index
    %c0_4 = arith.constant 0 : index
    %9 = vector.load %arg4[%c0_3, %c0_4] : memref<1x512xf32, #tpu.memory_space<vmem>>, vector<1x512xf32>
    %10 = vector.broadcast %9 : vector<1x512xf32> to vector<16x512xf32>
    %11 = arith.addf %8, %10 : vector<16x512xf32>
    %cst_5 = arith.constant 0.000000e+00 : f32
    %12 = vector.broadcast %cst_5 : f32 to vector<16x512xf32>
    %13 = arith.maximumf %11, %12 : vector<16x512xf32>
    %14 = arith.truncf %13 : vector<16x512xf32> to vector<16x512xbf16>
    %c0_6 = arith.constant 0 : index
    %c0_7 = arith.constant 0 : index
    %15 = vector.load %arg5[%c0_6, %c0_7] : memref<512x256xbf16, #tpu.memory_space<vmem>>, vector<512x256xbf16>
    %cst_8 = arith.constant dense<0.000000e+00> : vector<16x256xf32>
    %16 = tpu.matmul %14, %15, %cst_8 {dimension_numbers = #tpu.dot_dimension_numbers<[1], [0], [0], [1], [0, 0, 1, 1], [], []>} : vector<16x512xbf16>, vector<512x256xbf16>, vector<16x256xf32> -> vector<16x256xf32>
    %c0_9 = arith.constant 0 : index
    %c0_10 = arith.constant 0 : index
    %17 = vector.load %arg6[%c0_9, %c0_10] : memref<1x256xf32, #tpu.memory_space<vmem>>, vector<1x256xf32>
    %18 = vector.broadcast %17 : vector<1x256xf32> to vector<16x256xf32>
    %19 = arith.addf %16, %18 : vector<16x256xf32>
    %cst_11 = arith.constant 0.000000e+00 : f32
    %20 = vector.broadcast %cst_11 : f32 to vector<16x256xf32>
    %21 = arith.maximumf %19, %20 : vector<16x256xf32>
    %22 = arith.truncf %21 : vector<16x256xf32> to vector<16x256xbf16>
    %c0_12 = arith.constant 0 : index
    %c0_13 = arith.constant 0 : index
    %23 = vector.load %arg7[%c0_12, %c0_13] : memref<256x128xbf16, #tpu.memory_space<vmem>>, vector<256x128xbf16>
    %cst_14 = arith.constant dense<0.000000e+00> : vector<16x128xf32>
    %24 = tpu.matmul %22, %23, %cst_14 {dimension_numbers = #tpu.dot_dimension_numbers<[1], [0], [0], [1], [0, 0, 1, 1], [], []>} : vector<16x256xbf16>, vector<256x128xbf16>, vector<16x128xf32> -> vector<16x128xf32>
    %c0_15 = arith.constant 0 : index
    %c0_16 = arith.constant 0 : index
    %25 = vector.load %arg8[%c0_15, %c0_16] : memref<1x128xf32, #tpu.memory_space<vmem>>, vector<1x128xf32>
    %26 = vector.broadcast %25 : vector<1x128xf32> to vector<16x128xf32>
    %27 = arith.addf %24, %26 : vector<16x128xf32>
    %28 = vector.extract_strided_slice %27 {offsets = [0, 64], sizes = [16, 16], strides = [1, 1]} : vector<16x128xf32> to vector<16x16xf32>
    %29 = vector.extract_strided_slice %27 {offsets = [0, 80], sizes = [16, 16], strides = [1, 1]} : vector<16x128xf32> to vector<16x16xf32>
    %cst_17 = arith.constant 0.000000e+00 : f32
    %30 = vector.broadcast %cst_17 : f32 to vector<16x128xf32>
    %31 = arith.maximumf %27, %30 : vector<16x128xf32>
    %cst_18 = arith.constant 1.000000e+00 : f32
    %32 = vector.broadcast %cst_18 : f32 to vector<16x16xf32>
    %33 = arith.addf %32, %29 : vector<16x16xf32>
    %34 = arith.mulf %28, %28 : vector<16x16xf32>
    %35 = arith.subf %33, %34 : vector<16x16xf32>
    %36 = math.exp %29 : vector<16x16xf32>
    %37 = arith.subf %35, %36 : vector<16x16xf32>
    %cst_19 = arith.constant 0.000000e+00 : f32
    %38 = vector.broadcast %cst_19 : f32 to vector<16x16xf32>
    %39 = arith.select %5, %37, %38 : vector<16x16xi1>, vector<16x16xf32>
    %cst_20 = arith.constant 0.000000e+00 : f32
    %40 = vector.broadcast %cst_20 : f32 to vector<8x128xf32>
    %41 = vector.shape_cast %39 : vector<16x16xf32> to vector<1x16x16xf32>
    %cst_21 = arith.constant dense<0.000000e+00> : vector<1xf32>
    %42 = vector.multi_reduction <add>, %41, %cst_21 [1, 2] : vector<1x16x16xf32> to vector<1xf32>
    %43 = vector.shape_cast %42 : vector<1xf32> to vector<1x1x1xf32>
    %44 = vector.extract %43[0, 0, 0] : f32 from vector<1x1x1xf32>
    %cst_22 = arith.constant -5.000000e-01 : f32
    %45 = arith.mulf %cst_22, %44 : f32
    %46 = vector.broadcast %45 : f32 to vector<8x128xf32>
    %47 = arith.addf %40, %46 : vector<8x128xf32>
    %c0_23 = arith.constant 0 : index
    %c0_24 = arith.constant 0 : index
    %48 = vector.load %arg21[%c0_23, %c0_24] : memref<8x128xf32, #tpu.memory_space<vmem>>, vector<8x128xf32>
    tpu.vector_store %arg21[%c0_23, %c0_24], %47 {strides = array<i32>} : memref<8x128xf32, #tpu.memory_space<vmem>>, vector<8x128xf32>,
    %c0_25 = arith.constant 0 : index
    %c64 = arith.constant 64 : index
    %49 = vector.load %arg18[%c0_25, %c64] : memref<16x128xf32, #tpu.memory_space<vmem>>, vector<16x16xf32>
    %cst_26 = arith.constant 5.000000e-01 : f32
    %50 = vector.broadcast %cst_26 : f32 to vector<16x16xf32>
    %51 = arith.mulf %50, %29 : vector<16x16xf32>
    %52 = math.exp %51 : vector<16x16xf32>
    %53 = arith.mulf %52, %49 : vector<16x16xf32>
    %54 = arith.addf %28, %53 : vector<16x16xf32>
    %c0_27 = arith.constant 0 : index
    %c0_28 = arith.constant 0 : index
    %55 = vector.load %arg16[%c0_27, %c0_28] : memref<128x128xf32, #tpu.memory_space<vmem>>, vector<128x128xf32>
    %cst_29 = arith.constant dense<0xFF800000> : vector<16xf32>
    %56 = vector.multi_reduction <maximumf>, %31, %cst_29 [1] : vector<16x128xf32> to vector<16xf32>
    %57 = vector.shape_cast %56 : vector<16xf32> to vector<16x1xf32>
    %58 = vector.broadcast %57 : vector<16x1xf32> to vector<16x128xf32>
    %59 = arith.subf %31, %58 : vector<16x128xf32>
    %60 = math.exp %59 : vector<16x128xf32>
    %cst_30 = arith.constant dense<0.000000e+00> : vector<16x128xf32>
    %61 = tpu.matmul %60, %55, %cst_30 {dimension_numbers = #tpu.dot_dimension_numbers<[1], [0], [0], [1], [0, 0, 1, 1], [], []>} : vector<16x128xf32>, vector<128x128xf32>, vector<16x128xf32> -> vector<16x128xf32>
    %62 = arith.divf %60, %61 : vector<16x128xf32>
    %c0_31 = arith.constant 0 : index
    %c0_32 = arith.constant 0 : index
    %63 = vector.load %arg20[%c0_31, %c0_32] : memref<16x128xf32, #tpu.memory_space<vmem>>, vector<16x128xf32>
    tpu.vector_store %arg20[%c0_31, %c0_32], %62 {strides = array<i32>} : memref<16x128xf32, #tpu.memory_space<vmem>>, vector<16x128xf32>,
    %64 = tpu.iota {dimensions = array<i32: 1>} : vector<16x128xi32>
    %c0_33 = arith.constant 0 : index
    %c0_34 = arith.constant 0 : index
    %65 = vector.load %arg18[%c0_33, %c0_34] : memref<16x128xf32, #tpu.memory_space<vmem>>, vector<16x128xf32>
    %c64_i32 = arith.constant 64 : i32
    %66 = vector.broadcast %c64_i32 : i32 to vector<16x128xi32>
    %67 = arith.cmpi slt, %64, %66 : vector<16x128xi32>
    %cst_35 = arith.constant 1.000000e-10 : f32
    %68 = vector.broadcast %cst_35 : f32 to vector<16x128xf32>
    %69 = arith.addf %65, %68 : vector<16x128xf32>
    %70 = math.log %69 : vector<16x128xf32>
    %cst_36 = arith.constant 1.000000e-10 : f32
    %71 = vector.broadcast %cst_36 : f32 to vector<16x128xf32>
    %72 = arith.subf %71, %70 : vector<16x128xf32>
    %73 = math.log %72 : vector<16x128xf32>
    %cst_37 = arith.constant 0.000000e+00 : f32
    %74 = vector.broadcast %cst_37 : f32 to vector<16x128xf32>
    %75 = arith.subf %74, %73 : vector<16x128xf32>
    %cst_38 = arith.constant 0.000000e+00 : f32
    %76 = vector.broadcast %cst_38 : f32 to vector<16x128xf32>
    %77 = arith.select %67, %75, %76 : vector<16x128xi1>, vector<16x128xf32>
    %78 = arith.addf %31, %77 : vector<16x128xf32>
    %c0_39 = arith.constant 0 : index
    %79 = memref.load %arg1[%c0_39] : memref<1xf32, #tpu.memory_space<smem>>
    %80 = vector.broadcast %79 : f32 to vector<16x128xf32>
    %81 = arith.mulf %78, %80 : vector<16x128xf32>
    %cst_40 = arith.constant dense<0xFF800000> : vector<16xf32>
    %82 = vector.multi_reduction <maximumf>, %81, %cst_40 [1] : vector<16x128xf32> to vector<16xf32>
    %83 = vector.shape_cast %82 : vector<16xf32> to vector<16x1xf32>
    %84 = vector.broadcast %83 : vector<16x1xf32> to vector<16x128xf32>
    %85 = arith.subf %81, %84 : vector<16x128xf32>
    %86 = math.exp %85 : vector<16x128xf32>
    %cst_41 = arith.constant dense<0.000000e+00> : vector<16x128xf32>
    %87 = tpu.matmul %86, %55, %cst_41 {dimension_numbers = #tpu.dot_dimension_numbers<[1], [0], [0], [1], [0, 0, 1, 1], [], []>} : vector<16x128xf32>, vector<128x128xf32>, vector<16x128xf32> -> vector<16x128xf32>
    %88 = tpu.reciprocal %87 {approx = true} : vector<16x128xf32> -> vector<16x128xf32>
    %89 = arith.mulf %86, %88 : vector<16x128xf32>
    %90 = arith.truncf %54 : vector<16x16xf32> to vector<16x16xbf16>
    %c0_42 = arith.constant 0 : index
    %c0_43 = arith.constant 0 : index
    %91 = vector.load %arg9[%c0_42, %c0_43] : memref<16x256xbf16, #tpu.memory_space<vmem>>, vector<16x256xbf16>
    %cst_44 = arith.constant dense<0.000000e+00> : vector<16x256xf32>
    %92 = tpu.matmul %90, %91, %cst_44 {dimension_numbers = #tpu.dot_dimension_numbers<[1], [0], [0], [1], [0, 0, 1, 1], [], []>} : vector<16x16xbf16>, vector<16x256xbf16>, vector<16x256xf32> -> vector<16x256xf32>
    %93 = arith.truncf %89 : vector<16x128xf32> to vector<16x128xbf16>
    %c0_45 = arith.constant 0 : index
    %c0_46 = arith.constant 0 : index
    %94 = vector.load %arg10[%c0_45, %c0_46] : memref<128x256xbf16, #tpu.memory_space<vmem>>, vector<128x256xbf16>
    %cst_47 = arith.constant dense<0.000000e+00> : vector<16x256xf32>
    %95 = tpu.matmul %93, %94, %cst_47 {dimension_numbers = #tpu.dot_dimension_numbers<[1], [0], [0], [1], [0, 0, 1, 1], [], []>} : vector<16x128xbf16>, vector<128x256xbf16>, vector<16x256xf32> -> vector<16x256xf32>
    %96 = arith.addf %92, %95 : vector<16x256xf32>
    %c0_48 = arith.constant 0 : index
    %c0_49 = arith.constant 0 : index
    %97 = vector.load %arg11[%c0_48, %c0_49] : memref<1x256xf32, #tpu.memory_space<vmem>>, vector<1x256xf32>
    %98 = vector.broadcast %97 : vector<1x256xf32> to vector<16x256xf32>
    %99 = arith.addf %96, %98 : vector<16x256xf32>
    %cst_50 = arith.constant 0.000000e+00 : f32
    %100 = vector.broadcast %cst_50 : f32 to vector<16x256xf32>
    %101 = arith.maximumf %99, %100 : vector<16x256xf32>
    %102 = arith.truncf %101 : vector<16x256xf32> to vector<16x256xbf16>
    %c0_51 = arith.constant 0 : index
    %c0_52 = arith.constant 0 : index
    %103 = vector.load %arg12[%c0_51, %c0_52] : memref<256x512xbf16, #tpu.memory_space<vmem>>, vector<256x512xbf16>
    %cst_53 = arith.constant dense<0.000000e+00> : vector<16x512xf32>
    %104 = tpu.matmul %102, %103, %cst_53 {dimension_numbers = #tpu.dot_dimension_numbers<[1], [0], [0], [1], [0, 0, 1, 1], [], []>} : vector<16x256xbf16>, vector<256x512xbf16>, vector<16x512xf32> -> vector<16x512xf32>
    %c0_54 = arith.constant 0 : index
    %c0_55 = arith.constant 0 : index
    %105 = vector.load %arg13[%c0_54, %c0_55] : memref<1x512xf32, #tpu.memory_space<vmem>>, vector<1x512xf32>
    %106 = vector.broadcast %105 : vector<1x512xf32> to vector<16x512xf32>
    %107 = arith.addf %104, %106 : vector<16x512xf32>
    %cst_56 = arith.constant 0.000000e+00 : f32
    %108 = vector.broadcast %cst_56 : f32 to vector<16x512xf32>
    %109 = arith.maximumf %107, %108 : vector<16x512xf32>
    %110 = arith.truncf %109 : vector<16x512xf32> to vector<16x512xbf16>
    %c0_57 = arith.constant 0 : index
    %c0_58 = arith.constant 0 : index
    %111 = vector.load %arg14[%c0_57, %c0_58] : memref<512x2432xbf16, #tpu.memory_space<vmem>>, vector<512x2432xbf16>
    %cst_59 = arith.constant dense<0.000000e+00> : vector<16x2432xf32>
    %112 = tpu.matmul %110, %111, %cst_59 {dimension_numbers = #tpu.dot_dimension_numbers<[1], [0], [0], [1], [0, 0, 1, 1], [], []>} : vector<16x512xbf16>, vector<512x2432xbf16>, vector<16x2432xf32> -> vector<16x2432xf32>
    %c0_60 = arith.constant 0 : index
    %c0_61 = arith.constant 0 : index
    %113 = vector.load %arg15[%c0_60, %c0_61] : memref<1x2432xf32, #tpu.memory_space<vmem>>, vector<1x2432xf32>
    %114 = vector.broadcast %113 : vector<1x2432xf32> to vector<16x2432xf32>
    %115 = arith.addf %112, %114 : vector<16x2432xf32>
    %116 = arith.negf %115 : vector<16x2432xf32>
    %117 = math.exp %116 : vector<16x2432xf32>
    %cst_62 = arith.constant 1.000000e+00 : f32
    %118 = vector.broadcast %cst_62 : f32 to vector<16x2432xf32>
    %119 = arith.addf %118, %117 : vector<16x2432xf32>
    %120 = arith.divf %118, %119 : vector<16x2432xf32>
    %121 = arith.truncf %120 : vector<16x2432xf32> to vector<16x2432xbf16>
    %c0_63 = arith.constant 0 : index
    %c0_64 = arith.constant 0 : index
    %122 = vector.load %arg19[%c0_63, %c0_64] : memref<16x2432xbf16, #tpu.memory_space<vmem>>, vector<16x2432xbf16>
    tpu.vector_store %arg19[%c0_63, %c0_64], %121 {strides = array<i32>} : memref<16x2432xbf16, #tpu.memory_space<vmem>>, vector<16x2432xbf16>,
    return
  }
  func.func @transform_0(%arg0: i32) -> i32 {
    %c0_i32 = arith.constant 0 : i32
    %c0_i32_0 = arith.constant 0 : i32
    return %c0_i32 : i32
  }
  func.func @transform_1(%arg0: i32) -> (i32, i32) {
    %c0_i32 = arith.constant 0 : i32
    %c0_i32_0 = arith.constant 0 : i32
    return %arg0, %c0_i32 : i32, i32
  }
  func.func @transform_2(%arg0: i32) -> (i32, i32) {
    %c0_i32 = arith.constant 0 : i32
    %c0_i32_0 = arith.constant 0 : i32
    %c0_i32_1 = arith.constant 0 : i32
    return %c0_i32, %c0_i32_0 : i32, i32
  }
  func.func @transform_3(%arg0: i32) -> (i32, i32) {
    %c0_i32 = arith.constant 0 : i32
    %c0_i32_0 = arith.constant 0 : i32
    %c0_i32_1 = arith.constant 0 : i32
    return %c0_i32, %c0_i32_0 : i32, i32
  }
  func.func @transform_4(%arg0: i32) -> (i32, i32) {
    %c0_i32 = arith.constant 0 : i32
    %c0_i32_0 = arith.constant 0 : i32
    %c0_i32_1 = arith.constant 0 : i32
    return %c0_i32, %c0_i32_0 : i32, i32
  }
  func.func @transform_5(%arg0: i32) -> (i32, i32) {
    %c0_i32 = arith.constant 0 : i32
    %c0_i32_0 = arith.constant 0 : i32
    %c0_i32_1 = arith.constant 0 : i32
    return %c0_i32, %c0_i32_0 : i32, i32
  }
  func.func @transform_6(%arg0: i32) -> (i32, i32) {
    %c0_i32 = arith.constant 0 : i32
    %c0_i32_0 = arith.constant 0 : i32
    %c0_i32_1 = arith.constant 0 : i32
    return %c0_i32, %c0_i32_0 : i32, i32
  }
  func.func @transform_7(%arg0: i32) -> (i32, i32) {
    %c0_i32 = arith.constant 0 : i32
    %c0_i32_0 = arith.constant 0 : i32
    %c0_i32_1 = arith.constant 0 : i32
    return %c0_i32, %c0_i32_0 : i32, i32
  }
  func.func @transform_8(%arg0: i32) -> (i32, i32) {
    %c0_i32 = arith.constant 0 : i32
    %c0_i32_0 = arith.constant 0 : i32
    %c0_i32_1 = arith.constant 0 : i32
    return %c0_i32, %c0_i32_0 : i32, i32
  }
  func.func @transform_9(%arg0: i32) -> (i32, i32) {
    %c0_i32 = arith.constant 0 : i32
    %c0_i32_0 = arith.constant 0 : i32
    %c0_i32_1 = arith.constant 0 : i32
    return %c0_i32, %c0_i32_0 : i32, i32
  }
  func.func @transform_10(%arg0: i32) -> (i32, i32) {
    %c0_i32 = arith.constant 0 : i32
    %c0_i32_0 = arith.constant 0 : i32
    %c0_i32_1 = arith.constant 0 : i32
    return %c0_i32, %c0_i32_0 : i32, i32
  }
  func.func @transform_11(%arg0: i32) -> (i32, i32) {
    %c0_i32 = arith.constant 0 : i32
    %c0_i32_0 = arith.constant 0 : i32
    %c0_i32_1 = arith.constant 0 : i32
    return %c0_i32, %c0_i32_0 : i32, i32
  }
  func.func @transform_12(%arg0: i32) -> (i32, i32) {
    %c0_i32 = arith.constant 0 : i32
    %c0_i32_0 = arith.constant 0 : i32
    %c0_i32_1 = arith.constant 0 : i32
    return %c0_i32, %c0_i32_0 : i32, i32
  }
  func.func @transform_13(%arg0: i32) -> (i32, i32) {
    %c0_i32 = arith.constant 0 : i32
    %c0_i32_0 = arith.constant 0 : i32
    %c0_i32_1 = arith.constant 0 : i32
    return %c0_i32, %c0_i32_0 : i32, i32
  }
  func.func @transform_14(%arg0: i32) -> (i32, i32) {
    %c0_i32 = arith.constant 0 : i32
    %c0_i32_0 = arith.constant 0 : i32
    %c0_i32_1 = arith.constant 0 : i32
    return %c0_i32, %c0_i32_0 : i32, i32
  }
  func.func @transform_15(%arg0: i32) -> (i32, i32) {
    %c0_i32 = arith.constant 0 : i32
    %c0_i32_0 = arith.constant 0 : i32
    %c0_i32_1 = arith.constant 0 : i32
    return %c0_i32, %c0_i32_0 : i32, i32
  }
  func.func @transform_16(%arg0: i32) -> (i32, i32) {
    %c0_i32 = arith.constant 0 : i32
    %c0_i32_0 = arith.constant 0 : i32
    %c0_i32_1 = arith.constant 0 : i32
    return %c0_i32, %c0_i32_0 : i32, i32
  }
  func.func @transform_17(%arg0: i32) -> (i32, i32) {
    %c0_i32 = arith.constant 0 : i32
    %c0_i32_0 = arith.constant 0 : i32
    return %arg0, %c0_i32 : i32, i32
  }
  func.func @transform_18(%arg0: i32) -> (i32, i32) {
    %c0_i32 = arith.constant 0 : i32
    %c0_i32_0 = arith.constant 0 : i32
    return %arg0, %c0_i32 : i32, i32
  }
  func.func @transform_19(%arg0: i32) -> (i32, i32) {
    %c0_i32 = arith.constant 0 : i32
    %c0_i32_0 = arith.constant 0 : i32
    return %arg0, %c0_i32 : i32, i32
  }
  func.func @transform_20(%arg0: i32) -> (i32, i32) {
    %c0_i32 = arith.constant 0 : i32
    %c0_i32_0 = arith.constant 0 : i32
    return %arg0, %c0_i32 : i32, i32
  }
}

</mosaic_0001>

<bundles_post_ra>
// kernel: tpu_custom_call.1
= control target key start
LH: loop header
LB: loop body
LE: loop exit
PB: predicated region body
PF: predicated region fallthrough
CT: control target
= control target key end

     0   :  { %s17073_s0 = inlined_call_operand.<no memory space> [shape: f32[1], index: 0, kind: input, shape index: {}]   ;;  %s17074_s1 = inlined_call_operand.hbm [shape: bf16[16,2432], index: 1, kind: input, shape index: {}]   ;;  %s17075_s2 = inlined_call_operand.hbm [shape: bf16[2432,512], index: 2, kind: input, shape index: {}]   ;;  %s17076_s3 = inlined_call_operand.hbm [shape: f32[1,512], index: 3, kind: input, shape index: {}]   ;;  %s17077_s4 = inlined_call_operand.hbm [shape: bf16[512,256], index: 4, kind: input, shape index: {}]   ;;  %s17078_s5 = inlined_call_operand.hbm [shape: f32[1,256], index: 5, kind: input, shape index: {}]   ;;  %s17079_s6 = inlined_call_operand.hbm [shape: bf16[256,128], index: 6, kind: input, shape index: {}]   ;;  %s17080_s7 = inlined_call_operand.hbm [shape: f32[1,128], index: 7, kind: input, shape index: {}]   ;;  %s17081_s8 = inlined_call_operand.hbm [shape: bf16[16,256], index: 8, kind: input, shape index: {}]   ;;  %s17082_s9 = inlined_call_operand.hbm [shape: bf16[128,256], index: 9, kind: input, shape index: {}]   ;;  %s17083_s10 = inlined_call_operand.hbm [shape: f32[1,256], index: 10, kind: input, shape index: {}]   ;;  %s17084_s11 = inlined_call_operand.hbm [shape: bf16[256,512], index: 11, kind: input, shape index: {}]   ;;  %s17085_s12 = inlined_call_operand.hbm [shape: f32[1,512], index: 12, kind: input, shape index: {}]   ;;  %s17086_s13 = inlined_call_operand.hbm [shape: bf16[512,2432], index: 13, kind: input, shape index: {}]   ;;  %s17087_s14 = inlined_call_operand.hbm [shape: f32[1,2432], index: 14, kind: input, shape index: {}]   ;;  %s17088_s15 = inlined_call_operand.hbm [shape: f32[128,128], index: 15, kind: input, shape index: {}]   ;;  %s17089_s16 = inlined_call_operand.hbm [shape: f32[128,128], index: 16, kind: input, shape index: {}]   ;;  %s17090_s17 = inlined_call_operand.hbm [shape: f32[16,128], index: 17, kind: input, shape index: {}]   ;;  %s17091_s18 = inlined_call_operand.hbm [shape: bf16[16,2432], index: 18, kind: output, shape index: {0}]   ;;  %s17092_s19 = inlined_call_operand.hbm [shape: f32[16,128], index: 19, kind: output, shape index: {1}]   ;;  %s17093_s20 = inlined_call_operand.hbm [shape: f32[8,128], index: 20, kind: output, shape index: {2}]  }
   0x1   :  { %17105 = sst [smem:[#allocation45_spill]] %s17073_s0 }
   0x2   :  { %17106 = sst [smem:[#allocation46_spill]] %s17074_s1 }
   0x3   :  { %17107 = sst [smem:[#allocation47_spill]] %s17075_s2 }
   0x4   :  { %17108 = sst [smem:[#allocation48_spill]] %s17076_s3 }
   0x5   :  { %17109 = sst [smem:[#allocation49_spill]] %s17077_s4 }
   0x6   :  { %17110 = sst [smem:[#allocation50_spill]] %s17091_s18 }
   0x7   :  { %17111 = sst [smem:[#allocation51_spill]] %s17093_s20 }
   0x8   :  { %27 = vsyncpa [#allocation4], 0 }
   0x9   :  { %28 = vsyncpa [#allocation7], 0 }
   0xa   :  { %29 = vsyncpa [#allocation10], 0 }
   0xb   :  { %30 = vsyncpa [#allocation13], 0 }
   0xc   :  { %31 = vsyncpa [#allocation16], 0 }
   0xd   :  { %32 = vsyncpa [#allocation19], 0 }
   0xe   :  { %33 = vsyncpa [#allocation22], 0 }
   0xf   :  { %34 = vsyncpa [#allocation25], 0 }
  0x10   :  { %35 = vsyncpa [#allocation28], 0 }
  0x11   :  { %36 = vsyncpa [#allocation5], 0 }
  0x12   :  { %37 = vsyncpa [#allocation32], 0  ;;  %s16357_s1 = smov [#allocation6]   ;;  %s17112_s2 = sld [smem:[#allocation47_spill]] }
  0x13   :  { %s57_s22 = sshll.u32 %s16357_s1, 4  ;;  %s58_s22 = int_to_ptr.vmem [resolvable:$true] %s57_s22 }
  0x18   :  { %s15895_s25 = scalar_lea.hbm %s17112_s2, 77824 }
  0x19   :  { %p15896_p0 = scmp.ne.s32.totalorder %s17112_s2, %s15895_s25  ;;  %p15899_p1 = scmp.lt.u32.totalorder %s15895_s25, %s17112_s2 }
  0x1b   :  { %p15901_p2 = pnand %p15899_p1, %p15896_p0 }
  0x1d   :  { %15904 = shalt.err (!%p15901_p2)
}
  0x1e   :  { %s15905_s4 = scalar_lea.vmem %s58_s22, 77824  ;;  %p15910_p4 = scmp.lt.s32.totalorder %s58_s22, %s58_s22 }
  0x1f   :  { %p15906_p3 = scmp.ne.s32.totalorder %s58_s22, %s15905_s4  ;;  %p15911_p5 = scmp.lt.s32.totalorder %s15905_s4, %s15905_s4 }
  0x21   :  { %p15912_p6 = por %p15911_p5, %p15910_p4 }
  0x23   :  { %p15913_p7 = pnand %p15912_p6, %p15906_p3 }
  0x25   :  { %15916 = shalt.err (!%p15913_p7)
}
  0x26   :  { %s17100_s29 = smov 256   ;;  %s17101_s30 = smov 16  }
  0x27   :  { %63 = dma.hbm_to_vmem [thread:$0]  %s17112_s2, 77824, %s58_s22, [#allocation7], %s17100_s29, %s17100_s29, %s17101_s30  }
  0x28   :  { %s16360_s1 = smov [#allocation9]   ;;  %s17113_s3 = sld [smem:[#allocation49_spill]] }
  0x29   :  { %s79_s23 = sshll.u32 %s16360_s1, 4  ;;  %s80_s23 = int_to_ptr.vmem [resolvable:$true] %s79_s23 }
  0x2e   :  { %s15917_s26 = scalar_lea.hbm %s17113_s3, 8192 }
  0x2f   :  { %p15918_p8 = scmp.ne.s32.totalorder %s17113_s3, %s15917_s26  ;;  %p15921_p9 = scmp.lt.u32.totalorder %s15917_s26, %s17113_s3 }
  0x31   :  { %p15923_p10 = pnand %p15921_p9, %p15918_p8 }
  0x33   :  { %15926 = shalt.err (!%p15923_p10)
}
  0x34   :  { %s15927_s20 = scalar_lea.vmem %s80_s23, 8192  ;;  %p15932_p12 = scmp.lt.s32.totalorder %s80_s23, %s80_s23 }
  0x35   :  { %p15928_p11 = scmp.ne.s32.totalorder %s80_s23, %s15927_s20  ;;  %p15933_p13 = scmp.lt.s32.totalorder %s15927_s20, %s15927_s20 }
  0x37   :  { %p15934_p0 = por %p15933_p13, %p15932_p12 }
  0x39   :  { %p15935_p1 = pnand %p15934_p0, %p15928_p11 }
  0x3b   :  { %15938 = shalt.err (!%p15935_p1)
}
  0x3c   :  { %s17103_s22 = smov 128   ;;  %s16362_s2 = smov 8  }
  0x3d   :  { %85 = dma.hbm_to_vmem [thread:$0]  %s17113_s3, 8192, %s80_s23, [#allocation10], %s17103_s22, %s17103_s22, %s16362_s2  }
  0x3e   :  { %s16363_s18 = smov [#allocation12]   ;;  %s15939_s26 = scalar_lea.hbm %s17079_s6, 2048 }
  0x3f   :  { %s101_s1 = sshll.u32 %s16363_s18, 4  ;;  %p15940_p2 = scmp.ne.s32.totalorder %s17079_s6, %s15939_s26  ;;  %s102_s1 = int_to_ptr.vmem [resolvable:$true] %s101_s1 }
  0x40   :  { %p15943_p3 = scmp.lt.u32.totalorder %s15939_s26, %s17079_s6 }
  0x42   :  { %p15945_p4 = pnand %p15943_p3, %p15940_p2 }
  0x44   :  { %15948 = shalt.err (!%p15945_p4)
}
  0x45   :  { %s15949_s29 = scalar_lea.vmem %s102_s1, 2048  ;;  %p15954_p6 = scmp.lt.s32.totalorder %s102_s1, %s102_s1 }
  0x46   :  { %p15950_p5 = scmp.ne.s32.totalorder %s102_s1, %s15949_s29  ;;  %p15955_p7 = scmp.lt.s32.totalorder %s15949_s29, %s15949_s29 }
  0x48   :  { %p15956_p8 = por %p15955_p7, %p15954_p6 }
  0x4a   :  { %p15957_p9 = pnand %p15956_p8, %p15950_p5 }
  0x4c   :  { %15960 = shalt.err (!%p15957_p9)
}
  0x4d   :  { %s16364_s23 = smov 64   ;;  %s16365_s3 = smov 4  }
  0x4e   :  { %107 = dma.hbm_to_vmem [thread:$0]  %s17079_s6, 2048, %s102_s1, [#allocation13], %s16364_s23, %s16364_s23, %s16365_s3  }
  0x4f   :  { %s16366_s18 = smov [#allocation15]   ;;  %s16367_s25 = smov [#allocation18]  }
  0x50   :  { %s123_s24 = sshll.u32 %s16366_s18, 4  ;;  %s148_s26 = sshll.u32 %s16367_s25, 4  ;;  %s124_s24 = int_to_ptr.vmem [resolvable:$true] %s123_s24  ;;  %s149_s26 = int_to_ptr.vmem [resolvable:$true] %s148_s26 }
  0x51   :  { %s15961_s29 = scalar_lea.hbm %s17081_s8, 256 }
  0x52   :  { %p15962_p10 = scmp.ne.s32.totalorder %s17081_s8, %s15961_s29  ;;  %p15965_p11 = scmp.lt.u32.totalorder %s15961_s29, %s17081_s8 }
  0x54   :  { %p15967_p12 = pnand %p15965_p11, %p15962_p10 }
  0x56   :  { %15970 = shalt.err (!%p15967_p12)
}
  0x57   :  { %s15971_s6 = scalar_lea.vmem %s124_s24, 256  ;;  %p15976_p0 = scmp.lt.s32.totalorder %s124_s24, %s124_s24 }
  0x58   :  { %p15972_p13 = scmp.ne.s32.totalorder %s124_s24, %s15971_s6  ;;  %p15977_p1 = scmp.lt.s32.totalorder %s15971_s6, %s15971_s6 }
  0x5a   :  { %p15978_p2 = por %p15977_p1, %p15976_p0 }
  0x5c   :  { %p15979_p3 = pnand %p15978_p2, %p15972_p13 }
  0x5e   :  { %15982 = shalt.err (!%p15979_p3)
}
  0x5f   :  { %s17114_s1 = smov 128   ;;  %s15983_s22 = scalar_lea.hbm %s17083_s10, 32 }
  0x60   :  { %129 = dma.hbm_to_vmem [thread:$0]  %s17081_s8, 256, %s124_s24, [#allocation16], %s17114_s1, %s17114_s1, %s16362_s2  }
  0x61   :  { %p15984_p4 = scmp.ne.s32.totalorder %s17083_s10, %s15983_s22  ;;  %p15987_p5 = scmp.lt.u32.totalorder %s15983_s22, %s17083_s10 }
  0x63   :  { %p15989_p6 = pnand %p15987_p5, %p15984_p4 }
  0x65   :  { %15992 = shalt.err (!%p15989_p6)
}
  0x66   :  { %s15993_s29 = scalar_lea.vmem %s149_s26, 32  ;;  %p15998_p8 = scmp.lt.s32.totalorder %s149_s26, %s149_s26 }
  0x67   :  { %p15994_p7 = scmp.ne.s32.totalorder %s149_s26, %s15993_s29  ;;  %p15999_p9 = scmp.lt.s32.totalorder %s15993_s29, %s15993_s29 }
  0x69   :  { %p16000_p10 = por %p15999_p9, %p15998_p8 }
  0x6b   :  { %p16001_p11 = pnand %p16000_p10, %p15994_p7 }
  0x6d   :  { %16004 = shalt.err (!%p16001_p11)
}
  0x6e   :  { %151 = dma.hbm_to_vmem [thread:$0]  %s17083_s10, 32, %s149_s26, [#allocation19]  }
  0x6f   :  { %s16368_s28 = smov [#allocation21]   ;;  %s16369_s6 = smov [#allocation24]  }
  0x70   :  { %s170_s4 = sshll.u32 %s16368_s28, 4  ;;  %s192_s3 = sshll.u32 %s16369_s6, 4  ;;  %s171_s4 = int_to_ptr.vmem [resolvable:$true] %s170_s4  ;;  %s193_s3 = int_to_ptr.vmem [resolvable:$true] %s192_s3 }
  0x71   :  { %s16005_s30 = scalar_lea.hbm %s17085_s12, 64 }
  0x72   :  { %p16006_p12 = scmp.ne.s32.totalorder %s17085_s12, %s16005_s30  ;;  %p16009_p13 = scmp.lt.u32.totalorder %s16005_s30, %s17085_s12 }
  0x74   :  { %p16011_p0 = pnand %p16009_p13, %p16006_p12 }
  0x76   :  { %16014 = shalt.err (!%p16011_p0)
}
  0x77   :  { %s16015_s10 = scalar_lea.vmem %s171_s4, 64  ;;  %p16020_p2 = scmp.lt.s32.totalorder %s171_s4, %s171_s4 }
  0x78   :  { %p16016_p1 = scmp.ne.s32.totalorder %s171_s4, %s16015_s10  ;;  %p16021_p3 = scmp.lt.s32.totalorder %s16015_s10, %s16015_s10 }
  0x7a   :  { %p16022_p4 = por %p16021_p3, %p16020_p2 }
  0x7c   :  { %p16023_p5 = pnand %p16022_p4, %p16016_p1 }
  0x7e   :  { %16026 = shalt.err (!%p16023_p5)
}
  0x7f   :  { %173 = dma.hbm_to_vmem [thread:$0]  %s17085_s12, 64, %s171_s4, [#allocation22]  }
  0x80   :  { %s16027_s24 = scalar_lea.hbm %s17087_s14, 304 }
  0x81   :  { %p16028_p6 = scmp.ne.s32.totalorder %s17087_s14, %s16027_s24  ;;  %p16031_p7 = scmp.lt.u32.totalorder %s16027_s24, %s17087_s14 }
  0x83   :  { %p16033_p8 = pnand %p16031_p7, %p16028_p6 }
  0x85   :  { %16036 = shalt.err (!%p16033_p8)
}
  0x86   :  { %s16037_s30 = scalar_lea.vmem %s193_s3, 304  ;;  %s16041_s22 = scalar_lea.vmem %s193_s3, 320 }
  0x87   :  { %p16038_p9 = scmp.ne.s32.totalorder %s193_s3, %s16037_s30  ;;  %p16042_p10 = scmp.lt.s32.totalorder %s193_s3, %s193_s3 }
  0x88   :  { %p16043_p11 = scmp.lt.s32.totalorder %s16041_s22, %s16037_s30 }
  0x8a   :  { %p16044_p12 = por %p16043_p11, %p16042_p10 }
  0x8c   :  { %p16045_p13 = pnand %p16044_p12, %p16038_p9 }
  0x8e   :  { %16048 = shalt.err (!%p16045_p13)
}
  0x8f   :  { %195 = dma.hbm_to_vmem [thread:$0]  %s17087_s14, 304, %s193_s3, [#allocation25]  }
  0x90   :  { %s16370_s18 = smov [#allocation27]   ;;  %s16371_s20 = smov [#allocation3]  }
  0x91   :  { %s213_s25 = sshll.u32 %s16370_s18, 4  ;;  %s45_s10 = sshll.u32 %s16371_s20, 4  ;;  %s214_s25 = int_to_ptr.vmem [resolvable:$true] %s213_s25  ;;  %s46_s10 = int_to_ptr.vmem [resolvable:$true] %s45_s10 }
  0x92   :  { %s16049_s29 = scalar_lea.hbm %s17089_s16, 2048 }
  0x93   :  { %p16050_p0 = scmp.ne.s32.totalorder %s17089_s16, %s16049_s29  ;;  %p16053_p1 = scmp.lt.u32.totalorder %s16049_s29, %s17089_s16 }
  0x95   :  { %p16055_p2 = pnand %p16053_p1, %p16050_p0 }
  0x97   :  { %16058 = shalt.err (!%p16055_p2)
}
  0x98   :  { %s16059_s14 = scalar_lea.vmem %s214_s25, 2048  ;;  %p16064_p4 = scmp.lt.s32.totalorder %s214_s25, %s214_s25 }
  0x99   :  { %p16060_p3 = scmp.ne.s32.totalorder %s214_s25, %s16059_s14  ;;  %p16065_p5 = scmp.lt.s32.totalorder %s16059_s14, %s16059_s14 }
  0x9b   :  { %p16066_p6 = por %p16065_p5, %p16064_p4 }
  0x9d   :  { %p16067_p7 = pnand %p16066_p6, %p16060_p3 }
  0x9f   :  { %16070 = shalt.err (!%p16067_p7)
}
  0xa0   :  { %219 = dma.hbm_to_vmem [thread:$0]  %s17089_s16, 2048, %s214_s25, [#allocation28], %s17114_s1, %s17114_s1, %s16362_s2  }
  0xa1   :  { %s17115_s22 = sld [smem:[#allocation46_spill]] }
  0xa7   :  { %s16071_s12 = scalar_lea.hbm %s17115_s22, 2432 }
  0xa8   :  { %p16072_p8 = scmp.ne.s32.totalorder %s17115_s22, %s16071_s12  ;;  %p16075_p9 = scmp.lt.u32.totalorder %s16071_s12, %s17115_s22 }
  0xaa   :  { %p16077_p10 = pnand %p16075_p9, %p16072_p8 }
  0xac   :  { %16080 = shalt.err (!%p16077_p10)
}
  0xad   :  { %s16081_s27 = scalar_lea.vmem %s46_s10, 2432  ;;  %p16086_p12 = scmp.lt.s32.totalorder %s46_s10, %s46_s10 }
  0xae   :  { %p16082_p11 = scmp.ne.s32.totalorder %s46_s10, %s16081_s27  ;;  %p16087_p13 = scmp.lt.s32.totalorder %s16081_s27, %s16081_s27 }
  0xb0   :  { %p16088_p0 = por %p16087_p13, %p16086_p12 }
  0xb2   :  { %p16089_p1 = pnand %p16088_p0, %p16082_p11 }
  0xb4   :  { %16092 = shalt.err (!%p16089_p1)
}
  0xb5   :  { %s16372_s16 = smov 1216   ;;  %s16373_s25 = smov 76  }
  0xb6   :  { %51 = dma.hbm_to_vmem [thread:$0]  %s17115_s22, 2432, %s46_s10, [#allocation4], %s16372_s16, %s16372_s16, %s16373_s25  }
  0xb7   :  { %s16374_s24 = smov [#allocation8]   ;;  %s16375_s6 = smov [#allocation11]  }
  0xb8   :  { %s70_s28 = sshll.u32 %s16374_s24, 4  ;;  %s92_s14 = sshll.u32 %s16375_s6, 4  ;;  %s71_s28 = int_to_ptr.vmem [resolvable:$true] %s70_s28  ;;  %s93_s14 = int_to_ptr.vmem [resolvable:$true] %s92_s14 }
  0xb9   :  { %s17116_s21 = sld [smem:[#allocation48_spill]] }
  0xbf   :  { %s16093_s30 = scalar_lea.hbm %s17116_s21, 64 }
  0xc0   :  { %p16094_p2 = scmp.ne.s32.totalorder %s17116_s21, %s16093_s30  ;;  %p16097_p3 = scmp.lt.u32.totalorder %s16093_s30, %s17116_s21 }
  0xc2   :  { %p16099_p4 = pnand %p16097_p3, %p16094_p2 }
  0xc4   :  { %16102 = shalt.err (!%p16099_p4)
}
  0xc5   :  { %s16103_s10 = scalar_lea.vmem %s71_s28, 64  ;;  %p16108_p6 = scmp.lt.s32.totalorder %s71_s28, %s71_s28 }
  0xc6   :  { %p16104_p5 = scmp.ne.s32.totalorder %s71_s28, %s16103_s10  ;;  %p16109_p7 = scmp.lt.s32.totalorder %s16103_s10, %s16103_s10 }
  0xc8   :  { %p16110_p8 = por %p16109_p7, %p16108_p6 }
  0xca   :  { %p16111_p9 = pnand %p16110_p8, %p16104_p5 }
  0xcc   :  { %16114 = shalt.err (!%p16111_p9)
}
  0xcd   :  { %73 = dma.hbm_to_vmem [thread:$0]  %s17116_s21, 64, %s71_s28, [#allocation7]  }
  0xce   :  { %s16115_s8 = scalar_lea.hbm %s17078_s5, 32 }
  0xcf   :  { %p16116_p10 = scmp.ne.s32.totalorder %s17078_s5, %s16115_s8  ;;  %p16119_p11 = scmp.lt.u32.totalorder %s16115_s8, %s17078_s5 }
  0xd1   :  { %p16121_p12 = pnand %p16119_p11, %p16116_p10 }
  0xd3   :  { %16124 = shalt.err (!%p16121_p12)
}
  0xd4   :  { %s16125_s30 = scalar_lea.vmem %s93_s14, 32  ;;  %p16130_p0 = scmp.lt.s32.totalorder %s93_s14, %s93_s14 }
  0xd5   :  { %p16126_p13 = scmp.ne.s32.totalorder %s93_s14, %s16125_s30  ;;  %p16131_p1 = scmp.lt.s32.totalorder %s16125_s30, %s16125_s30 }
  0xd7   :  { %p16132_p2 = por %p16131_p1, %p16130_p0 }
  0xd9   :  { %p16133_p3 = pnand %p16132_p2, %p16126_p13 }
  0xdb   :  { %16136 = shalt.err (!%p16133_p3)
}
  0xdc   :  { %95 = dma.hbm_to_vmem [thread:$0]  %s17078_s5, 32, %s93_s14, [#allocation10]  }
  0xdd   :  { %s16376_s12 = smov [#allocation14]   ;;  %s16377_s18 = smov [#allocation17]  }
  0xde   :  { %s114_s4 = sshll.u32 %s16376_s12, 4  ;;  %s135_s20 = sshll.u32 %s16377_s18, 4  ;;  %s115_s4 = int_to_ptr.vmem [resolvable:$true] %s114_s4  ;;  %s136_s20 = int_to_ptr.vmem [resolvable:$true] %s135_s20 }
  0xdf   :  { %s16137_s26 = scalar_lea.hbm %s17080_s7, 16 }
  0xe0   :  { %p16138_p4 = scmp.ne.s32.totalorder %s17080_s7, %s16137_s26  ;;  %p16141_p5 = scmp.lt.u32.totalorder %s16137_s26, %s17080_s7 }
  0xe2   :  { %p16143_p6 = pnand %p16141_p5, %p16138_p4 }
  0xe4   :  { %16146 = shalt.err (!%p16143_p6)
}
  0xe5   :  { %s16147_s5 = scalar_lea.vmem %s115_s4, 16  ;;  %s16151_s14 = scalar_lea.vmem %s115_s4, 32 }
  0xe6   :  { %p16148_p7 = scmp.ne.s32.totalorder %s115_s4, %s16147_s5  ;;  %p16152_p8 = scmp.lt.s32.totalorder %s115_s4, %s115_s4 }
  0xe7   :  { %p16153_p9 = scmp.lt.s32.totalorder %s16151_s14, %s16147_s5 }
  0xe9   :  { %p16154_p10 = por %p16153_p9, %p16152_p8 }
  0xeb   :  { %p16155_p11 = pnand %p16154_p10, %p16148_p7 }
  0xed   :  { %16158 = shalt.err (!%p16155_p11)
}
  0xee   :  { %117 = dma.hbm_to_vmem [thread:$0]  %s17080_s7, 16, %s115_s4, [#allocation13]  }
  0xef   :  { %s16159_s28 = scalar_lea.hbm %s17082_s9, 2048 }
  0xf0   :  { %p16160_p12 = scmp.ne.s32.totalorder %s17082_s9, %s16159_s28  ;;  %p16163_p13 = scmp.lt.u32.totalorder %s16159_s28, %s17082_s9 }
  0xf2   :  { %p16165_p0 = pnand %p16163_p13, %p16160_p12 }
  0xf4   :  { %16168 = shalt.err (!%p16165_p0)
}
  0xf5   :  { %s16169_s22 = scalar_lea.vmem %s136_s20, 2048  ;;  %p16174_p2 = scmp.lt.s32.totalorder %s136_s20, %s136_s20 }
  0xf6   :  { %p16170_p1 = scmp.ne.s32.totalorder %s136_s20, %s16169_s22  ;;  %p16175_p3 = scmp.lt.s32.totalorder %s16169_s22, %s16169_s22 }
  0xf8   :  { %p16176_p4 = por %p16175_p3, %p16174_p2 }
  0xfa   :  { %p16177_p5 = pnand %p16176_p4, %p16170_p1 }
  0xfc   :  { %16180 = shalt.err (!%p16177_p5)
}
  0xfd   :  { %141 = dma.hbm_to_vmem [thread:$0]  %s17082_s9, 2048, %s136_s20, [#allocation16], %s17114_s1, %s17114_s1, %s16362_s2  }
  0xfe   :  { %s16378_s26 = smov [#allocation20]   ;;  %s16379_s29 = smov [#allocation23]  }
  0xff   :  { %s157_s27 = sshll.u32 %s16378_s26, 4  ;;  %s179_s8 = sshll.u32 %s16379_s29, 4  ;;  %s158_s27 = int_to_ptr.vmem [resolvable:$true] %s157_s27  ;;  %s180_s8 = int_to_ptr.vmem [resolvable:$true] %s179_s8 }
 0x100   :  { %s16181_s14 = scalar_lea.hbm %s17084_s11, 8192 }
 0x101   :  { %p16182_p6 = scmp.ne.s32.totalorder %s17084_s11, %s16181_s14  ;;  %p16185_p7 = scmp.lt.u32.totalorder %s16181_s14, %s17084_s11 }
 0x103   :  { %p16187_p8 = pnand %p16185_p7, %p16182_p6 }
 0x105   :  { %16190 = shalt.err (!%p16187_p8)
}
 0x106   :  { %s16191_s9 = scalar_lea.vmem %s158_s27, 8192  ;;  %p16196_p10 = scmp.lt.s32.totalorder %s158_s27, %s158_s27 }
 0x107   :  { %p16192_p9 = scmp.ne.s32.totalorder %s158_s27, %s16191_s9  ;;  %p16197_p11 = scmp.lt.s32.totalorder %s16191_s9, %s16191_s9 }
 0x109   :  { %p16198_p12 = por %p16197_p11, %p16196_p10 }
 0x10b   :  { %p16199_p13 = pnand %p16198_p12, %p16192_p9 }
 0x10d   :  { %16202 = shalt.err (!%p16199_p13)
}
 0x10e   :  { %s17117_s20 = smov 16   ;;  %s17118_s28 = smov 256  }
 0x10f   :  { %163 = dma.hbm_to_vmem [thread:$0]  %s17084_s11, 8192, %s158_s27, [#allocation19], %s17118_s28, %s17118_s28, %s17117_s20  }
 0x110   :  { %s16203_s22 = scalar_lea.hbm %s17086_s13, 77824 }
 0x111   :  { %p16204_p0 = scmp.ne.s32.totalorder %s17086_s13, %s16203_s22  ;;  %p16207_p1 = scmp.lt.u32.totalorder %s16203_s22, %s17086_s13 }
 0x113   :  { %p16209_p2 = pnand %p16207_p1, %p16204_p0 }
 0x115   :  { %16212 = shalt.err (!%p16209_p2)
}
 0x116   :  { %s16213_s24 = scalar_lea.vmem %s180_s8, 77824  ;;  %p16218_p4 = scmp.lt.s32.totalorder %s180_s8, %s180_s8 }
 0x117   :  { %p16214_p3 = scmp.ne.s32.totalorder %s180_s8, %s16213_s24  ;;  %p16219_p5 = scmp.lt.s32.totalorder %s16213_s24, %s16213_s24 }
 0x119   :  { %p16220_p6 = por %p16219_p5, %p16218_p4 }
 0x11b   :  { %p16221_p7 = pnand %p16220_p6, %p16214_p3 }
 0x11d   :  { %16224 = shalt.err (!%p16221_p7)
}
 0x11e   :  { %185 = dma.hbm_to_vmem [thread:$0]  %s17086_s13, 77824, %s180_s8, [#allocation22], %s16372_s16, %s16372_s16, %s16373_s25  }
 0x11f   :  { %s16380_s5 = smov [#allocation26]   ;;  %s16381_s6 = smov [#allocation29]  }
 0x120   :  { %s201_s14 = sshll.u32 %s16380_s5, 4  ;;  %s225_s3 = sshll.u32 %s16381_s6, 4  ;;  %s202_s14 = int_to_ptr.vmem [resolvable:$true] %s201_s14  ;;  %s226_s3 = int_to_ptr.vmem [resolvable:$true] %s225_s3 }
 0x121   :  { %s16225_s9 = scalar_lea.hbm %s17088_s15, 2048 }
 0x122   :  { %p16226_p8 = scmp.ne.s32.totalorder %s17088_s15, %s16225_s9  ;;  %p16229_p9 = scmp.lt.u32.totalorder %s16225_s9, %s17088_s15 }
 0x124   :  { %p16231_p10 = pnand %p16229_p9, %p16226_p8 }
 0x126   :  { %16234 = shalt.err (!%p16231_p10)
}
 0x127   :  { %s16235_s13 = scalar_lea.vmem %s202_s14, 2048  ;;  %p16240_p12 = scmp.lt.s32.totalorder %s202_s14, %s202_s14 }
 0x128   :  { %p16236_p11 = scmp.ne.s32.totalorder %s202_s14, %s16235_s13  ;;  %p16241_p13 = scmp.lt.s32.totalorder %s16235_s13, %s16235_s13 }
 0x12a   :  { %p16242_p0 = por %p16241_p13, %p16240_p12 }
 0x12c   :  { %p16243_p1 = pnand %p16242_p0, %p16236_p11 }
 0x12e   :  { %16246 = shalt.err (!%p16243_p1)
}
 0x12f   :  { %207 = dma.hbm_to_vmem [thread:$0]  %s17088_s15, 2048, %s202_s14, [#allocation25], %s17114_s1, %s17114_s1, %s16362_s2  }
 0x130   :  { %s16247_s4 = scalar_lea.hbm %s17090_s17, 256 }
 0x131   :  { %p16248_p2 = scmp.ne.s32.totalorder %s17090_s17, %s16247_s4  ;;  %p16251_p3 = scmp.lt.u32.totalorder %s16247_s4, %s17090_s17 }
 0x133   :  { %p16253_p4 = pnand %p16251_p3, %p16248_p2 }
 0x135   :  { %16256 = shalt.err (!%p16253_p4)
}
 0x136   :  { %s16257_s27 = scalar_lea.vmem %s226_s3, 256  ;;  %p16262_p6 = scmp.lt.s32.totalorder %s226_s3, %s226_s3 }
 0x137   :  { %p16258_p5 = scmp.ne.s32.totalorder %s226_s3, %s16257_s27  ;;  %p16263_p7 = scmp.lt.s32.totalorder %s16257_s27, %s16257_s27 }
 0x139   :  { %p16264_p8 = por %p16263_p7, %p16262_p6 }
 0x13b   :  { %p16265_p9 = pnand %p16264_p8, %p16258_p5 }
 0x13d   :  { %16268 = shalt.err (!%p16265_p9)
}
 0x13e   :  { %231 = dma.hbm_to_vmem [thread:$0]  %s17090_s17, 256, %s226_s3, [#allocation28], %s17114_s1, %s17114_s1, %s16362_s2  }
 0x13f   :  { %16335 = dma.done.wait [#allocation4], 2432  }
 0x140   :  { %16336 = vsyncadd [#allocation4], 4294964864 }
 0x141   :  { %16337 = dma.done.wait [#allocation7], 77888  }
 0x142   :  { %16338 = vsyncadd [#allocation7], 4294889408 }
 0x143   :  { %16339 = dma.done.wait [#allocation10], 8224  }
 0x144   :  { %16340 = vsyncadd [#allocation10], 4294959072 }
 0x145   :  { %16341 = dma.done.wait [#allocation13], 2064  }
 0x146   :  { %16342 = vsyncadd [#allocation13], 4294965232 }
 0x147   :  { %16343 = dma.done.wait [#allocation16], 2304  }
 0x148   :  { %16344 = vsyncadd [#allocation16], 4294964992 }
 0x149   :  { %16345 = dma.done.wait [#allocation19], 8224  }
 0x14a   :  { %16346 = vsyncadd [#allocation19], 4294959072 }
 0x14b   :  { %16347 = dma.done.wait [#allocation22], 77888  }
 0x14c   :  { %16348 = vsyncadd [#allocation22], 4294889408 }
 0x14d   :  { %16349 = dma.done.wait [#allocation25], 2352  }
 0x14e   :  { %16350 = vsyncadd [#allocation25], 4294964944 }
 0x14f   :  { %16351 = dma.done.wait [#allocation28], 2304  }
 0x150   :  { %16352 = vsyncadd [#allocation28], 4294964992  ;;  %v16382_v0 = vmov 0   ;;  %v13641_v1 = vld [vmem:[#allocation6 + $0x4] ss:$16 sps:$4 sm:$0xff]   ;;  %s17119_s6 = sld [smem:[#allocation45_spill]] }
 0x151   :  { %4498 = vmatprep.mubr.bf16.mxu1 %v16382_v0  ;;  %v13643_v2 = vld [vmem:[#allocation6 + $0x1204] ss:$16 sps:$4 sm:$0xff]   ;;  %4079 = vmatprep.subr.bf16.mxu0 %v13641_v1  ;;  %v13645_v3 = vld [vmem:[#allocation6] ss:$16 sps:$4 sm:$0xff]   ;;  %v13694_v34 = vld [vmem:[#allocation6 + $0xc] ss:$16 sps:$4 sm:$0xff]  }
 0x152   :  { %v13646_v4 = vld [vmem:[#allocation6 + $0x1200] ss:$16 sps:$4 sm:$0xff]   ;;  %4466 = vmatprep.subr.bf16.mxu1 %v13643_v2  ;;  %v13647_v5 = vld [vmem:[#allocation6 + $0x24] ss:$16 sps:$4 sm:$0xff]   ;;  %4080 = vmatpush1.bf16.msra.mxu0 %v13645_v3  ;;  %v13692_v36 = vld [vmem:[#allocation6 + $0x8] ss:$16 sps:$4 sm:$0xff]  }
 0x153   :  { %4467 = vmatpush1.bf16.msra.mxu1 %v13646_v4  ;;  %v13649_v6 = vld [vmem:[#allocation6 + $0x1224] ss:$16 sps:$4 sm:$0xff]   ;;  %v13651_v7 = vld [vmem:[#allocation6 + $0x20] ss:$16 sps:$4 sm:$0xff]   ;;  %4081 = vmatprep.subr.bf16.mxu0 %v13647_v5  ;;  %v13700_v39 = vld [vmem:[#allocation6 + $0x2c] ss:$16 sps:$4 sm:$0xff]  }
 0x154   :  { %v13652_v8 = vld [vmem:[#allocation6 + $0x1220] ss:$16 sps:$4 sm:$0xff]   ;;  %4468 = vmatprep.subr.bf16.mxu1 %v13649_v6  ;;  %v13653_v9 = vld [vmem:[#allocation6 + $0x44] ss:$16 sps:$4 sm:$0xff]   ;;  %v13698_v40 = vld [vmem:[#allocation6 + $0x28] ss:$16 sps:$4 sm:$0xff]  }
 0x155   :  { %v13655_v10 = vld [vmem:[#allocation6 + $0x1244] ss:$16 sps:$4 sm:$0xff]   ;;  %v13657_v11 = vld [vmem:[#allocation6 + $0x40] ss:$16 sps:$4 sm:$0xff]   ;;  %v13706_v43 = vld [vmem:[#allocation6 + $0x4c] ss:$16 sps:$4 sm:$0xff]  }
 0x156   :  { %v13658_v12 = vld [vmem:[#allocation6 + $0x1240] ss:$16 sps:$4 sm:$0xff]   ;;  %4082 = vmatpush1.bf16.msra.mxu0 %v13651_v7  ;;  %v13659_v13 = vld [vmem:[#allocation6 + $0x64] ss:$16 sps:$4 sm:$0xff]   ;;  %v13704_v44 = vld [vmem:[#allocation6 + $0x48] ss:$16 sps:$4 sm:$0xff]  }
 0x157   :  { %4469 = vmatpush1.bf16.msra.mxu1 %v13652_v8  ;;  %4083 = vmatprep.subr.bf16.mxu0 %v13653_v9  ;;  %v13661_v14 = vld [vmem:[#allocation6 + $0x1264] ss:$16 sps:$4 sm:$0xff]   ;;  %v13663_v15 = vld [vmem:[#allocation6 + $0x60] ss:$16 sps:$4 sm:$0xff]   ;;  %v13712_v47 = vld [vmem:[#allocation6 + $0x6c] ss:$16 sps:$4 sm:$0xff]  }
 0x158   :  { %4470 = vmatprep.subr.bf16.mxu1 %v13655_v10  ;;  %v13664_v16 = vld [vmem:[#allocation6 + $0x1260] ss:$16 sps:$4 sm:$0xff]   ;;  %v13665_v17 = vld [vmem:[#allocation6 + $0x84] ss:$16 sps:$4 sm:$0xff]   ;;  %v13710_v48 = vld [vmem:[#allocation6 + $0x68] ss:$16 sps:$4 sm:$0xff]  }
 0x159   :  { %v13667_v18 = vld [vmem:[#allocation6 + $0x1284] ss:$16 sps:$4 sm:$0xff]   ;;  %v13669_v19 = vld [vmem:[#allocation6 + $0x80] ss:$16 sps:$4 sm:$0xff]   ;;  %v13740_v51 = vld [vmem:[#allocation3 + $0x4] ss:$76 sps:$4 sm:$0xff]  }
 0x15a   :  { %4084 = vmatpush1.bf16.msra.mxu0 %v13657_v11  ;;  %v13670_v20 = vld [vmem:[#allocation6 + $0x1280] ss:$16 sps:$4 sm:$0xff]   ;;  %v13671_v21 = vld [vmem:[#allocation6 + $0xa4] ss:$16 sps:$4 sm:$0xff]   ;;  %v13718_v52 = vld [vmem:[#allocation6 + $0x8c] ss:$16 sps:$4 sm:$0xff]   ;;  %4111 = vmatprep.mubr.bf16.mxu0 %v13740_v51 }
 0x15b   :  { %4471 = vmatpush1.bf16.msra.mxu1 %v13658_v12  ;;  %4085 = vmatprep.subr.bf16.mxu0 %v13659_v13  ;;  %v13673_v22 = vld [vmem:[#allocation6 + $0x12a4] ss:$16 sps:$4 sm:$0xff]   ;;  %v13675_v23 = vld [vmem:[#allocation6 + $0xa0] ss:$16 sps:$4 sm:$0xff]   ;;  %v13716_v53 = vld [vmem:[#allocation6 + $0x88] ss:$16 sps:$4 sm:$0xff]  }
 0x15c   :  { %4472 = vmatprep.subr.bf16.mxu1 %v13661_v14  ;;  %v13676_v24 = vld [vmem:[#allocation6 + $0x12a0] ss:$16 sps:$4 sm:$0xff]   ;;  %v13677_v25 = vld [vmem:[#allocation6 + $0xc4] ss:$16 sps:$4 sm:$0xff]   ;;  %v13724_v56 = vld [vmem:[#allocation6 + $0xac] ss:$16 sps:$4 sm:$0xff]  }
 0x15d   :  { %v13679_v26 = vld [vmem:[#allocation6 + $0x12c4] ss:$16 sps:$4 sm:$0xff]   ;;  %v13681_v27 = vld [vmem:[#allocation6 + $0xc0] ss:$16 sps:$4 sm:$0xff]   ;;  %v13722_v57 = vld [vmem:[#allocation6 + $0xa8] ss:$16 sps:$4 sm:$0xff]  }
 0x15e   :  { %4086 = vmatpush1.bf16.msra.mxu0 %v13663_v15  ;;  %v13682_v28 = vld [vmem:[#allocation6 + $0x12c0] ss:$16 sps:$4 sm:$0xff]   ;;  %v13683_v29 = vld [vmem:[#allocation6 + $0xe4] ss:$16 sps:$4 sm:$0xff]   ;;  %v13730_v60 = vld [vmem:[#allocation6 + $0xcc] ss:$16 sps:$4 sm:$0xff]  }
 0x15f   :  { %4473 = vmatpush1.bf16.msra.mxu1 %v13664_v16  ;;  %4087 = vmatprep.subr.bf16.mxu0 %v13665_v17  ;;  %v13685_v30 = vld [vmem:[#allocation6 + $0x12e4] ss:$16 sps:$4 sm:$0xff]   ;;  %v13687_v31 = vld [vmem:[#allocation6 + $0xe0] ss:$16 sps:$4 sm:$0xff]   ;;  %v13728_v61 = vld [vmem:[#allocation6 + $0xc8] ss:$16 sps:$4 sm:$0xff]  }
 0x160   :  { %4474 = vmatprep.subr.bf16.mxu1 %v13667_v18  ;;  %v13688_v32 = vld [vmem:[#allocation6 + $0x12e0] ss:$16 sps:$4 sm:$0xff]   ;;  %v13689_v33 = vld [vmem:[#allocation6 + $0x104] ss:$16 sps:$4 sm:$0xff]   ;;  %v13736_v1 = vld [vmem:[#allocation6 + $0xec] ss:$16 sps:$4 sm:$0xff]  }
 0x161   :  { %v13691_v35 = vld [vmem:[#allocation3 + $0x48] ss:$76 sps:$4 sm:$0xff]   ;;  %v13696_v38 = vld [vmem:[#allocation6 + $0x124] ss:$16 sps:$4 sm:$0xff]   ;;  %v13734_v2 = vld [vmem:[#allocation6 + $0xe8] ss:$16 sps:$4 sm:$0xff]  }
 0x162   :  { %4088 = vmatpush1.bf16.msra.mxu0 %v13669_v19  ;;  %v13695_v37 = vld [vmem:[#allocation6 + $0x100] ss:$16 sps:$4 sm:$0xff]   ;;  %v13702_v42 = vld [vmem:[#allocation6 + $0x144] ss:$16 sps:$4 sm:$0xff]   ;;  %v13746_v5 = vld [vmem:[#allocation6 + $0x10c] ss:$16 sps:$4 sm:$0xff]  }
 0x163   :  { %4475 = vmatpush1.bf16.msra.mxu1 %v13670_v20  ;;  %4089 = vmatprep.subr.bf16.mxu0 %v13671_v21  ;;  %v13701_v41 = vld [vmem:[#allocation6 + $0x120] ss:$16 sps:$4 sm:$0xff]   ;;  %v13708_v46 = vld [vmem:[#allocation6 + $0x164] ss:$16 sps:$4 sm:$0xff]   ;;  %v13744_v8 = vld [vmem:[#allocation6 + $0x108] ss:$16 sps:$4 sm:$0xff]  }
 0x164   :  { %4476 = vmatprep.subr.bf16.mxu1 %v13673_v22  ;;  %v13707_v45 = vld [vmem:[#allocation6 + $0x140] ss:$16 sps:$4 sm:$0xff]   ;;  %v13714_v50 = vld [vmem:[#allocation6 + $0x184] ss:$16 sps:$4 sm:$0xff]   ;;  %v13752_v10 = vld [vmem:[#allocation6 + $0x12c] ss:$16 sps:$4 sm:$0xff]  }
 0x165   :  { %v13713_v49 = vld [vmem:[#allocation6 + $0x160] ss:$16 sps:$4 sm:$0xff]   ;;  %v13720_v55 = vld [vmem:[#allocation6 + $0x1a4] ss:$16 sps:$4 sm:$0xff]   ;;  %v13750_v12 = vld [vmem:[#allocation6 + $0x128] ss:$16 sps:$4 sm:$0xff]  }
 0x166   :  { %4090 = vmatpush1.bf16.msra.mxu0 %v13675_v23  ;;  %v13719_v54 = vld [vmem:[#allocation6 + $0x180] ss:$16 sps:$4 sm:$0xff]   ;;  %v13726_v59 = vld [vmem:[#allocation6 + $0x1c4] ss:$16 sps:$4 sm:$0xff]   ;;  %v13758_v14 = vld [vmem:[#allocation6 + $0x14c] ss:$16 sps:$4 sm:$0xff]  }
 0x167   :  { %4477 = vmatpush1.bf16.msra.mxu1 %v13676_v24  ;;  %4091 = vmatprep.subr.bf16.mxu0 %v13677_v25  ;;  %v13725_v58 = vld [vmem:[#allocation6 + $0x1a0] ss:$16 sps:$4 sm:$0xff]   ;;  %v13732_v63 = vld [vmem:[#allocation6 + $0x1e4] ss:$16 sps:$4 sm:$0xff]   ;;  %v13756_v16 = vld [vmem:[#allocation6 + $0x148] ss:$16 sps:$4 sm:$0xff]  }
 0x168   :  { %4478 = vmatprep.subr.bf16.mxu1 %v13679_v26  ;;  %v13731_v62 = vld [vmem:[#allocation6 + $0x1c0] ss:$16 sps:$4 sm:$0xff]   ;;  %v13743_v4 = vld [vmem:[#allocation6 + $0x204] ss:$16 sps:$4 sm:$0xff]   ;;  %v13764_v18 = vld [vmem:[#allocation6 + $0x16c] ss:$16 sps:$4 sm:$0xff]  }
 0x169   :  { %v13737_v3 = vld [vmem:[#allocation6 + $0x1e0] ss:$16 sps:$4 sm:$0xff]   ;;  %v16731_v6 = vld [vmem:[#allocation3] ss:$76 sps:$4 sm:$0xff]   ;;  %v13770_v22 = vld [vmem:[#allocation6 + $0x18c] ss:$16 sps:$4 sm:$0xff]  }
 0x16a   :  { %4092 = vmatpush1.bf16.msra.mxu0 %v13681_v27  ;;  %v13741_v7 = vld [vmem:[#allocation6 + $0x200] ss:$16 sps:$4 sm:$0xff]   ;;  %v13749_v9 = vld [vmem:[#allocation6 + $0x224] ss:$16 sps:$4 sm:$0xff]   ;;  %v13762_v20 = vld [vmem:[#allocation6 + $0x168] ss:$16 sps:$4 sm:$0xff]  }
 0x16b   :  { %4479 = vmatpush1.bf16.msra.mxu1 %v13682_v28  ;;  %4093 = vmatprep.subr.bf16.mxu0 %v13683_v29  ;;  %v13747_v11 = vld [vmem:[#allocation6 + $0x220] ss:$16 sps:$4 sm:$0xff]   ;;  %v13755_v13 = vld [vmem:[#allocation6 + $0x244] ss:$16 sps:$4 sm:$0xff]   ;;  %v13768_v24 = vld [vmem:[#allocation6 + $0x188] ss:$16 sps:$4 sm:$0xff]  }
 0x16c   :  { %4480 = vmatprep.subr.bf16.mxu1 %v13685_v30  ;;  %v13753_v15 = vld [vmem:[#allocation6 + $0x240] ss:$16 sps:$4 sm:$0xff]   ;;  %v13761_v17 = vld [vmem:[#allocation6 + $0x264] ss:$16 sps:$4 sm:$0xff]   ;;  %v13776_v26 = vld [vmem:[#allocation6 + $0x1ac] ss:$16 sps:$4 sm:$0xff]  }
 0x16d   :  { %v13759_v19 = vld [vmem:[#allocation6 + $0x260] ss:$16 sps:$4 sm:$0xff]   ;;  %v13767_v21 = vld [vmem:[#allocation6 + $0x284] ss:$16 sps:$4 sm:$0xff]   ;;  %v13774_v28 = vld [vmem:[#allocation6 + $0x1a8] ss:$16 sps:$4 sm:$0xff]  }
 0x16e   :  { %4094 = vmatpush1.bf16.msra.mxu0 %v13687_v31  ;;  %v13765_v23 = vld [vmem:[#allocation6 + $0x280] ss:$16 sps:$4 sm:$0xff]   ;;  %v13773_v25 = vld [vmem:[#allocation6 + $0x2a4] ss:$16 sps:$4 sm:$0xff]   ;;  %v13782_v30 = vld [vmem:[#allocation6 + $0x1cc] ss:$16 sps:$4 sm:$0xff]  }
 0x16f   :  { %4481 = vmatpush1.bf16.msra.mxu1 %v13688_v32  ;;  %4095 = vmatprep.subr.bf16.mxu0 %v13689_v33  ;;  %v13771_v27 = vld [vmem:[#allocation6 + $0x2a0] ss:$16 sps:$4 sm:$0xff]   ;;  %v13779_v29 = vld [vmem:[#allocation6 + $0x2c4] ss:$16 sps:$4 sm:$0xff]   ;;  %v13780_v32 = vld [vmem:[#allocation6 + $0x1c8] ss:$16 sps:$4 sm:$0xff]  }
 0x170   :  { %4509 = vmatprep.subr.bf16.mxu1 %v13694_v34  ;;  %v13777_v31 = vld [vmem:[#allocation6 + $0x2c0] ss:$16 sps:$4 sm:$0xff]   ;;  %v13785_v33 = vld [vmem:[#allocation6 + $0x2e4] ss:$16 sps:$4 sm:$0xff]   ;;  %s16383_s3 = smov 112   ;;  %s16385_s0 = smov 48  }
 0x171   :  { %v13839_v34 = vld [vmem:[#allocation3 + $0xc] ss:$76 sps:$4 sm:$0xff]   ;;  %vm5647_vm1 = vcmask 130048   ;;  %s16386_s30 = smov [#allocation31]  }
 0x172   :  { %4499 = vmatmul.mubr.bf16.vlgmr.msra.gmra.mrb[0].mxu1 %v13691_v35  ;;  %4096 = vmatpush1.bf16.msra.mxu0 %v13695_v37  ;;  %v13788_v35 = vld [vmem:[#allocation6 + $0x1ec] ss:$16 sps:$4 sm:$0xff]   ;;  %v13786_v37 = vld [vmem:[#allocation6 + $0x1e8] ss:$16 sps:$4 sm:$0xff]   ;;  %s11693_s9 = sshll.u32 %s16386_s30, 4  ;;  %s11694_s9 = int_to_ptr.vmem [resolvable:$true] %s11693_s9 }
 0x173   :  { %4510 = vmatpush1.bf16.msra.mxu1 %v13692_v36  ;;  %4097 = vmatprep.subr.bf16.mxu0 %v13696_v38  ;;  %v13783_v36 = vld [vmem:[#allocation6 + $0x2e0] ss:$16 sps:$4 sm:$0xff]   ;;  %v13791_v38 = vld [vmem:[#allocation6 + $0x304] ss:$16 sps:$4 sm:$0xff]   ;;  %s16269_s28 = scalar_lea.vmem %s11694_s9, 256  ;;  %p16274_p11 = scmp.lt.s32.totalorder %s11694_s9, %s11694_s9 }
 0x174   :  { %4511 = vmatprep.subr.bf16.mxu1 %v13700_v39  ;;  %4541 = vmatprep.mubr.bf16.mxu1 %v13740_v51  ;;  %v13794_v39 = vld [vmem:[#allocation6 + $0x20c] ss:$16 sps:$4 sm:$0xff]   ;;  %p16270_p10 = scmp.ne.s32.totalorder %s11694_s9, %s16269_s28  ;;  %p16275_p12 = scmp.lt.s32.totalorder %s16269_s28, %s16269_s28 }
 0x175   :  { %v13812_v51 = vld [vmem:[#allocation6 + $0x26c] ss:$16 sps:$4 sm:$0xff]  }
 0x176   :  { %4098 = vmatpush1.bf16.msra.mxu0 %v13701_v41  ;;  %v13792_v41 = vld [vmem:[#allocation6 + $0x208] ss:$16 sps:$4 sm:$0xff]   ;;  %p16276_p13 = por %p16275_p12, %p16274_p11 }
 0x177   :  { %4512 = vmatpush1.bf16.msra.mxu1 %v13698_v40  ;;  %4099 = vmatprep.subr.bf16.mxu0 %v13702_v42  ;;  %v13789_v40 = vld [vmem:[#allocation6 + $0x300] ss:$16 sps:$4 sm:$0xff]   ;;  %v13797_v42 = vld [vmem:[#allocation6 + $0x324] ss:$16 sps:$4 sm:$0xff]  }
 0x178   :  { %4513 = vmatprep.subr.bf16.mxu1 %v13706_v43  ;;  %v13800_v43 = vld [vmem:[#allocation6 + $0x22c] ss:$16 sps:$4 sm:$0xff]   ;;  %p16277_p0 = pnand %p16276_p13, %p16270_p10 }
 0x17a   :  { %4100 = vmatpush1.bf16.msra.mxu0 %v13707_v45  ;;  %v13798_v45 = vld [vmem:[#allocation6 + $0x228] ss:$16 sps:$4 sm:$0xff]  }
 0x17b   :  { %4514 = vmatpush1.bf16.msra.mxu1 %v13704_v44  ;;  %4101 = vmatprep.subr.bf16.mxu0 %v13708_v46  ;;  %v13795_v44 = vld [vmem:[#allocation6 + $0x320] ss:$16 sps:$4 sm:$0xff]   ;;  %v13803_v46 = vld [vmem:[#allocation6 + $0x344] ss:$16 sps:$4 sm:$0xff]  }
 0x17c   :  { %4515 = vmatprep.subr.bf16.mxu1 %v13712_v47  ;;  %v13806_v47 = vld [vmem:[#allocation6 + $0x24c] ss:$16 sps:$4 sm:$0xff]  }
 0x17e   :  { %4102 = vmatpush1.bf16.msra.mxu0 %v13713_v49  ;;  %v13804_v49 = vld [vmem:[#allocation6 + $0x248] ss:$16 sps:$4 sm:$0xff]  }
 0x17f   :  { %4516 = vmatpush1.bf16.msra.mxu1 %v13710_v48  ;;  %4103 = vmatprep.subr.bf16.mxu0 %v13714_v50  ;;  %v13801_v48 = vld [vmem:[#allocation6 + $0x340] ss:$16 sps:$4 sm:$0xff]   ;;  %v13809_v50 = vld [vmem:[#allocation6 + $0x364] ss:$16 sps:$4 sm:$0xff]  }
 0x180   :  { %4517 = vmatprep.subr.bf16.mxu1 %v13718_v52  ;;  %v13807_v52 = vld [vmem:[#allocation6 + $0x360] ss:$16 sps:$4 sm:$0xff]  }
 0x182   :  { %4104 = vmatpush1.bf16.msra.mxu0 %v13719_v54  ;;  %v13815_v54 = vld [vmem:[#allocation6 + $0x384] ss:$16 sps:$4 sm:$0xff]  }
 0x183   :  { %4518 = vmatpush1.bf16.msra.mxu1 %v13716_v53  ;;  %4105 = vmatprep.subr.bf16.mxu0 %v13720_v55  ;;  %v13810_v53 = vld [vmem:[#allocation6 + $0x268] ss:$16 sps:$4 sm:$0xff]   ;;  %v13818_v55 = vld [vmem:[#allocation6 + $0x28c] ss:$16 sps:$4 sm:$0xff]  }
 0x184   :  { %4519 = vmatprep.subr.bf16.mxu1 %v13724_v56  ;;  %v13813_v56 = vld [vmem:[#allocation6 + $0x380] ss:$16 sps:$4 sm:$0xff]  }
 0x186   :  { %4106 = vmatpush1.bf16.msra.mxu0 %v13725_v58  ;;  %v13821_v58 = vld [vmem:[#allocation6 + $0x3a4] ss:$16 sps:$4 sm:$0xff]  }
 0x187   :  { %4520 = vmatpush1.bf16.msra.mxu1 %v13722_v57  ;;  %4107 = vmatprep.subr.bf16.mxu0 %v13726_v59  ;;  %v13816_v57 = vld [vmem:[#allocation6 + $0x288] ss:$16 sps:$4 sm:$0xff]   ;;  %v13824_v59 = vld [vmem:[#allocation6 + $0x2ac] ss:$16 sps:$4 sm:$0xff]  }
 0x188   :  { %4521 = vmatprep.subr.bf16.mxu1 %v13730_v60  ;;  %v13819_v60 = vld [vmem:[#allocation6 + $0x3a0] ss:$16 sps:$4 sm:$0xff]  }
 0x18a   :  { %4108 = vmatpush1.bf16.msra.mxu0 %v13731_v62  ;;  %v13827_v62 = vld [vmem:[#allocation6 + $0x3c4] ss:$16 sps:$4 sm:$0xff]  }
 0x18b   :  { %4522 = vmatpush1.bf16.msra.mxu1 %v13728_v61  ;;  %4109 = vmatprep.subr.bf16.mxu0 %v13732_v63  ;;  %v13822_v61 = vld [vmem:[#allocation6 + $0x2a8] ss:$16 sps:$4 sm:$0xff]   ;;  %v13830_v63 = vld [vmem:[#allocation6 + $0x2cc] ss:$16 sps:$4 sm:$0xff]  }
 0x18c   :  { %4523 = vmatprep.subr.bf16.mxu1 %v13736_v1  ;;  %v13825_v1 = vld [vmem:[#allocation6 + $0x3c0] ss:$16 sps:$4 sm:$0xff]  }
 0x18e   :  { %4110 = vmatpush1.bf16.msra.mxu0 %v13737_v3  ;;  %v13833_v3 = vld [vmem:[#allocation6 + $0x3e4] ss:$16 sps:$4 sm:$0xff]  }
 0x18f   :  { %4524 = vmatpush1.bf16.msra.mxu1 %v13734_v2  ;;  %4122 = vmatprep.subr.bf16.mxu0 %v13743_v4  ;;  %v13828_v2 = vld [vmem:[#allocation6 + $0x2c8] ss:$16 sps:$4 sm:$0xff]   ;;  %v13836_v4 = vld [vmem:[#allocation6 + $0x2ec] ss:$16 sps:$4 sm:$0xff]  }
 0x190   :  { %4525 = vmatprep.subr.bf16.mxu1 %v13746_v5  ;;  %v13831_v5 = vld [vmem:[#allocation6 + $0x3e0] ss:$16 sps:$4 sm:$0xff]  }
 0x191   :  { %4112 = vmatmul.mubr.bf16.vlgmr.msra.gmra.mrb[0].mxu0 %v16731_v6 }
 0x192   :  { %4123 = vmatpush1.bf16.msra.mxu0 %v13741_v7  ;;  %4154 = vmatprep.mubr.bf16.mxu0 %v13839_v34  ;;  %v13842_v7 = vld [vmem:[#allocation6 + $0x404] ss:$16 sps:$4 sm:$0xff]  }
 0x193   :  { %4526 = vmatpush1.bf16.msra.mxu1 %v13744_v8  ;;  %4124 = vmatprep.subr.bf16.mxu0 %v13749_v9  ;;  %v13845_v8 = vld [vmem:[#allocation6 + $0x30c] ss:$16 sps:$4 sm:$0xff]  }
 0x194   :  { %4527 = vmatprep.subr.bf16.mxu1 %v13752_v10  ;;  %v16735_v9 = vld [vmem:[#allocation3 + $0x8] ss:$76 sps:$4 sm:$0xff]  }
 0x195   :  { %v13840_v10 = vld [vmem:[#allocation6 + $0x400] ss:$16 sps:$4 sm:$0xff]  }
 0x196   :  { %4125 = vmatpush1.bf16.msra.mxu0 %v13747_v11  ;;  %v13843_v11 = vld [vmem:[#allocation6 + $0x308] ss:$16 sps:$4 sm:$0xff]  }
 0x197   :  { %4528 = vmatpush1.bf16.msra.mxu1 %v13750_v12  ;;  %4126 = vmatprep.subr.bf16.mxu0 %v13755_v13  ;;  %v13848_v12 = vld [vmem:[#allocation6 + $0x424] ss:$16 sps:$4 sm:$0xff]   ;;  %v13851_v13 = vld [vmem:[#allocation6 + $0x32c] ss:$16 sps:$4 sm:$0xff]  }
 0x198   :  { %4529 = vmatprep.subr.bf16.mxu1 %v13758_v14  ;;  %v13846_v14 = vld [vmem:[#allocation6 + $0x420] ss:$16 sps:$4 sm:$0xff]  }
 0x19a   :  { %4127 = vmatpush1.bf16.msra.mxu0 %v13753_v15  ;;  %v13849_v15 = vld [vmem:[#allocation6 + $0x328] ss:$16 sps:$4 sm:$0xff]  }
 0x19b   :  { %4530 = vmatpush1.bf16.msra.mxu1 %v13756_v16  ;;  %4128 = vmatprep.subr.bf16.mxu0 %v13761_v17  ;;  %v13854_v16 = vld [vmem:[#allocation6 + $0x444] ss:$16 sps:$4 sm:$0xff]   ;;  %v16738_v17 = vld [vmem:[#allocation3 + $0x14] ss:$76 sps:$4 sm:$0xff]  }
 0x19c   :  { %4531 = vmatprep.subr.bf16.mxu1 %v13764_v18  ;;  %v13857_v18 = vld [vmem:[#allocation6 + $0x34c] ss:$16 sps:$4 sm:$0xff]  }
 0x19e   :  { %4129 = vmatpush1.bf16.msra.mxu0 %v13759_v19  ;;  %v13852_v19 = vld [vmem:[#allocation6 + $0x440] ss:$16 sps:$4 sm:$0xff]  }
 0x19f   :  { %4532 = vmatpush1.bf16.msra.mxu1 %v13762_v20  ;;  %4130 = vmatprep.subr.bf16.mxu0 %v13767_v21  ;;  %v13855_v20 = vld [vmem:[#allocation6 + $0x348] ss:$16 sps:$4 sm:$0xff]   ;;  %v13860_v21 = vld [vmem:[#allocation6 + $0x464] ss:$16 sps:$4 sm:$0xff]  }
 0x1a0   :  { %4533 = vmatprep.subr.bf16.mxu1 %v13770_v22  ;;  %v13863_v22 = vld [vmem:[#allocation6 + $0x36c] ss:$16 sps:$4 sm:$0xff]  }
 0x1a2   :  { %4131 = vmatpush1.bf16.msra.mxu0 %v13765_v23  ;;  %v13858_v23 = vld [vmem:[#allocation6 + $0x460] ss:$16 sps:$4 sm:$0xff]  }
 0x1a3   :  { %4534 = vmatpush1.bf16.msra.mxu1 %v13768_v24  ;;  %4132 = vmatprep.subr.bf16.mxu0 %v13773_v25  ;;  %v13861_v24 = vld [vmem:[#allocation6 + $0x368] ss:$16 sps:$4 sm:$0xff]   ;;  %v13866_v25 = vld [vmem:[#allocation6 + $0x484] ss:$16 sps:$4 sm:$0xff]  }
 0x1a4   :  { %4535 = vmatprep.subr.bf16.mxu1 %v13776_v26  ;;  %v13869_v26 = vld [vmem:[#allocation6 + $0x38c] ss:$16 sps:$4 sm:$0xff]  }
 0x1a6   :  { %4133 = vmatpush1.bf16.msra.mxu0 %v13771_v27  ;;  %v13864_v27 = vld [vmem:[#allocation6 + $0x480] ss:$16 sps:$4 sm:$0xff]  }
 0x1a7   :  { %4536 = vmatpush1.bf16.msra.mxu1 %v13774_v28  ;;  %4134 = vmatprep.subr.bf16.mxu0 %v13779_v29  ;;  %v13867_v28 = vld [vmem:[#allocation6 + $0x388] ss:$16 sps:$4 sm:$0xff]   ;;  %v13872_v29 = vld [vmem:[#allocation6 + $0x4a4] ss:$16 sps:$4 sm:$0xff]  }
 0x1a8   :  { %4537 = vmatprep.subr.bf16.mxu1 %v13782_v30  ;;  %v13875_v30 = vld [vmem:[#allocation6 + $0x3ac] ss:$16 sps:$4 sm:$0xff]  }
 0x1aa   :  { %4135 = vmatpush1.bf16.msra.mxu0 %v13777_v31  ;;  %v13870_v31 = vld [vmem:[#allocation6 + $0x4a0] ss:$16 sps:$4 sm:$0xff]  }
 0x1ab   :  { %4538 = vmatpush1.bf16.msra.mxu1 %v13780_v32  ;;  %4136 = vmatprep.subr.bf16.mxu0 %v13785_v33  ;;  %v13873_v32 = vld [vmem:[#allocation6 + $0x3a8] ss:$16 sps:$4 sm:$0xff]   ;;  %v13878_v33 = vld [vmem:[#allocation6 + $0x4c4] ss:$16 sps:$4 sm:$0xff]  }
 0x1ac   :  { %4539 = vmatprep.subr.bf16.mxu1 %v13788_v35  ;;  %v13876_v35 = vld [vmem:[#allocation6 + $0x4c0] ss:$16 sps:$4 sm:$0xff]  }
 0x1ae   :  { %4137 = vmatpush1.bf16.msra.mxu0 %v13783_v36  ;;  %v13879_v36 = vld [vmem:[#allocation6 + $0x3c8] ss:$16 sps:$4 sm:$0xff]  }
 0x1af   :  { %4540 = vmatpush1.bf16.msra.mxu1 %v13786_v37  ;;  %4138 = vmatprep.subr.bf16.mxu0 %v13791_v38  ;;  %v13884_v37 = vld [vmem:[#allocation6 + $0x4e4] ss:$16 sps:$4 sm:$0xff]   ;;  %v13887_v38 = vld [vmem:[#allocation6 + $0x3ec] ss:$16 sps:$4 sm:$0xff]  }
 0x1b0   :  { %4552 = vmatprep.subr.bf16.mxu1 %v13794_v39  ;;  %v13882_v39 = vld [vmem:[#allocation6 + $0x4e0] ss:$16 sps:$4 sm:$0xff]  }
 0x1b2   :  { %4542 = vmatmul.mubr.bf16.vlgmr.msra.gmra.mrb[4].mxu1 %v16731_v6  ;;  %4139 = vmatpush1.bf16.msra.mxu0 %v13789_v40  ;;  %v13834_v6 = vld [vmem:[#allocation6 + $0x2e8] ss:$16 sps:$4 sm:$0xff]  }
 0x1b3   :  { %4553 = vmatpush1.bf16.msra.mxu1 %v13792_v41  ;;  %4140 = vmatprep.subr.bf16.mxu0 %v13797_v42  ;;  %v13885_v40 = vld [vmem:[#allocation6 + $0x3e8] ss:$16 sps:$4 sm:$0xff]   ;;  %v13890_v41 = vld [vmem:[#allocation6 + $0x504] ss:$16 sps:$4 sm:$0xff]   ;;  %v13893_v42 = vld [vmem:[#allocation6 + $0x40c] ss:$16 sps:$4 sm:$0xff]  }
 0x1b4   :  { %4554 = vmatprep.subr.bf16.mxu1 %v13800_v43  ;;  %4584 = vmatprep.mubr.bf16.mxu1 %v13839_v34  ;;  %v13881_v34 = vld [vmem:[#allocation6 + $0x3cc] ss:$16 sps:$4 sm:$0xff]   ;;  %v13888_v43 = vld [vmem:[#allocation6 + $0x500] ss:$16 sps:$4 sm:$0xff]  }
 0x1b6   :  { %4141 = vmatpush1.bf16.msra.mxu0 %v13795_v44  ;;  %v13891_v44 = vld [vmem:[#allocation6 + $0x408] ss:$16 sps:$4 sm:$0xff]  }
 0x1b7   :  { %4555 = vmatpush1.bf16.msra.mxu1 %v13798_v45  ;;  %4142 = vmatprep.subr.bf16.mxu0 %v13803_v46  ;;  %v13896_v45 = vld [vmem:[#allocation6 + $0x524] ss:$16 sps:$4 sm:$0xff]   ;;  %v13899_v46 = vld [vmem:[#allocation6 + $0x42c] ss:$16 sps:$4 sm:$0xff]  }
 0x1b8   :  { %4556 = vmatprep.subr.bf16.mxu1 %v13806_v47  ;;  %v13894_v47 = vld [vmem:[#allocation6 + $0x520] ss:$16 sps:$4 sm:$0xff]  }
 0x1ba   :  { %4143 = vmatpush1.bf16.msra.mxu0 %v13801_v48  ;;  %v13897_v48 = vld [vmem:[#allocation6 + $0x428] ss:$16 sps:$4 sm:$0xff]  }
 0x1bb   :  { %4557 = vmatpush1.bf16.msra.mxu1 %v13804_v49  ;;  %4144 = vmatprep.subr.bf16.mxu0 %v13809_v50  ;;  %v13902_v49 = vld [vmem:[#allocation6 + $0x544] ss:$16 sps:$4 sm:$0xff]   ;;  %v13905_v50 = vld [vmem:[#allocation6 + $0x44c] ss:$16 sps:$4 sm:$0xff]  }
 0x1bc   :  { %4558 = vmatprep.subr.bf16.mxu1 %v13812_v51  ;;  %v13900_v51 = vld [vmem:[#allocation6 + $0x540] ss:$16 sps:$4 sm:$0xff]  }
 0x1be   :  { %4145 = vmatpush1.bf16.msra.mxu0 %v13807_v52  ;;  %v13903_v52 = vld [vmem:[#allocation6 + $0x448] ss:$16 sps:$4 sm:$0xff]  }
 0x1bf   :  { %4559 = vmatpush1.bf16.msra.mxu1 %v13810_v53  ;;  %4146 = vmatprep.subr.bf16.mxu0 %v13815_v54  ;;  %v13908_v53 = vld [vmem:[#allocation6 + $0x564] ss:$16 sps:$4 sm:$0xff]   ;;  %v13911_v54 = vld [vmem:[#allocation6 + $0x46c] ss:$16 sps:$4 sm:$0xff]  }
 0x1c0   :  { %4560 = vmatprep.subr.bf16.mxu1 %v13818_v55  ;;  %v13906_v55 = vld [vmem:[#allocation6 + $0x560] ss:$16 sps:$4 sm:$0xff]  }
 0x1c2   :  { %4147 = vmatpush1.bf16.msra.mxu0 %v13813_v56  ;;  %v13909_v56 = vld [vmem:[#allocation6 + $0x468] ss:$16 sps:$4 sm:$0xff]  }
 0x1c3   :  { %4561 = vmatpush1.bf16.msra.mxu1 %v13816_v57  ;;  %4148 = vmatprep.subr.bf16.mxu0 %v13821_v58  ;;  %v13914_v57 = vld [vmem:[#allocation6 + $0x584] ss:$16 sps:$4 sm:$0xff]   ;;  %v13917_v58 = vld [vmem:[#allocation6 + $0x48c] ss:$16 sps:$4 sm:$0xff]  }
 0x1c4   :  { %4562 = vmatprep.subr.bf16.mxu1 %v13824_v59  ;;  %v13912_v59 = vld [vmem:[#allocation6 + $0x580] ss:$16 sps:$4 sm:$0xff]  }
 0x1c6   :  { %4149 = vmatpush1.bf16.msra.mxu0 %v13819_v60  ;;  %v13915_v60 = vld [vmem:[#allocation6 + $0x488] ss:$16 sps:$4 sm:$0xff]  }
 0x1c7   :  { %4563 = vmatpush1.bf16.msra.mxu1 %v13822_v61  ;;  %4150 = vmatprep.subr.bf16.mxu0 %v13827_v62  ;;  %v13920_v61 = vld [vmem:[#allocation6 + $0x5a4] ss:$16 sps:$4 sm:$0xff]   ;;  %v13923_v62 = vld [vmem:[#allocation6 + $0x4ac] ss:$16 sps:$4 sm:$0xff]  }
 0x1c8   :  { %4564 = vmatprep.subr.bf16.mxu1 %v13830_v63  ;;  %v13918_v63 = vld [vmem:[#allocation6 + $0x5a0] ss:$16 sps:$4 sm:$0xff]  }
 0x1ca   :  { %4151 = vmatpush1.bf16.msra.mxu0 %v13825_v1  ;;  %v13921_v1 = vld [vmem:[#allocation6 + $0x4a8] ss:$16 sps:$4 sm:$0xff]  }
 0x1cb   :  { %4565 = vmatpush1.bf16.msra.mxu1 %v13828_v2  ;;  %4152 = vmatprep.subr.bf16.mxu0 %v13833_v3  ;;  %v13926_v2 = vld [vmem:[#allocation6 + $0x5c4] ss:$16 sps:$4 sm:$0xff]   ;;  %v13929_v3 = vld [vmem:[#allocation6 + $0x4cc] ss:$16 sps:$4 sm:$0xff]  }
 0x1cc   :  { %4566 = vmatprep.subr.bf16.mxu1 %v13836_v4  ;;  %v13924_v4 = vld [vmem:[#allocation6 + $0x5c0] ss:$16 sps:$4 sm:$0xff]  }
 0x1ce   :  { %4153 = vmatpush1.bf16.msra.mxu0 %v13831_v5  ;;  %v13927_v5 = vld [vmem:[#allocation6 + $0x4c8] ss:$16 sps:$4 sm:$0xff]  }
 0x1cf   :  { %4567 = vmatpush1.bf16.msra.mxu1 %v13834_v6  ;;  %4165 = vmatprep.subr.bf16.mxu0 %v13842_v7  ;;  %v13932_v6 = vld [vmem:[#allocation6 + $0x5e4] ss:$16 sps:$4 sm:$0xff]   ;;  %v13935_v7 = vld [vmem:[#allocation6 + $0x4ec] ss:$16 sps:$4 sm:$0xff]  }
 0x1d0   :  { %4568 = vmatprep.subr.bf16.mxu1 %v13845_v8  ;;  %v13930_v8 = vld [vmem:[#allocation6 + $0x5e0] ss:$16 sps:$4 sm:$0xff]  }
 0x1d1   :  { %4155 = vmatmul.mubr.bf16.vlgmr.msra.gmra.mrb[0].mxu0 %v16735_v9 }
 0x1d2   :  { %4166 = vmatpush1.bf16.msra.mxu0 %v13840_v10  ;;  %4197 = vmatprep.mubr.bf16.mxu0 %v16738_v17  ;;  %v13941_v10 = vld [vmem:[#allocation6 + $0x604] ss:$16 sps:$4 sm:$0xff]  }
 0x1d3   :  { %4569 = vmatpush1.bf16.msra.mxu1 %v13843_v11  ;;  %4167 = vmatprep.subr.bf16.mxu0 %v13848_v12  ;;  %v13944_v11 = vld [vmem:[#allocation6 + $0x50c] ss:$16 sps:$4 sm:$0xff]   ;;  %v16743_v12 = vld [vmem:[#allocation3 + $0x10] ss:$76 sps:$4 sm:$0xff]  }
 0x1d4   :  { %4570 = vmatprep.subr.bf16.mxu1 %v13851_v13  ;;  %v13939_v13 = vld [vmem:[#allocation6 + $0x600] ss:$16 sps:$4 sm:$0xff]  }
 0x1d6   :  { %4168 = vmatpush1.bf16.msra.mxu0 %v13846_v14  ;;  %v13942_v14 = vld [vmem:[#allocation6 + $0x508] ss:$16 sps:$4 sm:$0xff]  }
 0x1d7   :  { %4571 = vmatpush1.bf16.msra.mxu1 %v13849_v15  ;;  %4169 = vmatprep.subr.bf16.mxu0 %v13854_v16  ;;  %v13947_v15 = vld [vmem:[#allocation6 + $0x624] ss:$16 sps:$4 sm:$0xff]   ;;  %v13950_v16 = vld [vmem:[#allocation6 + $0x52c] ss:$16 sps:$4 sm:$0xff]  }
 0x1d8   :  { %4572 = vmatprep.subr.bf16.mxu1 %v13857_v18  ;;  %v13945_v18 = vld [vmem:[#allocation6 + $0x620] ss:$16 sps:$4 sm:$0xff]  }
 0x1da   :  { %4170 = vmatpush1.bf16.msra.mxu0 %v13852_v19  ;;  %v13948_v19 = vld [vmem:[#allocation6 + $0x528] ss:$16 sps:$4 sm:$0xff]  }
 0x1db   :  { %4573 = vmatpush1.bf16.msra.mxu1 %v13855_v20  ;;  %4171 = vmatprep.subr.bf16.mxu0 %v13860_v21  ;;  %v13953_v20 = vld [vmem:[#allocation6 + $0x644] ss:$16 sps:$4 sm:$0xff]   ;;  %v13956_v21 = vld [vmem:[#allocation6 + $0x54c] ss:$16 sps:$4 sm:$0xff]  }
 0x1dc   :  { %4574 = vmatprep.subr.bf16.mxu1 %v13863_v22  ;;  %v13951_v22 = vld [vmem:[#allocation6 + $0x640] ss:$16 sps:$4 sm:$0xff]  }
 0x1de   :  { %4172 = vmatpush1.bf16.msra.mxu0 %v13858_v23  ;;  %v13954_v23 = vld [vmem:[#allocation6 + $0x548] ss:$16 sps:$4 sm:$0xff]  }
 0x1df   :  { %4575 = vmatpush1.bf16.msra.mxu1 %v13861_v24  ;;  %4173 = vmatprep.subr.bf16.mxu0 %v13866_v25  ;;  %v13959_v24 = vld [vmem:[#allocation6 + $0x664] ss:$16 sps:$4 sm:$0xff]   ;;  %v13962_v25 = vld [vmem:[#allocation6 + $0x56c] ss:$16 sps:$4 sm:$0xff]  }
 0x1e0   :  { %4576 = vmatprep.subr.bf16.mxu1 %v13869_v26  ;;  %v13957_v26 = vld [vmem:[#allocation6 + $0x660] ss:$16 sps:$4 sm:$0xff]  }
 0x1e2   :  { %4174 = vmatpush1.bf16.msra.mxu0 %v13864_v27  ;;  %v13960_v27 = vld [vmem:[#allocation6 + $0x568] ss:$16 sps:$4 sm:$0xff]  }
 0x1e3   :  { %4577 = vmatpush1.bf16.msra.mxu1 %v13867_v28  ;;  %4175 = vmatprep.subr.bf16.mxu0 %v13872_v29  ;;  %v13965_v28 = vld [vmem:[#allocation6 + $0x684] ss:$16 sps:$4 sm:$0xff]   ;;  %v13968_v29 = vld [vmem:[#allocation6 + $0x58c] ss:$16 sps:$4 sm:$0xff]  }
 0x1e4   :  { %4578 = vmatprep.subr.bf16.mxu1 %v13875_v30  ;;  %v13963_v30 = vld [vmem:[#allocation6 + $0x680] ss:$16 sps:$4 sm:$0xff]  }
 0x1e6   :  { %4176 = vmatpush1.bf16.msra.mxu0 %v13870_v31  ;;  %v13966_v31 = vld [vmem:[#allocation6 + $0x588] ss:$16 sps:$4 sm:$0xff]  }
 0x1e7   :  { %4579 = vmatpush1.bf16.msra.mxu1 %v13873_v32  ;;  %4177 = vmatprep.subr.bf16.mxu0 %v13878_v33  ;;  %v13971_v32 = vld [vmem:[#allocation6 + $0x6a4] ss:$16 sps:$4 sm:$0xff]   ;;  %v13974_v33 = vld [vmem:[#allocation6 + $0x5ac] ss:$16 sps:$4 sm:$0xff]  }
 0x1e8   :  { %4580 = vmatprep.subr.bf16.mxu1 %v13881_v34  ;;  %v13969_v34 = vld [vmem:[#allocation6 + $0x6a0] ss:$16 sps:$4 sm:$0xff]  }
 0x1ea   :  { %4178 = vmatpush1.bf16.msra.mxu0 %v13876_v35  ;;  %v13972_v35 = vld [vmem:[#allocation6 + $0x5a8] ss:$16 sps:$4 sm:$0xff]  }
 0x1eb   :  { %4581 = vmatpush1.bf16.msra.mxu1 %v13879_v36  ;;  %4179 = vmatprep.subr.bf16.mxu0 %v13884_v37  ;;  %v13977_v36 = vld [vmem:[#allocation6 + $0x6c4] ss:$16 sps:$4 sm:$0xff]   ;;  %v13980_v37 = vld [vmem:[#allocation6 + $0x5cc] ss:$16 sps:$4 sm:$0xff]  }
 0x1ec   :  { %4582 = vmatprep.subr.bf16.mxu1 %v13887_v38  ;;  %v13975_v38 = vld [vmem:[#allocation6 + $0x6c0] ss:$16 sps:$4 sm:$0xff]  }
 0x1ee   :  { %4180 = vmatpush1.bf16.msra.mxu0 %v13882_v39  ;;  %v13978_v39 = vld [vmem:[#allocation6 + $0x5c8] ss:$16 sps:$4 sm:$0xff]  }
 0x1ef   :  { %4583 = vmatpush1.bf16.msra.mxu1 %v13885_v40  ;;  %4181 = vmatprep.subr.bf16.mxu0 %v13890_v41  ;;  %v13983_v40 = vld [vmem:[#allocation6 + $0x6e4] ss:$16 sps:$4 sm:$0xff]   ;;  %v13986_v41 = vld [vmem:[#allocation6 + $0x5ec] ss:$16 sps:$4 sm:$0xff]  }
 0x1f0   :  { %4595 = vmatprep.subr.bf16.mxu1 %v13893_v42  ;;  %v13981_v42 = vld [vmem:[#allocation6 + $0x6e0] ss:$16 sps:$4 sm:$0xff]  }
 0x1f2   :  { %4585 = vmatmul.mubr.bf16.vlgmr.msra.gmra.mrb[4].mxu1 %v16735_v9  ;;  %4182 = vmatpush1.bf16.msra.mxu0 %v13888_v43  ;;  %v13933_v9 = vld [vmem:[#allocation6 + $0x4e8] ss:$16 sps:$4 sm:$0xff]  }
 0x1f3   :  { %4596 = vmatpush1.bf16.msra.mxu1 %v13891_v44  ;;  %4183 = vmatprep.subr.bf16.mxu0 %v13896_v45  ;;  %v13984_v43 = vld [vmem:[#allocation6 + $0x5e8] ss:$16 sps:$4 sm:$0xff]   ;;  %v13989_v44 = vld [vmem:[#allocation6 + $0x704] ss:$16 sps:$4 sm:$0xff]   ;;  %v13992_v45 = vld [vmem:[#allocation6 + $0x60c] ss:$16 sps:$4 sm:$0xff]  }
 0x1f4   :  { %4597 = vmatprep.subr.bf16.mxu1 %v13899_v46  ;;  %4627 = vmatprep.mubr.bf16.mxu1 %v16738_v17  ;;  %v16745_v17 = vld [vmem:[#allocation3 + $0x1c] ss:$76 sps:$4 sm:$0xff]  }
 0x1f5   :  { %v13987_v46 = vld [vmem:[#allocation6 + $0x700] ss:$16 sps:$4 sm:$0xff]  }
 0x1f6   :  { %4184 = vmatpush1.bf16.msra.mxu0 %v13894_v47  ;;  %v13990_v47 = vld [vmem:[#allocation6 + $0x608] ss:$16 sps:$4 sm:$0xff]  }
 0x1f7   :  { %4598 = vmatpush1.bf16.msra.mxu1 %v13897_v48  ;;  %4185 = vmatprep.subr.bf16.mxu0 %v13902_v49  ;;  %v13995_v48 = vld [vmem:[#allocation6 + $0x724] ss:$16 sps:$4 sm:$0xff]   ;;  %v13998_v49 = vld [vmem:[#allocation6 + $0x62c] ss:$16 sps:$4 sm:$0xff]  }
 0x1f8   :  { %4599 = vmatprep.subr.bf16.mxu1 %v13905_v50  ;;  %v13993_v50 = vld [vmem:[#allocation6 + $0x720] ss:$16 sps:$4 sm:$0xff]  }
 0x1fa   :  { %4186 = vmatpush1.bf16.msra.mxu0 %v13900_v51  ;;  %v13996_v51 = vld [vmem:[#allocation6 + $0x628] ss:$16 sps:$4 sm:$0xff]  }
 0x1fb   :  { %4600 = vmatpush1.bf16.msra.mxu1 %v13903_v52  ;;  %4187 = vmatprep.subr.bf16.mxu0 %v13908_v53  ;;  %v14001_v52 = vld [vmem:[#allocation6 + $0x744] ss:$16 sps:$4 sm:$0xff]   ;;  %v14004_v53 = vld [vmem:[#allocation6 + $0x64c] ss:$16 sps:$4 sm:$0xff]  }
 0x1fc   :  { %4601 = vmatprep.subr.bf16.mxu1 %v13911_v54  ;;  %v13999_v54 = vld [vmem:[#allocation6 + $0x740] ss:$16 sps:$4 sm:$0xff]  }
 0x1fe   :  { %4188 = vmatpush1.bf16.msra.mxu0 %v13906_v55  ;;  %v14002_v55 = vld [vmem:[#allocation6 + $0x648] ss:$16 sps:$4 sm:$0xff]  }
 0x1ff   :  { %4602 = vmatpush1.bf16.msra.mxu1 %v13909_v56  ;;  %4189 = vmatprep.subr.bf16.mxu0 %v13914_v57  ;;  %v14007_v56 = vld [vmem:[#allocation6 + $0x764] ss:$16 sps:$4 sm:$0xff]   ;;  %v14010_v57 = vld [vmem:[#allocation6 + $0x66c] ss:$16 sps:$4 sm:$0xff]  }
 0x200   :  { %4603 = vmatprep.subr.bf16.mxu1 %v13917_v58  ;;  %v14005_v58 = vld [vmem:[#allocation6 + $0x760] ss:$16 sps:$4 sm:$0xff]  }
 0x202   :  { %4190 = vmatpush1.bf16.msra.mxu0 %v13912_v59  ;;  %v14008_v59 = vld [vmem:[#allocation6 + $0x668] ss:$16 sps:$4 sm:$0xff]  }
 0x203   :  { %4604 = vmatpush1.bf16.msra.mxu1 %v13915_v60  ;;  %4191 = vmatprep.subr.bf16.mxu0 %v13920_v61  ;;  %v14013_v60 = vld [vmem:[#allocation6 + $0x784] ss:$16 sps:$4 sm:$0xff]   ;;  %v14016_v61 = vld [vmem:[#allocation6 + $0x68c] ss:$16 sps:$4 sm:$0xff]  }
 0x204   :  { %4605 = vmatprep.subr.bf16.mxu1 %v13923_v62  ;;  %v14011_v62 = vld [vmem:[#allocation6 + $0x780] ss:$16 sps:$4 sm:$0xff]  }
 0x206   :  { %4192 = vmatpush1.bf16.msra.mxu0 %v13918_v63  ;;  %v14014_v63 = vld [vmem:[#allocation6 + $0x688] ss:$16 sps:$4 sm:$0xff]  }
 0x207   :  { %4606 = vmatpush1.bf16.msra.mxu1 %v13921_v1  ;;  %4193 = vmatprep.subr.bf16.mxu0 %v13926_v2  ;;  %v14019_v1 = vld [vmem:[#allocation6 + $0x7a4] ss:$16 sps:$4 sm:$0xff]   ;;  %v14022_v2 = vld [vmem:[#allocation6 + $0x6ac] ss:$16 sps:$4 sm:$0xff]  }
 0x208   :  { %4607 = vmatprep.subr.bf16.mxu1 %v13929_v3  ;;  %v14017_v3 = vld [vmem:[#allocation6 + $0x7a0] ss:$16 sps:$4 sm:$0xff]  }
 0x20a   :  { %4194 = vmatpush1.bf16.msra.mxu0 %v13924_v4  ;;  %v14020_v4 = vld [vmem:[#allocation6 + $0x6a8] ss:$16 sps:$4 sm:$0xff]  }
 0x20b   :  { %4608 = vmatpush1.bf16.msra.mxu1 %v13927_v5  ;;  %4195 = vmatprep.subr.bf16.mxu0 %v13932_v6  ;;  %v14025_v5 = vld [vmem:[#allocation6 + $0x7c4] ss:$16 sps:$4 sm:$0xff]   ;;  %v14028_v6 = vld [vmem:[#allocation6 + $0x6cc] ss:$16 sps:$4 sm:$0xff]  }
 0x20c   :  { %4609 = vmatprep.subr.bf16.mxu1 %v13935_v7 }
 0x20e   :  { %4196 = vmatpush1.bf16.msra.mxu0 %v13930_v8 }
 0x20f   :  { %4610 = vmatpush1.bf16.msra.mxu1 %v13933_v9  ;;  %4208 = vmatprep.subr.bf16.mxu0 %v13941_v10  ;;  %v14023_v9 = vld [vmem:[#allocation6 + $0x7c0] ss:$16 sps:$4 sm:$0xff]  }
 0x210   :  { %4611 = vmatprep.subr.bf16.mxu1 %v13944_v11  ;;  %v14026_v11 = vld [vmem:[#allocation6 + $0x6c8] ss:$16 sps:$4 sm:$0xff]  }
 0x211   :  { %4198 = vmatmul.mubr.bf16.vlgmr.msra.gmra.mrb[0].mxu0 %v16743_v12 }
 0x212   :  { %4209 = vmatpush1.bf16.msra.mxu0 %v13939_v13  ;;  %4240 = vmatprep.mubr.bf16.mxu0 %v16745_v17 }
 0x213   :  { %4612 = vmatpush1.bf16.msra.mxu1 %v13942_v14  ;;  %4210 = vmatprep.subr.bf16.mxu0 %v13947_v15  ;;  %v14034_v14 = vld [vmem:[#allocation6 + $0x6ec] ss:$16 sps:$4 sm:$0xff]   ;;  %v14029_v15 = vld [vmem:[#allocation6 + $0x7e0] ss:$16 sps:$4 sm:$0xff]  }
 0x214   :  { %4613 = vmatprep.subr.bf16.mxu1 %v13950_v16  ;;  %v14032_v16 = vld [vmem:[#allocation6 + $0x6e8] ss:$16 sps:$4 sm:$0xff]  }
 0x216   :  { %4211 = vmatpush1.bf16.msra.mxu0 %v13945_v18  ;;  %v14043_v18 = vld [vmem:[#allocation6 + $0x70c] ss:$16 sps:$4 sm:$0xff]  }
 0x217   :  { %4614 = vmatpush1.bf16.msra.mxu1 %v13948_v19  ;;  %4212 = vmatprep.subr.bf16.mxu0 %v13953_v20  ;;  %v16759_v19 = vld [vmem:[#allocation3 + $0x18] ss:$76 sps:$4 sm:$0xff]  }
 0x218   :  { %4615 = vmatprep.subr.bf16.mxu1 %v13956_v21  ;;  %v14038_v20 = vld [vmem:[#allocation6 + $0x800] ss:$16 sps:$4 sm:$0xff]   ;;  %v14041_v21 = vld [vmem:[#allocation6 + $0x708] ss:$16 sps:$4 sm:$0xff]  }
 0x21a   :  { %4213 = vmatpush1.bf16.msra.mxu0 %v13951_v22  ;;  %v14046_v22 = vld [vmem:[#allocation6 + $0x824] ss:$16 sps:$4 sm:$0xff]  }
 0x21b   :  { %4616 = vmatpush1.bf16.msra.mxu1 %v13954_v23  ;;  %4214 = vmatprep.subr.bf16.mxu0 %v13959_v24  ;;  %v14049_v23 = vld [vmem:[#allocation6 + $0x72c] ss:$16 sps:$4 sm:$0xff]  }
 0x21c   :  { %4617 = vmatprep.subr.bf16.mxu1 %v13962_v25  ;;  %v16761_v24 = vld [vmem:[#allocation3 + $0x24] ss:$76 sps:$4 sm:$0xff]   ;;  %v14044_v25 = vld [vmem:[#allocation6 + $0x820] ss:$16 sps:$4 sm:$0xff]  }
 0x21e   :  { %4215 = vmatpush1.bf16.msra.mxu0 %v13957_v26  ;;  %v14047_v26 = vld [vmem:[#allocation6 + $0x728] ss:$16 sps:$4 sm:$0xff]  }
 0x21f   :  { %4618 = vmatpush1.bf16.msra.mxu1 %v13960_v27  ;;  %4216 = vmatprep.subr.bf16.mxu0 %v13965_v28  ;;  %v14052_v27 = vld [vmem:[#allocation6 + $0x844] ss:$16 sps:$4 sm:$0xff]   ;;  %v14055_v28 = vld [vmem:[#allocation6 + $0x74c] ss:$16 sps:$4 sm:$0xff]  }
 0x220   :  { %4619 = vmatprep.subr.bf16.mxu1 %v13968_v29  ;;  %v14050_v29 = vld [vmem:[#allocation6 + $0x840] ss:$16 sps:$4 sm:$0xff]  }
 0x222   :  { %4217 = vmatpush1.bf16.msra.mxu0 %v13963_v30  ;;  %v14053_v30 = vld [vmem:[#allocation6 + $0x748] ss:$16 sps:$4 sm:$0xff]  }
 0x223   :  { %4620 = vmatpush1.bf16.msra.mxu1 %v13966_v31  ;;  %4218 = vmatprep.subr.bf16.mxu0 %v13971_v32  ;;  %v14058_v31 = vld [vmem:[#allocation6 + $0x864] ss:$16 sps:$4 sm:$0xff]   ;;  %v14061_v32 = vld [vmem:[#allocation6 + $0x76c] ss:$16 sps:$4 sm:$0xff]  }
 0x224   :  { %4621 = vmatprep.subr.bf16.mxu1 %v13974_v33  ;;  %v14056_v33 = vld [vmem:[#allocation6 + $0x860] ss:$16 sps:$4 sm:$0xff]  }
 0x226   :  { %4219 = vmatpush1.bf16.msra.mxu0 %v13969_v34  ;;  %v14059_v34 = vld [vmem:[#allocation6 + $0x768] ss:$16 sps:$4 sm:$0xff]  }
 0x227   :  { %4622 = vmatpush1.bf16.msra.mxu1 %v13972_v35  ;;  %4220 = vmatprep.subr.bf16.mxu0 %v13977_v36  ;;  %v14064_v35 = vld [vmem:[#allocation6 + $0x884] ss:$16 sps:$4 sm:$0xff]   ;;  %v14067_v36 = vld [vmem:[#allocation6 + $0x78c] ss:$16 sps:$4 sm:$0xff]  }
 0x228   :  { %4623 = vmatprep.subr.bf16.mxu1 %v13980_v37  ;;  %v14062_v37 = vld [vmem:[#allocation6 + $0x880] ss:$16 sps:$4 sm:$0xff]  }
 0x22a   :  { %4221 = vmatpush1.bf16.msra.mxu0 %v13975_v38  ;;  %v14065_v38 = vld [vmem:[#allocation6 + $0x788] ss:$16 sps:$4 sm:$0xff]  }
 0x22b   :  { %4624 = vmatpush1.bf16.msra.mxu1 %v13978_v39  ;;  %4222 = vmatprep.subr.bf16.mxu0 %v13983_v40  ;;  %v14070_v39 = vld [vmem:[#allocation6 + $0x8a4] ss:$16 sps:$4 sm:$0xff]   ;;  %v14073_v40 = vld [vmem:[#allocation6 + $0x7ac] ss:$16 sps:$4 sm:$0xff]  }
 0x22c   :  { %4625 = vmatprep.subr.bf16.mxu1 %v13986_v41  ;;  %v14068_v41 = vld [vmem:[#allocation6 + $0x8a0] ss:$16 sps:$4 sm:$0xff]  }
 0x22e   :  { %4223 = vmatpush1.bf16.msra.mxu0 %v13981_v42  ;;  %v14071_v42 = vld [vmem:[#allocation6 + $0x7a8] ss:$16 sps:$4 sm:$0xff]  }
 0x22f   :  { %4626 = vmatpush1.bf16.msra.mxu1 %v13984_v43  ;;  %4224 = vmatprep.subr.bf16.mxu0 %v13989_v44  ;;  %v14076_v43 = vld [vmem:[#allocation6 + $0x8c4] ss:$16 sps:$4 sm:$0xff]   ;;  %v14079_v44 = vld [vmem:[#allocation6 + $0x7cc] ss:$16 sps:$4 sm:$0xff]  }
 0x230   :  { %4638 = vmatprep.subr.bf16.mxu1 %v13992_v45  ;;  %v14074_v45 = vld [vmem:[#allocation6 + $0x8c0] ss:$16 sps:$4 sm:$0xff]  }
 0x232   :  { %4628 = vmatmul.mubr.bf16.vlgmr.msra.gmra.mrb[4].mxu1 %v16743_v12  ;;  %4225 = vmatpush1.bf16.msra.mxu0 %v13987_v46  ;;  %v14031_v12 = vld [vmem:[#allocation6 + $0x7e4] ss:$16 sps:$4 sm:$0xff]   ;;  %v14077_v46 = vld [vmem:[#allocation6 + $0x7c8] ss:$16 sps:$4 sm:$0xff]  }
 0x233   :  { %4639 = vmatpush1.bf16.msra.mxu1 %v13990_v47  ;;  %4226 = vmatprep.subr.bf16.mxu0 %v13995_v48  ;;  %v14082_v47 = vld [vmem:[#allocation6 + $0x8e4] ss:$16 sps:$4 sm:$0xff]   ;;  %v14085_v48 = vld [vmem:[#allocation6 + $0x7ec] ss:$16 sps:$4 sm:$0xff]  }
 0x234   :  { %4640 = vmatprep.subr.bf16.mxu1 %v13998_v49  ;;  %4670 = vmatprep.mubr.bf16.mxu1 %v16745_v17  ;;  %v14040_v17 = vld [vmem:[#allocation6 + $0x804] ss:$16 sps:$4 sm:$0xff]   ;;  %v14080_v49 = vld [vmem:[#allocation6 + $0x8e0] ss:$16 sps:$4 sm:$0xff]  }
 0x236   :  { %4227 = vmatpush1.bf16.msra.mxu0 %v13993_v50  ;;  %v14083_v50 = vld [vmem:[#allocation6 + $0x7e8] ss:$16 sps:$4 sm:$0xff]  }
 0x237   :  { %4641 = vmatpush1.bf16.msra.mxu1 %v13996_v51  ;;  %4228 = vmatprep.subr.bf16.mxu0 %v14001_v52  ;;  %v14088_v51 = vld [vmem:[#allocation6 + $0x904] ss:$16 sps:$4 sm:$0xff]   ;;  %v14091_v52 = vld [vmem:[#allocation6 + $0x80c] ss:$16 sps:$4 sm:$0xff]  }
 0x238   :  { %4642 = vmatprep.subr.bf16.mxu1 %v14004_v53  ;;  %v14086_v53 = vld [vmem:[#allocation6 + $0x900] ss:$16 sps:$4 sm:$0xff]  }
 0x23a   :  { %4229 = vmatpush1.bf16.msra.mxu0 %v13999_v54  ;;  %v14089_v54 = vld [vmem:[#allocation6 + $0x808] ss:$16 sps:$4 sm:$0xff]  }
 0x23b   :  { %4643 = vmatpush1.bf16.msra.mxu1 %v14002_v55  ;;  %4230 = vmatprep.subr.bf16.mxu0 %v14007_v56  ;;  %v14094_v55 = vld [vmem:[#allocation6 + $0x924] ss:$16 sps:$4 sm:$0xff]   ;;  %v14097_v56 = vld [vmem:[#allocation6 + $0x82c] ss:$16 sps:$4 sm:$0xff]  }
 0x23c   :  { %4644 = vmatprep.subr.bf16.mxu1 %v14010_v57  ;;  %v14092_v57 = vld [vmem:[#allocation6 + $0x920] ss:$16 sps:$4 sm:$0xff]  }
 0x23e   :  { %4231 = vmatpush1.bf16.msra.mxu0 %v14005_v58  ;;  %v14095_v58 = vld [vmem:[#allocation6 + $0x828] ss:$16 sps:$4 sm:$0xff]  }
 0x23f   :  { %4645 = vmatpush1.bf16.msra.mxu1 %v14008_v59  ;;  %4232 = vmatprep.subr.bf16.mxu0 %v14013_v60  ;;  %v14100_v59 = vld [vmem:[#allocation6 + $0x944] ss:$16 sps:$4 sm:$0xff]   ;;  %v14103_v60 = vld [vmem:[#allocation6 + $0x84c] ss:$16 sps:$4 sm:$0xff]  }
 0x240   :  { %4646 = vmatprep.subr.bf16.mxu1 %v14016_v61  ;;  %v14098_v61 = vld [vmem:[#allocation6 + $0x940] ss:$16 sps:$4 sm:$0xff]  }
 0x242   :  { %4233 = vmatpush1.bf16.msra.mxu0 %v14011_v62  ;;  %v14101_v62 = vld [vmem:[#allocation6 + $0x848] ss:$16 sps:$4 sm:$0xff]  }
 0x243   :  { %4647 = vmatpush1.bf16.msra.mxu1 %v14014_v63  ;;  %4234 = vmatprep.subr.bf16.mxu0 %v14019_v1  ;;  %v14106_v63 = vld [vmem:[#allocation6 + $0x964] ss:$16 sps:$4 sm:$0xff]   ;;  %v14109_v1 = vld [vmem:[#allocation6 + $0x86c] ss:$16 sps:$4 sm:$0xff]  }
 0x244   :  { %4648 = vmatprep.subr.bf16.mxu1 %v14022_v2  ;;  %v14104_v2 = vld [vmem:[#allocation6 + $0x960] ss:$16 sps:$4 sm:$0xff]  }
 0x245   :  { %v16751_v7 = vpop.f32.mrb[0].mxu1 }
 0x246   :  { %v16753_v8 = vpop.f32.mrb[1].mxu1  ;;  %4235 = vmatpush1.bf16.msra.mxu0 %v14017_v3  ;;  %v14107_v3 = vld [vmem:[#allocation6 + $0x868] ss:$16 sps:$4 sm:$0xff]  }
 0x247   :  { %v16755_v10 = vpop.f32.mrb[2].mxu1  ;;  %4649 = vmatpush1.bf16.msra.mxu1 %v14020_v4  ;;  %4236 = vmatprep.subr.bf16.mxu0 %v14025_v5  ;;  %v14112_v4 = vld [vmem:[#allocation6 + $0x984] ss:$16 sps:$4 sm:$0xff]   ;;  %v14115_v5 = vld [vmem:[#allocation6 + $0x88c] ss:$16 sps:$4 sm:$0xff]  }
 0x248   :  { %v16757_v13 = vpop.f32.mrb[3].mxu1  ;;  %4650 = vmatprep.subr.bf16.mxu1 %v14028_v6  ;;  %v14110_v6 = vld [vmem:[#allocation6 + $0x980] ss:$16 sps:$4 sm:$0xff]  }
 0x24a   :  { %4237 = vmatpush1.bf16.msra.mxu0 %v14023_v9  ;;  %v14113_v9 = vld [vmem:[#allocation6 + $0x888] ss:$16 sps:$4 sm:$0xff]  }
 0x24b   :  { %4651 = vmatpush1.bf16.msra.mxu1 %v14026_v11  ;;  %4238 = vmatprep.subr.bf16.mxu0 %v14031_v12  ;;  %v14118_v11 = vld [vmem:[#allocation6 + $0x9a4] ss:$16 sps:$4 sm:$0xff]   ;;  %v14121_v12 = vld [vmem:[#allocation6 + $0x8ac] ss:$16 sps:$4 sm:$0xff]  }
 0x24c   :  { %4652 = vmatprep.subr.bf16.mxu1 %v14034_v14  ;;  %v14116_v14 = vld [vmem:[#allocation6 + $0x9a0] ss:$16 sps:$4 sm:$0xff]  }
 0x24e   :  { %4239 = vmatpush1.bf16.msra.mxu0 %v14029_v15  ;;  %v14119_v15 = vld [vmem:[#allocation6 + $0x8a8] ss:$16 sps:$4 sm:$0xff]  }
 0x24f   :  { %4653 = vmatpush1.bf16.msra.mxu1 %v14032_v16  ;;  %4251 = vmatprep.subr.bf16.mxu0 %v14040_v17  ;;  %v14124_v16 = vld [vmem:[#allocation6 + $0x9c4] ss:$16 sps:$4 sm:$0xff]   ;;  %v14127_v17 = vld [vmem:[#allocation6 + $0x8cc] ss:$16 sps:$4 sm:$0xff]  }
 0x250   :  { %4654 = vmatprep.subr.bf16.mxu1 %v14043_v18  ;;  %v14122_v18 = vld [vmem:[#allocation6 + $0x9c0] ss:$16 sps:$4 sm:$0xff]  }
 0x251   :  { %4241 = vmatmul.mubr.bf16.vlgmr.msra.gmra.mrb[0].mxu0 %v16759_v19 }
 0x252   :  { %4252 = vmatpush1.bf16.msra.mxu0 %v14038_v20  ;;  %4283 = vmatprep.mubr.bf16.mxu0 %v16761_v24  ;;  %v14130_v20 = vld [vmem:[#allocation6 + $0x9e4] ss:$16 sps:$4 sm:$0xff]  }
 0x253   :  { %4655 = vmatpush1.bf16.msra.mxu1 %v14041_v21  ;;  %4253 = vmatprep.subr.bf16.mxu0 %v14046_v22  ;;  %v14133_v21 = vld [vmem:[#allocation6 + $0x8ec] ss:$16 sps:$4 sm:$0xff]   ;;  %v14128_v22 = vld [vmem:[#allocation6 + $0x9e0] ss:$16 sps:$4 sm:$0xff]  }
 0x254   :  { %4656 = vmatprep.subr.bf16.mxu1 %v14049_v23  ;;  %v14131_v23 = vld [vmem:[#allocation6 + $0x8e8] ss:$16 sps:$4 sm:$0xff]  }
 0x256   :  { %4254 = vmatpush1.bf16.msra.mxu0 %v14044_v25  ;;  %v14139_v25 = vld [vmem:[#allocation6 + $0xa04] ss:$16 sps:$4 sm:$0xff]  }
 0x257   :  { %4657 = vmatpush1.bf16.msra.mxu1 %v14047_v26  ;;  %4255 = vmatprep.subr.bf16.mxu0 %v14052_v27  ;;  %v14142_v26 = vld [vmem:[#allocation6 + $0x90c] ss:$16 sps:$4 sm:$0xff]   ;;  %v14137_v27 = vld [vmem:[#allocation6 + $0xa00] ss:$16 sps:$4 sm:$0xff]  }
 0x258   :  { %4658 = vmatprep.subr.bf16.mxu1 %v14055_v28  ;;  %v14140_v28 = vld [vmem:[#allocation6 + $0x908] ss:$16 sps:$4 sm:$0xff]  }
 0x25a   :  { %4256 = vmatpush1.bf16.msra.mxu0 %v14050_v29  ;;  %v14145_v29 = vld [vmem:[#allocation6 + $0xa24] ss:$16 sps:$4 sm:$0xff]  }
 0x25b   :  { %4659 = vmatpush1.bf16.msra.mxu1 %v14053_v30  ;;  %4257 = vmatprep.subr.bf16.mxu0 %v14058_v31  ;;  %v14148_v30 = vld [vmem:[#allocation6 + $0x92c] ss:$16 sps:$4 sm:$0xff]   ;;  %v16769_v31 = vld [vmem:[#allocation3 + $0x2c] ss:$76 sps:$4 sm:$0xff]  }
 0x25c   :  { %4660 = vmatprep.subr.bf16.mxu1 %v14061_v32  ;;  %v14143_v32 = vld [vmem:[#allocation6 + $0xa20] ss:$16 sps:$4 sm:$0xff]  }
 0x25e   :  { %4258 = vmatpush1.bf16.msra.mxu0 %v14056_v33  ;;  %v14146_v33 = vld [vmem:[#allocation6 + $0x928] ss:$16 sps:$4 sm:$0xff]  }
 0x25f   :  { %4661 = vmatpush1.bf16.msra.mxu1 %v14059_v34  ;;  %4259 = vmatprep.subr.bf16.mxu0 %v14064_v35  ;;  %v14151_v34 = vld [vmem:[#allocation6 + $0xa44] ss:$16 sps:$4 sm:$0xff]   ;;  %v14154_v35 = vld [vmem:[#allocation6 + $0x94c] ss:$16 sps:$4 sm:$0xff]  }
 0x260   :  { %4662 = vmatprep.subr.bf16.mxu1 %v14067_v36  ;;  %v14149_v36 = vld [vmem:[#allocation6 + $0xa40] ss:$16 sps:$4 sm:$0xff]  }
 0x262   :  { %4260 = vmatpush1.bf16.msra.mxu0 %v14062_v37  ;;  %v14152_v37 = vld [vmem:[#allocation6 + $0x948] ss:$16 sps:$4 sm:$0xff]  }
 0x263   :  { %4663 = vmatpush1.bf16.msra.mxu1 %v14065_v38  ;;  %4261 = vmatprep.subr.bf16.mxu0 %v14070_v39  ;;  %v14157_v38 = vld [vmem:[#allocation6 + $0xa64] ss:$16 sps:$4 sm:$0xff]   ;;  %v14160_v39 = vld [vmem:[#allocation6 + $0x96c] ss:$16 sps:$4 sm:$0xff]  }
 0x264   :  { %4664 = vmatprep.subr.bf16.mxu1 %v14073_v40  ;;  %v14155_v40 = vld [vmem:[#allocation6 + $0xa60] ss:$16 sps:$4 sm:$0xff]  }
 0x266   :  { %4262 = vmatpush1.bf16.msra.mxu0 %v14068_v41  ;;  %v14158_v41 = vld [vmem:[#allocation6 + $0x968] ss:$16 sps:$4 sm:$0xff]  }
 0x267   :  { %4665 = vmatpush1.bf16.msra.mxu1 %v14071_v42  ;;  %4263 = vmatprep.subr.bf16.mxu0 %v14076_v43  ;;  %v14163_v42 = vld [vmem:[#allocation6 + $0xa84] ss:$16 sps:$4 sm:$0xff]   ;;  %v14166_v43 = vld [vmem:[#allocation6 + $0x98c] ss:$16 sps:$4 sm:$0xff]  }
 0x268   :  { %4666 = vmatprep.subr.bf16.mxu1 %v14079_v44  ;;  %v14161_v44 = vld [vmem:[#allocation6 + $0xa80] ss:$16 sps:$4 sm:$0xff]  }
 0x26a   :  { %4264 = vmatpush1.bf16.msra.mxu0 %v14074_v45  ;;  %v14164_v45 = vld [vmem:[#allocation6 + $0x988] ss:$16 sps:$4 sm:$0xff]  }
 0x26b   :  { %4667 = vmatpush1.bf16.msra.mxu1 %v14077_v46  ;;  %4265 = vmatprep.subr.bf16.mxu0 %v14082_v47  ;;  %v14169_v46 = vld [vmem:[#allocation6 + $0xaa4] ss:$16 sps:$4 sm:$0xff]   ;;  %v14172_v47 = vld [vmem:[#allocation6 + $0x9ac] ss:$16 sps:$4 sm:$0xff]  }
 0x26c   :  { %4668 = vmatprep.subr.bf16.mxu1 %v14085_v48  ;;  %v14167_v48 = vld [vmem:[#allocation6 + $0xaa0] ss:$16 sps:$4 sm:$0xff]  }
 0x26e   :  { %4266 = vmatpush1.bf16.msra.mxu0 %v14080_v49  ;;  %v14170_v49 = vld [vmem:[#allocation6 + $0x9a8] ss:$16 sps:$4 sm:$0xff]  }
 0x26f   :  { %4669 = vmatpush1.bf16.msra.mxu1 %v14083_v50  ;;  %4267 = vmatprep.subr.bf16.mxu0 %v14088_v51  ;;  %v14175_v50 = vld [vmem:[#allocation6 + $0xac4] ss:$16 sps:$4 sm:$0xff]   ;;  %v14178_v51 = vld [vmem:[#allocation6 + $0x9cc] ss:$16 sps:$4 sm:$0xff]  }
 0x270   :  { %4681 = vmatprep.subr.bf16.mxu1 %v14091_v52  ;;  %v14173_v52 = vld [vmem:[#allocation6 + $0xac0] ss:$16 sps:$4 sm:$0xff]  }
 0x272   :  { %4671 = vmatmul.mubr.bf16.vlgmr.msra.gmra.mrb[4].mxu1 %v16759_v19  ;;  %4268 = vmatpush1.bf16.msra.mxu0 %v14086_v53  ;;  %v14125_v19 = vld [vmem:[#allocation6 + $0x8c8] ss:$16 sps:$4 sm:$0xff]  }
 0x273   :  { %4682 = vmatpush1.bf16.msra.mxu1 %v14089_v54  ;;  %4269 = vmatprep.subr.bf16.mxu0 %v14094_v55  ;;  %v14176_v53 = vld [vmem:[#allocation6 + $0x9c8] ss:$16 sps:$4 sm:$0xff]   ;;  %v14181_v54 = vld [vmem:[#allocation6 + $0xae4] ss:$16 sps:$4 sm:$0xff]   ;;  %v14184_v55 = vld [vmem:[#allocation6 + $0x9ec] ss:$16 sps:$4 sm:$0xff]  }
 0x274   :  { %4683 = vmatprep.subr.bf16.mxu1 %v14097_v56  ;;  %4713 = vmatprep.mubr.bf16.mxu1 %v16761_v24  ;;  %v16767_v24 = vld [vmem:[#allocation3 + $0x20] ss:$76 sps:$4 sm:$0xff]   ;;  %v14179_v56 = vld [vmem:[#allocation6 + $0xae0] ss:$16 sps:$4 sm:$0xff]  }
 0x276   :  { %4270 = vmatpush1.bf16.msra.mxu0 %v14092_v57  ;;  %v14182_v57 = vld [vmem:[#allocation6 + $0x9e8] ss:$16 sps:$4 sm:$0xff]  }
 0x277   :  { %4684 = vmatpush1.bf16.msra.mxu1 %v14095_v58  ;;  %4271 = vmatprep.subr.bf16.mxu0 %v14100_v59  ;;  %v14187_v58 = vld [vmem:[#allocation6 + $0xb04] ss:$16 sps:$4 sm:$0xff]   ;;  %v14190_v59 = vld [vmem:[#allocation6 + $0xa0c] ss:$16 sps:$4 sm:$0xff]  }
 0x278   :  { %4685 = vmatprep.subr.bf16.mxu1 %v14103_v60  ;;  %v14185_v60 = vld [vmem:[#allocation6 + $0xb00] ss:$16 sps:$4 sm:$0xff]  }
 0x27a   :  { %4272 = vmatpush1.bf16.msra.mxu0 %v14098_v61  ;;  %v14188_v61 = vld [vmem:[#allocation6 + $0xa08] ss:$16 sps:$4 sm:$0xff]  }
 0x27b   :  { %4686 = vmatpush1.bf16.msra.mxu1 %v14101_v62  ;;  %4273 = vmatprep.subr.bf16.mxu0 %v14106_v63  ;;  %v14193_v62 = vld [vmem:[#allocation6 + $0xb24] ss:$16 sps:$4 sm:$0xff]   ;;  %v14196_v63 = vld [vmem:[#allocation6 + $0xa2c] ss:$16 sps:$4 sm:$0xff]  }
 0x27c   :  { %4687 = vmatprep.subr.bf16.mxu1 %v14109_v1  ;;  %v14191_v1 = vld [vmem:[#allocation6 + $0xb20] ss:$16 sps:$4 sm:$0xff]  }
 0x27e   :  { %4274 = vmatpush1.bf16.msra.mxu0 %v14104_v2  ;;  %v14194_v2 = vld [vmem:[#allocation6 + $0xa28] ss:$16 sps:$4 sm:$0xff]  }
 0x27f   :  { %4688 = vmatpush1.bf16.msra.mxu1 %v14107_v3  ;;  %4275 = vmatprep.subr.bf16.mxu0 %v14112_v4  ;;  %v14199_v3 = vld [vmem:[#allocation6 + $0xb44] ss:$16 sps:$4 sm:$0xff]   ;;  %v14202_v4 = vld [vmem:[#allocation6 + $0xa4c] ss:$16 sps:$4 sm:$0xff]  }
 0x280   :  { %4689 = vmatprep.subr.bf16.mxu1 %v14115_v5  ;;  %v14197_v5 = vld [vmem:[#allocation6 + $0xb40] ss:$16 sps:$4 sm:$0xff]  }
 0x282   :  { %4276 = vmatpush1.bf16.msra.mxu0 %v14110_v6  ;;  %v14200_v6 = vld [vmem:[#allocation6 + $0xa48] ss:$16 sps:$4 sm:$0xff]  }
 0x283   :  { %4690 = vmatpush1.bf16.msra.mxu1 %v14113_v9  ;;  %4277 = vmatprep.subr.bf16.mxu0 %v14118_v11  ;;  %v14205_v9 = vld [vmem:[#allocation6 + $0xb64] ss:$16 sps:$4 sm:$0xff]   ;;  %v14208_v11 = vld [vmem:[#allocation6 + $0xa6c] ss:$16 sps:$4 sm:$0xff]  }
 0x284   :  { %4691 = vmatprep.subr.bf16.mxu1 %v14121_v12  ;;  %v14203_v12 = vld [vmem:[#allocation6 + $0xb60] ss:$16 sps:$4 sm:$0xff]  }
 0x286   :  { %4278 = vmatpush1.bf16.msra.mxu0 %v14116_v14  ;;  %v14206_v14 = vld [vmem:[#allocation6 + $0xa68] ss:$16 sps:$4 sm:$0xff]  }
 0x287   :  { %4692 = vmatpush1.bf16.msra.mxu1 %v14119_v15  ;;  %4279 = vmatprep.subr.bf16.mxu0 %v14124_v16  ;;  %v14211_v15 = vld [vmem:[#allocation6 + $0xb84] ss:$16 sps:$4 sm:$0xff]   ;;  %v14214_v16 = vld [vmem:[#allocation6 + $0xa8c] ss:$16 sps:$4 sm:$0xff]  }
 0x288   :  { %4693 = vmatprep.subr.bf16.mxu1 %v14127_v17  ;;  %v14209_v17 = vld [vmem:[#allocation6 + $0xb80] ss:$16 sps:$4 sm:$0xff]  }
 0x28a   :  { %4280 = vmatpush1.bf16.msra.mxu0 %v14122_v18  ;;  %v14212_v18 = vld [vmem:[#allocation6 + $0xa88] ss:$16 sps:$4 sm:$0xff]  }
 0x28b   :  { %4694 = vmatpush1.bf16.msra.mxu1 %v14125_v19  ;;  %4281 = vmatprep.subr.bf16.mxu0 %v14130_v20  ;;  %v14217_v19 = vld [vmem:[#allocation6 + $0xba4] ss:$16 sps:$4 sm:$0xff]   ;;  %v14220_v20 = vld [vmem:[#allocation6 + $0xaac] ss:$16 sps:$4 sm:$0xff]  }
 0x28c   :  { %4695 = vmatprep.subr.bf16.mxu1 %v14133_v21  ;;  %v14215_v21 = vld [vmem:[#allocation6 + $0xba0] ss:$16 sps:$4 sm:$0xff]  }
 0x28e   :  { %4282 = vmatpush1.bf16.msra.mxu0 %v14128_v22  ;;  %v14218_v22 = vld [vmem:[#allocation6 + $0xaa8] ss:$16 sps:$4 sm:$0xff]  }
 0x28f   :  { %4696 = vmatpush1.bf16.msra.mxu1 %v14131_v23  ;;  %4294 = vmatprep.subr.bf16.mxu0 %v14139_v25  ;;  %v14223_v23 = vld [vmem:[#allocation6 + $0xbc4] ss:$16 sps:$4 sm:$0xff]   ;;  %v14221_v25 = vld [vmem:[#allocation6 + $0xbc0] ss:$16 sps:$4 sm:$0xff]  }
 0x290   :  { %4697 = vmatprep.subr.bf16.mxu1 %v14142_v26  ;;  %v14224_v26 = vld [vmem:[#allocation6 + $0xac8] ss:$16 sps:$4 sm:$0xff]  }
 0x291   :  { %4284 = vmatmul.mubr.bf16.vlgmr.msra.gmra.mrb[0].mxu0 %v16767_v24 }
 0x292   :  { %4295 = vmatpush1.bf16.msra.mxu0 %v14137_v27  ;;  %4326 = vmatprep.mubr.bf16.mxu0 %v16769_v31  ;;  %v14229_v27 = vld [vmem:[#allocation6 + $0xbe4] ss:$16 sps:$4 sm:$0xff]  }
 0x293   :  { %4698 = vmatpush1.bf16.msra.mxu1 %v14140_v28  ;;  %4296 = vmatprep.subr.bf16.mxu0 %v14145_v29  ;;  %v14232_v28 = vld [vmem:[#allocation6 + $0xaec] ss:$16 sps:$4 sm:$0xff]   ;;  %v14227_v29 = vld [vmem:[#allocation6 + $0xbe0] ss:$16 sps:$4 sm:$0xff]  }
 0x294   :  { %4699 = vmatprep.subr.bf16.mxu1 %v14148_v30  ;;  %v14230_v30 = vld [vmem:[#allocation6 + $0xae8] ss:$16 sps:$4 sm:$0xff]  }
 0x296   :  { %4297 = vmatpush1.bf16.msra.mxu0 %v14143_v32  ;;  %v14238_v32 = vld [vmem:[#allocation6 + $0xc04] ss:$16 sps:$4 sm:$0xff]  }
 0x297   :  { %4700 = vmatpush1.bf16.msra.mxu1 %v14146_v33  ;;  %4298 = vmatprep.subr.bf16.mxu0 %v14151_v34  ;;  %v14241_v33 = vld [vmem:[#allocation6 + $0xb0c] ss:$16 sps:$4 sm:$0xff]   ;;  %v14236_v34 = vld [vmem:[#allocation6 + $0xc00] ss:$16 sps:$4 sm:$0xff]  }
 0x298   :  { %4701 = vmatprep.subr.bf16.mxu1 %v14154_v35  ;;  %v14239_v35 = vld [vmem:[#allocation6 + $0xb08] ss:$16 sps:$4 sm:$0xff]  }
 0x29a   :  { %4299 = vmatpush1.bf16.msra.mxu0 %v14149_v36  ;;  %v14244_v36 = vld [vmem:[#allocation6 + $0xc24] ss:$16 sps:$4 sm:$0xff]  }
 0x29b   :  { %4702 = vmatpush1.bf16.msra.mxu1 %v14152_v37  ;;  %4300 = vmatprep.subr.bf16.mxu0 %v14157_v38  ;;  %v14247_v37 = vld [vmem:[#allocation6 + $0xb2c] ss:$16 sps:$4 sm:$0xff]  }
 0x29c   :  { %4703 = vmatprep.subr.bf16.mxu1 %v14160_v39  ;;  %v16777_v38 = vld [vmem:[#allocation3 + $0x34] ss:$76 sps:$4 sm:$0xff]   ;;  %v14242_v39 = vld [vmem:[#allocation6 + $0xc20] ss:$16 sps:$4 sm:$0xff]  }
 0x29e   :  { %4301 = vmatpush1.bf16.msra.mxu0 %v14155_v40  ;;  %v14245_v40 = vld [vmem:[#allocation6 + $0xb28] ss:$16 sps:$4 sm:$0xff]  }
 0x29f   :  { %4704 = vmatpush1.bf16.msra.mxu1 %v14158_v41  ;;  %4302 = vmatprep.subr.bf16.mxu0 %v14163_v42  ;;  %v14250_v41 = vld [vmem:[#allocation6 + $0xc44] ss:$16 sps:$4 sm:$0xff]   ;;  %v14253_v42 = vld [vmem:[#allocation6 + $0xb4c] ss:$16 sps:$4 sm:$0xff]  }
 0x2a0   :  { %4705 = vmatprep.subr.bf16.mxu1 %v14166_v43  ;;  %v14248_v43 = vld [vmem:[#allocation6 + $0xc40] ss:$16 sps:$4 sm:$0xff]  }
 0x2a2   :  { %4303 = vmatpush1.bf16.msra.mxu0 %v14161_v44  ;;  %v14251_v44 = vld [vmem:[#allocation6 + $0xb48] ss:$16 sps:$4 sm:$0xff]  }
 0x2a3   :  { %4706 = vmatpush1.bf16.msra.mxu1 %v14164_v45  ;;  %4304 = vmatprep.subr.bf16.mxu0 %v14169_v46  ;;  %v14256_v45 = vld [vmem:[#allocation6 + $0xc64] ss:$16 sps:$4 sm:$0xff]   ;;  %v14259_v46 = vld [vmem:[#allocation6 + $0xb6c] ss:$16 sps:$4 sm:$0xff]  }
 0x2a4   :  { %4707 = vmatprep.subr.bf16.mxu1 %v14172_v47  ;;  %v14254_v47 = vld [vmem:[#allocation6 + $0xc60] ss:$16 sps:$4 sm:$0xff]  }
 0x2a6   :  { %4305 = vmatpush1.bf16.msra.mxu0 %v14167_v48  ;;  %v14257_v48 = vld [vmem:[#allocation6 + $0xb68] ss:$16 sps:$4 sm:$0xff]  }
 0x2a7   :  { %4708 = vmatpush1.bf16.msra.mxu1 %v14170_v49  ;;  %4306 = vmatprep.subr.bf16.mxu0 %v14175_v50  ;;  %v14262_v49 = vld [vmem:[#allocation6 + $0xc84] ss:$16 sps:$4 sm:$0xff]   ;;  %v14265_v50 = vld [vmem:[#allocation6 + $0xb8c] ss:$16 sps:$4 sm:$0xff]  }
 0x2a8   :  { %4709 = vmatprep.subr.bf16.mxu1 %v14178_v51  ;;  %v14260_v51 = vld [vmem:[#allocation6 + $0xc80] ss:$16 sps:$4 sm:$0xff]  }
 0x2aa   :  { %4307 = vmatpush1.bf16.msra.mxu0 %v14173_v52  ;;  %v14263_v52 = vld [vmem:[#allocation6 + $0xb88] ss:$16 sps:$4 sm:$0xff]  }
 0x2ab   :  { %4710 = vmatpush1.bf16.msra.mxu1 %v14176_v53  ;;  %4308 = vmatprep.subr.bf16.mxu0 %v14181_v54  ;;  %v14268_v53 = vld [vmem:[#allocation6 + $0xca4] ss:$16 sps:$4 sm:$0xff]   ;;  %v14271_v54 = vld [vmem:[#allocation6 + $0xbac] ss:$16 sps:$4 sm:$0xff]  }
 0x2ac   :  { %4711 = vmatprep.subr.bf16.mxu1 %v14184_v55  ;;  %v14266_v55 = vld [vmem:[#allocation6 + $0xca0] ss:$16 sps:$4 sm:$0xff]  }
 0x2ae   :  { %4309 = vmatpush1.bf16.msra.mxu0 %v14179_v56  ;;  %v14269_v56 = vld [vmem:[#allocation6 + $0xba8] ss:$16 sps:$4 sm:$0xff]  }
 0x2af   :  { %4712 = vmatpush1.bf16.msra.mxu1 %v14182_v57  ;;  %4310 = vmatprep.subr.bf16.mxu0 %v14187_v58  ;;  %v14274_v57 = vld [vmem:[#allocation6 + $0xcc4] ss:$16 sps:$4 sm:$0xff]   ;;  %v14277_v58 = vld [vmem:[#allocation6 + $0xbcc] ss:$16 sps:$4 sm:$0xff]  }
 0x2b0   :  { %4724 = vmatprep.subr.bf16.mxu1 %v14190_v59  ;;  %v14272_v59 = vld [vmem:[#allocation6 + $0xcc0] ss:$16 sps:$4 sm:$0xff]  }
 0x2b2   :  { %4714 = vmatmul.mubr.bf16.vlgmr.msra.gmra.mrb[4].mxu1 %v16767_v24  ;;  %4311 = vmatpush1.bf16.msra.mxu0 %v14185_v60  ;;  %v14226_v24 = vld [vmem:[#allocation6 + $0xacc] ss:$16 sps:$4 sm:$0xff]   ;;  %v14275_v60 = vld [vmem:[#allocation6 + $0xbc8] ss:$16 sps:$4 sm:$0xff]  }
 0x2b3   :  { %4725 = vmatpush1.bf16.msra.mxu1 %v14188_v61  ;;  %4312 = vmatprep.subr.bf16.mxu0 %v14193_v62  ;;  %v14280_v61 = vld [vmem:[#allocation6 + $0xce4] ss:$16 sps:$4 sm:$0xff]   ;;  %v14283_v62 = vld [vmem:[#allocation6 + $0xbec] ss:$16 sps:$4 sm:$0xff]  }
 0x2b4   :  { %4726 = vmatprep.subr.bf16.mxu1 %v14196_v63  ;;  %4756 = vmatprep.mubr.bf16.mxu1 %v16769_v31  ;;  %v16775_v31 = vld [vmem:[#allocation3 + $0x28] ss:$76 sps:$4 sm:$0xff]  }
 0x2b5   :  { %v14278_v63 = vld [vmem:[#allocation6 + $0xce0] ss:$16 sps:$4 sm:$0xff]  }
 0x2b6   :  { %4313 = vmatpush1.bf16.msra.mxu0 %v14191_v1  ;;  %v14281_v1 = vld [vmem:[#allocation6 + $0xbe8] ss:$16 sps:$4 sm:$0xff]  }
 0x2b7   :  { %4727 = vmatpush1.bf16.msra.mxu1 %v14194_v2  ;;  %4314 = vmatprep.subr.bf16.mxu0 %v14199_v3  ;;  %v14286_v2 = vld [vmem:[#allocation6 + $0xd04] ss:$16 sps:$4 sm:$0xff]   ;;  %v14289_v3 = vld [vmem:[#allocation6 + $0xc0c] ss:$16 sps:$4 sm:$0xff]  }
 0x2b8   :  { %4728 = vmatprep.subr.bf16.mxu1 %v14202_v4  ;;  %v14284_v4 = vld [vmem:[#allocation6 + $0xd00] ss:$16 sps:$4 sm:$0xff]  }
 0x2ba   :  { %4315 = vmatpush1.bf16.msra.mxu0 %v14197_v5  ;;  %v14287_v5 = vld [vmem:[#allocation6 + $0xc08] ss:$16 sps:$4 sm:$0xff]  }
 0x2bb   :  { %4729 = vmatpush1.bf16.msra.mxu1 %v14200_v6  ;;  %4316 = vmatprep.subr.bf16.mxu0 %v14205_v9  ;;  %v14292_v6 = vld [vmem:[#allocation6 + $0xd24] ss:$16 sps:$4 sm:$0xff]   ;;  %v14295_v9 = vld [vmem:[#allocation6 + $0xc2c] ss:$16 sps:$4 sm:$0xff]  }
 0x2bc   :  { %4730 = vmatprep.subr.bf16.mxu1 %v14208_v11  ;;  %v14290_v11 = vld [vmem:[#allocation6 + $0xd20] ss:$16 sps:$4 sm:$0xff]  }
 0x2be   :  { %4317 = vmatpush1.bf16.msra.mxu0 %v14203_v12  ;;  %v14293_v12 = vld [vmem:[#allocation6 + $0xc28] ss:$16 sps:$4 sm:$0xff]  }
 0x2bf   :  { %4731 = vmatpush1.bf16.msra.mxu1 %v14206_v14  ;;  %4318 = vmatprep.subr.bf16.mxu0 %v14211_v15  ;;  %v14298_v14 = vld [vmem:[#allocation6 + $0xd44] ss:$16 sps:$4 sm:$0xff]   ;;  %v14301_v15 = vld [vmem:[#allocation6 + $0xc4c] ss:$16 sps:$4 sm:$0xff]  }
 0x2c0   :  { %4732 = vmatprep.subr.bf16.mxu1 %v14214_v16  ;;  %v14296_v16 = vld [vmem:[#allocation6 + $0xd40] ss:$16 sps:$4 sm:$0xff]  }
 0x2c2   :  { %4319 = vmatpush1.bf16.msra.mxu0 %v14209_v17  ;;  %v14299_v17 = vld [vmem:[#allocation6 + $0xc48] ss:$16 sps:$4 sm:$0xff]  }
 0x2c3   :  { %4733 = vmatpush1.bf16.msra.mxu1 %v14212_v18  ;;  %4320 = vmatprep.subr.bf16.mxu0 %v14217_v19  ;;  %v14304_v18 = vld [vmem:[#allocation6 + $0xd64] ss:$16 sps:$4 sm:$0xff]   ;;  %v14307_v19 = vld [vmem:[#allocation6 + $0xc6c] ss:$16 sps:$4 sm:$0xff]  }
 0x2c4   :  { %4734 = vmatprep.subr.bf16.mxu1 %v14220_v20  ;;  %v14302_v20 = vld [vmem:[#allocation6 + $0xd60] ss:$16 sps:$4 sm:$0xff]  }
 0x2c6   :  { %4321 = vmatpush1.bf16.msra.mxu0 %v14215_v21  ;;  %v14305_v21 = vld [vmem:[#allocation6 + $0xc68] ss:$16 sps:$4 sm:$0xff]  }
 0x2c7   :  { %4735 = vmatpush1.bf16.msra.mxu1 %v14218_v22  ;;  %4322 = vmatprep.subr.bf16.mxu0 %v14223_v23  ;;  %v14310_v22 = vld [vmem:[#allocation6 + $0xd84] ss:$16 sps:$4 sm:$0xff]   ;;  %v14313_v23 = vld [vmem:[#allocation6 + $0xc8c] ss:$16 sps:$4 sm:$0xff]  }
 0x2c8   :  { %4736 = vmatprep.subr.bf16.mxu1 %v14226_v24  ;;  %v14308_v24 = vld [vmem:[#allocation6 + $0xd80] ss:$16 sps:$4 sm:$0xff]  }
 0x2ca   :  { %4323 = vmatpush1.bf16.msra.mxu0 %v14221_v25  ;;  %v14311_v25 = vld [vmem:[#allocation6 + $0xc88] ss:$16 sps:$4 sm:$0xff]  }
 0x2cb   :  { %4737 = vmatpush1.bf16.msra.mxu1 %v14224_v26  ;;  %4324 = vmatprep.subr.bf16.mxu0 %v14229_v27  ;;  %v14316_v26 = vld [vmem:[#allocation6 + $0xda4] ss:$16 sps:$4 sm:$0xff]   ;;  %v14319_v27 = vld [vmem:[#allocation6 + $0xcac] ss:$16 sps:$4 sm:$0xff]  }
 0x2cc   :  { %4738 = vmatprep.subr.bf16.mxu1 %v14232_v28  ;;  %v14314_v28 = vld [vmem:[#allocation6 + $0xda0] ss:$16 sps:$4 sm:$0xff]  }
 0x2ce   :  { %4325 = vmatpush1.bf16.msra.mxu0 %v14227_v29  ;;  %v14317_v29 = vld [vmem:[#allocation6 + $0xca8] ss:$16 sps:$4 sm:$0xff]  }
 0x2cf   :  { %4739 = vmatpush1.bf16.msra.mxu1 %v14230_v30  ;;  %4337 = vmatprep.subr.bf16.mxu0 %v14238_v32  ;;  %v14322_v30 = vld [vmem:[#allocation6 + $0xdc4] ss:$16 sps:$4 sm:$0xff]   ;;  %v14320_v32 = vld [vmem:[#allocation6 + $0xdc0] ss:$16 sps:$4 sm:$0xff]  }
 0x2d0   :  { %4740 = vmatprep.subr.bf16.mxu1 %v14241_v33  ;;  %v14323_v33 = vld [vmem:[#allocation6 + $0xcc8] ss:$16 sps:$4 sm:$0xff]  }
 0x2d1   :  { %4327 = vmatmul.mubr.bf16.vlgmr.msra.gmra.mrb[0].mxu0 %v16775_v31 }
 0x2d2   :  { %4338 = vmatpush1.bf16.msra.mxu0 %v14236_v34  ;;  %4369 = vmatprep.mubr.bf16.mxu0 %v16777_v38  ;;  %v14328_v34 = vld [vmem:[#allocation6 + $0xde4] ss:$16 sps:$4 sm:$0xff]  }
 0x2d3   :  { %4741 = vmatpush1.bf16.msra.mxu1 %v14239_v35  ;;  %4339 = vmatprep.subr.bf16.mxu0 %v14244_v36  ;;  %v14331_v35 = vld [vmem:[#allocation6 + $0xcec] ss:$16 sps:$4 sm:$0xff]   ;;  %v14326_v36 = vld [vmem:[#allocation6 + $0xde0] ss:$16 sps:$4 sm:$0xff]  }
 0x2d4   :  { %4742 = vmatprep.subr.bf16.mxu1 %v14247_v37  ;;  %v14329_v37 = vld [vmem:[#allocation6 + $0xce8] ss:$16 sps:$4 sm:$0xff]  }
 0x2d6   :  { %4340 = vmatpush1.bf16.msra.mxu0 %v14242_v39  ;;  %v14337_v39 = vld [vmem:[#allocation6 + $0xe04] ss:$16 sps:$4 sm:$0xff]  }
 0x2d7   :  { %4743 = vmatpush1.bf16.msra.mxu1 %v14245_v40  ;;  %4341 = vmatprep.subr.bf16.mxu0 %v14250_v41  ;;  %v14340_v40 = vld [vmem:[#allocation6 + $0xd0c] ss:$16 sps:$4 sm:$0xff]   ;;  %v14335_v41 = vld [vmem:[#allocation6 + $0xe00] ss:$16 sps:$4 sm:$0xff]  }
 0x2d8   :  { %4744 = vmatprep.subr.bf16.mxu1 %v14253_v42  ;;  %v14338_v42 = vld [vmem:[#allocation6 + $0xd08] ss:$16 sps:$4 sm:$0xff]  }
 0x2da   :  { %4342 = vmatpush1.bf16.msra.mxu0 %v14248_v43  ;;  %v14343_v43 = vld [vmem:[#allocation6 + $0xe24] ss:$16 sps:$4 sm:$0xff]  }
 0x2db   :  { %4745 = vmatpush1.bf16.msra.mxu1 %v14251_v44  ;;  %4343 = vmatprep.subr.bf16.mxu0 %v14256_v45  ;;  %v14346_v44 = vld [vmem:[#allocation6 + $0xd2c] ss:$16 sps:$4 sm:$0xff]   ;;  %v14341_v45 = vld [vmem:[#allocation6 + $0xe20] ss:$16 sps:$4 sm:$0xff]  }
 0x2dc   :  { %4746 = vmatprep.subr.bf16.mxu1 %v14259_v46  ;;  %v14344_v46 = vld [vmem:[#allocation6 + $0xd28] ss:$16 sps:$4 sm:$0xff]  }
 0x2de   :  { %4344 = vmatpush1.bf16.msra.mxu0 %v14254_v47  ;;  %v16785_v47 = vld [vmem:[#allocation3 + $0x3c] ss:$76 sps:$4 sm:$0xff]  }
 0x2df   :  { %4747 = vmatpush1.bf16.msra.mxu1 %v14257_v48  ;;  %4345 = vmatprep.subr.bf16.mxu0 %v14262_v49  ;;  %v14349_v48 = vld [vmem:[#allocation6 + $0xe44] ss:$16 sps:$4 sm:$0xff]   ;;  %v14352_v49 = vld [vmem:[#allocation6 + $0xd4c] ss:$16 sps:$4 sm:$0xff]  }
 0x2e0   :  { %4748 = vmatprep.subr.bf16.mxu1 %v14265_v50  ;;  %v14347_v50 = vld [vmem:[#allocation6 + $0xe40] ss:$16 sps:$4 sm:$0xff]  }
 0x2e2   :  { %4346 = vmatpush1.bf16.msra.mxu0 %v14260_v51  ;;  %v14350_v51 = vld [vmem:[#allocation6 + $0xd48] ss:$16 sps:$4 sm:$0xff]  }
 0x2e3   :  { %4749 = vmatpush1.bf16.msra.mxu1 %v14263_v52  ;;  %4347 = vmatprep.subr.bf16.mxu0 %v14268_v53  ;;  %v14355_v52 = vld [vmem:[#allocation6 + $0xe64] ss:$16 sps:$4 sm:$0xff]   ;;  %v14358_v53 = vld [vmem:[#allocation6 + $0xd6c] ss:$16 sps:$4 sm:$0xff]  }
 0x2e4   :  { %4750 = vmatprep.subr.bf16.mxu1 %v14271_v54  ;;  %v14353_v54 = vld [vmem:[#allocation6 + $0xe60] ss:$16 sps:$4 sm:$0xff]  }
 0x2e6   :  { %4348 = vmatpush1.bf16.msra.mxu0 %v14266_v55  ;;  %v14356_v55 = vld [vmem:[#allocation6 + $0xd68] ss:$16 sps:$4 sm:$0xff]  }
 0x2e7   :  { %4751 = vmatpush1.bf16.msra.mxu1 %v14269_v56  ;;  %4349 = vmatprep.subr.bf16.mxu0 %v14274_v57  ;;  %v14361_v56 = vld [vmem:[#allocation6 + $0xe84] ss:$16 sps:$4 sm:$0xff]   ;;  %v14364_v57 = vld [vmem:[#allocation6 + $0xd8c] ss:$16 sps:$4 sm:$0xff]  }
 0x2e8   :  { %4752 = vmatprep.subr.bf16.mxu1 %v14277_v58  ;;  %v14359_v58 = vld [vmem:[#allocation6 + $0xe80] ss:$16 sps:$4 sm:$0xff]  }
 0x2ea   :  { %4350 = vmatpush1.bf16.msra.mxu0 %v14272_v59  ;;  %v14362_v59 = vld [vmem:[#allocation6 + $0xd88] ss:$16 sps:$4 sm:$0xff]  }
 0x2eb   :  { %4753 = vmatpush1.bf16.msra.mxu1 %v14275_v60  ;;  %4351 = vmatprep.subr.bf16.mxu0 %v14280_v61  ;;  %v14367_v60 = vld [vmem:[#allocation6 + $0xea4] ss:$16 sps:$4 sm:$0xff]   ;;  %v14370_v61 = vld [vmem:[#allocation6 + $0xdac] ss:$16 sps:$4 sm:$0xff]  }
 0x2ec   :  { %4754 = vmatprep.subr.bf16.mxu1 %v14283_v62  ;;  %v14365_v62 = vld [vmem:[#allocation6 + $0xea0] ss:$16 sps:$4 sm:$0xff]  }
 0x2ee   :  { %4352 = vmatpush1.bf16.msra.mxu0 %v14278_v63  ;;  %v14368_v63 = vld [vmem:[#allocation6 + $0xda8] ss:$16 sps:$4 sm:$0xff]  }
 0x2ef   :  { %4755 = vmatpush1.bf16.msra.mxu1 %v14281_v1  ;;  %4353 = vmatprep.subr.bf16.mxu0 %v14286_v2  ;;  %v14373_v1 = vld [vmem:[#allocation6 + $0xec4] ss:$16 sps:$4 sm:$0xff]   ;;  %v14376_v2 = vld [vmem:[#allocation6 + $0xdcc] ss:$16 sps:$4 sm:$0xff]  }
 0x2f0   :  { %4767 = vmatprep.subr.bf16.mxu1 %v14289_v3  ;;  %v14371_v3 = vld [vmem:[#allocation6 + $0xec0] ss:$16 sps:$4 sm:$0xff]  }
 0x2f2   :  { %4757 = vmatmul.mubr.bf16.vlgmr.msra.gmra.mrb[4].mxu1 %v16775_v31  ;;  %4354 = vmatpush1.bf16.msra.mxu0 %v14284_v4  ;;  %v14325_v31 = vld [vmem:[#allocation6 + $0xccc] ss:$16 sps:$4 sm:$0xff]   ;;  %v14374_v4 = vld [vmem:[#allocation6 + $0xdc8] ss:$16 sps:$4 sm:$0xff]  }
 0x2f3   :  { %4768 = vmatpush1.bf16.msra.mxu1 %v14287_v5  ;;  %4355 = vmatprep.subr.bf16.mxu0 %v14292_v6  ;;  %v14379_v5 = vld [vmem:[#allocation6 + $0xee4] ss:$16 sps:$4 sm:$0xff]   ;;  %v14382_v6 = vld [vmem:[#allocation6 + $0xdec] ss:$16 sps:$4 sm:$0xff]  }
 0x2f4   :  { %4769 = vmatprep.subr.bf16.mxu1 %v14295_v9  ;;  %4799 = vmatprep.mubr.bf16.mxu1 %v16777_v38  ;;  %v16783_v38 = vld [vmem:[#allocation3 + $0x30] ss:$76 sps:$4 sm:$0xff]   ;;  %v14377_v9 = vld [vmem:[#allocation6 + $0xee0] ss:$16 sps:$4 sm:$0xff]  }
 0x2f6   :  { %4356 = vmatpush1.bf16.msra.mxu0 %v14290_v11  ;;  %v14380_v11 = vld [vmem:[#allocation6 + $0xde8] ss:$16 sps:$4 sm:$0xff]  }
 0x2f7   :  { %4770 = vmatpush1.bf16.msra.mxu1 %v14293_v12  ;;  %4357 = vmatprep.subr.bf16.mxu0 %v14298_v14  ;;  %v14385_v12 = vld [vmem:[#allocation6 + $0xf04] ss:$16 sps:$4 sm:$0xff]   ;;  %v14388_v14 = vld [vmem:[#allocation6 + $0xe0c] ss:$16 sps:$4 sm:$0xff]  }
 0x2f8   :  { %4771 = vmatprep.subr.bf16.mxu1 %v14301_v15  ;;  %v14383_v15 = vld [vmem:[#allocation6 + $0xf00] ss:$16 sps:$4 sm:$0xff]  }
 0x2fa   :  { %4358 = vmatpush1.bf16.msra.mxu0 %v14296_v16  ;;  %v14386_v16 = vld [vmem:[#allocation6 + $0xe08] ss:$16 sps:$4 sm:$0xff]  }
 0x2fb   :  { %4772 = vmatpush1.bf16.msra.mxu1 %v14299_v17  ;;  %4359 = vmatprep.subr.bf16.mxu0 %v14304_v18  ;;  %v14391_v17 = vld [vmem:[#allocation6 + $0xf24] ss:$16 sps:$4 sm:$0xff]   ;;  %v14394_v18 = vld [vmem:[#allocation6 + $0xe2c] ss:$16 sps:$4 sm:$0xff]  }
 0x2fc   :  { %4773 = vmatprep.subr.bf16.mxu1 %v14307_v19  ;;  %v14389_v19 = vld [vmem:[#allocation6 + $0xf20] ss:$16 sps:$4 sm:$0xff]  }
 0x2fe   :  { %4360 = vmatpush1.bf16.msra.mxu0 %v14302_v20  ;;  %v14392_v20 = vld [vmem:[#allocation6 + $0xe28] ss:$16 sps:$4 sm:$0xff]  }
 0x2ff   :  { %4774 = vmatpush1.bf16.msra.mxu1 %v14305_v21  ;;  %4361 = vmatprep.subr.bf16.mxu0 %v14310_v22  ;;  %v14397_v21 = vld [vmem:[#allocation6 + $0xf44] ss:$16 sps:$4 sm:$0xff]   ;;  %v14400_v22 = vld [vmem:[#allocation6 + $0xe4c] ss:$16 sps:$4 sm:$0xff]  }
 0x300   :  { %4775 = vmatprep.subr.bf16.mxu1 %v14313_v23  ;;  %v14395_v23 = vld [vmem:[#allocation6 + $0xf40] ss:$16 sps:$4 sm:$0xff]  }
 0x302   :  { %4362 = vmatpush1.bf16.msra.mxu0 %v14308_v24  ;;  %v14398_v24 = vld [vmem:[#allocation6 + $0xe48] ss:$16 sps:$4 sm:$0xff]  }
 0x303   :  { %4776 = vmatpush1.bf16.msra.mxu1 %v14311_v25  ;;  %4363 = vmatprep.subr.bf16.mxu0 %v14316_v26  ;;  %v14403_v25 = vld [vmem:[#allocation6 + $0xf64] ss:$16 sps:$4 sm:$0xff]   ;;  %v14406_v26 = vld [vmem:[#allocation6 + $0xe6c] ss:$16 sps:$4 sm:$0xff]  }
 0x304   :  { %4777 = vmatprep.subr.bf16.mxu1 %v14319_v27  ;;  %v14401_v27 = vld [vmem:[#allocation6 + $0xf60] ss:$16 sps:$4 sm:$0xff]  }
 0x306   :  { %4364 = vmatpush1.bf16.msra.mxu0 %v14314_v28  ;;  %v14404_v28 = vld [vmem:[#allocation6 + $0xe68] ss:$16 sps:$4 sm:$0xff]  }
 0x307   :  { %4778 = vmatpush1.bf16.msra.mxu1 %v14317_v29  ;;  %4365 = vmatprep.subr.bf16.mxu0 %v14322_v30  ;;  %v14409_v29 = vld [vmem:[#allocation6 + $0xf84] ss:$16 sps:$4 sm:$0xff]   ;;  %v14412_v30 = vld [vmem:[#allocation6 + $0xe8c] ss:$16 sps:$4 sm:$0xff]  }
 0x308   :  { %4779 = vmatprep.subr.bf16.mxu1 %v14325_v31  ;;  %v14407_v31 = vld [vmem:[#allocation6 + $0xf80] ss:$16 sps:$4 sm:$0xff]  }
 0x30a   :  { %4366 = vmatpush1.bf16.msra.mxu0 %v14320_v32  ;;  %v14410_v32 = vld [vmem:[#allocation6 + $0xe88] ss:$16 sps:$4 sm:$0xff]  }
 0x30b   :  { %4780 = vmatpush1.bf16.msra.mxu1 %v14323_v33  ;;  %4367 = vmatprep.subr.bf16.mxu0 %v14328_v34  ;;  %v14415_v33 = vld [vmem:[#allocation6 + $0xfa4] ss:$16 sps:$4 sm:$0xff]   ;;  %v14418_v34 = vld [vmem:[#allocation6 + $0xeac] ss:$16 sps:$4 sm:$0xff]  }
 0x30c   :  { %4781 = vmatprep.subr.bf16.mxu1 %v14331_v35  ;;  %v14413_v35 = vld [vmem:[#allocation6 + $0xfa0] ss:$16 sps:$4 sm:$0xff]  }
 0x30e   :  { %4368 = vmatpush1.bf16.msra.mxu0 %v14326_v36  ;;  %v14416_v36 = vld [vmem:[#allocation6 + $0xea8] ss:$16 sps:$4 sm:$0xff]  }
 0x30f   :  { %4782 = vmatpush1.bf16.msra.mxu1 %v14329_v37  ;;  %4380 = vmatprep.subr.bf16.mxu0 %v14337_v39  ;;  %v14421_v37 = vld [vmem:[#allocation6 + $0xfc4] ss:$16 sps:$4 sm:$0xff]   ;;  %v14419_v39 = vld [vmem:[#allocation6 + $0xfc0] ss:$16 sps:$4 sm:$0xff]  }
 0x310   :  { %4783 = vmatprep.subr.bf16.mxu1 %v14340_v40  ;;  %v14422_v40 = vld [vmem:[#allocation6 + $0xec8] ss:$16 sps:$4 sm:$0xff]  }
 0x311   :  { %4370 = vmatmul.mubr.bf16.vlgmr.msra.gmra.mrb[0].mxu0 %v16783_v38 }
 0x312   :  { %4381 = vmatpush1.bf16.msra.mxu0 %v14335_v41  ;;  %4412 = vmatprep.mubr.bf16.mxu0 %v16785_v47  ;;  %v14427_v41 = vld [vmem:[#allocation6 + $0xfe4] ss:$16 sps:$4 sm:$0xff]  }
 0x313   :  { %4784 = vmatpush1.bf16.msra.mxu1 %v14338_v42  ;;  %4382 = vmatprep.subr.bf16.mxu0 %v14343_v43  ;;  %v14430_v42 = vld [vmem:[#allocation6 + $0xeec] ss:$16 sps:$4 sm:$0xff]   ;;  %v14425_v43 = vld [vmem:[#allocation6 + $0xfe0] ss:$16 sps:$4 sm:$0xff]  }
 0x314   :  { %4785 = vmatprep.subr.bf16.mxu1 %v14346_v44  ;;  %v14428_v44 = vld [vmem:[#allocation6 + $0xee8] ss:$16 sps:$4 sm:$0xff]  }
 0x316   :  { %4383 = vmatpush1.bf16.msra.mxu0 %v14341_v45  ;;  %v14436_v45 = vld [vmem:[#allocation6 + $0x1004] ss:$16 sps:$4 sm:$0xff]  }
 0x317   :  { %4786 = vmatpush1.bf16.msra.mxu1 %v14344_v46  ;;  %4384 = vmatprep.subr.bf16.mxu0 %v14349_v48  ;;  %v14439_v46 = vld [vmem:[#allocation6 + $0xf0c] ss:$16 sps:$4 sm:$0xff]   ;;  %v14434_v48 = vld [vmem:[#allocation6 + $0x1000] ss:$16 sps:$4 sm:$0xff]  }
 0x318   :  { %4787 = vmatprep.subr.bf16.mxu1 %v14352_v49  ;;  %v14437_v49 = vld [vmem:[#allocation6 + $0xf08] ss:$16 sps:$4 sm:$0xff]  }
 0x31a   :  { %4385 = vmatpush1.bf16.msra.mxu0 %v14347_v50  ;;  %v14442_v50 = vld [vmem:[#allocation6 + $0x1024] ss:$16 sps:$4 sm:$0xff]  }
 0x31b   :  { %4788 = vmatpush1.bf16.msra.mxu1 %v14350_v51  ;;  %4386 = vmatprep.subr.bf16.mxu0 %v14355_v52  ;;  %v14445_v51 = vld [vmem:[#allocation6 + $0xf2c] ss:$16 sps:$4 sm:$0xff]  }
 0x31c   :  { %4789 = vmatprep.subr.bf16.mxu1 %v14358_v53  ;;  %v16793_v52 = vld [vmem:[#allocation3 + $0x44] ss:$76 sps:$4 sm:$0xff]   ;;  %v14440_v53 = vld [vmem:[#allocation6 + $0x1020] ss:$16 sps:$4 sm:$0xff]  }
 0x31e   :  { %4387 = vmatpush1.bf16.msra.mxu0 %v14353_v54  ;;  %v14443_v54 = vld [vmem:[#allocation6 + $0xf28] ss:$16 sps:$4 sm:$0xff]  }
 0x31f   :  { %4790 = vmatpush1.bf16.msra.mxu1 %v14356_v55  ;;  %4388 = vmatprep.subr.bf16.mxu0 %v14361_v56  ;;  %v14448_v55 = vld [vmem:[#allocation6 + $0x1044] ss:$16 sps:$4 sm:$0xff]   ;;  %v14451_v56 = vld [vmem:[#allocation6 + $0xf4c] ss:$16 sps:$4 sm:$0xff]  }
 0x320   :  { %4791 = vmatprep.subr.bf16.mxu1 %v14364_v57  ;;  %v14446_v57 = vld [vmem:[#allocation6 + $0x1040] ss:$16 sps:$4 sm:$0xff]  }
 0x322   :  { %4389 = vmatpush1.bf16.msra.mxu0 %v14359_v58  ;;  %v14449_v58 = vld [vmem:[#allocation6 + $0xf48] ss:$16 sps:$4 sm:$0xff]  }
 0x323   :  { %4792 = vmatpush1.bf16.msra.mxu1 %v14362_v59  ;;  %4390 = vmatprep.subr.bf16.mxu0 %v14367_v60  ;;  %v14454_v59 = vld [vmem:[#allocation6 + $0x1064] ss:$16 sps:$4 sm:$0xff]   ;;  %v14457_v60 = vld [vmem:[#allocation6 + $0xf6c] ss:$16 sps:$4 sm:$0xff]  }
 0x324   :  { %4793 = vmatprep.subr.bf16.mxu1 %v14370_v61  ;;  %v14452_v61 = vld [vmem:[#allocation6 + $0x1060] ss:$16 sps:$4 sm:$0xff]  }
 0x326   :  { %4391 = vmatpush1.bf16.msra.mxu0 %v14365_v62  ;;  %v14455_v62 = vld [vmem:[#allocation6 + $0xf68] ss:$16 sps:$4 sm:$0xff]  }
 0x327   :  { %4794 = vmatpush1.bf16.msra.mxu1 %v14368_v63  ;;  %4392 = vmatprep.subr.bf16.mxu0 %v14373_v1  ;;  %v14460_v63 = vld [vmem:[#allocation6 + $0x1084] ss:$16 sps:$4 sm:$0xff]   ;;  %v14463_v1 = vld [vmem:[#allocation6 + $0xf8c] ss:$16 sps:$4 sm:$0xff]  }
 0x328   :  { %4795 = vmatprep.subr.bf16.mxu1 %v14376_v2  ;;  %v14458_v2 = vld [vmem:[#allocation6 + $0x1080] ss:$16 sps:$4 sm:$0xff]  }
 0x32a   :  { %4393 = vmatpush1.bf16.msra.mxu0 %v14371_v3  ;;  %v14461_v3 = vld [vmem:[#allocation6 + $0xf88] ss:$16 sps:$4 sm:$0xff]  }
 0x32b   :  { %4796 = vmatpush1.bf16.msra.mxu1 %v14374_v4  ;;  %4394 = vmatprep.subr.bf16.mxu0 %v14379_v5  ;;  %v14466_v4 = vld [vmem:[#allocation6 + $0x10a4] ss:$16 sps:$4 sm:$0xff]   ;;  %v14469_v5 = vld [vmem:[#allocation6 + $0xfac] ss:$16 sps:$4 sm:$0xff]  }
 0x32c   :  { %4797 = vmatprep.subr.bf16.mxu1 %v14382_v6  ;;  %v14464_v6 = vld [vmem:[#allocation6 + $0x10a0] ss:$16 sps:$4 sm:$0xff]  }
 0x32e   :  { %4395 = vmatpush1.bf16.msra.mxu0 %v14377_v9  ;;  %v14467_v9 = vld [vmem:[#allocation6 + $0xfa8] ss:$16 sps:$4 sm:$0xff]  }
 0x32f   :  { %4798 = vmatpush1.bf16.msra.mxu1 %v14380_v11  ;;  %4396 = vmatprep.subr.bf16.mxu0 %v14385_v12  ;;  %v14472_v11 = vld [vmem:[#allocation6 + $0x10c4] ss:$16 sps:$4 sm:$0xff]   ;;  %v14475_v12 = vld [vmem:[#allocation6 + $0xfcc] ss:$16 sps:$4 sm:$0xff]  }
 0x330   :  { %4810 = vmatprep.subr.bf16.mxu1 %v14388_v14  ;;  %v14470_v14 = vld [vmem:[#allocation6 + $0x10c0] ss:$16 sps:$4 sm:$0xff]  }
 0x332   :  { %4800 = vmatmul.mubr.bf16.vlgmr.msra.gmra.mrb[4].mxu1 %v16783_v38  ;;  %4397 = vmatpush1.bf16.msra.mxu0 %v14383_v15  ;;  %v14424_v38 = vld [vmem:[#allocation6 + $0xecc] ss:$16 sps:$4 sm:$0xff]   ;;  %v14473_v15 = vld [vmem:[#allocation6 + $0xfc8] ss:$16 sps:$4 sm:$0xff]  }
 0x333   :  { %4811 = vmatpush1.bf16.msra.mxu1 %v14386_v16  ;;  %4398 = vmatprep.subr.bf16.mxu0 %v14391_v17  ;;  %v14478_v16 = vld [vmem:[#allocation6 + $0x10e4] ss:$16 sps:$4 sm:$0xff]   ;;  %v14481_v17 = vld [vmem:[#allocation6 + $0xfec] ss:$16 sps:$4 sm:$0xff]  }
 0x334   :  { %4812 = vmatprep.subr.bf16.mxu1 %v14394_v18  ;;  %4842 = vmatprep.mubr.bf16.mxu1 %v16785_v47  ;;  %v16791_v47 = vld [vmem:[#allocation3 + $0x38] ss:$76 sps:$4 sm:$0xff]  }
 0x335   :  { %v14476_v18 = vld [vmem:[#allocation6 + $0x10e0] ss:$16 sps:$4 sm:$0xff]  }
 0x336   :  { %4399 = vmatpush1.bf16.msra.mxu0 %v14389_v19  ;;  %v14479_v19 = vld [vmem:[#allocation6 + $0xfe8] ss:$16 sps:$4 sm:$0xff]  }
 0x337   :  { %4813 = vmatpush1.bf16.msra.mxu1 %v14392_v20  ;;  %4400 = vmatprep.subr.bf16.mxu0 %v14397_v21  ;;  %v14484_v20 = vld [vmem:[#allocation6 + $0x1104] ss:$16 sps:$4 sm:$0xff]   ;;  %v14487_v21 = vld [vmem:[#allocation6 + $0x100c] ss:$16 sps:$4 sm:$0xff]  }
 0x338   :  { %4814 = vmatprep.subr.bf16.mxu1 %v14400_v22  ;;  %v14482_v22 = vld [vmem:[#allocation6 + $0x1100] ss:$16 sps:$4 sm:$0xff]  }
 0x33a   :  { %4401 = vmatpush1.bf16.msra.mxu0 %v14395_v23  ;;  %v14485_v23 = vld [vmem:[#allocation6 + $0x1008] ss:$16 sps:$4 sm:$0xff]  }
 0x33b   :  { %4815 = vmatpush1.bf16.msra.mxu1 %v14398_v24  ;;  %4402 = vmatprep.subr.bf16.mxu0 %v14403_v25  ;;  %v14490_v24 = vld [vmem:[#allocation6 + $0x1124] ss:$16 sps:$4 sm:$0xff]   ;;  %v14493_v25 = vld [vmem:[#allocation6 + $0x102c] ss:$16 sps:$4 sm:$0xff]  }
 0x33c   :  { %4816 = vmatprep.subr.bf16.mxu1 %v14406_v26  ;;  %v14488_v26 = vld [vmem:[#allocation6 + $0x1120] ss:$16 sps:$4 sm:$0xff]  }
 0x33e   :  { %4403 = vmatpush1.bf16.msra.mxu0 %v14401_v27  ;;  %v14491_v27 = vld [vmem:[#allocation6 + $0x1028] ss:$16 sps:$4 sm:$0xff]  }
 0x33f   :  { %4817 = vmatpush1.bf16.msra.mxu1 %v14404_v28  ;;  %4404 = vmatprep.subr.bf16.mxu0 %v14409_v29  ;;  %v14496_v28 = vld [vmem:[#allocation6 + $0x1144] ss:$16 sps:$4 sm:$0xff]   ;;  %v14499_v29 = vld [vmem:[#allocation6 + $0x104c] ss:$16 sps:$4 sm:$0xff]  }
 0x340   :  { %4818 = vmatprep.subr.bf16.mxu1 %v14412_v30  ;;  %v14494_v30 = vld [vmem:[#allocation6 + $0x1140] ss:$16 sps:$4 sm:$0xff]  }
 0x342   :  { %4405 = vmatpush1.bf16.msra.mxu0 %v14407_v31  ;;  %v14497_v31 = vld [vmem:[#allocation6 + $0x1048] ss:$16 sps:$4 sm:$0xff]  }
 0x343   :  { %4819 = vmatpush1.bf16.msra.mxu1 %v14410_v32  ;;  %4406 = vmatprep.subr.bf16.mxu0 %v14415_v33  ;;  %v14502_v32 = vld [vmem:[#allocation6 + $0x1164] ss:$16 sps:$4 sm:$0xff]   ;;  %v14505_v33 = vld [vmem:[#allocation6 + $0x106c] ss:$16 sps:$4 sm:$0xff]  }
 0x344   :  { %4820 = vmatprep.subr.bf16.mxu1 %v14418_v34  ;;  %v14500_v34 = vld [vmem:[#allocation6 + $0x1160] ss:$16 sps:$4 sm:$0xff]  }
 0x346   :  { %4407 = vmatpush1.bf16.msra.mxu0 %v14413_v35  ;;  %v14503_v35 = vld [vmem:[#allocation6 + $0x1068] ss:$16 sps:$4 sm:$0xff]  }
 0x347   :  { %4821 = vmatpush1.bf16.msra.mxu1 %v14416_v36  ;;  %4408 = vmatprep.subr.bf16.mxu0 %v14421_v37  ;;  %v14508_v36 = vld [vmem:[#allocation6 + $0x1184] ss:$16 sps:$4 sm:$0xff]   ;;  %v14511_v37 = vld [vmem:[#allocation6 + $0x108c] ss:$16 sps:$4 sm:$0xff]  }
 0x348   :  { %4822 = vmatprep.subr.bf16.mxu1 %v14424_v38  ;;  %v14506_v38 = vld [vmem:[#allocation6 + $0x1180] ss:$16 sps:$4 sm:$0xff]  }
 0x34a   :  { %4409 = vmatpush1.bf16.msra.mxu0 %v14419_v39  ;;  %v14509_v39 = vld [vmem:[#allocation6 + $0x1088] ss:$16 sps:$4 sm:$0xff]  }
 0x34b   :  { %4823 = vmatpush1.bf16.msra.mxu1 %v14422_v40  ;;  %4410 = vmatprep.subr.bf16.mxu0 %v14427_v41  ;;  %v14514_v40 = vld [vmem:[#allocation6 + $0x11a4] ss:$16 sps:$4 sm:$0xff]   ;;  %v14517_v41 = vld [vmem:[#allocation6 + $0x10ac] ss:$16 sps:$4 sm:$0xff]  }
 0x34c   :  { %4824 = vmatprep.subr.bf16.mxu1 %v14430_v42  ;;  %v14512_v42 = vld [vmem:[#allocation6 + $0x11a0] ss:$16 sps:$4 sm:$0xff]  }
 0x34e   :  { %4411 = vmatpush1.bf16.msra.mxu0 %v14425_v43  ;;  %v14515_v43 = vld [vmem:[#allocation6 + $0x10a8] ss:$16 sps:$4 sm:$0xff]  }
 0x34f   :  { %4825 = vmatpush1.bf16.msra.mxu1 %v14428_v44  ;;  %4423 = vmatprep.subr.bf16.mxu0 %v14436_v45  ;;  %v14520_v44 = vld [vmem:[#allocation6 + $0x11c4] ss:$16 sps:$4 sm:$0xff]   ;;  %v14523_v45 = vld [vmem:[#allocation6 + $0x10cc] ss:$16 sps:$4 sm:$0xff]  }
 0x350   :  { %4826 = vmatprep.subr.bf16.mxu1 %v14439_v46  ;;  %v14518_v46 = vld [vmem:[#allocation6 + $0x11c0] ss:$16 sps:$4 sm:$0xff]  }
 0x351   :  { %4413 = vmatmul.mubr.bf16.vlgmr.msra.gmra.mrb[0].mxu0 %v16791_v47 }
 0x352   :  { %4424 = vmatpush1.bf16.msra.mxu0 %v14434_v48  ;;  %4455 = vmatprep.mubr.bf16.mxu0 %v16793_v52  ;;  %v14526_v48 = vld [vmem:[#allocation6 + $0x11e4] ss:$16 sps:$4 sm:$0xff]  }
 0x353   :  { %4827 = vmatpush1.bf16.msra.mxu1 %v14437_v49  ;;  %4425 = vmatprep.subr.bf16.mxu0 %v14442_v50  ;;  %v14529_v49 = vld [vmem:[#allocation6 + $0x10ec] ss:$16 sps:$4 sm:$0xff]   ;;  %v14524_v50 = vld [vmem:[#allocation6 + $0x11e0] ss:$16 sps:$4 sm:$0xff]  }
 0x354   :  { %4828 = vmatprep.subr.bf16.mxu1 %v14445_v51  ;;  %v14527_v51 = vld [vmem:[#allocation6 + $0x10e8] ss:$16 sps:$4 sm:$0xff]  }
 0x356   :  { %4426 = vmatpush1.bf16.msra.mxu0 %v14440_v53  ;;  %v14583_v53 = vld [vmem:[#allocation9 + $0x4] ss:$8 sps:$4 sm:$0xff]  }
 0x357   :  { %4829 = vmatpush1.bf16.msra.mxu1 %v14443_v54  ;;  %4427 = vmatprep.subr.bf16.mxu0 %v14448_v55  ;;  %v16799_v54 = vld [vmem:[#allocation3 + $0x40] ss:$76 sps:$4 sm:$0xff]  }
 0x358   :  { %4830 = vmatprep.subr.bf16.mxu1 %v14451_v56  ;;  %v14533_v55 = vld [vmem:[#allocation6 + $0x1108] ss:$16 sps:$4 sm:$0xff]   ;;  %v14581_v56 = vld [vmem:[#allocation9] ss:$8 sps:$4 sm:$0xff]  }
 0x35a   :  { %4428 = vmatpush1.bf16.msra.mxu0 %v14446_v57  ;;  %v14538_v57 = vld [vmem:[#allocation6 + $0x112c] ss:$16 sps:$4 sm:$0xff]  }
 0x35b   :  { %4831 = vmatpush1.bf16.msra.mxu1 %v14449_v58  ;;  %4429 = vmatprep.subr.bf16.mxu0 %v14454_v59  ;;  %v14586_v58 = vld [vmem:[#allocation9 + $0x14] ss:$8 sps:$4 sm:$0xff]  }
 0x35c   :  { %4832 = vmatprep.subr.bf16.mxu1 %v14457_v60  ;;  %v14536_v59 = vld [vmem:[#allocation6 + $0x1128] ss:$16 sps:$4 sm:$0xff]   ;;  %v14584_v60 = vld [vmem:[#allocation9 + $0x10] ss:$8 sps:$4 sm:$0xff]  }
 0x35e   :  { %4430 = vmatpush1.bf16.msra.mxu0 %v14452_v61  ;;  %v14541_v61 = vld [vmem:[#allocation6 + $0x114c] ss:$16 sps:$4 sm:$0xff]  }
 0x35f   :  { %4833 = vmatpush1.bf16.msra.mxu1 %v14455_v62  ;;  %4431 = vmatprep.subr.bf16.mxu0 %v14460_v63  ;;  %v14589_v62 = vld [vmem:[#allocation9 + $0x24] ss:$8 sps:$4 sm:$0xff]  }
 0x360   :  { %4834 = vmatprep.subr.bf16.mxu1 %v14463_v1  ;;  %v14539_v63 = vld [vmem:[#allocation6 + $0x1148] ss:$16 sps:$4 sm:$0xff]   ;;  %v14587_v1 = vld [vmem:[#allocation9 + $0x20] ss:$8 sps:$4 sm:$0xff]  }
 0x362   :  { %4432 = vmatpush1.bf16.msra.mxu0 %v14458_v2  ;;  %v14544_v2 = vld [vmem:[#allocation6 + $0x116c] ss:$16 sps:$4 sm:$0xff]  }
 0x363   :  { %4835 = vmatpush1.bf16.msra.mxu1 %v14461_v3  ;;  %4433 = vmatprep.subr.bf16.mxu0 %v14466_v4  ;;  %v14592_v3 = vld [vmem:[#allocation9 + $0x34] ss:$8 sps:$4 sm:$0xff]  }
 0x364   :  { %4836 = vmatprep.subr.bf16.mxu1 %v14469_v5  ;;  %v14542_v4 = vld [vmem:[#allocation6 + $0x1168] ss:$16 sps:$4 sm:$0xff]   ;;  %v14590_v5 = vld [vmem:[#allocation9 + $0x30] ss:$8 sps:$4 sm:$0xff]  }
 0x366   :  { %4434 = vmatpush1.bf16.msra.mxu0 %v14464_v6  ;;  %v14547_v6 = vld [vmem:[#allocation6 + $0x118c] ss:$16 sps:$4 sm:$0xff]  }
 0x367   :  { %4837 = vmatpush1.bf16.msra.mxu1 %v14467_v9  ;;  %4435 = vmatprep.subr.bf16.mxu0 %v14472_v11  ;;  %v14595_v9 = vld [vmem:[#allocation9 + $0x44] ss:$8 sps:$4 sm:$0xff]  }
 0x368   :  { %4838 = vmatprep.subr.bf16.mxu1 %v14475_v12  ;;  %v14545_v11 = vld [vmem:[#allocation6 + $0x1188] ss:$16 sps:$4 sm:$0xff]   ;;  %v14593_v12 = vld [vmem:[#allocation9 + $0x40] ss:$8 sps:$4 sm:$0xff]  }
 0x36a   :  { %4436 = vmatpush1.bf16.msra.mxu0 %v14470_v14  ;;  %v14550_v14 = vld [vmem:[#allocation6 + $0x11ac] ss:$16 sps:$4 sm:$0xff]  }
 0x36b   :  { %4839 = vmatpush1.bf16.msra.mxu1 %v14473_v15  ;;  %4437 = vmatprep.subr.bf16.mxu0 %v14478_v16  ;;  %v14598_v15 = vld [vmem:[#allocation9 + $0x54] ss:$8 sps:$4 sm:$0xff]  }
 0x36c   :  { %4840 = vmatprep.subr.bf16.mxu1 %v14481_v17  ;;  %v14548_v16 = vld [vmem:[#allocation6 + $0x11a8] ss:$16 sps:$4 sm:$0xff]   ;;  %v14596_v17 = vld [vmem:[#allocation9 + $0x50] ss:$8 sps:$4 sm:$0xff]  }
 0x36e   :  { %4438 = vmatpush1.bf16.msra.mxu0 %v14476_v18  ;;  %v14553_v18 = vld [vmem:[#allocation6 + $0x11cc] ss:$16 sps:$4 sm:$0xff]  }
 0x36f   :  { %4841 = vmatpush1.bf16.msra.mxu1 %v14479_v19  ;;  %4439 = vmatprep.subr.bf16.mxu0 %v14484_v20  ;;  %v14601_v19 = vld [vmem:[#allocation9 + $0x64] ss:$8 sps:$4 sm:$0xff]  }
 0x370   :  { %4853 = vmatprep.subr.bf16.mxu1 %v14487_v21  ;;  %v14551_v20 = vld [vmem:[#allocation6 + $0x11c8] ss:$16 sps:$4 sm:$0xff]   ;;  %v14599_v21 = vld [vmem:[#allocation9 + $0x60] ss:$8 sps:$4 sm:$0xff]  }
 0x372   :  { %4843 = vmatmul.mubr.bf16.vlgmr.msra.gmra.mrb[4].mxu1 %v16791_v47  ;;  %4440 = vmatpush1.bf16.msra.mxu0 %v14482_v22  ;;  %v14521_v47 = vld [vmem:[#allocation6 + $0x10c8] ss:$16 sps:$4 sm:$0xff]   ;;  %v14556_v22 = vld [vmem:[#allocation6 + $0x11ec] ss:$16 sps:$4 sm:$0xff]  }
 0x373   :  { %4854 = vmatpush1.bf16.msra.mxu1 %v14485_v23  ;;  %4441 = vmatprep.subr.bf16.mxu0 %v14490_v24  ;;  %v14604_v23 = vld [vmem:[#allocation9 + $0x74] ss:$8 sps:$4 sm:$0xff]  }
 0x374   :  { %4855 = vmatprep.subr.bf16.mxu1 %v14493_v25  ;;  %4885 = vmatprep.mubr.bf16.mxu1 %v16793_v52  ;;  %v14535_v52 = vld [vmem:[#allocation6 + $0x110c] ss:$16 sps:$4 sm:$0xff]   ;;  %v14554_v24 = vld [vmem:[#allocation6 + $0x11e8] ss:$16 sps:$4 sm:$0xff]  }
 0x375   :  { %v14602_v25 = vld [vmem:[#allocation9 + $0x70] ss:$8 sps:$4 sm:$0xff]  }
 0x376   :  { %4442 = vmatpush1.bf16.msra.mxu0 %v14488_v26  ;;  %v14559_v26 = vld [vmem:[#allocation6 + $0x120c] ss:$16 sps:$4 sm:$0xff]  }
 0x377   :  { %4856 = vmatpush1.bf16.msra.mxu1 %v14491_v27  ;;  %4443 = vmatprep.subr.bf16.mxu0 %v14496_v28  ;;  %v14607_v27 = vld [vmem:[#allocation9 + $0x84] ss:$8 sps:$4 sm:$0xff]  }
 0x378   :  { %4857 = vmatprep.subr.bf16.mxu1 %v14499_v29  ;;  %v14557_v28 = vld [vmem:[#allocation6 + $0x1208] ss:$16 sps:$4 sm:$0xff]   ;;  %v14562_v29 = vld [vmem:[#allocation6 + $0x122c] ss:$16 sps:$4 sm:$0xff]  }
 0x37a   :  { %4444 = vmatpush1.bf16.msra.mxu0 %v14494_v30  ;;  %v14605_v30 = vld [vmem:[#allocation9 + $0x80] ss:$8 sps:$4 sm:$0xff]  }
 0x37b   :  { %4858 = vmatpush1.bf16.msra.mxu1 %v14497_v31  ;;  %4445 = vmatprep.subr.bf16.mxu0 %v14502_v32  ;;  %v14610_v31 = vld [vmem:[#allocation9 + $0x94] ss:$8 sps:$4 sm:$0xff]  }
 0x37c   :  { %4859 = vmatprep.subr.bf16.mxu1 %v14505_v33  ;;  %v14560_v32 = vld [vmem:[#allocation6 + $0x1228] ss:$16 sps:$4 sm:$0xff]   ;;  %v14565_v33 = vld [vmem:[#allocation6 + $0x124c] ss:$16 sps:$4 sm:$0xff]  }
 0x37e   :  { %4446 = vmatpush1.bf16.msra.mxu0 %v14500_v34  ;;  %v14608_v34 = vld [vmem:[#allocation9 + $0x90] ss:$8 sps:$4 sm:$0xff]  }
 0x37f   :  { %4860 = vmatpush1.bf16.msra.mxu1 %v14503_v35  ;;  %4447 = vmatprep.subr.bf16.mxu0 %v14508_v36  ;;  %v14613_v35 = vld [vmem:[#allocation9 + $0xa4] ss:$8 sps:$4 sm:$0xff]  }
 0x380   :  { %4861 = vmatprep.subr.bf16.mxu1 %v14511_v37  ;;  %v14563_v36 = vld [vmem:[#allocation6 + $0x1248] ss:$16 sps:$4 sm:$0xff]   ;;  %v14568_v37 = vld [vmem:[#allocation6 + $0x126c] ss:$16 sps:$4 sm:$0xff]  }
 0x382   :  { %4448 = vmatpush1.bf16.msra.mxu0 %v14506_v38  ;;  %v14611_v38 = vld [vmem:[#allocation9 + $0xa0] ss:$8 sps:$4 sm:$0xff]  }
 0x383   :  { %4862 = vmatpush1.bf16.msra.mxu1 %v14509_v39  ;;  %4449 = vmatprep.subr.bf16.mxu0 %v14514_v40  ;;  %v14616_v39 = vld [vmem:[#allocation9 + $0xb4] ss:$8 sps:$4 sm:$0xff]  }
 0x384   :  { %4863 = vmatprep.subr.bf16.mxu1 %v14517_v41  ;;  %v14566_v40 = vld [vmem:[#allocation6 + $0x1268] ss:$16 sps:$4 sm:$0xff]   ;;  %v14571_v41 = vld [vmem:[#allocation6 + $0x128c] ss:$16 sps:$4 sm:$0xff]  }
 0x386   :  { %4450 = vmatpush1.bf16.msra.mxu0 %v14512_v42  ;;  %v14614_v42 = vld [vmem:[#allocation9 + $0xb0] ss:$8 sps:$4 sm:$0xff]  }
 0x387   :  { %4864 = vmatpush1.bf16.msra.mxu1 %v14515_v43  ;;  %4451 = vmatprep.subr.bf16.mxu0 %v14520_v44  ;;  %v14619_v43 = vld [vmem:[#allocation9 + $0xc4] ss:$8 sps:$4 sm:$0xff]  }
 0x388   :  { %4865 = vmatprep.subr.bf16.mxu1 %v14523_v45  ;;  %v14569_v44 = vld [vmem:[#allocation6 + $0x1288] ss:$16 sps:$4 sm:$0xff]   ;;  %v14574_v45 = vld [vmem:[#allocation6 + $0x12ac] ss:$16 sps:$4 sm:$0xff]  }
 0x38a   :  { %4452 = vmatpush1.bf16.msra.mxu0 %v14518_v46  ;;  %v14617_v46 = vld [vmem:[#allocation9 + $0xc0] ss:$8 sps:$4 sm:$0xff]  }
 0x38b   :  { %4866 = vmatpush1.bf16.msra.mxu1 %v14521_v47  ;;  %4453 = vmatprep.subr.bf16.mxu0 %v14526_v48  ;;  %v14572_v47 = vld [vmem:[#allocation6 + $0x12a8] ss:$16 sps:$4 sm:$0xff]   ;;  %v14577_v48 = vld [vmem:[#allocation6 + $0x12cc] ss:$16 sps:$4 sm:$0xff]  }
 0x38c   :  { %4867 = vmatprep.subr.bf16.mxu1 %v14529_v49  ;;  %v14575_v49 = vld [vmem:[#allocation6 + $0x12c8] ss:$16 sps:$4 sm:$0xff]  }
 0x38e   :  { %4454 = vmatpush1.bf16.msra.mxu0 %v14524_v50  ;;  %v14580_v50 = vld [vmem:[#allocation6 + $0x12ec] ss:$16 sps:$4 sm:$0xff]  }
 0x38f   :  { %4868 = vmatpush1.bf16.msra.mxu1 %v14527_v51  ;;  %5347 = vmatprep.subr.bf16.mxu0 %v14583_v53  ;;  %v14578_v51 = vld [vmem:[#allocation6 + $0x12e8] ss:$16 sps:$4 sm:$0xff]  }
 0x390   :  { %4869 = vmatprep.subr.bf16.mxu1 %v14535_v52  ;;  %v15894_v52 = vld [vmem:[#allocation3 + $0x48] ss:$76 sps:$4 sm:$0xff]   ;;  %v14622_v53 = vld [vmem:[#allocation9 + $0xd4] ss:$8 sps:$4 sm:$0xff]  }
 0x391   :  { %4456 = vmatmul.mubr.bf16.vlgmr.msra.gmra.mrb[0].mxu0 %v16799_v54 }
 0x392   :  { %5348 = vmatpush1.bf16.msra.mxu0 %v14581_v56  ;;  %v14623_v56 = vld [vmem:[#allocation9 + $0xe0] ss:$8 sps:$4 sm:$0xff]  }
 0x393   :  { %4870 = vmatpush1.bf16.msra.mxu1 %v14533_v55  ;;  %5349 = vmatprep.subr.bf16.mxu0 %v14586_v58  ;;  %v14625_v55 = vld [vmem:[#allocation9 + $0xe4] ss:$8 sps:$4 sm:$0xff]   ;;  %v14626_v58 = vld [vmem:[#allocation9 + $0xf0] ss:$8 sps:$4 sm:$0xff]  }
 0x394   :  { %4871 = vmatprep.subr.bf16.mxu1 %v14538_v57  ;;  %v14628_v57 = vld [vmem:[#allocation9 + $0xf4] ss:$8 sps:$4 sm:$0xff]  }
 0x396   :  { %5350 = vmatpush1.bf16.msra.mxu0 %v14584_v60  ;;  %v14677_v60 = vld [vmem:[#allocation12 + $0x40] sm:$0xff]  }
 0x397   :  { %4872 = vmatpush1.bf16.msra.mxu1 %v14536_v59  ;;  %5351 = vmatprep.subr.bf16.mxu0 %v14589_v62  ;;  %v14631_v59 = vld [vmem:[#allocation9 + $0x104] ss:$8 sps:$4 sm:$0xff]  }
 0x398   :  { %4873 = vmatprep.subr.bf16.mxu1 %v14541_v61  ;;  %v14678_v61 = vld [vmem:[#allocation12] sm:$0xff]   ;;  %v14679_v62 = vld [vmem:[#allocation12 + $0x48] sm:$0xff]  }
 0x39a   :  { %5352 = vmatpush1.bf16.msra.mxu0 %v14587_v1  ;;  %v14681_v1 = vld [vmem:[#allocation12 + $0x50] sm:$0xff]  }
 0x39b   :  { %4874 = vmatpush1.bf16.msra.mxu1 %v14539_v63  ;;  %5353 = vmatprep.subr.bf16.mxu0 %v14592_v3  ;;  %v14680_v63 = vld [vmem:[#allocation12 + $0x8] sm:$0xff]   ;;  %v14683_v3 = vld [vmem:[#allocation12 + $0x58] sm:$0xff]  }
 0x39c   :  { %4875 = vmatprep.subr.bf16.mxu1 %v14544_v2  ;;  %v14682_v2 = vld [vmem:[#allocation12 + $0x10] sm:$0xff]  }
 0x39e   :  { %5354 = vmatpush1.bf16.msra.mxu0 %v14590_v5  ;;  %v14685_v5 = vld [vmem:[#allocation12 + $0x60] sm:$0xff]  }
 0x39f   :  { %4876 = vmatpush1.bf16.msra.mxu1 %v14542_v4  ;;  %5355 = vmatprep.subr.bf16.mxu0 %v14595_v9  ;;  %v14684_v4 = vld [vmem:[#allocation12 + $0x18] sm:$0xff]   ;;  %v14687_v9 = vld [vmem:[#allocation12 + $0x68] sm:$0xff]  }
 0x3a0   :  { %4877 = vmatprep.subr.bf16.mxu1 %v14547_v6  ;;  %v14686_v6 = vld [vmem:[#allocation12 + $0x20] sm:$0xff]  }
 0x3a2   :  { %5356 = vmatpush1.bf16.msra.mxu0 %v14593_v12 }
 0x3a3   :  { %4878 = vmatpush1.bf16.msra.mxu1 %v14545_v11  ;;  %5357 = vmatprep.subr.bf16.mxu0 %v14598_v15  ;;  %v923_v11 = vlaneseq  ;;  %v16810_v15 = vld [vmem:[#allocation8] sm:$0xf] }
 0x3a4   :  { %4879 = vmatprep.subr.bf16.mxu1 %v14550_v14 }
 0x3a5   :  { %v16805_v12 = vshrl.u32 %v923_v11, 7 }
 0x3a6   :  { %5358 = vmatpush1.bf16.msra.mxu0 %v14596_v17 }
 0x3a7   :  { %4880 = vmatpush1.bf16.msra.mxu1 %v14548_v16  ;;  %5359 = vmatprep.subr.bf16.mxu0 %v14601_v19  ;;  %v16808_v14 = vsub.s32 0, %v16805_v12  ;;  %v16813_v16 = vsub.s32 1, %v16805_v12 }
 0x3a8   :  { %4881 = vmatprep.subr.bf16.mxu1 %v14553_v18 }
 0x3a9   :  { %v926_v17 = vrot.slane %v16810_v15, %v16808_v14  ;;  %v930_v18 = vrot.slane %v16810_v15, %v16813_v16 }
 0x3aa   :  { %5360 = vmatpush1.bf16.msra.mxu0 %v14599_v21 }
 0x3ab   :  { %4882 = vmatpush1.bf16.msra.mxu1 %v14551_v20  ;;  %5361 = vmatprep.subr.bf16.mxu0 %v14604_v23 }
 0x3ac   :  { %4883 = vmatprep.subr.bf16.mxu1 %v14556_v22 }
 0x3ae   :  { %5362 = vmatpush1.bf16.msra.mxu0 %v14602_v25 }
 0x3af   :  { %4884 = vmatpush1.bf16.msra.mxu1 %v14554_v24  ;;  %5363 = vmatprep.subr.bf16.mxu0 %v14607_v27 }
 0x3b0   :  { %4896 = vmatprep.subr.bf16.mxu1 %v14559_v26 }
 0x3b2   :  { %4886 = vmatmul.mubr.bf16.vlgmr.msra.gmra.mrb[4].mxu1 %v16799_v54  ;;  %5364 = vmatpush1.bf16.msra.mxu0 %v14605_v30  ;;  %v14620_v54 = vld [vmem:[#allocation9 + $0xd0] ss:$8 sps:$4 sm:$0xff]  }
 0x3b3   :  { %4897 = vmatpush1.bf16.msra.mxu1 %v14557_v28  ;;  %4928 = vmatprep.mubr.bf16.mxu1 %v16382_v0 }
 0x3b4   :  { %4898 = vmatprep.subr.bf16.mxu1 %v14562_v29  ;;  %5365 = vmatprep.subr.bf16.mxu0 %v14610_v31 }
 0x3b6   :  { %5366 = vmatpush1.bf16.msra.mxu0 %v14608_v34 }
 0x3b7   :  { %4899 = vmatpush1.bf16.msra.mxu1 %v14560_v32  ;;  %5367 = vmatprep.subr.bf16.mxu0 %v14613_v35 }
 0x3b8   :  { %4900 = vmatprep.subr.bf16.mxu1 %v14565_v33 }
 0x3ba   :  { %5368 = vmatpush1.bf16.msra.mxu0 %v14611_v38  ;;  %v14634_v38 = vld [vmem:[#allocation9 + $0x114] ss:$8 sps:$4 sm:$0xff]  }
 0x3bb   :  { %4901 = vmatpush1.bf16.msra.mxu1 %v14563_v36  ;;  %5369 = vmatprep.subr.bf16.mxu0 %v14616_v39  ;;  %v14637_v39 = vld [vmem:[#allocation9 + $0x124] ss:$8 sps:$4 sm:$0xff]  }
 0x3bc   :  { %4902 = vmatprep.subr.bf16.mxu1 %v14568_v37  ;;  %v14629_v37 = vld [vmem:[#allocation9 + $0x100] ss:$8 sps:$4 sm:$0xff]  }
 0x3be   :  { %5370 = vmatpush1.bf16.msra.mxu0 %v14614_v42  ;;  %v14646_v42 = vld [vmem:[#allocation9 + $0x154] ss:$8 sps:$4 sm:$0xff]  }
 0x3bf   :  { %4903 = vmatpush1.bf16.msra.mxu1 %v14566_v40  ;;  %5371 = vmatprep.subr.bf16.mxu0 %v14619_v43  ;;  %v14643_v40 = vld [vmem:[#allocation9 + $0x144] ss:$8 sps:$4 sm:$0xff]   ;;  %v14644_v43 = vld [vmem:[#allocation9 + $0x150] ss:$8 sps:$4 sm:$0xff]  }
 0x3c0   :  { %4904 = vmatprep.subr.bf16.mxu1 %v14571_v41  ;;  %v14641_v41 = vld [vmem:[#allocation9 + $0x140] ss:$8 sps:$4 sm:$0xff]  }
 0x3c2   :  { %5372 = vmatpush1.bf16.msra.mxu0 %v14617_v46  ;;  %v14652_v46 = vld [vmem:[#allocation9 + $0x174] ss:$8 sps:$4 sm:$0xff]  }
 0x3c3   :  { %4905 = vmatpush1.bf16.msra.mxu1 %v14569_v44  ;;  %5373 = vmatprep.subr.bf16.mxu0 %v14622_v53  ;;  %v14649_v44 = vld [vmem:[#allocation9 + $0x164] ss:$8 sps:$4 sm:$0xff]   ;;  %v14659_v53 = vld [vmem:[#allocation9 + $0x1a0] ss:$8 sps:$4 sm:$0xff]  }
 0x3c4   :  { %4906 = vmatprep.subr.bf16.mxu1 %v14574_v45  ;;  %v14647_v45 = vld [vmem:[#allocation9 + $0x160] ss:$8 sps:$4 sm:$0xff]  }
 0x3c6   :  { %5374 = vmatpush1.bf16.msra.mxu0 %v14620_v54  ;;  %v14664_v54 = vld [vmem:[#allocation9 + $0x1b4] ss:$8 sps:$4 sm:$0xff]  }
 0x3c7   :  { %4907 = vmatpush1.bf16.msra.mxu1 %v14572_v47  ;;  %5375 = vmatprep.subr.bf16.mxu0 %v14625_v55  ;;  %v14650_v47 = vld [vmem:[#allocation9 + $0x170] ss:$8 sps:$4 sm:$0xff]  }
 0x3c8   :  { %4908 = vmatprep.subr.bf16.mxu1 %v14577_v48  ;;  %v14655_v48 = vld [vmem:[#allocation9 + $0x184] ss:$8 sps:$4 sm:$0xff]   ;;  %v14662_v55 = vld [vmem:[#allocation9 + $0x1b0] ss:$8 sps:$4 sm:$0xff]  }
 0x3ca   :  { %5376 = vmatpush1.bf16.msra.mxu0 %v14623_v56  ;;  %v14667_v56 = vld [vmem:[#allocation9 + $0x1c4] ss:$8 sps:$4 sm:$0xff]  }
 0x3cb   :  { %4909 = vmatpush1.bf16.msra.mxu1 %v14575_v49  ;;  %5377 = vmatprep.subr.bf16.mxu0 %v14628_v57  ;;  %v14653_v49 = vld [vmem:[#allocation9 + $0x180] ss:$8 sps:$4 sm:$0xff]   ;;  %v16824_v57 = vsub.s32 2, %v16805_v12 }
 0x3cc   :  { %4910 = vmatprep.subr.bf16.mxu1 %v14580_v50  ;;  %v14658_v50 = vld [vmem:[#allocation9 + $0x194] ss:$8 sps:$4 sm:$0xff]  }
 0x3ce   :  { %5378 = vmatpush1.bf16.msra.mxu0 %v14626_v58  ;;  %v14665_v58 = vld [vmem:[#allocation9 + $0x1c0] ss:$8 sps:$4 sm:$0xff]  }
 0x3cf   :  { %4911 = vmatpush1.bf16.msra.mxu1 %v14578_v51  ;;  %5390 = vmatprep.subr.bf16.mxu0 %v14631_v59  ;;  %v14656_v51 = vld [vmem:[#allocation9 + $0x190] ss:$8 sps:$4 sm:$0xff]   ;;  %v16827_v59 = vsub.s32 3, %v16805_v12 }
 0x3d0   :  { %13207 = vmatprep.subr.bf16.mxu1 %v14677_v60  ;;  %v14670_v60 = vld [vmem:[#allocation9 + $0x1d4] ss:$8 sps:$4 sm:$0xff]  }
 0x3d2   :  { %4929 = vmatmul.mubr.bf16.vlgmr.msra.gmra.mrb[4].mxu1 %v15894_v52  ;;  %v14661_v52 = vld [vmem:[#allocation9 + $0x1a4] ss:$8 sps:$4 sm:$0xff]  }
 0x3d3   :  { %13208 = vmatpush3.bf16.msra.mxu1 %v14678_v61  ;;  %v934_v61 = vrot.slane %v16810_v15, %v16824_v57 }
 0x3d4   :  { %13209 = vmatprep.subr.bf16.mxu1 %v14679_v62  ;;  %v14668_v62 = vld [vmem:[#allocation9 + $0x1d0] ss:$8 sps:$4 sm:$0xff]  }
 0x3d7   :  { %13210 = vmatpush3.bf16.msra.mxu1 %v14680_v63  ;;  %v938_v63 = vrot.slane %v16810_v15, %v16827_v59  ;;  %v14674_v15 = vld [vmem:[#allocation9 + $0x1f0] ss:$8 sps:$4 sm:$0xff]  }
 0x3d8   :  { %13211 = vmatprep.subr.bf16.mxu1 %v14681_v1  ;;  %v14673_v1 = vld [vmem:[#allocation9 + $0x1e4] ss:$8 sps:$4 sm:$0xff]  }
 0x3db   :  { %13212 = vmatpush3.bf16.msra.mxu1 %v14682_v2 }
 0x3dc   :  { %13213 = vmatprep.subr.bf16.mxu1 %v14683_v3 }
 0x3df   :  { %13214 = vmatpush3.bf16.msra.mxu1 %v14684_v4 }
 0x3e0   :  { %13215 = vmatprep.subr.bf16.mxu1 %v14685_v5 }
 0x3e3   :  { %13216 = vmatpush3.bf16.msra.mxu1 %v14686_v6 }
 0x3e4   :  { %13217 = vmatprep.subr.bf16.mxu1 %v14687_v9  ;;  %v14671_v9 = vld [vmem:[#allocation9 + $0x1e0] ss:$8 sps:$4 sm:$0xff]  }
 0x464   :  { %v4457_v19 = vpop.f32.mrb[0].mxu0 }
 0x465   :  { %v13443_v20 = vadd.f32 %v4457_v19, %v926_v17  ;;  %v4459_v21 = vpop.f32.mrb[1].mxu0  ;;  %v14676_v19 = vld [vmem:[#allocation9 + $0x1f4] ss:$8 sps:$4 sm:$0xff]  }
 0x466   :  { %v13445_v22 = vadd.f32 %v4459_v21, %v930_v18  ;;  %v4461_v23 = vpop.f32.mrb[2].mxu0 }
 0x467   :  { %v13444_v24 = vadd.f32 %v13443_v20, %v16751_v7  ;;  %v13447_v25 = vadd.f32 %v4461_v23, %v926_v17  ;;  %v4463_v26 = vpop.f32.mrb[3].mxu0  ;;  %v14632_v7 = vld [vmem:[#allocation9 + $0x110] ss:$8 sps:$4 sm:$0xff]  }
 0x468   :  { %v13446_v27 = vadd.f32 %v13445_v22, %v16753_v8  ;;  %v13449_v28 = vadd.f32 %v4463_v26, %v930_v18  ;;  %v14635_v8 = vld [vmem:[#allocation9 + $0x120] ss:$8 sps:$4 sm:$0xff]  }
 0x469   :  { %v13448_v29 = vadd.f32 %v13447_v25, %v16755_v10  ;;  %v4939_v31 = vmax.f32 %v13444_v24, 0.0  ;;  %v14640_v10 = vld [vmem:[#allocation9 + $0x134] ss:$8 sps:$4 sm:$0xff]  }
 0x46a   :  { %v13450_v30 = vadd.f32 %v13449_v28, %v16757_v13  ;;  %v4940_v33 = vmax.f32 %v13446_v27, 0.0  ;;  %v14638_v13 = vld [vmem:[#allocation9 + $0x130] ss:$8 sps:$4 sm:$0xff]  }
 0x46b   :  { %v4943_v32 = vmax.f32 %v13448_v29, 0.0  ;;  %v14688_v27 = vld [vmem:[#allocation12 + $0x28] sm:$0xff]   ;;  %v14689_v28 = vld [vmem:[#allocation12 + $0x70] sm:$0xff]  }
 0x46c   :  { %v4944_v34 = vmax.f32 %v13450_v30, 0.0  ;;  %13218 = vmatpush3.bf16.msra.mxu1 %v14688_v27  ;;  %v14690_v29 = vld [vmem:[#allocation12 + $0x30] sm:$0xff]   ;;  %v14691_v30 = vld [vmem:[#allocation12 + $0x78] sm:$0xff]  }
 0x46d   :  { %v4947_v35 = vpack.c.bf16 %v4943_v32, %v4939_v31  ;;  %13219 = vmatprep.subr.bf16.mxu1 %v14689_v28  ;;  %v14692_v31 = vld [vmem:[#allocation12 + $0x38] sm:$0xff]  }
 0x46e   :  { %v4948_v36 = vpack.c.bf16 %v4944_v34, %v4940_v33  ;;  %v5015_v32 = vld [vmem:[#allocation11] sm:$0x3] }
 0x46f   :  { %v5020_v33 = vrot.slane %v5015_v32, %v16808_v14  ;;  %v5024_v34 = vrot.slane %v5015_v32, %v16813_v16 }
 0x470   :  { %5379 = vmatprep.mubr.bf16.mxu0 %v4948_v36  ;;  %13220 = vmatpush3.bf16.msra.mxu1 %v14690_v29 }
 0x471   :  { %5380 = vmatmul.mubr.bf16.vlgmr.msra.gmra.mrb[4].mxu0 %v4947_v35  ;;  %13221 = vmatprep.subr.bf16.mxu1 %v14691_v30 }
 0x472   :  { %5391 = vmatpush1.bf16.msra.mxu0 %v14629_v37 }
 0x473   :  { %5392 = vmatprep.subr.bf16.mxu0 %v14634_v38 }
 0x474   :  { %13222 = vmatpush3.bf16.msra.mxu1 %v14692_v31 }
 0x476   :  { %5393 = vmatpush1.bf16.msra.mxu0 %v14632_v7 }
 0x477   :  { %5394 = vmatprep.subr.bf16.mxu0 %v14637_v39 }
 0x47a   :  { %5395 = vmatpush1.bf16.msra.mxu0 %v14635_v8 }
 0x47b   :  { %5396 = vmatprep.subr.bf16.mxu0 %v14640_v10 }
 0x47e   :  { %5397 = vmatpush1.bf16.msra.mxu0 %v14638_v13 }
 0x47f   :  { %5398 = vmatprep.subr.bf16.mxu0 %v14643_v40 }
 0x482   :  { %5399 = vmatpush1.bf16.msra.mxu0 %v14641_v41 }
 0x483   :  { %5400 = vmatprep.subr.bf16.mxu0 %v14646_v42 }
 0x486   :  { %5401 = vmatpush1.bf16.msra.mxu0 %v14644_v43 }
 0x487   :  { %5402 = vmatprep.subr.bf16.mxu0 %v14649_v44 }
 0x48a   :  { %5403 = vmatpush1.bf16.msra.mxu0 %v14647_v45  ;;  %v5692_v45 = vld [vmem:[#allocation26] sm:$0xff] }
 0x48b   :  { %5404 = vmatprep.subr.bf16.mxu0 %v14652_v46  ;;  %v5693_v46 = vld [vmem:[#allocation26 + $0x8] sm:$0xff] }
 0x48e   :  { %5405 = vmatpush1.bf16.msra.mxu0 %v14650_v47  ;;  %v5694_v47 = vld [vmem:[#allocation26 + $0x10] sm:$0xff] }
 0x48f   :  { %5406 = vmatprep.subr.bf16.mxu0 %v14655_v48  ;;  %v16835_v48 = vpack.c.bf16 %v5693_v46, %v5692_v45 }
 0x491   :  { %13380 = vmatprep.subr.bf16.mxu1 %v16835_v48 }
 0x492   :  { %5407 = vmatpush1.bf16.msra.mxu0 %v14653_v49  ;;  %v5695_v49 = vld [vmem:[#allocation26 + $0x18] sm:$0xff] }
 0x493   :  { %5408 = vmatprep.subr.bf16.mxu0 %v14658_v50  ;;  %v16837_v50 = vpack.c.bf16 %v5695_v49, %v5694_v47 }
 0x496   :  { %5409 = vmatpush1.bf16.msra.mxu0 %v14656_v51  ;;  %v5696_v51 = vld [vmem:[#allocation26 + $0x20] sm:$0xff] }
 0x497   :  { %5410 = vmatprep.subr.bf16.mxu0 %v14661_v52  ;;  %v5697_v52 = vld [vmem:[#allocation26 + $0x28] sm:$0xff] }
 0x49a   :  { %5411 = vmatpush1.bf16.msra.mxu0 %v14659_v53  ;;  %v16842_v53 = vpack.c.bf16 %v5697_v52, %v5696_v51 }
 0x49b   :  { %5412 = vmatprep.subr.bf16.mxu0 %v14664_v54  ;;  %v5698_v54 = vld [vmem:[#allocation26 + $0x30] sm:$0xff] }
 0x49e   :  { %5413 = vmatpush1.bf16.msra.mxu0 %v14662_v55  ;;  %v5699_v55 = vld [vmem:[#allocation26 + $0x38] sm:$0xff] }
 0x49f   :  { %5414 = vmatprep.subr.bf16.mxu0 %v14667_v56  ;;  %v16846_v56 = vpack.c.bf16 %v5699_v55, %v5698_v54 }
 0x4a2   :  { %5415 = vmatpush1.bf16.msra.mxu0 %v14665_v58  ;;  %v5801_v58 = vld [vmem:[#allocation29] sm:$0xff] }
 0x4a3   :  { %5416 = vmatprep.subr.bf16.mxu0 %v14670_v60  ;;  %v5802_v60 = vld [vmem:[#allocation29 + $0x8] sm:$0xff] }
 0x4a5   :  { %v4930_v2 = vpop.f32.mrb[4].mxu1 }
 0x4a6   :  { %v13451_v3 = vadd.f32 %v4930_v2, %v934_v61  ;;  %v4932_v4 = vpop.f32.mrb[5].mxu1  ;;  %5417 = vmatpush1.bf16.msra.mxu0 %v14668_v62  ;;  %v5805_v62 = vadd.f32 1e-10, %v5802_v60 }
 0x4a7   :  { %v13452_v5 = vadd.f32 %v4932_v4, %v938_v63  ;;  %v4934_v6 = vpop.f32.mrb[6].mxu1  ;;  %5418 = vmatprep.subr.bf16.mxu0 %v14673_v1 }
 0x4a8   :  { %v13453_v17 = vadd.f32 %v4934_v6, %v934_v61  ;;  %v4936_v18 = vpop.f32.mrb[7].mxu1  ;;  %v4941_v21 = vmax.f32 %v13451_v3, 0.0  ;;  %v5804_v61 = vadd.f32 1e-10, %v5801_v58 }
 0x4a9   :  { %v13454_v20 = vadd.f32 %v4936_v18, %v938_v63  ;;  %v4942_v23 = vmax.f32 %v13452_v5, 0.0  ;;  %v5800_v18 = vand.u32 127, %v923_v11  ;;  %v5823_v11 = vstv %s17119_s6 }
 0x4aa   :  { %v4945_v22 = vmax.f32 %v13453_v17, 0.0  ;;  %5419 = vmatpush1.bf16.msra.mxu0 %v14671_v9  ;;  %15712 = vlog2.f32 %v5804_v61 }
 0x4ab   :  { %v4946_v24 = vmax.f32 %v13454_v20, 0.0  ;;  %5420 = vmatprep.subr.bf16.mxu0 %v14676_v19  ;;  %15714 = vlog2.f32 %v5805_v62  ;;  %vm5803_vm0 = vcmp.lt.s32.totalorder %v5800_v18, 64 }
 0x4ac   :  { %v4949_v25 = vpack.c.bf16 %v4945_v22, %v4941_v21  ;;  %v12421_v21 = vld [vmem:[#allocation14] ss:$0 sm:$0xff] }
 0x4ad   :  { %v4950_v26 = vpack.c.bf16 %v4946_v24, %v4942_v23 }
 0x4ae   :  { %5421 = vmatpush1.bf16.msra.mxu0 %v14674_v15 }
 0x4af   :  { %5422 = vmatprep.mubr.bf16.mxu0 %v4950_v26 }
 0x4b1   :  { %5423 = vmatmul.mubr.bf16.vlgmr.msra.gmra.mrb[4].mxu0 %v4949_v25 }
 0x4b4   :  { %v15713_v63 = vpop.eup %15712 }
 0x4b5   :  { %v15715_v1 = vpop.eup %15714  ;;  %v5807_v2 = vmul.f32 0.6931472, %v15713_v63 }
 0x4b6   :  { %v5809_v3 = vmul.f32 0.6931472, %v15715_v1 }
 0x4b7   :  { %v5810_v4 = vsub.f32 1e-10, %v5807_v2 }
 0x4b8   :  { %v5811_v5 = vsub.f32 1e-10, %v5809_v3 }
 0x4b9   :  { %15716 = vlog2.f32 %v5810_v4 }
 0x4ba   :  { %15718 = vlog2.f32 %v5811_v5 }
 0x4c3   :  { %v15717_v6 = vpop.eup %15716 }
 0x4c4   :  { %v15719_v9 = vpop.eup %15718  ;;  %v5813_v17 = vmul.f32 0.6931472, %v15717_v6 }
 0x4c5   :  { %v5815_v19 = vmul.f32 0.6931472, %v15719_v9 }
 0x4c6   :  { %v5816_v23 = vsub.f32 0.0, %v5813_v17 }
 0x4c7   :  { %v5817_v26 = vsub.f32 0.0, %v5815_v19 }
 0x4c8   :  { %v5818_v29 = vsel %vm5803_vm0, %v5816_v23, 0.0 }
 0x4c9   :  { %v5819_v32 = vsel %vm5803_vm0, %v5817_v26, 0.0 }
 0x584   :  { %v5424_v35 = vpop.f32.mrb[4].mxu0 }
 0x585   :  { %v13455_v36 = vadd.f32 %v5424_v35, %v5020_v33  ;;  %v5426_v37 = vpop.f32.mrb[5].mxu0 }
 0x586   :  { %v13456_v38 = vadd.f32 %v5426_v37, %v5024_v34  ;;  %v5428_v7 = vpop.f32.mrb[6].mxu0 }
 0x587   :  { %v13457_v39 = vadd.f32 %v5428_v7, %v5020_v33  ;;  %v5430_v8 = vpop.f32.mrb[7].mxu0  ;;  %v5433_v13 = vmax.f32 %v13455_v36, 0.0  ;;  %v5701_v7 = vld [vmem:[#allocation26 + $0x48] sm:$0xff] }
 0x588   :  { %v13458_v10 = vadd.f32 %v5430_v8, %v5024_v34  ;;  %v5434_v41 = vmax.f32 %v13456_v38, 0.0  ;;  %v5700_v38 = vld [vmem:[#allocation26 + $0x40] sm:$0xff]  ;;  %v5702_v8 = vld [vmem:[#allocation26 + $0x50] sm:$0xff] }
 0x589   :  { %v5435_v40 = vmax.f32 %v13457_v39, 0.0  ;;  %v16864_v39 = vpack.c.bf16 %v5701_v7, %v5700_v38  ;;  %v14707_v7 = vld [vmem:[#allocation17 + $0x44] ss:$8 sps:$4 sm:$0xff]  }
 0x58a   :  { %v5436_v42 = vmax.f32 %v13458_v10, 0.0  ;;  %v5703_v10 = vld [vmem:[#allocation26 + $0x58] sm:$0xff] }
 0x58b   :  { %v5437_v43 = vpack.c.bf16 %v5435_v40, %v5433_v13  ;;  %v16868_v13 = vpack.c.bf16 %v5703_v10, %v5702_v8  ;;  %v5704_v40 = vld [vmem:[#allocation26 + $0x60] sm:$0xff] }
 0x58c   :  { %v5438_v44 = vpack.c.bf16 %v5436_v42, %v5434_v41  ;;  %v5705_v41 = vld [vmem:[#allocation26 + $0x68] sm:$0xff] }
 0x58d   :  { %v16872_v42 = vpack.c.bf16 %v5705_v41, %v5704_v40  ;;  %v14705_v8 = vld [vmem:[#allocation17 + $0x40] ss:$8 sps:$4 sm:$0xff]   ;;  %v14710_v40 = vld [vmem:[#allocation17 + $0x54] ss:$8 sps:$4 sm:$0xff]  }
 0x58e   :  { %5606 = vmatprep.mubr.bf16.mxu1 %v5438_v44  ;;  %v5707_v44 = vld [vmem:[#allocation26 + $0x78] sm:$0xff] }
 0x58f   :  { %5607 = vmatmul.mubr.bf16.vlgmr.msra.gmra.mrb[8].mxu1 %v5437_v43  ;;  %v5706_v43 = vld [vmem:[#allocation26 + $0x70] sm:$0xff]  ;;  %v14716_v41 = vld [vmem:[#allocation17 + $0x74] ss:$8 sps:$4 sm:$0xff]  }
 0x590   :  { %13382 = vmatpush3.bf16.msra.mxu1 %v16835_v48  ;;  %v13407_v45 = vpack.c.bf16 %v5707_v44, %v5706_v43  ;;  %v14719_v43 = vld [vmem:[#allocation15 + $0x4] ss:$8 sps:$4 sm:$0xff]  }
 0x591   :  { %13384 = vmatprep.subr.bf16.mxu1 %v16837_v50 }
 0x594   :  { %13386 = vmatpush3.bf16.msra.mxu1 %v16837_v50 }
 0x595   :  { %13388 = vmatprep.subr.bf16.mxu1 %v16842_v53 }
 0x598   :  { %13390 = vmatpush3.bf16.msra.mxu1 %v16842_v53 }
 0x599   :  { %13392 = vmatprep.subr.bf16.mxu1 %v16846_v56 }
 0x59c   :  { %13394 = vmatpush3.bf16.msra.mxu1 %v16846_v56 }
 0x59d   :  { %13396 = vmatprep.subr.bf16.mxu1 %v16864_v39 }
 0x5a0   :  { %13398 = vmatpush3.bf16.msra.mxu1 %v16864_v39 }
 0x5a1   :  { %13400 = vmatprep.subr.bf16.mxu1 %v16868_v13 }
 0x5a4   :  { %13402 = vmatpush3.bf16.msra.mxu1 %v16868_v13 }
 0x5a5   :  { %13404 = vmatprep.subr.bf16.mxu1 %v16872_v42 }
 0x5a8   :  { %13406 = vmatpush3.bf16.msra.mxu1 %v16872_v42 }
 0x5a9   :  { %13408 = vmatprep.subr.bf16.mxu1 %v13407_v45 }
 0x5ac   :  { %13410 = vmatpush3.bf16.msra.mxu1 %v13407_v45 }
 0x5ad   :  { %13412 = vmatprep.subr.bf16.mxu1 %v16835_v48 }
 0x662   :  { %v13223_v20 = vpop.f32.mrb[8].mxu1 }
 0x663   :  { %v13224_v22 = vpop.f32.mrb[9].mxu1 }
 0x664   :  { %v13225_v24 = vadd.f32 %v13224_v22, %v13223_v20  ;;  %v13226_v15 = vpop.f32.mrb[10].mxu1  ;;  %v16384_v22 = vmov 0.0  }
 0x665   :  { %v13227_v25 = vpop.f32.mrb[11].mxu1 }
 0x666   :  { %v16852_v27 = vadd.f32 %v13225_v24, %v12421_v21  ;;  %v13228_v28 = vadd.f32 %v13227_v25, %v13226_v15  ;;  %v14696_v24 = vld [vmem:[#allocation17 + $0x10] ss:$8 sps:$4 sm:$0xff]   ;;  %v14698_v15 = vld [vmem:[#allocation17 + $0x14] ss:$8 sps:$4 sm:$0xff]  }
 0x668   :  { %v16854_v30 = vadd.f32 %v13228_v28, %v12421_v21  ;;  %v5615_v31 = vmax.f32 %v16852_v27, 0.0  ;;  %v5666_v46 = vmul.f32 0.5, %v16852_v27  ;;  %v5619_v19 = vmul.f32 %v16852_v27, %v16852_v27  ;;  %v14699_v28 = vld [vmem:[#allocation17 + $0x20] ss:$8 sps:$4 sm:$0xff]  }
 0x669   :  { %v5631_v25 = vmul.f32 1.442695, %v16852_v27 }
 0x66a   :  { %5708 = vmax.xlane.f32.xlu0 %v5615_v31  ;;  %v5616_v33 = vmax.f32 %v16854_v30, 0.0  ;;  %v5820_v34 = vadd.f32 %v5818_v29, %v5615_v31  ;;  %v5667_v47 = vmul.f32 0.5, %v16854_v30  ;;  %v5668_v49 = vmul.f32 1.442695, %v5666_v46  ;;  %v14701_v29 = vld [vmem:[#allocation17 + $0x24] ss:$8 sps:$4 sm:$0xff]  }
 0x66c   :  { %v5824_v35 = vmul.f32 %v5823_v11, %v5820_v34  ;;  %v5821_v36 = vadd.f32 %v5819_v32, %v5616_v33  ;;  %v5670_v51 = vmul.f32 1.442695, %v5667_v47  ;;  %15720 = vpow2.f32 %v5668_v49 }
 0x66e   :  { %5710 = vmax.xlane.f32.xlu0 %v5616_v33  ;;  %5826 = vmax.xlane.f32.xlu1 %v5824_v35  ;;  %v16861_v37 = vmul.f32 %v5823_v11, %v5821_v36  ;;  %15722 = vpow2.f32 %v5670_v51  ;;  %v14704_v11 = vld [vmem:[#allocation17 + $0x34] ss:$8 sps:$4 sm:$0xff]  }
 0x672   :  { %5828 = vmax.xlane.f32.xlu1 %v16861_v37 }
 0x676   :  { %v15721_v2 = vpop.eup %15720 }
 0x678   :  { %v15723_v6 = vpop.eup %15722 }
 0x683   :  { %5676 = vrot.lane.b32.xlu1 %v5802_v60, %s17117_s20 }
 0x684   :  { %5674 = vrot.lane.b32.xlu0 %v5801_v58, %s17117_s20 }
 0x6f7   :  { %v5709_v52 = vpop.xlane.xlu0 %5708 }
 0x6f8   :  { %v5712_v54 = vsub.f32 %v5615_v31, %v5709_v52  ;;  %v14702_v31 = vld [vmem:[#allocation17 + $0x30] ss:$8 sps:$4 sm:$0xff]  }
 0x6fa   :  { %v5714_v55 = vmul.f32 1.442695, %v5712_v54 }
 0x6fb   :  { %v5711_v58 = vpop.xlane.xlu0 %5710  ;;  %v5827_v60 = vpop.xlane.xlu1 %5826 }
 0x6fc   :  { %15724 = vpow2.f32 %v5714_v55  ;;  %v5713_v61 = vsub.f32 %v5616_v33, %v5711_v58  ;;  %v5830_v62 = vsub.f32 %v5824_v35, %v5827_v60  ;;  %v5617_v35 = vadd.f32 1.0, %v16852_v27 }
 0x6fe   :  { %v5716_v63 = vmul.f32 1.442695, %v5713_v61  ;;  %v5832_v1 = vmul.f32 1.442695, %v5830_v62 }
 0x6ff   :  { %v5675_v3 = vpop.permute.xlu0 %5674  ;;  %v5829_v4 = vpop.xlane.xlu1 %5828 }
 0x700   :  { %15726 = vpow2.f32 %v5716_v63  ;;  %v5680_v5 = vmul.f32 %v15721_v2, %v5675_v3  ;;  %v5831_v23 = vsub.f32 %v16861_v37, %v5829_v4 }
 0x701   :  { %15728 = vpow2.f32 %v5832_v1 }
 0x702   :  { %5684 = vrot.lane.b32.xlu1 %v5680_v5, %s16383_s3  ;;  %v14717_v5 = vld [vmem:[#allocation15] ss:$8 sps:$4 sm:$0xff]  }
 0x703   :  { %v5677_v9 = vpop.permute.xlu1 %5676 }
 0x704   :  { %v5681_v17 = vmul.f32 %v15723_v6, %v5677_v9  ;;  %v14720_v9 = vld [vmem:[#allocation20] ss:$16 sps:$4 sm:$0xff]  }
 0x706   :  { %v16881_v18 = vpop.eup %15724  ;;  %5686 = vrot.lane.b32.xlu1 %v5681_v17, %s16383_s3  ;;  %v14722_v17 = vld [vmem:[#allocation20 + $0x4] ss:$16 sps:$4 sm:$0xff]  }
 0x707   :  { %13341 = vmatprep.mubr.f32.mxu1 %v16881_v18  ;;  %6545 = vmatprep.subr.bf16.mxu0 %v14722_v17  ;;  %v14812_v17 = vld [vmem:[#allocation20 + $0x1e4] ss:$16 sps:$4 sm:$0xff]  }
 0x708   :  { %6546 = vmatpush1.bf16.msra.mxu0 %v14720_v9  ;;  %v14807_v9 = vld [vmem:[#allocation20 + $0x1c8] ss:$16 sps:$4 sm:$0xff]  }
 0x70a   :  { %v16886_v20 = vpop.eup %15726  ;;  %5623 = vrot.lane.b32.xlu1 %v5619_v19, %s17117_s20  ;;  %v14728_v19 = vld [vmem:[#allocation20 + $0x24] ss:$16 sps:$4 sm:$0xff]  }
 0x70b   :  { %v16889_v21 = vpop.eup %15728  ;;  %13342 = vmatmul.mubr.f32.vlgmr.msra.gmra.mrb[12].mxu1 %v16886_v20  ;;  %6547 = vmatprep.subr.bf16.mxu0 %v14728_v19  ;;  %v14810_v19 = vld [vmem:[#allocation20 + $0x1e0] ss:$16 sps:$4 sm:$0xff]  }
 0x70c   :  { %13414 = vmatpush3.bf16.msra.mxu1 %v16835_v48  ;;  %13376 = vmatprep.mubr.f32.mxu1 %v16889_v21  ;;  %v5834_v48 = vmul.f32 1.442695, %v5831_v23  ;;  %v14723_v23 = vld [vmem:[#allocation20 + $0x8] ss:$16 sps:$4 sm:$0xff]  }
 0x70d   :  { %13416 = vmatprep.subr.bf16.mxu1 %v16837_v50 }
 0x70e   :  { %5643 = vrot.lane.b32.xlu1 %v16384_v22, %s16385_s0  ;;  %15730 = vpow2.f32 %v5834_v48  ;;  %v14734_v22 = vld [vmem:[#allocation20 + $0x44] ss:$16 sps:$4 sm:$0xff]   ;;  %v14732_v48 = vld [vmem:[#allocation20 + $0x40] ss:$16 sps:$4 sm:$0xff]  }
 0x70f   :  { %15732 = vpow2.f32 %v5631_v25  ;;  %v14741_v25 = vld [vmem:[#allocation20 + $0x68] ss:$16 sps:$4 sm:$0xff]  }
 0x710   :  { %13418 = vmatpush3.bf16.msra.mxu1 %v16837_v50 }
 0x711   :  { %13420 = vmatprep.subr.bf16.mxu1 %v16842_v53 }
 0x714   :  { %13422 = vmatpush3.bf16.msra.mxu1 %v16842_v53  ;;  %v14693_v53 = vld [vmem:[#allocation17] ss:$8 sps:$4 sm:$0xff]  }
 0x715   :  { %13424 = vmatprep.subr.bf16.mxu1 %v16846_v56 }
 0x718   :  { %13426 = vmatpush3.bf16.msra.mxu1 %v16846_v56  ;;  %v16908_v50 = vpop.eup %15730  ;;  %v14695_v56 = vld [vmem:[#allocation17 + $0x4] ss:$8 sps:$4 sm:$0xff]  }
 0x719   :  { %13428 = vmatprep.subr.bf16.mxu1 %v16864_v39 }
 0x71c   :  { %13430 = vmatpush3.bf16.msra.mxu1 %v16864_v39  ;;  %v15733_v39 = vpop.eup %15732 }
 0x71d   :  { %13432 = vmatprep.subr.bf16.mxu1 %v16868_v13 }
 0x720   :  { %13434 = vmatpush3.bf16.msra.mxu1 %v16868_v13  ;;  %v14708_v13 = vld [vmem:[#allocation17 + $0x50] ss:$8 sps:$4 sm:$0xff]  }
 0x721   :  { %13436 = vmatprep.subr.bf16.mxu1 %v16872_v42 }
 0x724   :  { %13438 = vmatpush3.bf16.msra.mxu1 %v16872_v42  ;;  %v14714_v42 = vld [vmem:[#allocation17 + $0x70] ss:$8 sps:$4 sm:$0xff]  }
 0x725   :  { %13440 = vmatprep.subr.bf16.mxu1 %v13407_v45 }
 0x728   :  { %13442 = vmatpush3.bf16.msra.mxu1 %v13407_v45 }
 0x729   :  { %6015 = vmatprep.subr.bf16.mxu1 %v14695_v56  ;;  %v14740_v56 = vld [vmem:[#allocation20 + $0x64] ss:$16 sps:$4 sm:$0xff]  }
 0x72b   :  { %13377 = vmatmul.mubr.f32.vlgmr.msra.gmra.mrb[14].mxu1 %v16908_v50 }
 0x72c   :  { %6047 = vmatprep.mubr.bf16.mxu1 %v16382_v0  ;;  %6016 = vmatpush1.bf16.msra.mxu1 %v14693_v53  ;;  %v14735_v53 = vld [vmem:[#allocation20 + $0x48] ss:$16 sps:$4 sm:$0xff]  }
 0x72d   :  { %6017 = vmatprep.subr.bf16.mxu1 %v14698_v15  ;;  %v14738_v15 = vld [vmem:[#allocation20 + $0x60] ss:$16 sps:$4 sm:$0xff]  }
 0x730   :  { %6018 = vmatpush1.bf16.msra.mxu1 %v14696_v24  ;;  %v14743_v24 = vld [vmem:[#allocation20 + $0x6c] ss:$16 sps:$4 sm:$0xff]  }
 0x731   :  { %6019 = vmatprep.subr.bf16.mxu1 %v14701_v29  ;;  %v14747_v29 = vld [vmem:[#allocation20 + $0x88] ss:$16 sps:$4 sm:$0xff]  }
 0x734   :  { %6020 = vmatpush1.bf16.msra.mxu1 %v14699_v28  ;;  %v14746_v28 = vld [vmem:[#allocation20 + $0x84] ss:$16 sps:$4 sm:$0xff]  }
 0x735   :  { %6021 = vmatprep.subr.bf16.mxu1 %v14704_v11  ;;  %v14752_v11 = vld [vmem:[#allocation20 + $0xa4] ss:$16 sps:$4 sm:$0xff]  }
 0x738   :  { %6022 = vmatpush1.bf16.msra.mxu1 %v14702_v31  ;;  %v14749_v31 = vld [vmem:[#allocation20 + $0x8c] ss:$16 sps:$4 sm:$0xff]  }
 0x739   :  { %6023 = vmatprep.subr.bf16.mxu1 %v14707_v7  ;;  %v14764_v7 = vld [vmem:[#allocation20 + $0xe4] ss:$16 sps:$4 sm:$0xff]  }
 0x73c   :  { %6024 = vmatpush1.bf16.msra.mxu1 %v14705_v8  ;;  %v14762_v8 = vld [vmem:[#allocation20 + $0xe0] ss:$16 sps:$4 sm:$0xff]  }
 0x73d   :  { %6025 = vmatprep.subr.bf16.mxu1 %v14710_v40  ;;  %v14773_v40 = vld [vmem:[#allocation20 + $0x10c] ss:$16 sps:$4 sm:$0xff]  }
 0x740   :  { %6026 = vmatpush1.bf16.msra.mxu1 %v14708_v13  ;;  %v14770_v13 = vld [vmem:[#allocation20 + $0x104] ss:$16 sps:$4 sm:$0xff]  }
 0x774   :  { %v5685_v26 = vpop.permute.xlu1 %5684 }
 0x775   :  { %v5690_v33 = vadd.f32 %v5685_v26, %v16852_v27  ;;  %v14711_v27 = vld [vmem:[#allocation17 + $0x60] ss:$8 sps:$4 sm:$0xff]  }
 0x776   :  { %v14744_v26 = vld [vmem:[#allocation20 + $0x80] ss:$16 sps:$4 sm:$0xff]  }
 0x778   :  { %v5687_v32 = vpop.permute.xlu1 %5686 }
 0x779   :  { %v5691_v34 = vadd.f32 %v5687_v32, %v16854_v30  ;;  %v14713_v30 = vld [vmem:[#allocation17 + $0x64] ss:$8 sps:$4 sm:$0xff]  }
 0x77a   :  { %6027 = vmatprep.subr.bf16.mxu1 %v14713_v30  ;;  %v14755_v32 = vld [vmem:[#allocation20 + $0xac] ss:$16 sps:$4 sm:$0xff]   ;;  %v14768_v30 = vld [vmem:[#allocation20 + $0x100] ss:$16 sps:$4 sm:$0xff]  }
 0x77b   :  { %v5915_v36 = vpack.c.bf16 %v5691_v34, %v5690_v33  ;;  %6028 = vmatpush1.bf16.msra.mxu1 %v14711_v27  ;;  %v14750_v33 = vld [vmem:[#allocation20 + $0xa0] ss:$16 sps:$4 sm:$0xff]   ;;  %v14753_v34 = vld [vmem:[#allocation20 + $0xa8] ss:$16 sps:$4 sm:$0xff]  }
 0x77c   :  { %v5624_v37 = vpop.permute.xlu1 %5623  ;;  %6029 = vmatprep.subr.bf16.mxu1 %v14716_v41  ;;  %v14771_v27 = vld [vmem:[#allocation20 + $0x108] ss:$16 sps:$4 sm:$0xff]   ;;  %v14776_v41 = vld [vmem:[#allocation20 + $0x124] ss:$16 sps:$4 sm:$0xff]  }
 0x77d   :  { %v5629_v38 = vsub.f32 %v5617_v35, %v5624_v37  ;;  %6059 = vrot.lane.b32.xlu0 %v5915_v36, %s16364_s23  ;;  %v14758_v35 = vld [vmem:[#allocation20 + $0xc4] ss:$16 sps:$4 sm:$0xff]   ;;  %v14761_v36 = vld [vmem:[#allocation20 + $0xcc] ss:$16 sps:$4 sm:$0xff]   ;;  %v14756_v37 = vld [vmem:[#allocation20 + $0xc0] ss:$16 sps:$4 sm:$0xff]  }
 0x77f   :  { %v5635_v10 = vsub.f32 %v5629_v38, %v15733_v39  ;;  %6030 = vmatpush1.bf16.msra.mxu1 %v14714_v42  ;;  %v14759_v38 = vld [vmem:[#allocation20 + $0xc8] ss:$16 sps:$4 sm:$0xff]   ;;  %v14767_v39 = vld [vmem:[#allocation20 + $0xec] ss:$16 sps:$4 sm:$0xff]  }
 0x780   :  { %6074 = vmatprep.subr.bf16.mxu1 %v14719_v43  ;;  %v5644_v54 = vpop.permute.xlu1 %5643  ;;  %v14779_v42 = vld [vmem:[#allocation20 + $0x12c] ss:$16 sps:$4 sm:$0xff]   ;;  %v14774_v43 = vld [vmem:[#allocation20 + $0x120] ss:$16 sps:$4 sm:$0xff]  }
 0x781   :  { %5641 = vrot.lane.b32.xlu0 %v5635_v10, %s16385_s0  ;;  %v5649_v55 = vsel %vm5647_vm1, %v5644_v54, 0.0  ;;  %v14765_v10 = vld [vmem:[#allocation20 + $0xe8] ss:$16 sps:$4 sm:$0xff]   ;;  %v14786_v54 = vld [vmem:[#allocation20 + $0x160] ss:$16 sps:$4 sm:$0xff]  }
 0x7de   :  { %v13343_v44 = vpop.f32.mrb[12].mxu1 }
 0x7df   :  { %15734 = vrcp.f32 %v13343_v44  ;;  %v5784_v45 = vpop.f32.mrb[13].mxu1  ;;  %v14777_v44 = vld [vmem:[#allocation20 + $0x128] ss:$16 sps:$4 sm:$0xff]  }
 0x7e0   :  { %15736 = vrcp.f32 %v5784_v45  ;;  %v14782_v45 = vld [vmem:[#allocation20 + $0x144] ss:$16 sps:$4 sm:$0xff]  }
 0x7e9   :  { %v15735_v46 = vpop.eup %15734 }
 0x7ea   :  { %v15737_v47 = vpop.eup %15736  ;;  %v5796_v49 = vmul.f32 %v15735_v46, %v16886_v20  ;;  %v14726_v20 = vld [vmem:[#allocation20 + $0x20] ss:$16 sps:$4 sm:$0xff]   ;;  %v14785_v46 = vld [vmem:[#allocation20 + $0x14c] ss:$16 sps:$4 sm:$0xff]  }
 0x7eb   :  { %v5794_v51 = vmul.f32 %v15737_v47, %v16881_v18  ;;  %v14725_v18 = vld [vmem:[#allocation20 + $0xc] ss:$16 sps:$4 sm:$0xff]   ;;  %6548 = vmatpush1.bf16.msra.mxu0 %v14726_v20  ;;  %v14780_v47 = vld [vmem:[#allocation20 + $0x140] ss:$16 sps:$4 sm:$0xff]   ;;  %v14813_v20 = vld [vmem:[#allocation20 + $0x1e8] ss:$16 sps:$4 sm:$0xff]  }
 0x7ec   :  { %5798 = vst [vmem:[#allocation31 + $0x8] sm:$0xff] %v5796_v49  ;;  %6549 = vmatprep.subr.bf16.mxu0 %v14734_v22  ;;  %v14783_v49 = vld [vmem:[#allocation20 + $0x148] ss:$16 sps:$4 sm:$0xff]  }
 0x7ed   :  { %5797 = vst [vmem:[#allocation31] sm:$0xff] %v5794_v51  ;;  %v14788_v51 = vld [vmem:[#allocation20 + $0x164] ss:$16 sps:$4 sm:$0xff]  }
 0x7ee   :  { %v14818_v22 = vld [vmem:[#allocation23 + $0x4] ss:$76 sps:$4 sm:$0xff]  }
 0x7ef   :  { %v6060_v52 = vpop.permute.xlu0 %6059  ;;  %6550 = vmatpush1.bf16.msra.mxu0 %v14732_v48 }
 0x7f0   :  { %6551 = vmatprep.subr.bf16.mxu0 %v14740_v56 }
 0x7f3   :  { %v5642_v58 = vpop.permute.xlu0 %5641  ;;  %6552 = vmatpush1.bf16.msra.mxu0 %v14738_v15 }
 0x7f4   :  { %v5648_v60 = vsel %vm5647_vm1, %v5642_v58, 0.0  ;;  %6553 = vmatprep.subr.bf16.mxu0 %v14746_v28  ;;  %v14794_v58 = vld [vmem:[#allocation20 + $0x184] ss:$16 sps:$4 sm:$0xff]  }
 0x7f5   :  { %v5650_v61 = vadd.f32 %v5649_v55, %v5648_v60  ;;  %v14789_v55 = vld [vmem:[#allocation20 + $0x168] ss:$16 sps:$4 sm:$0xff]   ;;  %v14797_v60 = vld [vmem:[#allocation20 + $0x18c] ss:$16 sps:$4 sm:$0xff]  }
 0x7f7   :  { %5651 = vadd.xlane.f32.xlu0 %v5650_v61  ;;  %6554 = vmatpush1.bf16.msra.mxu0 %v14744_v26  ;;  %v14792_v61 = vld [vmem:[#allocation20 + $0x180] ss:$16 sps:$4 sm:$0xff]  }
 0x7f8   :  { %6555 = vmatprep.subr.bf16.mxu0 %v14752_v11 }
 0x7fb   :  { %6556 = vmatpush1.bf16.msra.mxu0 %v14750_v33 }
 0x7fc   :  { %6557 = vmatprep.subr.bf16.mxu0 %v14758_v35 }
 0x7fe   :  { %v13378_v62 = vpop.f32.mrb[14].mxu1 }
 0x7ff   :  { %15738 = vrcp.f32 %v13378_v62  ;;  %v5902_v63 = vpop.f32.mrb[15].mxu1  ;;  %6558 = vmatpush1.bf16.msra.mxu0 %v14756_v37  ;;  %v14795_v62 = vld [vmem:[#allocation20 + $0x188] ss:$16 sps:$4 sm:$0xff]  }
 0x800   :  { %15740 = vrcp.f32 %v5902_v63  ;;  %6559 = vmatprep.subr.bf16.mxu0 %v14764_v7  ;;  %v14800_v63 = vld [vmem:[#allocation20 + $0x1a4] ss:$16 sps:$4 sm:$0xff]  }
 0x803   :  { %6560 = vmatpush1.bf16.msra.mxu0 %v14762_v8 }
 0x804   :  { %6561 = vmatprep.subr.bf16.mxu0 %v14770_v13  ;;  %v14816_v13 = vld [vmem:[#allocation23] ss:$76 sps:$4 sm:$0xff]  }
 0x807   :  { %6562 = vmatpush1.bf16.msra.mxu0 %v14768_v30  ;;  %v14824_v30 = vld [vmem:[#allocation23 + $0x9c] ss:$76 sps:$4 sm:$0xff]  }
 0x808   :  { %6563 = vmatprep.subr.bf16.mxu0 %v14776_v41  ;;  %v14822_v41 = vld [vmem:[#allocation23 + $0x98] ss:$76 sps:$4 sm:$0xff]  }
 0x809   :  { %v15739_v1 = vpop.eup %15738 }
 0x80a   :  { %v15741_v2 = vpop.eup %15740  ;;  %v5914_v3 = vmul.f32 %v15739_v1, %v16908_v50  ;;  %v14729_v50 = vld [vmem:[#allocation20 + $0x28] ss:$16 sps:$4 sm:$0xff]   ;;  %v14803_v1 = vld [vmem:[#allocation20 + $0x1ac] ss:$16 sps:$4 sm:$0xff]  }
 0x80b   :  { %v5913_v4 = vmul.f32 %v15741_v2, %v16889_v21  ;;  %v14731_v21 = vld [vmem:[#allocation20 + $0x2c] ss:$16 sps:$4 sm:$0xff]   ;;  %6564 = vmatpush1.bf16.msra.mxu0 %v14774_v43  ;;  %v14798_v2 = vld [vmem:[#allocation20 + $0x1a0] ss:$16 sps:$4 sm:$0xff]   ;;  %v14830_v43 = vld [vmem:[#allocation23 + $0x134] ss:$76 sps:$4 sm:$0xff]  }
 0x80c   :  { %6565 = vmatprep.subr.bf16.mxu0 %v14782_v45  ;;  %v14828_v45 = vld [vmem:[#allocation23 + $0x130] ss:$76 sps:$4 sm:$0xff]  }
 0x80d   :  { %v5918_v6 = vpack.c.bf16 %v5914_v3, %v5913_v4  ;;  %v14801_v3 = vld [vmem:[#allocation20 + $0x1a8] ss:$16 sps:$4 sm:$0xff]   ;;  %v14806_v4 = vld [vmem:[#allocation20 + $0x1c4] ss:$16 sps:$4 sm:$0xff]  }
 0x80f   :  { %6048 = vmatmul.mubr.bf16.vlgmr.msra.gmra.mrb[16].mxu1 %v5918_v6  ;;  %6566 = vmatpush1.bf16.msra.mxu0 %v14780_v47  ;;  %v14804_v6 = vld [vmem:[#allocation20 + $0x1c0] ss:$16 sps:$4 sm:$0xff]  }
 0x810   :  { %6075 = vmatpush1.bf16.msra.mxu1 %v14717_v5  ;;  %6106 = vmatprep.mubr.bf16.mxu1 %v16382_v0  ;;  %v14737_v0 = vld [vmem:[#allocation20 + $0x4c] ss:$16 sps:$4 sm:$0xff]  }
 0x811   :  { %6588 = vmatprep.subr.bf16.mxu1 %v14725_v18  ;;  %6567 = vmatprep.subr.bf16.mxu0 %v14788_v51  ;;  %v14809_v5 = vld [vmem:[#allocation20 + $0x1cc] ss:$16 sps:$4 sm:$0xff]  }
 0x812   :  { %v14815_v18 = vld [vmem:[#allocation20 + $0x1ec] ss:$16 sps:$4 sm:$0xff]  }
 0x813   :  { %6568 = vmatpush1.bf16.msra.mxu0 %v14786_v54  ;;  %v14836_v47 = vld [vmem:[#allocation23 + $0x1cc] ss:$76 sps:$4 sm:$0xff]   ;;  %v14834_v51 = vld [vmem:[#allocation23 + $0x1c8] ss:$76 sps:$4 sm:$0xff]   ;;  %v14842_v54 = vld [vmem:[#allocation23 + $0x264] ss:$76 sps:$4 sm:$0xff]  }
 0x814   :  { %6569 = vmatprep.subr.bf16.mxu0 %v14794_v58  ;;  %v14840_v58 = vld [vmem:[#allocation23 + $0x260] ss:$76 sps:$4 sm:$0xff]  }
 0x817   :  { %6570 = vmatpush1.bf16.msra.mxu0 %v14792_v61  ;;  %v14848_v61 = vld [vmem:[#allocation23 + $0x2fc] ss:$76 sps:$4 sm:$0xff]  }
 0x818   :  { %6571 = vmatprep.subr.bf16.mxu0 %v14800_v63  ;;  %v14846_v63 = vld [vmem:[#allocation23 + $0x2f8] ss:$76 sps:$4 sm:$0xff]  }
 0x81b   :  { %12456 = vmatmul.mubr.msk.bf16.vlgmr.msra.gmra.mrb[16].mxu1 %vm5647_vm1, %v6060_v52  ;;  %v14791_v52 = vld [vmem:[#allocation20 + $0x16c] ss:$16 sps:$4 sm:$0xff]   ;;  %6572 = vmatpush1.bf16.msra.mxu0 %v14798_v2  ;;  %v14854_v2 = vld [vmem:[#allocation23 + $0x394] ss:$76 sps:$4 sm:$0xff]  }
 0x81c   :  { %6589 = vmatpush1.bf16.msra.mxu1 %v14723_v23  ;;  %6573 = vmatprep.subr.bf16.mxu0 %v14806_v4  ;;  %v14821_v23 = vld [vmem:[#allocation23 + $0xc] ss:$76 sps:$4 sm:$0xff]   ;;  %v14852_v4 = vld [vmem:[#allocation23 + $0x390] ss:$76 sps:$4 sm:$0xff]  }
 0x81d   :  { %6590 = vmatprep.subr.bf16.mxu1 %v14731_v21 }
 0x81f   :  { %6574 = vmatpush1.bf16.msra.mxu0 %v14804_v6  ;;  %v14860_v6 = vld [vmem:[#allocation23 + $0x42c] ss:$76 sps:$4 sm:$0xff]  }
 0x820   :  { %6591 = vmatpush1.bf16.msra.mxu1 %v14729_v50  ;;  %6575 = vmatprep.subr.bf16.mxu0 %v14812_v17  ;;  %v14858_v17 = vld [vmem:[#allocation23 + $0x428] ss:$76 sps:$4 sm:$0xff]  }
 0x821   :  { %6592 = vmatprep.subr.bf16.mxu1 %v14737_v0 }
 0x823   :  { %6576 = vmatpush1.bf16.msra.mxu0 %v14810_v19  ;;  %v14866_v19 = vld [vmem:[#allocation23 + $0x4c4] ss:$76 sps:$4 sm:$0xff]  }
 0x824   :  { %6593 = vmatpush1.bf16.msra.mxu1 %v14735_v53  ;;  %10456 = vmatprep.subr.bf16.mxu0 %v14818_v22  ;;  %v14864_v22 = vld [vmem:[#allocation23 + $0x4c0] ss:$76 sps:$4 sm:$0xff]  }
 0x825   :  { %6594 = vmatprep.subr.bf16.mxu1 %v14743_v24 }
 0x828   :  { %6595 = vmatpush1.bf16.msra.mxu1 %v14741_v25  ;;  %v6117_v25 = vld [vmem:[#allocation18] sm:$0x3] }
 0x829   :  { %6596 = vmatprep.subr.bf16.mxu1 %v14749_v31  ;;  %v6122_v26 = vrot.slane %v6117_v25, %v16808_v14  ;;  %v6126_v28 = vrot.slane %v6117_v25, %v16813_v16  ;;  %v14884_v25 = vld [vmem:[#allocation23 + $0x68c] ss:$76 sps:$4 sm:$0xff]  }
 0x82c   :  { %6597 = vmatpush1.bf16.msra.mxu1 %v14747_v29 }
 0x82d   :  { %6598 = vmatprep.subr.bf16.mxu1 %v14755_v32 }
 0x830   :  { %6599 = vmatpush1.bf16.msra.mxu1 %v14753_v34 }
 0x831   :  { %6600 = vmatprep.subr.bf16.mxu1 %v14761_v36 }
 0x834   :  { %6601 = vmatpush1.bf16.msra.mxu1 %v14759_v38 }
 0x835   :  { %6602 = vmatprep.subr.bf16.mxu1 %v14767_v39 }
 0x838   :  { %6603 = vmatpush1.bf16.msra.mxu1 %v14765_v10 }
 0x839   :  { %6604 = vmatprep.subr.bf16.mxu1 %v14773_v40  ;;  %v14819_v40 = vld [vmem:[#allocation23 + $0x8] ss:$76 sps:$4 sm:$0xff]  }
 0x83c   :  { %6605 = vmatpush1.bf16.msra.mxu1 %v14771_v27  ;;  %v14827_v27 = vld [vmem:[#allocation23 + $0xa4] ss:$76 sps:$4 sm:$0xff]  }
 0x83d   :  { %6606 = vmatprep.subr.bf16.mxu1 %v14779_v42  ;;  %v14825_v42 = vld [vmem:[#allocation23 + $0xa0] ss:$76 sps:$4 sm:$0xff]  }
 0x840   :  { %6607 = vmatpush1.bf16.msra.mxu1 %v14777_v44  ;;  %v14833_v44 = vld [vmem:[#allocation23 + $0x13c] ss:$76 sps:$4 sm:$0xff]  }
 0x841   :  { %6608 = vmatprep.subr.bf16.mxu1 %v14785_v46  ;;  %v14831_v46 = vld [vmem:[#allocation23 + $0x138] ss:$76 sps:$4 sm:$0xff]  }
 0x844   :  { %6609 = vmatpush1.bf16.msra.mxu1 %v14783_v49  ;;  %v14839_v49 = vld [vmem:[#allocation23 + $0x1d4] ss:$76 sps:$4 sm:$0xff]  }
 0x845   :  { %6610 = vmatprep.subr.bf16.mxu1 %v14791_v52  ;;  %v14837_v52 = vld [vmem:[#allocation23 + $0x1d0] ss:$76 sps:$4 sm:$0xff]  }
 0x848   :  { %6611 = vmatpush1.bf16.msra.mxu1 %v14789_v55  ;;  %v14845_v55 = vld [vmem:[#allocation23 + $0x26c] ss:$76 sps:$4 sm:$0xff]  }
 0x849   :  { %6612 = vmatprep.subr.bf16.mxu1 %v14797_v60  ;;  %v14843_v60 = vld [vmem:[#allocation23 + $0x268] ss:$76 sps:$4 sm:$0xff]  }
 0x84c   :  { %6613 = vmatpush1.bf16.msra.mxu1 %v14795_v62  ;;  %v14851_v62 = vld [vmem:[#allocation23 + $0x304] ss:$76 sps:$4 sm:$0xff]  }
 0x84d   :  { %6614 = vmatprep.subr.bf16.mxu1 %v14803_v1  ;;  %v14849_v1 = vld [vmem:[#allocation23 + $0x300] ss:$76 sps:$4 sm:$0xff]  }
 0x850   :  { %6615 = vmatpush1.bf16.msra.mxu1 %v14801_v3  ;;  %v14857_v3 = vld [vmem:[#allocation23 + $0x39c] ss:$76 sps:$4 sm:$0xff]  }
 0x851   :  { %6616 = vmatprep.subr.bf16.mxu1 %v14809_v5  ;;  %v14855_v5 = vld [vmem:[#allocation23 + $0x398] ss:$76 sps:$4 sm:$0xff]  }
 0x854   :  { %6617 = vmatpush1.bf16.msra.mxu1 %v14807_v9  ;;  %v14863_v9 = vld [vmem:[#allocation23 + $0x434] ss:$76 sps:$4 sm:$0xff]  }
 0x855   :  { %6618 = vmatprep.subr.bf16.mxu1 %v14815_v18  ;;  %v14861_v18 = vld [vmem:[#allocation23 + $0x430] ss:$76 sps:$4 sm:$0xff]  }
 0x858   :  { %6619 = vmatpush1.bf16.msra.mxu1 %v14813_v20  ;;  %v14869_v20 = vld [vmem:[#allocation23 + $0x4cc] ss:$76 sps:$4 sm:$0xff]  }
 0x859   :  { %10542 = vmatprep.subr.bf16.mxu1 %v14821_v23  ;;  %v14867_v23 = vld [vmem:[#allocation23 + $0x4c8] ss:$76 sps:$4 sm:$0xff]  }
 0x884   :  { %v5652_v48 = vpop.xlane.xlu0 %5651 }
 0x885   :  { %v5653_v21 = vrot.slane %v5652_v48, 4 }
 0x887   :  { %v5654_v50 = vadd.f32 %v5653_v21, %v5652_v48  ;;  %v14872_v48 = vld [vmem:[#allocation23 + $0x55c] ss:$76 sps:$4 sm:$0xff]   ;;  %v14875_v21 = vld [vmem:[#allocation23 + $0x564] ss:$76 sps:$4 sm:$0xff]  }
 0x889   :  { %v5655_v0 = vrot.slane %v5654_v50, 2 }
 0x88b   :  { %v5656_v53 = vadd.f32 %v5655_v0, %v5654_v50  ;;  %v14870_v50 = vld [vmem:[#allocation23 + $0x558] ss:$76 sps:$4 sm:$0xff]   ;;  %v14873_v0 = vld [vmem:[#allocation23 + $0x560] ss:$76 sps:$4 sm:$0xff]  }
 0x88d   :  { %v5657_v56 = vrot.slane %v5656_v53, 1 }
 0x88f   :  { %v5658_v24 = vadd.f32 %v5657_v56, %v5656_v53  ;;  %v14878_v53 = vld [vmem:[#allocation23 + $0x5f4] ss:$76 sps:$4 sm:$0xff]   ;;  %v14881_v56 = vld [vmem:[#allocation23 + $0x5fc] ss:$76 sps:$4 sm:$0xff]  }
 0x891   :  { %13607 = vpush %v5658_v24  ;;  %v14876_v24 = vld [vmem:[#allocation23 + $0x5f0] ss:$76 sps:$4 sm:$0xff]  }
 0x8c2   :  { %s13608_s23 = spop %13607 }
 0x8c3   :  { %s5660_s20 = smul.f32 -0.5, %s13608_s23 }
 0x8c5   :  { %v5661_v15 = vstv %s5660_s20 }
 0x8c6   :  { %5663 = vst [vmem:[#allocation33] sm:$0xff] %v5661_v15  ;;  %v14879_v15 = vld [vmem:[#allocation23 + $0x5f8] ss:$76 sps:$4 sm:$0xff]  }
 0x8ee   :  { %v6108_v29 = vpop.f32.mrb[16].mxu1 }
 0x8ef   :  { %v6129_v31 = vadd.f32 %v6122_v26, %v6108_v29  ;;  %v6110_v11 = vpop.f32.mrb[17].mxu1  ;;  %v14885_v29 = vld [vmem:[#allocation23 + $0x690] ss:$76 sps:$4 sm:$0xff]  }
 0x8f0   :  { %v6130_v32 = vadd.f32 %v6126_v28, %v6110_v11  ;;  %v6112_v33 = vpop.f32.mrb[18].mxu1  ;;  %v14893_v11 = vld [vmem:[#allocation23 + $0x72c] ss:$76 sps:$4 sm:$0xff]  }
 0x8f1   :  { %v6131_v34 = vadd.f32 %v6122_v26, %v6112_v33  ;;  %v6114_v35 = vpop.f32.mrb[19].mxu1  ;;  %v6133_v37 = vmax.f32 %v6129_v31, 0.0  ;;  %v14887_v26 = vld [vmem:[#allocation23 + $0x694] ss:$76 sps:$4 sm:$0xff]   ;;  %v14890_v31 = vld [vmem:[#allocation23 + $0x724] ss:$76 sps:$4 sm:$0xff]  }
 0x8f2   :  { %v6132_v36 = vadd.f32 %v6126_v28, %v6114_v35  ;;  %v6134_v7 = vmax.f32 %v6130_v32, 0.0  ;;  %v14882_v28 = vld [vmem:[#allocation23 + $0x688] ss:$76 sps:$4 sm:$0xff]   ;;  %v14888_v32 = vld [vmem:[#allocation23 + $0x720] ss:$76 sps:$4 sm:$0xff]  }
 0x8f3   :  { %v6135_v38 = vmax.f32 %v6131_v34, 0.0  ;;  %v14891_v33 = vld [vmem:[#allocation23 + $0x728] ss:$76 sps:$4 sm:$0xff]   ;;  %v14899_v35 = vld [vmem:[#allocation23 + $0x7c4] ss:$76 sps:$4 sm:$0xff]  }
 0x8f4   :  { %v6136_v39 = vmax.f32 %v6132_v36, 0.0  ;;  %v14896_v34 = vld [vmem:[#allocation23 + $0x7bc] ss:$76 sps:$4 sm:$0xff]   ;;  %v14894_v36 = vld [vmem:[#allocation23 + $0x7b8] ss:$76 sps:$4 sm:$0xff]  }
 0x8f5   :  { %v6137_v8 = vpack.c.bf16 %v6135_v38, %v6133_v37  ;;  %v14897_v37 = vld [vmem:[#allocation23 + $0x7c0] ss:$76 sps:$4 sm:$0xff]  }
 0x8f6   :  { %v6138_v10 = vpack.c.bf16 %v6136_v39, %v6134_v7  ;;  %v14902_v38 = vld [vmem:[#allocation23 + $0x854] ss:$76 sps:$4 sm:$0xff]   ;;  %v14905_v7 = vld [vmem:[#allocation23 + $0x85c] ss:$76 sps:$4 sm:$0xff]  }
 0x8f7   :  { %v14900_v39 = vld [vmem:[#allocation23 + $0x850] ss:$76 sps:$4 sm:$0xff]  }
 0x8f8   :  { %6577 = vmatprep.mubr.bf16.mxu0 %v6138_v10  ;;  %6620 = vmatprep.mubr.bf16.mxu1 %v6138_v10  ;;  %v14908_v10 = vld [vmem:[#allocation23 + $0x8ec] ss:$76 sps:$4 sm:$0xff]  }
 0x8f9   :  { %6578 = vmatmul.mubr.bf16.vlgmr.msra.gmra.mrb[8].mxu0 %v6137_v8  ;;  %6621 = vmatmul.mubr.bf16.vlgmr.msra.gmra.mrb[20].mxu1 %v6137_v8  ;;  %v14903_v8 = vld [vmem:[#allocation23 + $0x858] ss:$76 sps:$4 sm:$0xff]  }
 0x8fa   :  { %10457 = vmatpush1.bf16.msra.mxu0 %v14816_v13  ;;  %10543 = vmatpush1.bf16.msra.mxu1 %v14819_v40  ;;  %v14911_v13 = vld [vmem:[#allocation23 + $0x8f4] ss:$76 sps:$4 sm:$0xff]  }
 0x8fb   :  { %10458 = vmatprep.subr.bf16.mxu0 %v14824_v30  ;;  %10544 = vmatprep.subr.bf16.mxu1 %v14827_v27  ;;  %v14906_v40 = vld [vmem:[#allocation23 + $0x8e8] ss:$76 sps:$4 sm:$0xff]   ;;  %v14909_v30 = vld [vmem:[#allocation23 + $0x8f0] ss:$76 sps:$4 sm:$0xff]  }
 0x8fc   :  { %v14914_v27 = vld [vmem:[#allocation23 + $0x984] ss:$76 sps:$4 sm:$0xff]  }
 0x8fe   :  { %10459 = vmatpush1.bf16.msra.mxu0 %v14822_v41  ;;  %10545 = vmatpush1.bf16.msra.mxu1 %v14825_v42  ;;  %v14917_v41 = vld [vmem:[#allocation23 + $0x98c] ss:$76 sps:$4 sm:$0xff]   ;;  %v6203_v42 = vld [vmem:[#allocation21] sm:$0xf] }
 0x8ff   :  { %10460 = vmatprep.subr.bf16.mxu0 %v14830_v43  ;;  %10546 = vmatprep.subr.bf16.mxu1 %v14833_v44  ;;  %v6208_v43 = vrot.slane %v6203_v42, %v16808_v14  ;;  %v6216_v44 = vrot.slane %v6203_v42, %v16824_v57 }
 0x902   :  { %10461 = vmatpush1.bf16.msra.mxu0 %v14828_v45  ;;  %10547 = vmatpush1.bf16.msra.mxu1 %v14831_v46  ;;  %v6212_v45 = vrot.slane %v6203_v42, %v16813_v16  ;;  %v6220_v46 = vrot.slane %v6203_v42, %v16827_v59  ;;  %v14956_v42 = vld [vmem:[#allocation23 + $0xdac] ss:$76 sps:$4 sm:$0xff]  }
 0x903   :  { %10462 = vmatprep.subr.bf16.mxu0 %v14836_v47  ;;  %10548 = vmatprep.subr.bf16.mxu1 %v14839_v49 }
 0x906   :  { %10463 = vmatpush1.bf16.msra.mxu0 %v14834_v51  ;;  %10549 = vmatpush1.bf16.msra.mxu1 %v14837_v52 }
 0x907   :  { %10464 = vmatprep.subr.bf16.mxu0 %v14842_v54  ;;  %10550 = vmatprep.subr.bf16.mxu1 %v14845_v55 }
 0x90a   :  { %10465 = vmatpush1.bf16.msra.mxu0 %v14840_v58  ;;  %10551 = vmatpush1.bf16.msra.mxu1 %v14843_v60 }
 0x90b   :  { %10466 = vmatprep.subr.bf16.mxu0 %v14848_v61  ;;  %10552 = vmatprep.subr.bf16.mxu1 %v14851_v62 }
 0x90e   :  { %10467 = vmatpush1.bf16.msra.mxu0 %v14846_v63  ;;  %10553 = vmatpush1.bf16.msra.mxu1 %v14849_v1 }
 0x90f   :  { %10468 = vmatprep.subr.bf16.mxu0 %v14854_v2  ;;  %10554 = vmatprep.subr.bf16.mxu1 %v14857_v3 }
 0x912   :  { %10469 = vmatpush1.bf16.msra.mxu0 %v14852_v4  ;;  %10555 = vmatpush1.bf16.msra.mxu1 %v14855_v5 }
 0x913   :  { %10470 = vmatprep.subr.bf16.mxu0 %v14860_v6  ;;  %10556 = vmatprep.subr.bf16.mxu1 %v14863_v9 }
 0x916   :  { %10471 = vmatpush1.bf16.msra.mxu0 %v14858_v17  ;;  %10557 = vmatpush1.bf16.msra.mxu1 %v14861_v18 }
 0x917   :  { %10472 = vmatprep.subr.bf16.mxu0 %v14866_v19  ;;  %10558 = vmatprep.subr.bf16.mxu1 %v14869_v20 }
 0x91a   :  { %10473 = vmatpush1.bf16.msra.mxu0 %v14864_v22  ;;  %10559 = vmatpush1.bf16.msra.mxu1 %v14867_v23 }
 0x91b   :  { %10474 = vmatprep.subr.bf16.mxu0 %v14872_v48  ;;  %10560 = vmatprep.subr.bf16.mxu1 %v14875_v21 }
 0x91e   :  { %10475 = vmatpush1.bf16.msra.mxu0 %v14870_v50  ;;  %10561 = vmatpush1.bf16.msra.mxu1 %v14873_v0 }
 0x91f   :  { %10476 = vmatprep.subr.bf16.mxu0 %v14878_v53  ;;  %10562 = vmatprep.subr.bf16.mxu1 %v14881_v56  ;;  %v14912_v53 = vld [vmem:[#allocation23 + $0x980] ss:$76 sps:$4 sm:$0xff]   ;;  %v14915_v56 = vld [vmem:[#allocation23 + $0x988] ss:$76 sps:$4 sm:$0xff]  }
 0x922   :  { %10477 = vmatpush1.bf16.msra.mxu0 %v14876_v24  ;;  %10563 = vmatpush1.bf16.msra.mxu1 %v14879_v15  ;;  %v14920_v24 = vld [vmem:[#allocation23 + $0xa1c] ss:$76 sps:$4 sm:$0xff]   ;;  %v14923_v15 = vld [vmem:[#allocation23 + $0xa24] ss:$76 sps:$4 sm:$0xff]  }
 0x923   :  { %10478 = vmatprep.subr.bf16.mxu0 %v14884_v25  ;;  %10564 = vmatprep.subr.bf16.mxu1 %v14887_v26  ;;  %v14918_v25 = vld [vmem:[#allocation23 + $0xa18] ss:$76 sps:$4 sm:$0xff]   ;;  %v14921_v26 = vld [vmem:[#allocation23 + $0xa20] ss:$76 sps:$4 sm:$0xff]  }
 0x926   :  { %10479 = vmatpush1.bf16.msra.mxu0 %v14882_v28  ;;  %10565 = vmatpush1.bf16.msra.mxu1 %v14885_v29  ;;  %v14926_v28 = vld [vmem:[#allocation23 + $0xab4] ss:$76 sps:$4 sm:$0xff]   ;;  %v14929_v29 = vld [vmem:[#allocation23 + $0xabc] ss:$76 sps:$4 sm:$0xff]  }
 0x927   :  { %10480 = vmatprep.subr.bf16.mxu0 %v14890_v31  ;;  %10566 = vmatprep.subr.bf16.mxu1 %v14893_v11  ;;  %v14924_v31 = vld [vmem:[#allocation23 + $0xab0] ss:$76 sps:$4 sm:$0xff]   ;;  %v14927_v11 = vld [vmem:[#allocation23 + $0xab8] ss:$76 sps:$4 sm:$0xff]  }
 0x92a   :  { %10481 = vmatpush1.bf16.msra.mxu0 %v14888_v32  ;;  %10567 = vmatpush1.bf16.msra.mxu1 %v14891_v33  ;;  %v14932_v32 = vld [vmem:[#allocation23 + $0xb4c] ss:$76 sps:$4 sm:$0xff]   ;;  %v14935_v33 = vld [vmem:[#allocation23 + $0xb54] ss:$76 sps:$4 sm:$0xff]  }
 0x92b   :  { %10482 = vmatprep.subr.bf16.mxu0 %v14896_v34  ;;  %10568 = vmatprep.subr.bf16.mxu1 %v14899_v35  ;;  %v14930_v34 = vld [vmem:[#allocation23 + $0xb48] ss:$76 sps:$4 sm:$0xff]   ;;  %v14933_v35 = vld [vmem:[#allocation23 + $0xb50] ss:$76 sps:$4 sm:$0xff]  }
 0x92e   :  { %10483 = vmatpush1.bf16.msra.mxu0 %v14894_v36  ;;  %10569 = vmatpush1.bf16.msra.mxu1 %v14897_v37  ;;  %v14938_v36 = vld [vmem:[#allocation23 + $0xbe4] ss:$76 sps:$4 sm:$0xff]   ;;  %v14941_v37 = vld [vmem:[#allocation23 + $0xbec] ss:$76 sps:$4 sm:$0xff]  }
 0x92f   :  { %10484 = vmatprep.subr.bf16.mxu0 %v14902_v38  ;;  %10570 = vmatprep.subr.bf16.mxu1 %v14905_v7  ;;  %v14936_v38 = vld [vmem:[#allocation23 + $0xbe0] ss:$76 sps:$4 sm:$0xff]   ;;  %v14939_v7 = vld [vmem:[#allocation23 + $0xbe8] ss:$76 sps:$4 sm:$0xff]  }
 0x932   :  { %10485 = vmatpush1.bf16.msra.mxu0 %v14900_v39  ;;  %10571 = vmatpush1.bf16.msra.mxu1 %v14903_v8  ;;  %v14944_v39 = vld [vmem:[#allocation23 + $0xc7c] ss:$76 sps:$4 sm:$0xff]   ;;  %v14947_v8 = vld [vmem:[#allocation23 + $0xc84] ss:$76 sps:$4 sm:$0xff]  }
 0x933   :  { %10486 = vmatprep.subr.bf16.mxu0 %v14908_v10  ;;  %10572 = vmatprep.subr.bf16.mxu1 %v14911_v13  ;;  %v14942_v10 = vld [vmem:[#allocation23 + $0xc78] ss:$76 sps:$4 sm:$0xff]   ;;  %v14945_v13 = vld [vmem:[#allocation23 + $0xc80] ss:$76 sps:$4 sm:$0xff]  }
 0x936   :  { %10487 = vmatpush1.bf16.msra.mxu0 %v14906_v40  ;;  %10573 = vmatpush1.bf16.msra.mxu1 %v14909_v30  ;;  %v14950_v40 = vld [vmem:[#allocation23 + $0xd14] ss:$76 sps:$4 sm:$0xff]   ;;  %v14953_v30 = vld [vmem:[#allocation23 + $0xd1c] ss:$76 sps:$4 sm:$0xff]  }
 0x937   :  { %10499 = vmatprep.subr.bf16.mxu0 %v14914_v27  ;;  %10585 = vmatprep.subr.bf16.mxu1 %v14917_v41  ;;  %v14948_v27 = vld [vmem:[#allocation23 + $0xd10] ss:$76 sps:$4 sm:$0xff]   ;;  %v14951_v41 = vld [vmem:[#allocation23 + $0xd18] ss:$76 sps:$4 sm:$0xff]  }
 0x9cc   :  { %v6579_v47 = vpop.f32.mrb[8].mxu0  ;;  %v6622_v49 = vpop.f32.mrb[20].mxu1 }
 0x9cd   :  { %v6580_v51 = vadd.f32 %v6579_v47, %v6208_v43  ;;  %v6623_v52 = vadd.f32 %v6622_v49, %v6216_v44  ;;  %v6581_v54 = vpop.f32.mrb[9].mxu0  ;;  %v6624_v55 = vpop.f32.mrb[21].mxu1  ;;  %v14965_v47 = vld [vmem:[#allocation23 + $0xe4c] ss:$76 sps:$4 sm:$0xff]  }
 0x9ce   :  { %v6582_v58 = vadd.f32 %v6581_v54, %v6212_v45  ;;  %v6625_v60 = vadd.f32 %v6624_v55, %v6220_v46  ;;  %v6583_v61 = vpop.f32.mrb[10].mxu0  ;;  %v6626_v62 = vpop.f32.mrb[22].mxu1  ;;  %v14960_v49 = vld [vmem:[#allocation23 + $0xe40] ss:$76 sps:$4 sm:$0xff]   ;;  %v14971_v54 = vld [vmem:[#allocation23 + $0xee4] ss:$76 sps:$4 sm:$0xff]  }
 0x9cf   :  { %v6584_v63 = vadd.f32 %v6583_v61, %v6208_v43  ;;  %v6627_v1 = vadd.f32 %v6626_v62, %v6216_v44  ;;  %v6585_v2 = vpop.f32.mrb[11].mxu0  ;;  %v6628_v3 = vpop.f32.mrb[23].mxu1  ;;  %v6631_v6 = vmax.f32 %v6580_v51, 0.0  ;;  %v6633_v9 = vmax.f32 %v6623_v52, 0.0  ;;  %v14959_v43 = vld [vmem:[#allocation23 + $0xdb4] ss:$76 sps:$4 sm:$0xff]  }
 0x9d0   :  { %v6586_v4 = vadd.f32 %v6585_v2, %v6212_v45  ;;  %v6629_v5 = vadd.f32 %v6628_v3, %v6220_v46  ;;  %v6632_v19 = vmax.f32 %v6582_v58, 0.0  ;;  %v6634_v20 = vmax.f32 %v6625_v60, 0.0  ;;  %v14954_v44 = vld [vmem:[#allocation23 + $0xda8] ss:$76 sps:$4 sm:$0xff]   ;;  %v14957_v45 = vld [vmem:[#allocation23 + $0xdb0] ss:$76 sps:$4 sm:$0xff]  }
 0x9d1   :  { %v6635_v17 = vmax.f32 %v6584_v63, 0.0  ;;  %v6637_v18 = vmax.f32 %v6627_v1, 0.0  ;;  %v14962_v46 = vld [vmem:[#allocation23 + $0xe44] ss:$76 sps:$4 sm:$0xff]   ;;  %v14963_v51 = vld [vmem:[#allocation23 + $0xe48] ss:$76 sps:$4 sm:$0xff]  }
 0x9d2   :  { %v6636_v22 = vmax.f32 %v6586_v4, 0.0  ;;  %v6638_v23 = vmax.f32 %v6629_v5, 0.0  ;;  %v14968_v52 = vld [vmem:[#allocation23 + $0xedc] ss:$76 sps:$4 sm:$0xff]   ;;  %v14966_v55 = vld [vmem:[#allocation23 + $0xed8] ss:$76 sps:$4 sm:$0xff]  }
 0x9d3   :  { %v16932_v48 = vpack.c.bf16 %v6635_v17, %v6631_v6  ;;  %v16934_v21 = vpack.c.bf16 %v6637_v18, %v6633_v9  ;;  %v14969_v58 = vld [vmem:[#allocation23 + $0xee0] ss:$76 sps:$4 sm:$0xff]   ;;  %v14977_v61 = vld [vmem:[#allocation23 + $0xf7c] ss:$76 sps:$4 sm:$0xff]   ;;  %v14975_v63 = vld [vmem:[#allocation23 + $0xf78] ss:$76 sps:$4 sm:$0xff]  }
 0x9d4   :  { %v16936_v50 = vpack.c.bf16 %v6636_v22, %v6632_v19  ;;  %v16938_v0 = vpack.c.bf16 %v6638_v23, %v6634_v20  ;;  %v14974_v60 = vld [vmem:[#allocation23 + $0xf74] ss:$76 sps:$4 sm:$0xff]   ;;  %v14972_v62 = vld [vmem:[#allocation23 + $0xf70] ss:$76 sps:$4 sm:$0xff]   ;;  %v14980_v1 = vld [vmem:[#allocation23 + $0x100c] ss:$76 sps:$4 sm:$0xff]  }
 0x9d5   :  { %v14983_v2 = vld [vmem:[#allocation23 + $0x1014] ss:$76 sps:$4 sm:$0xff]   ;;  %v14981_v4 = vld [vmem:[#allocation23 + $0x1010] ss:$76 sps:$4 sm:$0xff]   ;;  %v14989_v6 = vld [vmem:[#allocation23 + $0x10ac] ss:$76 sps:$4 sm:$0xff]  }
 0x9d6   :  { %10488 = vmatprep.mubr.bf16.mxu0 %v16936_v50  ;;  %10574 = vmatprep.mubr.bf16.mxu1 %v16936_v50  ;;  %v14978_v3 = vld [vmem:[#allocation23 + $0x1008] ss:$76 sps:$4 sm:$0xff]   ;;  %v14986_v5 = vld [vmem:[#allocation23 + $0x10a4] ss:$76 sps:$4 sm:$0xff]   ;;  %v14984_v9 = vld [vmem:[#allocation23 + $0x10a0] ss:$76 sps:$4 sm:$0xff]  }
 0x9d7   :  { %10489 = vmatmul.mubr.bf16.vlgmr.msra.gmra.mrb[12].mxu0 %v16932_v48  ;;  %10575 = vmatmul.mubr.bf16.vlgmr.msra.gmra.mrb[24].mxu1 %v16932_v48  ;;  %v14987_v17 = vld [vmem:[#allocation23 + $0x10a8] ss:$76 sps:$4 sm:$0xff]   ;;  %v14995_v19 = vld [vmem:[#allocation23 + $0x1144] ss:$76 sps:$4 sm:$0xff]   ;;  %v14993_v22 = vld [vmem:[#allocation23 + $0x1140] ss:$76 sps:$4 sm:$0xff]  }
 0x9d8   :  { %10500 = vmatpush1.bf16.msra.mxu0 %v14912_v53  ;;  %10586 = vmatpush1.bf16.msra.mxu1 %v14915_v56  ;;  %v14992_v18 = vld [vmem:[#allocation23 + $0x113c] ss:$76 sps:$4 sm:$0xff]   ;;  %v14990_v20 = vld [vmem:[#allocation23 + $0x1138] ss:$76 sps:$4 sm:$0xff]   ;;  %v14998_v23 = vld [vmem:[#allocation23 + $0x11d4] ss:$76 sps:$4 sm:$0xff]  }
 0x9d9   :  { %10531 = vmatprep.mubr.bf16.mxu0 %v16938_v0  ;;  %10617 = vmatprep.mubr.bf16.mxu1 %v16938_v0  ;;  %v15001_v53 = vld [vmem:[#allocation23 + $0x11dc] ss:$76 sps:$4 sm:$0xff]  }
 0x9da   :  { %10501 = vmatprep.subr.bf16.mxu0 %v14920_v24  ;;  %10587 = vmatprep.subr.bf16.mxu1 %v14923_v15  ;;  %v14996_v56 = vld [vmem:[#allocation23 + $0x11d0] ss:$76 sps:$4 sm:$0xff]   ;;  %v14999_v24 = vld [vmem:[#allocation23 + $0x11d8] ss:$76 sps:$4 sm:$0xff]  }
 0x9db   :  { %v15004_v15 = vld [vmem:[#allocation23 + $0x126c] ss:$76 sps:$4 sm:$0xff]  }
 0x9dc   :  { %10502 = vmatpush1.bf16.msra.mxu0 %v14918_v25  ;;  %10588 = vmatpush1.bf16.msra.mxu1 %v14921_v26  ;;  %v15007_v25 = vld [vmem:[#allocation23 + $0x1274] ss:$76 sps:$4 sm:$0xff]  }
 0x9dd   :  { %10503 = vmatprep.subr.bf16.mxu0 %v14926_v28  ;;  %10589 = vmatprep.subr.bf16.mxu1 %v14929_v29  ;;  %v15002_v26 = vld [vmem:[#allocation23 + $0x1268] ss:$76 sps:$4 sm:$0xff]   ;;  %v15005_v28 = vld [vmem:[#allocation23 + $0x1270] ss:$76 sps:$4 sm:$0xff]  }
 0x9de   :  { %v15010_v29 = vld [vmem:[#allocation23 + $0x14] ss:$76 sps:$4 sm:$0xff]  }
 0x9e0   :  { %10504 = vmatpush1.bf16.msra.mxu0 %v14924_v31  ;;  %10590 = vmatpush1.bf16.msra.mxu1 %v14927_v11  ;;  %v15013_v31 = vld [vmem:[#allocation23 + $0x1c] ss:$76 sps:$4 sm:$0xff]  }
 0x9e1   :  { %10505 = vmatprep.subr.bf16.mxu0 %v14932_v32  ;;  %10591 = vmatprep.subr.bf16.mxu1 %v14935_v33  ;;  %v15008_v11 = vld [vmem:[#allocation23 + $0x10] ss:$76 sps:$4 sm:$0xff]   ;;  %v15011_v32 = vld [vmem:[#allocation23 + $0x18] ss:$76 sps:$4 sm:$0xff]  }
 0x9e2   :  { %v15016_v33 = vld [vmem:[#allocation23 + $0xac] ss:$76 sps:$4 sm:$0xff]  }
 0x9e4   :  { %10506 = vmatpush1.bf16.msra.mxu0 %v14930_v34  ;;  %10592 = vmatpush1.bf16.msra.mxu1 %v14933_v35  ;;  %v15019_v34 = vld [vmem:[#allocation23 + $0xb4] ss:$76 sps:$4 sm:$0xff]  }
 0x9e5   :  { %10507 = vmatprep.subr.bf16.mxu0 %v14938_v36  ;;  %10593 = vmatprep.subr.bf16.mxu1 %v14941_v37  ;;  %v15014_v35 = vld [vmem:[#allocation23 + $0xa8] ss:$76 sps:$4 sm:$0xff]   ;;  %v15017_v36 = vld [vmem:[#allocation23 + $0xb0] ss:$76 sps:$4 sm:$0xff]  }
 0x9e6   :  { %v15022_v37 = vld [vmem:[#allocation23 + $0x144] ss:$76 sps:$4 sm:$0xff]  }
 0x9e8   :  { %10508 = vmatpush1.bf16.msra.mxu0 %v14936_v38  ;;  %10594 = vmatpush1.bf16.msra.mxu1 %v14939_v7  ;;  %v15025_v38 = vld [vmem:[#allocation23 + $0x14c] ss:$76 sps:$4 sm:$0xff]  }
 0x9e9   :  { %10509 = vmatprep.subr.bf16.mxu0 %v14944_v39  ;;  %10595 = vmatprep.subr.bf16.mxu1 %v14947_v8  ;;  %v15020_v7 = vld [vmem:[#allocation23 + $0x140] ss:$76 sps:$4 sm:$0xff]   ;;  %v15023_v39 = vld [vmem:[#allocation23 + $0x148] ss:$76 sps:$4 sm:$0xff]  }
 0x9ea   :  { %v15028_v8 = vld [vmem:[#allocation23 + $0x1dc] ss:$76 sps:$4 sm:$0xff]  }
 0x9ec   :  { %10510 = vmatpush1.bf16.msra.mxu0 %v14942_v10  ;;  %10596 = vmatpush1.bf16.msra.mxu1 %v14945_v13  ;;  %v15031_v10 = vld [vmem:[#allocation23 + $0x1e4] ss:$76 sps:$4 sm:$0xff]  }
 0x9ed   :  { %10511 = vmatprep.subr.bf16.mxu0 %v14950_v40  ;;  %10597 = vmatprep.subr.bf16.mxu1 %v14953_v30  ;;  %v15026_v13 = vld [vmem:[#allocation23 + $0x1d8] ss:$76 sps:$4 sm:$0xff]   ;;  %v15029_v40 = vld [vmem:[#allocation23 + $0x1e0] ss:$76 sps:$4 sm:$0xff]  }
 0x9ee   :  { %v15034_v30 = vld [vmem:[#allocation23 + $0x274] ss:$76 sps:$4 sm:$0xff]  }
 0x9f0   :  { %10512 = vmatpush1.bf16.msra.mxu0 %v14948_v27  ;;  %10598 = vmatpush1.bf16.msra.mxu1 %v14951_v41  ;;  %v15037_v27 = vld [vmem:[#allocation23 + $0x27c] ss:$76 sps:$4 sm:$0xff]  }
 0x9f1   :  { %10513 = vmatprep.subr.bf16.mxu0 %v14956_v42  ;;  %10599 = vmatprep.subr.bf16.mxu1 %v14959_v43  ;;  %v15032_v41 = vld [vmem:[#allocation23 + $0x270] ss:$76 sps:$4 sm:$0xff]   ;;  %v15035_v42 = vld [vmem:[#allocation23 + $0x278] ss:$76 sps:$4 sm:$0xff]  }
 0x9f2   :  { %v15040_v43 = vld [vmem:[#allocation23 + $0x30c] ss:$76 sps:$4 sm:$0xff]  }
 0x9f4   :  { %10514 = vmatpush1.bf16.msra.mxu0 %v14954_v44  ;;  %10600 = vmatpush1.bf16.msra.mxu1 %v14957_v45  ;;  %v15043_v44 = vld [vmem:[#allocation23 + $0x314] ss:$76 sps:$4 sm:$0xff]  }
 0x9f5   :  { %10515 = vmatprep.subr.bf16.mxu0 %v14962_v46  ;;  %10601 = vmatprep.subr.bf16.mxu1 %v14965_v47  ;;  %v15038_v45 = vld [vmem:[#allocation23 + $0x308] ss:$76 sps:$4 sm:$0xff]   ;;  %v15041_v46 = vld [vmem:[#allocation23 + $0x310] ss:$76 sps:$4 sm:$0xff]  }
 0x9f6   :  { %v15046_v47 = vld [vmem:[#allocation23 + $0x3a4] ss:$76 sps:$4 sm:$0xff]  }
 0x9f8   :  { %10516 = vmatpush1.bf16.msra.mxu0 %v14960_v49  ;;  %10602 = vmatpush1.bf16.msra.mxu1 %v14963_v51  ;;  %v15049_v49 = vld [vmem:[#allocation23 + $0x3ac] ss:$76 sps:$4 sm:$0xff]  }
 0x9f9   :  { %10517 = vmatprep.subr.bf16.mxu0 %v14968_v52  ;;  %10603 = vmatprep.subr.bf16.mxu1 %v14971_v54  ;;  %v15044_v51 = vld [vmem:[#allocation23 + $0x3a0] ss:$76 sps:$4 sm:$0xff]   ;;  %v15047_v52 = vld [vmem:[#allocation23 + $0x3a8] ss:$76 sps:$4 sm:$0xff]  }
 0x9fa   :  { %v15052_v54 = vld [vmem:[#allocation23 + $0x43c] ss:$76 sps:$4 sm:$0xff]  }
 0x9fc   :  { %10518 = vmatpush1.bf16.msra.mxu0 %v14966_v55  ;;  %10604 = vmatpush1.bf16.msra.mxu1 %v14969_v58  ;;  %v15055_v55 = vld [vmem:[#allocation23 + $0x444] ss:$76 sps:$4 sm:$0xff]  }
 0x9fd   :  { %10519 = vmatprep.subr.bf16.mxu0 %v14974_v60  ;;  %10605 = vmatprep.subr.bf16.mxu1 %v14977_v61  ;;  %v15050_v58 = vld [vmem:[#allocation23 + $0x438] ss:$76 sps:$4 sm:$0xff]   ;;  %v15053_v60 = vld [vmem:[#allocation23 + $0x440] ss:$76 sps:$4 sm:$0xff]  }
 0x9fe   :  { %v15058_v61 = vld [vmem:[#allocation23 + $0x4d4] ss:$76 sps:$4 sm:$0xff]  }
 0xa00   :  { %10520 = vmatpush1.bf16.msra.mxu0 %v14972_v62  ;;  %10606 = vmatpush1.bf16.msra.mxu1 %v14975_v63  ;;  %v15061_v62 = vld [vmem:[#allocation23 + $0x4dc] ss:$76 sps:$4 sm:$0xff]  }
 0xa01   :  { %10521 = vmatprep.subr.bf16.mxu0 %v14980_v1  ;;  %10607 = vmatprep.subr.bf16.mxu1 %v14983_v2  ;;  %v15056_v63 = vld [vmem:[#allocation23 + $0x4d0] ss:$76 sps:$4 sm:$0xff]   ;;  %v15059_v1 = vld [vmem:[#allocation23 + $0x4d8] ss:$76 sps:$4 sm:$0xff]  }
 0xa02   :  { %v15064_v2 = vld [vmem:[#allocation23 + $0x56c] ss:$76 sps:$4 sm:$0xff]  }
 0xa04   :  { %10522 = vmatpush1.bf16.msra.mxu0 %v14978_v3  ;;  %10608 = vmatpush1.bf16.msra.mxu1 %v14981_v4  ;;  %v15067_v3 = vld [vmem:[#allocation23 + $0x574] ss:$76 sps:$4 sm:$0xff]  }
 0xa05   :  { %10523 = vmatprep.subr.bf16.mxu0 %v14986_v5  ;;  %10609 = vmatprep.subr.bf16.mxu1 %v14989_v6  ;;  %v15062_v4 = vld [vmem:[#allocation23 + $0x568] ss:$76 sps:$4 sm:$0xff]   ;;  %v15065_v5 = vld [vmem:[#allocation23 + $0x570] ss:$76 sps:$4 sm:$0xff]  }
 0xa06   :  { %v15070_v6 = vld [vmem:[#allocation23 + $0x604] ss:$76 sps:$4 sm:$0xff]  }
 0xa08   :  { %10524 = vmatpush1.bf16.msra.mxu0 %v14984_v9  ;;  %10610 = vmatpush1.bf16.msra.mxu1 %v14987_v17  ;;  %v15073_v9 = vld [vmem:[#allocation23 + $0x60c] ss:$76 sps:$4 sm:$0xff]  }
 0xa09   :  { %10525 = vmatprep.subr.bf16.mxu0 %v14992_v18  ;;  %10611 = vmatprep.subr.bf16.mxu1 %v14995_v19  ;;  %v15068_v17 = vld [vmem:[#allocation23 + $0x600] ss:$76 sps:$4 sm:$0xff]   ;;  %v15071_v18 = vld [vmem:[#allocation23 + $0x608] ss:$76 sps:$4 sm:$0xff]  }
 0xa0a   :  { %v15076_v19 = vld [vmem:[#allocation23 + $0x69c] ss:$76 sps:$4 sm:$0xff]  }
 0xa0c   :  { %10526 = vmatpush1.bf16.msra.mxu0 %v14990_v20  ;;  %10612 = vmatpush1.bf16.msra.mxu1 %v14993_v22  ;;  %v15079_v20 = vld [vmem:[#allocation23 + $0x6a4] ss:$76 sps:$4 sm:$0xff]  }
 0xa0d   :  { %10527 = vmatprep.subr.bf16.mxu0 %v14998_v23  ;;  %10613 = vmatprep.subr.bf16.mxu1 %v15001_v53  ;;  %v15074_v22 = vld [vmem:[#allocation23 + $0x698] ss:$76 sps:$4 sm:$0xff]   ;;  %v15077_v23 = vld [vmem:[#allocation23 + $0x6a0] ss:$76 sps:$4 sm:$0xff]  }
 0xa0e   :  { %v15082_v53 = vld [vmem:[#allocation23 + $0x734] ss:$76 sps:$4 sm:$0xff]  }
 0xa10   :  { %10528 = vmatpush1.bf16.msra.mxu0 %v14996_v56  ;;  %10614 = vmatpush1.bf16.msra.mxu1 %v14999_v24  ;;  %v15085_v56 = vld [vmem:[#allocation23 + $0x73c] ss:$76 sps:$4 sm:$0xff]  }
 0xa11   :  { %10529 = vmatprep.subr.bf16.mxu0 %v15004_v15  ;;  %10615 = vmatprep.subr.bf16.mxu1 %v15007_v25  ;;  %v15080_v24 = vld [vmem:[#allocation23 + $0x730] ss:$76 sps:$4 sm:$0xff]   ;;  %v15083_v15 = vld [vmem:[#allocation23 + $0x738] ss:$76 sps:$4 sm:$0xff]  }
 0xa12   :  { %v15088_v25 = vld [vmem:[#allocation23 + $0x7cc] ss:$76 sps:$4 sm:$0xff]  }
 0xa14   :  { %10530 = vmatpush1.bf16.msra.mxu0 %v15002_v26  ;;  %10616 = vmatpush1.bf16.msra.mxu1 %v15005_v28  ;;  %v15091_v26 = vld [vmem:[#allocation23 + $0x7d4] ss:$76 sps:$4 sm:$0xff]  }
 0xa15   :  { %10628 = vmatprep.subr.bf16.mxu0 %v15010_v29  ;;  %10714 = vmatprep.subr.bf16.mxu1 %v15013_v31  ;;  %v15086_v28 = vld [vmem:[#allocation23 + $0x7c8] ss:$76 sps:$4 sm:$0xff]   ;;  %v15089_v29 = vld [vmem:[#allocation23 + $0x7d0] ss:$76 sps:$4 sm:$0xff]  }
 0xa16   :  { %v15094_v31 = vld [vmem:[#allocation23 + $0x864] ss:$76 sps:$4 sm:$0xff]  }
 0xa17   :  { %10532 = vmatmul.mubr.bf16.vlgmr.msra.gmra.mrb[12].mxu0 %v16934_v21  ;;  %10618 = vmatmul.mubr.bf16.vlgmr.msra.gmra.mrb[24].mxu1 %v16934_v21 }
 0xa18   :  { %10629 = vmatpush1.bf16.msra.mxu0 %v15008_v11  ;;  %10660 = vmatprep.mubr.bf16.mxu0 %v16936_v50  ;;  %v15097_v11 = vld [vmem:[#allocation23 + $0x86c] ss:$76 sps:$4 sm:$0xff]  }
 0xa19   :  { %10715 = vmatpush1.bf16.msra.mxu1 %v15011_v32  ;;  %10746 = vmatprep.mubr.bf16.mxu1 %v16936_v50  ;;  %v15092_v32 = vld [vmem:[#allocation23 + $0x860] ss:$76 sps:$4 sm:$0xff]  }
 0xa1a   :  { %10630 = vmatprep.subr.bf16.mxu0 %v15016_v33  ;;  %10716 = vmatprep.subr.bf16.mxu1 %v15019_v34  ;;  %v15095_v33 = vld [vmem:[#allocation23 + $0x868] ss:$76 sps:$4 sm:$0xff]  }
 0xa1b   :  { %v15100_v34 = vld [vmem:[#allocation23 + $0x8fc] ss:$76 sps:$4 sm:$0xff]  }
 0xa1c   :  { %10631 = vmatpush1.bf16.msra.mxu0 %v15014_v35  ;;  %v15103_v35 = vld [vmem:[#allocation23 + $0x904] ss:$76 sps:$4 sm:$0xff]  }
 0xa1d   :  { %10717 = vmatpush1.bf16.msra.mxu1 %v15017_v36  ;;  %10632 = vmatprep.subr.bf16.mxu0 %v15022_v37  ;;  %v15098_v36 = vld [vmem:[#allocation23 + $0x8f8] ss:$76 sps:$4 sm:$0xff]   ;;  %v15101_v37 = vld [vmem:[#allocation23 + $0x900] ss:$76 sps:$4 sm:$0xff]  }
 0xa1e   :  { %10718 = vmatprep.subr.bf16.mxu1 %v15025_v38  ;;  %v15106_v38 = vld [vmem:[#allocation23 + $0x994] ss:$76 sps:$4 sm:$0xff]  }
 0xa20   :  { %10633 = vmatpush1.bf16.msra.mxu0 %v15020_v7  ;;  %v15109_v7 = vld [vmem:[#allocation23 + $0x99c] ss:$76 sps:$4 sm:$0xff]  }
 0xa21   :  { %10719 = vmatpush1.bf16.msra.mxu1 %v15023_v39  ;;  %10634 = vmatprep.subr.bf16.mxu0 %v15028_v8  ;;  %v15104_v39 = vld [vmem:[#allocation23 + $0x990] ss:$76 sps:$4 sm:$0xff]   ;;  %v15107_v8 = vld [vmem:[#allocation23 + $0x998] ss:$76 sps:$4 sm:$0xff]  }
 0xa22   :  { %10720 = vmatprep.subr.bf16.mxu1 %v15031_v10  ;;  %v15112_v10 = vld [vmem:[#allocation23 + $0xa2c] ss:$76 sps:$4 sm:$0xff]  }
 0xa24   :  { %10635 = vmatpush1.bf16.msra.mxu0 %v15026_v13  ;;  %v15115_v13 = vld [vmem:[#allocation23 + $0xa34] ss:$76 sps:$4 sm:$0xff]  }
 0xa25   :  { %10721 = vmatpush1.bf16.msra.mxu1 %v15029_v40  ;;  %10636 = vmatprep.subr.bf16.mxu0 %v15034_v30  ;;  %v15110_v40 = vld [vmem:[#allocation23 + $0xa28] ss:$76 sps:$4 sm:$0xff]   ;;  %v15113_v30 = vld [vmem:[#allocation23 + $0xa30] ss:$76 sps:$4 sm:$0xff]  }
 0xa26   :  { %10722 = vmatprep.subr.bf16.mxu1 %v15037_v27  ;;  %v15118_v27 = vld [vmem:[#allocation23 + $0xac4] ss:$76 sps:$4 sm:$0xff]  }
 0xa28   :  { %10637 = vmatpush1.bf16.msra.mxu0 %v15032_v41  ;;  %v15121_v41 = vld [vmem:[#allocation23 + $0xacc] ss:$76 sps:$4 sm:$0xff]  }
 0xa29   :  { %10723 = vmatpush1.bf16.msra.mxu1 %v15035_v42  ;;  %10638 = vmatprep.subr.bf16.mxu0 %v15040_v43  ;;  %v15116_v42 = vld [vmem:[#allocation23 + $0xac0] ss:$76 sps:$4 sm:$0xff]   ;;  %v15119_v43 = vld [vmem:[#allocation23 + $0xac8] ss:$76 sps:$4 sm:$0xff]  }
 0xa2a   :  { %10724 = vmatprep.subr.bf16.mxu1 %v15043_v44  ;;  %v15124_v44 = vld [vmem:[#allocation23 + $0xb5c] ss:$76 sps:$4 sm:$0xff]  }
 0xa2c   :  { %10639 = vmatpush1.bf16.msra.mxu0 %v15038_v45  ;;  %v15127_v45 = vld [vmem:[#allocation23 + $0xb64] ss:$76 sps:$4 sm:$0xff]  }
 0xa2d   :  { %10725 = vmatpush1.bf16.msra.mxu1 %v15041_v46  ;;  %10640 = vmatprep.subr.bf16.mxu0 %v15046_v47  ;;  %v15122_v46 = vld [vmem:[#allocation23 + $0xb58] ss:$76 sps:$4 sm:$0xff]   ;;  %v15125_v47 = vld [vmem:[#allocation23 + $0xb60] ss:$76 sps:$4 sm:$0xff]  }
 0xa2e   :  { %10726 = vmatprep.subr.bf16.mxu1 %v15049_v49  ;;  %v15130_v49 = vld [vmem:[#allocation23 + $0xbf4] ss:$76 sps:$4 sm:$0xff]  }
 0xa30   :  { %10641 = vmatpush1.bf16.msra.mxu0 %v15044_v51  ;;  %v15133_v51 = vld [vmem:[#allocation23 + $0xbfc] ss:$76 sps:$4 sm:$0xff]  }
 0xa31   :  { %10727 = vmatpush1.bf16.msra.mxu1 %v15047_v52  ;;  %10642 = vmatprep.subr.bf16.mxu0 %v15052_v54  ;;  %v15128_v52 = vld [vmem:[#allocation23 + $0xbf0] ss:$76 sps:$4 sm:$0xff]   ;;  %v15131_v54 = vld [vmem:[#allocation23 + $0xbf8] ss:$76 sps:$4 sm:$0xff]  }
 0xa32   :  { %10728 = vmatprep.subr.bf16.mxu1 %v15055_v55  ;;  %v15136_v55 = vld [vmem:[#allocation23 + $0xc8c] ss:$76 sps:$4 sm:$0xff]  }
 0xa34   :  { %10643 = vmatpush1.bf16.msra.mxu0 %v15050_v58  ;;  %v15139_v58 = vld [vmem:[#allocation23 + $0xc94] ss:$76 sps:$4 sm:$0xff]  }
 0xa35   :  { %10729 = vmatpush1.bf16.msra.mxu1 %v15053_v60  ;;  %10644 = vmatprep.subr.bf16.mxu0 %v15058_v61  ;;  %v15134_v60 = vld [vmem:[#allocation23 + $0xc88] ss:$76 sps:$4 sm:$0xff]   ;;  %v15137_v61 = vld [vmem:[#allocation23 + $0xc90] ss:$76 sps:$4 sm:$0xff]  }
 0xa36   :  { %10730 = vmatprep.subr.bf16.mxu1 %v15061_v62  ;;  %v15142_v62 = vld [vmem:[#allocation23 + $0xd24] ss:$76 sps:$4 sm:$0xff]  }
 0xa38   :  { %10645 = vmatpush1.bf16.msra.mxu0 %v15056_v63  ;;  %v15145_v63 = vld [vmem:[#allocation23 + $0xd2c] ss:$76 sps:$4 sm:$0xff]  }
 0xa39   :  { %10731 = vmatpush1.bf16.msra.mxu1 %v15059_v1  ;;  %10646 = vmatprep.subr.bf16.mxu0 %v15064_v2  ;;  %v15140_v1 = vld [vmem:[#allocation23 + $0xd20] ss:$76 sps:$4 sm:$0xff]   ;;  %v15143_v2 = vld [vmem:[#allocation23 + $0xd28] ss:$76 sps:$4 sm:$0xff]  }
 0xa3a   :  { %10732 = vmatprep.subr.bf16.mxu1 %v15067_v3  ;;  %v15148_v3 = vld [vmem:[#allocation23 + $0xdbc] ss:$76 sps:$4 sm:$0xff]  }
 0xa3c   :  { %10647 = vmatpush1.bf16.msra.mxu0 %v15062_v4  ;;  %v15151_v4 = vld [vmem:[#allocation23 + $0xdc4] ss:$76 sps:$4 sm:$0xff]  }
 0xa3d   :  { %10733 = vmatpush1.bf16.msra.mxu1 %v15065_v5  ;;  %10648 = vmatprep.subr.bf16.mxu0 %v15070_v6  ;;  %v15146_v5 = vld [vmem:[#allocation23 + $0xdb8] ss:$76 sps:$4 sm:$0xff]   ;;  %v15149_v6 = vld [vmem:[#allocation23 + $0xdc0] ss:$76 sps:$4 sm:$0xff]  }
 0xa3e   :  { %10734 = vmatprep.subr.bf16.mxu1 %v15073_v9  ;;  %v15154_v9 = vld [vmem:[#allocation23 + $0xe54] ss:$76 sps:$4 sm:$0xff]  }
 0xa40   :  { %10649 = vmatpush1.bf16.msra.mxu0 %v15068_v17  ;;  %v15157_v17 = vld [vmem:[#allocation23 + $0xe5c] ss:$76 sps:$4 sm:$0xff]  }
 0xa41   :  { %10735 = vmatpush1.bf16.msra.mxu1 %v15071_v18  ;;  %10650 = vmatprep.subr.bf16.mxu0 %v15076_v19  ;;  %v15152_v18 = vld [vmem:[#allocation23 + $0xe50] ss:$76 sps:$4 sm:$0xff]   ;;  %v15155_v19 = vld [vmem:[#allocation23 + $0xe58] ss:$76 sps:$4 sm:$0xff]  }
 0xa42   :  { %10736 = vmatprep.subr.bf16.mxu1 %v15079_v20  ;;  %v15160_v20 = vld [vmem:[#allocation23 + $0xeec] ss:$76 sps:$4 sm:$0xff]  }
 0xa44   :  { %10651 = vmatpush1.bf16.msra.mxu0 %v15074_v22  ;;  %v15163_v22 = vld [vmem:[#allocation23 + $0xef4] ss:$76 sps:$4 sm:$0xff]  }
 0xa45   :  { %10737 = vmatpush1.bf16.msra.mxu1 %v15077_v23  ;;  %10652 = vmatprep.subr.bf16.mxu0 %v15082_v53  ;;  %v15158_v23 = vld [vmem:[#allocation23 + $0xee8] ss:$76 sps:$4 sm:$0xff]   ;;  %v15161_v53 = vld [vmem:[#allocation23 + $0xef0] ss:$76 sps:$4 sm:$0xff]  }
 0xa46   :  { %10738 = vmatprep.subr.bf16.mxu1 %v15085_v56  ;;  %v15166_v56 = vld [vmem:[#allocation23 + $0xf84] ss:$76 sps:$4 sm:$0xff]  }
 0xa48   :  { %10653 = vmatpush1.bf16.msra.mxu0 %v15080_v24  ;;  %v15169_v24 = vld [vmem:[#allocation23 + $0xf8c] ss:$76 sps:$4 sm:$0xff]  }
 0xa49   :  { %10739 = vmatpush1.bf16.msra.mxu1 %v15083_v15  ;;  %10654 = vmatprep.subr.bf16.mxu0 %v15088_v25  ;;  %v15164_v15 = vld [vmem:[#allocation23 + $0xf80] ss:$76 sps:$4 sm:$0xff]   ;;  %v15167_v25 = vld [vmem:[#allocation23 + $0xf88] ss:$76 sps:$4 sm:$0xff]  }
 0xa4a   :  { %10740 = vmatprep.subr.bf16.mxu1 %v15091_v26  ;;  %v15172_v26 = vld [vmem:[#allocation23 + $0x101c] ss:$76 sps:$4 sm:$0xff]  }
 0xa4c   :  { %10655 = vmatpush1.bf16.msra.mxu0 %v15086_v28  ;;  %v15175_v28 = vld [vmem:[#allocation23 + $0x1024] ss:$76 sps:$4 sm:$0xff]  }
 0xa4d   :  { %10741 = vmatpush1.bf16.msra.mxu1 %v15089_v29  ;;  %10656 = vmatprep.subr.bf16.mxu0 %v15094_v31  ;;  %v15170_v29 = vld [vmem:[#allocation23 + $0x1018] ss:$76 sps:$4 sm:$0xff]   ;;  %v15173_v31 = vld [vmem:[#allocation23 + $0x1020] ss:$76 sps:$4 sm:$0xff]  }
 0xa4e   :  { %10742 = vmatprep.subr.bf16.mxu1 %v15097_v11  ;;  %v15178_v11 = vld [vmem:[#allocation23 + $0x10b4] ss:$76 sps:$4 sm:$0xff]  }
 0xa50   :  { %10657 = vmatpush1.bf16.msra.mxu0 %v15092_v32  ;;  %v15181_v32 = vld [vmem:[#allocation23 + $0x10bc] ss:$76 sps:$4 sm:$0xff]  }
 0xa51   :  { %10743 = vmatpush1.bf16.msra.mxu1 %v15095_v33  ;;  %10658 = vmatprep.subr.bf16.mxu0 %v15100_v34  ;;  %v15176_v33 = vld [vmem:[#allocation23 + $0x10b0] ss:$76 sps:$4 sm:$0xff]   ;;  %v15179_v34 = vld [vmem:[#allocation23 + $0x10b8] ss:$76 sps:$4 sm:$0xff]  }
 0xa52   :  { %10744 = vmatprep.subr.bf16.mxu1 %v15103_v35  ;;  %v15184_v35 = vld [vmem:[#allocation23 + $0x114c] ss:$76 sps:$4 sm:$0xff]  }
 0xa54   :  { %10659 = vmatpush1.bf16.msra.mxu0 %v15098_v36  ;;  %v15187_v36 = vld [vmem:[#allocation23 + $0x1154] ss:$76 sps:$4 sm:$0xff]  }
 0xa55   :  { %10745 = vmatpush1.bf16.msra.mxu1 %v15101_v37  ;;  %10671 = vmatprep.subr.bf16.mxu0 %v15106_v38  ;;  %v15182_v37 = vld [vmem:[#allocation23 + $0x1148] ss:$76 sps:$4 sm:$0xff]   ;;  %v15185_v38 = vld [vmem:[#allocation23 + $0x1150] ss:$76 sps:$4 sm:$0xff]  }
 0xa56   :  { %10757 = vmatprep.subr.bf16.mxu1 %v15109_v7  ;;  %v15190_v7 = vld [vmem:[#allocation23 + $0x11e4] ss:$76 sps:$4 sm:$0xff]  }
 0xa57   :  { %10661 = vmatmul.mubr.bf16.vlgmr.msra.gmra.mrb[16].mxu0 %v16932_v48 }
 0xa58   :  { %10747 = vmatmul.mubr.bf16.vlgmr.msra.gmra.mrb[28].mxu1 %v16932_v48  ;;  %10672 = vmatpush1.bf16.msra.mxu0 %v15104_v39  ;;  %v15193_v39 = vld [vmem:[#allocation23 + $0x11ec] ss:$76 sps:$4 sm:$0xff]  }
 0xa59   :  { %10703 = vmatprep.mubr.bf16.mxu0 %v16938_v0  ;;  %10758 = vmatpush1.bf16.msra.mxu1 %v15107_v8  ;;  %v15188_v8 = vld [vmem:[#allocation23 + $0x11e0] ss:$76 sps:$4 sm:$0xff]  }
 0xa5a   :  { %10789 = vmatprep.mubr.bf16.mxu1 %v16938_v0  ;;  %10673 = vmatprep.subr.bf16.mxu0 %v15112_v10  ;;  %v15191_v10 = vld [vmem:[#allocation23 + $0x11e8] ss:$76 sps:$4 sm:$0xff]  }
 0xa5b   :  { %10759 = vmatprep.subr.bf16.mxu1 %v15115_v13  ;;  %v15196_v13 = vld [vmem:[#allocation23 + $0x127c] ss:$76 sps:$4 sm:$0xff]  }
 0xa5c   :  { %10674 = vmatpush1.bf16.msra.mxu0 %v15110_v40  ;;  %v15199_v40 = vld [vmem:[#allocation23 + $0x1284] ss:$76 sps:$4 sm:$0xff]  }
 0xa5d   :  { %10760 = vmatpush1.bf16.msra.mxu1 %v15113_v30  ;;  %10675 = vmatprep.subr.bf16.mxu0 %v15118_v27  ;;  %v15194_v30 = vld [vmem:[#allocation23 + $0x1278] ss:$76 sps:$4 sm:$0xff]   ;;  %v15197_v27 = vld [vmem:[#allocation23 + $0x1280] ss:$76 sps:$4 sm:$0xff]  }
 0xa5e   :  { %10761 = vmatprep.subr.bf16.mxu1 %v15121_v41  ;;  %v15202_v41 = vld [vmem:[#allocation23 + $0x24] ss:$76 sps:$4 sm:$0xff]  }
 0xa60   :  { %10676 = vmatpush1.bf16.msra.mxu0 %v15116_v42  ;;  %v15205_v42 = vld [vmem:[#allocation23 + $0x2c] ss:$76 sps:$4 sm:$0xff]  }
 0xa61   :  { %10762 = vmatpush1.bf16.msra.mxu1 %v15119_v43  ;;  %10677 = vmatprep.subr.bf16.mxu0 %v15124_v44  ;;  %v15200_v43 = vld [vmem:[#allocation23 + $0x20] ss:$76 sps:$4 sm:$0xff]   ;;  %v15203_v44 = vld [vmem:[#allocation23 + $0x28] ss:$76 sps:$4 sm:$0xff]  }
 0xa62   :  { %10763 = vmatprep.subr.bf16.mxu1 %v15127_v45  ;;  %v15208_v45 = vld [vmem:[#allocation23 + $0xbc] ss:$76 sps:$4 sm:$0xff]  }
 0xa64   :  { %10678 = vmatpush1.bf16.msra.mxu0 %v15122_v46  ;;  %v15211_v46 = vld [vmem:[#allocation23 + $0xc4] ss:$76 sps:$4 sm:$0xff]  }
 0xa65   :  { %10764 = vmatpush1.bf16.msra.mxu1 %v15125_v47  ;;  %10679 = vmatprep.subr.bf16.mxu0 %v15130_v49  ;;  %v15206_v47 = vld [vmem:[#allocation23 + $0xb8] ss:$76 sps:$4 sm:$0xff]   ;;  %v15209_v49 = vld [vmem:[#allocation23 + $0xc0] ss:$76 sps:$4 sm:$0xff]  }
 0xa66   :  { %10765 = vmatprep.subr.bf16.mxu1 %v15133_v51  ;;  %v15214_v51 = vld [vmem:[#allocation23 + $0x154] ss:$76 sps:$4 sm:$0xff]  }
 0xa68   :  { %10680 = vmatpush1.bf16.msra.mxu0 %v15128_v52  ;;  %v15217_v52 = vld [vmem:[#allocation23 + $0x15c] ss:$76 sps:$4 sm:$0xff]  }
 0xa69   :  { %10766 = vmatpush1.bf16.msra.mxu1 %v15131_v54  ;;  %10681 = vmatprep.subr.bf16.mxu0 %v15136_v55  ;;  %v15212_v54 = vld [vmem:[#allocation23 + $0x150] ss:$76 sps:$4 sm:$0xff]   ;;  %v15215_v55 = vld [vmem:[#allocation23 + $0x158] ss:$76 sps:$4 sm:$0xff]  }
 0xa6a   :  { %10767 = vmatprep.subr.bf16.mxu1 %v15139_v58  ;;  %v15220_v58 = vld [vmem:[#allocation23 + $0x1ec] ss:$76 sps:$4 sm:$0xff]  }
 0xa6c   :  { %10682 = vmatpush1.bf16.msra.mxu0 %v15134_v60  ;;  %v15223_v60 = vld [vmem:[#allocation23 + $0x1f4] ss:$76 sps:$4 sm:$0xff]  }
 0xa6d   :  { %10768 = vmatpush1.bf16.msra.mxu1 %v15137_v61  ;;  %10683 = vmatprep.subr.bf16.mxu0 %v15142_v62  ;;  %v15218_v61 = vld [vmem:[#allocation23 + $0x1e8] ss:$76 sps:$4 sm:$0xff]   ;;  %v15221_v62 = vld [vmem:[#allocation23 + $0x1f0] ss:$76 sps:$4 sm:$0xff]  }
 0xa6e   :  { %10769 = vmatprep.subr.bf16.mxu1 %v15145_v63  ;;  %v15226_v63 = vld [vmem:[#allocation23 + $0x284] ss:$76 sps:$4 sm:$0xff]  }
 0xa70   :  { %10684 = vmatpush1.bf16.msra.mxu0 %v15140_v1  ;;  %v15229_v1 = vld [vmem:[#allocation23 + $0x28c] ss:$76 sps:$4 sm:$0xff]  }
 0xa71   :  { %10770 = vmatpush1.bf16.msra.mxu1 %v15143_v2  ;;  %10685 = vmatprep.subr.bf16.mxu0 %v15148_v3  ;;  %v15224_v2 = vld [vmem:[#allocation23 + $0x280] ss:$76 sps:$4 sm:$0xff]   ;;  %v15227_v3 = vld [vmem:[#allocation23 + $0x288] ss:$76 sps:$4 sm:$0xff]  }
 0xa72   :  { %10771 = vmatprep.subr.bf16.mxu1 %v15151_v4  ;;  %v15232_v4 = vld [vmem:[#allocation23 + $0x31c] ss:$76 sps:$4 sm:$0xff]  }
 0xa74   :  { %10686 = vmatpush1.bf16.msra.mxu0 %v15146_v5  ;;  %v15235_v5 = vld [vmem:[#allocation23 + $0x324] ss:$76 sps:$4 sm:$0xff]  }
 0xa75   :  { %10772 = vmatpush1.bf16.msra.mxu1 %v15149_v6  ;;  %10687 = vmatprep.subr.bf16.mxu0 %v15154_v9  ;;  %v15230_v6 = vld [vmem:[#allocation23 + $0x318] ss:$76 sps:$4 sm:$0xff]   ;;  %v15233_v9 = vld [vmem:[#allocation23 + $0x320] ss:$76 sps:$4 sm:$0xff]  }
 0xa76   :  { %10773 = vmatprep.subr.bf16.mxu1 %v15157_v17  ;;  %v15238_v17 = vld [vmem:[#allocation23 + $0x3b4] ss:$76 sps:$4 sm:$0xff]  }
 0xa78   :  { %10688 = vmatpush1.bf16.msra.mxu0 %v15152_v18  ;;  %v15241_v18 = vld [vmem:[#allocation23 + $0x3bc] ss:$76 sps:$4 sm:$0xff]  }
 0xa79   :  { %10774 = vmatpush1.bf16.msra.mxu1 %v15155_v19  ;;  %10689 = vmatprep.subr.bf16.mxu0 %v15160_v20  ;;  %v15236_v19 = vld [vmem:[#allocation23 + $0x3b0] ss:$76 sps:$4 sm:$0xff]   ;;  %v15239_v20 = vld [vmem:[#allocation23 + $0x3b8] ss:$76 sps:$4 sm:$0xff]  }
 0xa7a   :  { %10775 = vmatprep.subr.bf16.mxu1 %v15163_v22  ;;  %v15244_v22 = vld [vmem:[#allocation23 + $0x44c] ss:$76 sps:$4 sm:$0xff]  }
 0xa7c   :  { %10690 = vmatpush1.bf16.msra.mxu0 %v15158_v23  ;;  %v15247_v23 = vld [vmem:[#allocation23 + $0x454] ss:$76 sps:$4 sm:$0xff]  }
 0xa7d   :  { %10776 = vmatpush1.bf16.msra.mxu1 %v15161_v53  ;;  %10691 = vmatprep.subr.bf16.mxu0 %v15166_v56  ;;  %v15242_v53 = vld [vmem:[#allocation23 + $0x448] ss:$76 sps:$4 sm:$0xff]   ;;  %v15245_v56 = vld [vmem:[#allocation23 + $0x450] ss:$76 sps:$4 sm:$0xff]  }
 0xa7e   :  { %10777 = vmatprep.subr.bf16.mxu1 %v15169_v24  ;;  %v15250_v24 = vld [vmem:[#allocation23 + $0x4e4] ss:$76 sps:$4 sm:$0xff]  }
 0xa80   :  { %10692 = vmatpush1.bf16.msra.mxu0 %v15164_v15  ;;  %v15253_v15 = vld [vmem:[#allocation23 + $0x4ec] ss:$76 sps:$4 sm:$0xff]  }
 0xa81   :  { %10778 = vmatpush1.bf16.msra.mxu1 %v15167_v25  ;;  %10693 = vmatprep.subr.bf16.mxu0 %v15172_v26  ;;  %v15248_v25 = vld [vmem:[#allocation23 + $0x4e0] ss:$76 sps:$4 sm:$0xff]   ;;  %v15251_v26 = vld [vmem:[#allocation23 + $0x4e8] ss:$76 sps:$4 sm:$0xff]  }
 0xa82   :  { %10779 = vmatprep.subr.bf16.mxu1 %v15175_v28  ;;  %v15256_v28 = vld [vmem:[#allocation23 + $0x57c] ss:$76 sps:$4 sm:$0xff]  }
 0xa84   :  { %10694 = vmatpush1.bf16.msra.mxu0 %v15170_v29  ;;  %v15259_v29 = vld [vmem:[#allocation23 + $0x584] ss:$76 sps:$4 sm:$0xff]  }
 0xa85   :  { %10780 = vmatpush1.bf16.msra.mxu1 %v15173_v31  ;;  %10695 = vmatprep.subr.bf16.mxu0 %v15178_v11  ;;  %v15254_v31 = vld [vmem:[#allocation23 + $0x578] ss:$76 sps:$4 sm:$0xff]   ;;  %v15257_v11 = vld [vmem:[#allocation23 + $0x580] ss:$76 sps:$4 sm:$0xff]  }
 0xa86   :  { %10781 = vmatprep.subr.bf16.mxu1 %v15181_v32  ;;  %v15262_v32 = vld [vmem:[#allocation23 + $0x614] ss:$76 sps:$4 sm:$0xff]  }
 0xa88   :  { %10696 = vmatpush1.bf16.msra.mxu0 %v15176_v33  ;;  %v15265_v33 = vld [vmem:[#allocation23 + $0x61c] ss:$76 sps:$4 sm:$0xff]  }
 0xa89   :  { %10782 = vmatpush1.bf16.msra.mxu1 %v15179_v34  ;;  %10697 = vmatprep.subr.bf16.mxu0 %v15184_v35  ;;  %v15260_v34 = vld [vmem:[#allocation23 + $0x610] ss:$76 sps:$4 sm:$0xff]   ;;  %v15263_v35 = vld [vmem:[#allocation23 + $0x618] ss:$76 sps:$4 sm:$0xff]  }
 0xa8a   :  { %10783 = vmatprep.subr.bf16.mxu1 %v15187_v36  ;;  %v15268_v36 = vld [vmem:[#allocation23 + $0x6ac] ss:$76 sps:$4 sm:$0xff]  }
 0xa8c   :  { %10698 = vmatpush1.bf16.msra.mxu0 %v15182_v37  ;;  %v15271_v37 = vld [vmem:[#allocation23 + $0x6b4] ss:$76 sps:$4 sm:$0xff]  }
 0xa8d   :  { %10784 = vmatpush1.bf16.msra.mxu1 %v15185_v38  ;;  %10699 = vmatprep.subr.bf16.mxu0 %v15190_v7  ;;  %v15266_v38 = vld [vmem:[#allocation23 + $0x6a8] ss:$76 sps:$4 sm:$0xff]   ;;  %v15269_v7 = vld [vmem:[#allocation23 + $0x6b0] ss:$76 sps:$4 sm:$0xff]  }
 0xa8e   :  { %10785 = vmatprep.subr.bf16.mxu1 %v15193_v39  ;;  %v15274_v39 = vld [vmem:[#allocation23 + $0x744] ss:$76 sps:$4 sm:$0xff]  }
 0xa90   :  { %10700 = vmatpush1.bf16.msra.mxu0 %v15188_v8  ;;  %v15277_v8 = vld [vmem:[#allocation23 + $0x74c] ss:$76 sps:$4 sm:$0xff]  }
 0xa91   :  { %10786 = vmatpush1.bf16.msra.mxu1 %v15191_v10  ;;  %10701 = vmatprep.subr.bf16.mxu0 %v15196_v13  ;;  %v15272_v10 = vld [vmem:[#allocation23 + $0x740] ss:$76 sps:$4 sm:$0xff]   ;;  %v15275_v13 = vld [vmem:[#allocation23 + $0x748] ss:$76 sps:$4 sm:$0xff]  }
 0xa92   :  { %10787 = vmatprep.subr.bf16.mxu1 %v15199_v40  ;;  %v15280_v40 = vld [vmem:[#allocation23 + $0x7dc] ss:$76 sps:$4 sm:$0xff]  }
 0xa94   :  { %10702 = vmatpush1.bf16.msra.mxu0 %v15194_v30  ;;  %v15283_v30 = vld [vmem:[#allocation23 + $0x7e4] ss:$76 sps:$4 sm:$0xff]  }
 0xa95   :  { %10788 = vmatpush1.bf16.msra.mxu1 %v15197_v27  ;;  %10800 = vmatprep.subr.bf16.mxu0 %v15202_v41  ;;  %v15278_v27 = vld [vmem:[#allocation23 + $0x7d8] ss:$76 sps:$4 sm:$0xff]   ;;  %v15281_v41 = vld [vmem:[#allocation23 + $0x7e0] ss:$76 sps:$4 sm:$0xff]  }
 0xa96   :  { %10886 = vmatprep.subr.bf16.mxu1 %v15205_v42  ;;  %v15286_v42 = vld [vmem:[#allocation23 + $0x874] ss:$76 sps:$4 sm:$0xff]  }
 0xa97   :  { %10704 = vmatmul.mubr.bf16.vlgmr.msra.gmra.mrb[16].mxu0 %v16934_v21 }
 0xa98   :  { %10790 = vmatmul.mubr.bf16.vlgmr.msra.gmra.mrb[28].mxu1 %v16934_v21  ;;  %10801 = vmatpush1.bf16.msra.mxu0 %v15200_v43  ;;  %v15289_v43 = vld [vmem:[#allocation23 + $0x87c] ss:$76 sps:$4 sm:$0xff]  }
 0xa99   :  { %10832 = vmatprep.mubr.bf16.mxu0 %v16936_v50  ;;  %10887 = vmatpush1.bf16.msra.mxu1 %v15203_v44  ;;  %v15284_v44 = vld [vmem:[#allocation23 + $0x870] ss:$76 sps:$4 sm:$0xff]  }
 0xa9a   :  { %10918 = vmatprep.mubr.bf16.mxu1 %v16936_v50  ;;  %10802 = vmatprep.subr.bf16.mxu0 %v15208_v45  ;;  %v15287_v45 = vld [vmem:[#allocation23 + $0x878] ss:$76 sps:$4 sm:$0xff]  }
 0xa9b   :  { %10888 = vmatprep.subr.bf16.mxu1 %v15211_v46  ;;  %v15292_v46 = vld [vmem:[#allocation23 + $0x90c] ss:$76 sps:$4 sm:$0xff]  }
 0xa9c   :  { %10803 = vmatpush1.bf16.msra.mxu0 %v15206_v47  ;;  %v15295_v47 = vld [vmem:[#allocation23 + $0x914] ss:$76 sps:$4 sm:$0xff]  }
 0xa9d   :  { %10889 = vmatpush1.bf16.msra.mxu1 %v15209_v49  ;;  %10804 = vmatprep.subr.bf16.mxu0 %v15214_v51  ;;  %v15290_v49 = vld [vmem:[#allocation23 + $0x908] ss:$76 sps:$4 sm:$0xff]   ;;  %v15293_v51 = vld [vmem:[#allocation23 + $0x910] ss:$76 sps:$4 sm:$0xff]  }
 0xa9e   :  { %10890 = vmatprep.subr.bf16.mxu1 %v15217_v52  ;;  %v15298_v52 = vld [vmem:[#allocation23 + $0x9a4] ss:$76 sps:$4 sm:$0xff]  }
 0xaa0   :  { %10805 = vmatpush1.bf16.msra.mxu0 %v15212_v54  ;;  %v15301_v54 = vld [vmem:[#allocation23 + $0x9ac] ss:$76 sps:$4 sm:$0xff]  }
 0xaa1   :  { %10891 = vmatpush1.bf16.msra.mxu1 %v15215_v55  ;;  %10806 = vmatprep.subr.bf16.mxu0 %v15220_v58  ;;  %v15296_v55 = vld [vmem:[#allocation23 + $0x9a0] ss:$76 sps:$4 sm:$0xff]   ;;  %v15299_v58 = vld [vmem:[#allocation23 + $0x9a8] ss:$76 sps:$4 sm:$0xff]  }
 0xaa2   :  { %10892 = vmatprep.subr.bf16.mxu1 %v15223_v60  ;;  %v15304_v60 = vld [vmem:[#allocation23 + $0xa3c] ss:$76 sps:$4 sm:$0xff]  }
 0xaa4   :  { %10807 = vmatpush1.bf16.msra.mxu0 %v15218_v61  ;;  %v15307_v61 = vld [vmem:[#allocation23 + $0xa44] ss:$76 sps:$4 sm:$0xff]  }
 0xaa5   :  { %10893 = vmatpush1.bf16.msra.mxu1 %v15221_v62  ;;  %10808 = vmatprep.subr.bf16.mxu0 %v15226_v63  ;;  %v15302_v62 = vld [vmem:[#allocation23 + $0xa38] ss:$76 sps:$4 sm:$0xff]   ;;  %v15305_v63 = vld [vmem:[#allocation23 + $0xa40] ss:$76 sps:$4 sm:$0xff]  }
 0xaa6   :  { %10894 = vmatprep.subr.bf16.mxu1 %v15229_v1  ;;  %v15310_v1 = vld [vmem:[#allocation23 + $0xad4] ss:$76 sps:$4 sm:$0xff]  }
 0xaa8   :  { %10809 = vmatpush1.bf16.msra.mxu0 %v15224_v2  ;;  %v15313_v2 = vld [vmem:[#allocation23 + $0xadc] ss:$76 sps:$4 sm:$0xff]  }
 0xaa9   :  { %10895 = vmatpush1.bf16.msra.mxu1 %v15227_v3  ;;  %10810 = vmatprep.subr.bf16.mxu0 %v15232_v4  ;;  %v15308_v3 = vld [vmem:[#allocation23 + $0xad0] ss:$76 sps:$4 sm:$0xff]   ;;  %v15311_v4 = vld [vmem:[#allocation23 + $0xad8] ss:$76 sps:$4 sm:$0xff]  }
 0xaaa   :  { %10896 = vmatprep.subr.bf16.mxu1 %v15235_v5  ;;  %v15316_v5 = vld [vmem:[#allocation23 + $0xb6c] ss:$76 sps:$4 sm:$0xff]  }
 0xaac   :  { %10811 = vmatpush1.bf16.msra.mxu0 %v15230_v6  ;;  %v15319_v6 = vld [vmem:[#allocation23 + $0xb74] ss:$76 sps:$4 sm:$0xff]  }
 0xaad   :  { %10897 = vmatpush1.bf16.msra.mxu1 %v15233_v9  ;;  %10812 = vmatprep.subr.bf16.mxu0 %v15238_v17  ;;  %v15314_v9 = vld [vmem:[#allocation23 + $0xb68] ss:$76 sps:$4 sm:$0xff]   ;;  %v15317_v17 = vld [vmem:[#allocation23 + $0xb70] ss:$76 sps:$4 sm:$0xff]  }
 0xaae   :  { %10898 = vmatprep.subr.bf16.mxu1 %v15241_v18  ;;  %v15322_v18 = vld [vmem:[#allocation23 + $0xc04] ss:$76 sps:$4 sm:$0xff]  }
 0xab0   :  { %10813 = vmatpush1.bf16.msra.mxu0 %v15236_v19  ;;  %v15325_v19 = vld [vmem:[#allocation23 + $0xc0c] ss:$76 sps:$4 sm:$0xff]  }
 0xab1   :  { %10899 = vmatpush1.bf16.msra.mxu1 %v15239_v20  ;;  %10814 = vmatprep.subr.bf16.mxu0 %v15244_v22  ;;  %v15320_v20 = vld [vmem:[#allocation23 + $0xc00] ss:$76 sps:$4 sm:$0xff]  }
 0xab2   :  { %10900 = vmatprep.subr.bf16.mxu1 %v15247_v23  ;;  %v16962_v22 = vld [vmem:[#allocation24] sm:$0xff]  ;;  %v15323_v23 = vld [vmem:[#allocation23 + $0xc08] ss:$76 sps:$4 sm:$0xff]  }
 0xab4   :  { %10815 = vmatpush1.bf16.msra.mxu0 %v15242_v53  ;;  %v15328_v53 = vld [vmem:[#allocation23 + $0xc9c] ss:$76 sps:$4 sm:$0xff]  }
 0xab5   :  { %10901 = vmatpush1.bf16.msra.mxu1 %v15245_v56  ;;  %10816 = vmatprep.subr.bf16.mxu0 %v15250_v24  ;;  %v15331_v56 = vld [vmem:[#allocation23 + $0xca4] ss:$76 sps:$4 sm:$0xff]   ;;  %v7292_v24 = vrot.slane %v16962_v22, %v16808_v14 }
 0xab6   :  { %10902 = vmatprep.subr.bf16.mxu1 %v15253_v15  ;;  %v7300_v15 = vrot.slane %v16962_v22, %v16824_v57 }
 0xab8   :  { %10817 = vmatpush1.bf16.msra.mxu0 %v15248_v25  ;;  %v7296_v25 = vrot.slane %v16962_v22, %v16813_v16 }
 0xab9   :  { %10903 = vmatpush1.bf16.msra.mxu1 %v15251_v26  ;;  %10818 = vmatprep.subr.bf16.mxu0 %v15256_v28  ;;  %v7304_v26 = vrot.slane %v16962_v22, %v16827_v59  ;;  %v15326_v28 = vld [vmem:[#allocation23 + $0xc98] ss:$76 sps:$4 sm:$0xff]  }
 0xaba   :  { %10904 = vmatprep.subr.bf16.mxu1 %v15259_v29  ;;  %v15329_v29 = vld [vmem:[#allocation23 + $0xca0] ss:$76 sps:$4 sm:$0xff]  }
 0xabc   :  { %10819 = vmatpush1.bf16.msra.mxu0 %v15254_v31  ;;  %v15334_v31 = vld [vmem:[#allocation23 + $0xd34] ss:$76 sps:$4 sm:$0xff]  }
 0xabd   :  { %10905 = vmatpush1.bf16.msra.mxu1 %v15257_v11  ;;  %10820 = vmatprep.subr.bf16.mxu0 %v15262_v32 }
 0xabe   :  { %10906 = vmatprep.subr.bf16.mxu1 %v15265_v33  ;;  %v15337_v33 = vld [vmem:[#allocation23 + $0xd3c] ss:$76 sps:$4 sm:$0xff]  }
 0xac0   :  { %10821 = vmatpush1.bf16.msra.mxu0 %v15260_v34 }
 0xac1   :  { %10907 = vmatpush1.bf16.msra.mxu1 %v15263_v35  ;;  %10822 = vmatprep.subr.bf16.mxu0 %v15268_v36 }
 0xac2   :  { %10908 = vmatprep.subr.bf16.mxu1 %v15271_v37 }
 0xac4   :  { %10823 = vmatpush1.bf16.msra.mxu0 %v15266_v38  ;;  %v15332_v38 = vld [vmem:[#allocation23 + $0xd30] ss:$76 sps:$4 sm:$0xff]  }
 0xac5   :  { %10909 = vmatpush1.bf16.msra.mxu1 %v15269_v7  ;;  %10824 = vmatprep.subr.bf16.mxu0 %v15274_v39 }
 0xac6   :  { %10910 = vmatprep.subr.bf16.mxu1 %v15277_v8 }
 0xac8   :  { %10825 = vmatpush1.bf16.msra.mxu0 %v15272_v10 }
 0xac9   :  { %10911 = vmatpush1.bf16.msra.mxu1 %v15275_v13  ;;  %10826 = vmatprep.subr.bf16.mxu0 %v15280_v40  ;;  %v15335_v13 = vld [vmem:[#allocation23 + $0xd38] ss:$76 sps:$4 sm:$0xff]  }
 0xaca   :  { %10912 = vmatprep.subr.bf16.mxu1 %v15283_v30  ;;  %v15340_v40 = vld [vmem:[#allocation23 + $0xdcc] ss:$76 sps:$4 sm:$0xff]  }
 0xacc   :  { %10827 = vmatpush1.bf16.msra.mxu0 %v15278_v27 }
 0xacd   :  { %10913 = vmatpush1.bf16.msra.mxu1 %v15281_v41  ;;  %10828 = vmatprep.subr.bf16.mxu0 %v15286_v42 }
 0xace   :  { %10914 = vmatprep.subr.bf16.mxu1 %v15289_v43 }
 0xad0   :  { %10829 = vmatpush1.bf16.msra.mxu0 %v15284_v44 }
 0xad1   :  { %10915 = vmatpush1.bf16.msra.mxu1 %v15287_v45  ;;  %10830 = vmatprep.subr.bf16.mxu0 %v15292_v46 }
 0xad2   :  { %10916 = vmatprep.subr.bf16.mxu1 %v15295_v47 }
 0xad4   :  { %10831 = vmatpush1.bf16.msra.mxu0 %v15290_v49 }
 0xad5   :  { %10917 = vmatpush1.bf16.msra.mxu1 %v15293_v51  ;;  %10843 = vmatprep.subr.bf16.mxu0 %v15298_v52  ;;  %v15343_v51 = vld [vmem:[#allocation23 + $0xdd4] ss:$76 sps:$4 sm:$0xff]  }
 0xad6   :  { %10929 = vmatprep.subr.bf16.mxu1 %v15301_v54 }
 0xad7   :  { %10833 = vmatmul.mubr.bf16.vlgmr.msra.gmra.mrb[20].mxu0 %v16932_v48 }
 0xad8   :  { %10919 = vmatmul.mubr.bf16.vlgmr.msra.gmra.mrb[32].mxu1 %v16932_v48  ;;  %10844 = vmatpush1.bf16.msra.mxu0 %v15296_v55  ;;  %v15338_v55 = vld [vmem:[#allocation23 + $0xdc8] ss:$76 sps:$4 sm:$0xff]  }
 0xad9   :  { %10875 = vmatprep.mubr.bf16.mxu0 %v16938_v0  ;;  %10930 = vmatpush1.bf16.msra.mxu1 %v15299_v58 }
 0xada   :  { %10961 = vmatprep.mubr.bf16.mxu1 %v16938_v0  ;;  %10845 = vmatprep.subr.bf16.mxu0 %v15304_v60  ;;  %v15341_v60 = vld [vmem:[#allocation23 + $0xdd0] ss:$76 sps:$4 sm:$0xff]  }
 0xadb   :  { %10931 = vmatprep.subr.bf16.mxu1 %v15307_v61  ;;  %v15346_v61 = vld [vmem:[#allocation23 + $0xe64] ss:$76 sps:$4 sm:$0xff]  }
 0xadc   :  { %10846 = vmatpush1.bf16.msra.mxu0 %v15302_v62 }
 0xadd   :  { %10932 = vmatpush1.bf16.msra.mxu1 %v15305_v63  ;;  %10847 = vmatprep.subr.bf16.mxu0 %v15310_v1  ;;  %v15349_v63 = vld [vmem:[#allocation23 + $0xe6c] ss:$76 sps:$4 sm:$0xff]  }
 0xade   :  { %10933 = vmatprep.subr.bf16.mxu1 %v15313_v2  ;;  %v15344_v1 = vld [vmem:[#allocation23 + $0xe60] ss:$76 sps:$4 sm:$0xff]   ;;  %v15347_v2 = vld [vmem:[#allocation23 + $0xe68] ss:$76 sps:$4 sm:$0xff]  }
 0xae0   :  { %10848 = vmatpush1.bf16.msra.mxu0 %v15308_v3  ;;  %v15352_v3 = vld [vmem:[#allocation23 + $0xefc] ss:$76 sps:$4 sm:$0xff]  }
 0xae1   :  { %10934 = vmatpush1.bf16.msra.mxu1 %v15311_v4  ;;  %10849 = vmatprep.subr.bf16.mxu0 %v15316_v5  ;;  %v15355_v4 = vld [vmem:[#allocation23 + $0xf04] ss:$76 sps:$4 sm:$0xff]  }
 0xae2   :  { %10935 = vmatprep.subr.bf16.mxu1 %v15319_v6  ;;  %v15350_v5 = vld [vmem:[#allocation23 + $0xef8] ss:$76 sps:$4 sm:$0xff]  }
 0xae4   :  { %10850 = vmatpush1.bf16.msra.mxu0 %v15314_v9  ;;  %v15353_v9 = vld [vmem:[#allocation23 + $0xf00] ss:$76 sps:$4 sm:$0xff]  }
 0xae5   :  { %10936 = vmatpush1.bf16.msra.mxu1 %v15317_v17  ;;  %10851 = vmatprep.subr.bf16.mxu0 %v15322_v18  ;;  %v15358_v17 = vld [vmem:[#allocation23 + $0xf94] ss:$76 sps:$4 sm:$0xff]  }
 0xae6   :  { %10937 = vmatprep.subr.bf16.mxu1 %v15325_v19 }
 0xae8   :  { %10852 = vmatpush1.bf16.msra.mxu0 %v15320_v20  ;;  %v15361_v20 = vld [vmem:[#allocation23 + $0xf9c] ss:$76 sps:$4 sm:$0xff]  }
 0xae9   :  { %10938 = vmatpush1.bf16.msra.mxu1 %v15323_v23  ;;  %10853 = vmatprep.subr.bf16.mxu0 %v15328_v53 }
 0xaea   :  { %v10533_v11 = vpop.f32.mrb[12].mxu0  ;;  %v10619_v32 = vpop.f32.mrb[24].mxu1  ;;  %10939 = vmatprep.subr.bf16.mxu1 %v15331_v56 }
 0xaeb   :  { %v13459_v34 = vadd.f32 %v10533_v11, %v7292_v24  ;;  %v13463_v35 = vadd.f32 %v10619_v32, %v7300_v15  ;;  %v10535_v36 = vpop.f32.mrb[13].mxu0  ;;  %v10621_v37 = vpop.f32.mrb[25].mxu1  ;;  %v15367_v32 = vld [vmem:[#allocation23 + $0x1034] ss:$76 sps:$4 sm:$0xff]  }
 0xaec   :  { %v13460_v7 = vadd.f32 %v10535_v36, %v7296_v25  ;;  %v13464_v39 = vadd.f32 %v10621_v37, %v7304_v26  ;;  %v10537_v8 = vpop.f32.mrb[14].mxu0  ;;  %v10623_v10 = vpop.f32.mrb[26].mxu1  ;;  %10854 = vmatpush1.bf16.msra.mxu0 %v15326_v28  ;;  %v15359_v28 = vld [vmem:[#allocation23 + $0xf98] ss:$76 sps:$4 sm:$0xff]   ;;  %v15362_v37 = vld [vmem:[#allocation23 + $0x1028] ss:$76 sps:$4 sm:$0xff]  }
 0xaed   :  { %v13129_v30 = vmul.f32 -1.442695, %v13459_v34  ;;  %v13131_v27 = vmul.f32 -1.442695, %v13463_v35  ;;  %v13461_v41 = vadd.f32 %v10537_v8, %v7292_v24  ;;  %v13465_v42 = vadd.f32 %v10623_v10, %v7300_v15  ;;  %10940 = vmatpush1.bf16.msra.mxu1 %v15329_v29  ;;  %v10539_v43 = vpop.f32.mrb[15].mxu0  ;;  %v10625_v44 = vpop.f32.mrb[27].mxu1  ;;  %10855 = vmatprep.subr.bf16.mxu0 %v15334_v31 }
 0xaee   :  { %v13130_v45 = vmul.f32 -1.442695, %v13460_v7  ;;  %v13132_v46 = vmul.f32 -1.442695, %v13464_v39  ;;  %v13462_v47 = vadd.f32 %v10539_v43, %v7296_v25  ;;  %v13466_v49 = vadd.f32 %v10625_v44, %v7304_v26  ;;  %10941 = vmatprep.subr.bf16.mxu1 %v15337_v33  ;;  %v15356_v15 = vld [vmem:[#allocation23 + $0xf90] ss:$76 sps:$4 sm:$0xff]  }
 0xaef   :  { %15742 = vpow2.f32 %v13129_v30  ;;  %v13148_v52 = vmul.f32 -1.442695, %v13461_v41  ;;  %v13150_v54 = vmul.f32 -1.442695, %v13465_v42  ;;  %v15364_v29 = vld [vmem:[#allocation23 + $0x102c] ss:$76 sps:$4 sm:$0xff]  }
 0xaf0   :  { %15744 = vpow2.f32 %v13131_v27  ;;  %10856 = vmatpush1.bf16.msra.mxu0 %v15332_v38  ;;  %v13149_v58 = vmul.f32 -1.442695, %v13462_v47  ;;  %v13151_v62 = vmul.f32 -1.442695, %v13466_v49  ;;  %v15365_v7 = vld [vmem:[#allocation23 + $0x1030] ss:$76 sps:$4 sm:$0xff]  }
 0xaf1   :  { %15746 = vpow2.f32 %v13130_v45  ;;  %10942 = vmatpush1.bf16.msra.mxu1 %v15335_v13  ;;  %10857 = vmatprep.subr.bf16.mxu0 %v15340_v40  ;;  %v15370_v39 = vld [vmem:[#allocation23 + $0x10c4] ss:$76 sps:$4 sm:$0xff]   ;;  %v15373_v8 = vld [vmem:[#allocation23 + $0x10cc] ss:$76 sps:$4 sm:$0xff]   ;;  %v15371_v13 = vld [vmem:[#allocation23 + $0x10c8] ss:$76 sps:$4 sm:$0xff]  }
 0xaf2   :  { %15748 = vpow2.f32 %v13132_v46  ;;  %10943 = vmatprep.subr.bf16.mxu1 %v15343_v51  ;;  %v15368_v10 = vld [vmem:[#allocation23 + $0x10c0] ss:$76 sps:$4 sm:$0xff]   ;;  %v15376_v40 = vld [vmem:[#allocation23 + $0x115c] ss:$76 sps:$4 sm:$0xff]   ;;  %v15379_v27 = vld [vmem:[#allocation23 + $0x1164] ss:$76 sps:$4 sm:$0xff]  }
 0xaf3   :  { %15750 = vpow2.f32 %v13148_v52  ;;  %v15374_v43 = vld [vmem:[#allocation23 + $0x1158] ss:$76 sps:$4 sm:$0xff]   ;;  %v15377_v46 = vld [vmem:[#allocation23 + $0x1160] ss:$76 sps:$4 sm:$0xff]   ;;  %v15385_v52 = vld [vmem:[#allocation23 + $0x11fc] ss:$76 sps:$4 sm:$0xff]  }
 0xaf4   :  { %15752 = vpow2.f32 %v13150_v54  ;;  %10858 = vmatpush1.bf16.msra.mxu0 %v15338_v55  ;;  %v15382_v47 = vld [vmem:[#allocation23 + $0x11f4] ss:$76 sps:$4 sm:$0xff]  }
 0xaf5   :  { %15754 = vpow2.f32 %v13149_v58  ;;  %10944 = vmatpush1.bf16.msra.mxu1 %v15341_v60  ;;  %10859 = vmatprep.subr.bf16.mxu0 %v15346_v61  ;;  %v15380_v58 = vld [vmem:[#allocation23 + $0x11f0] ss:$76 sps:$4 sm:$0xff]  }
 0xaf6   :  { %15756 = vpow2.f32 %v13151_v62  ;;  %10945 = vmatprep.subr.bf16.mxu1 %v15349_v63  ;;  %v15383_v62 = vld [vmem:[#allocation23 + $0x11f8] ss:$76 sps:$4 sm:$0xff]  }
 0xaf7   :  { %v15388_v63 = vld [vmem:[#allocation23 + $0x128c] ss:$76 sps:$4 sm:$0xff]  }
 0xaf8   :  { %10860 = vmatpush1.bf16.msra.mxu0 %v15344_v1 }
 0xaf9   :  { %v15743_v6 = vpop.eup %15742  ;;  %10946 = vmatpush1.bf16.msra.mxu1 %v15347_v2  ;;  %10861 = vmatprep.subr.bf16.mxu0 %v15352_v3  ;;  %v15391_v2 = vld [vmem:[#allocation23 + $0x1294] ss:$76 sps:$4 sm:$0xff]  }
 0xafa   :  { %v15745_v18 = vpop.eup %15744  ;;  %v11426_v19 = vadd.f32 1.0, %v15743_v6  ;;  %10947 = vmatprep.subr.bf16.mxu1 %v15355_v4  ;;  %v15386_v3 = vld [vmem:[#allocation23 + $0x1288] ss:$76 sps:$4 sm:$0xff]   ;;  %v15389_v4 = vld [vmem:[#allocation23 + $0x1290] ss:$76 sps:$4 sm:$0xff]  }
 0xafb   :  { %v15747_v23 = vpop.eup %15746  ;;  %v11428_v53 = vadd.f32 1.0, %v15745_v18  ;;  %v15397_v6 = vld [vmem:[#allocation23 + $0x3c] ss:$76 sps:$4 sm:$0xff]   ;;  %v15400_v18 = vld [vmem:[#allocation23 + $0xcc] ss:$76 sps:$4 sm:$0xff]  }
 0xafc   :  { %v15749_v56 = vpop.eup %15748  ;;  %15758 = vrcp.f32 %v11426_v19  ;;  %v11427_v24 = vadd.f32 1.0, %v15747_v23  ;;  %10862 = vmatpush1.bf16.msra.mxu0 %v15350_v5  ;;  %v15394_v5 = vld [vmem:[#allocation23 + $0x34] ss:$76 sps:$4 sm:$0xff]   ;;  %v15401_v23 = vld [vmem:[#allocation23 + $0xd0] ss:$76 sps:$4 sm:$0xff]  }
 0xafd   :  { %v15751_v25 = vpop.eup %15750  ;;  %15760 = vrcp.f32 %v11428_v53  ;;  %v11429_v26 = vadd.f32 1.0, %v15749_v56  ;;  %10948 = vmatpush1.bf16.msra.mxu1 %v15353_v9  ;;  %10863 = vmatprep.subr.bf16.mxu0 %v15358_v17  ;;  %v15392_v9 = vld [vmem:[#allocation23 + $0x30] ss:$76 sps:$4 sm:$0xff]   ;;  %v15395_v17 = vld [vmem:[#allocation23 + $0x38] ss:$76 sps:$4 sm:$0xff]  }
 0xafe   :  { %v15753_v31 = vpop.eup %15752  ;;  %15762 = vrcp.f32 %v11427_v24  ;;  %v11445_v11 = vadd.f32 1.0, %v15751_v25  ;;  %10949 = vmatprep.subr.bf16.mxu1 %v15361_v20  ;;  %v15403_v19 = vld [vmem:[#allocation23 + $0xd4] ss:$76 sps:$4 sm:$0xff]   ;;  %v15406_v53 = vld [vmem:[#allocation23 + $0x164] ss:$76 sps:$4 sm:$0xff]  }
 0xaff   :  { %v15755_v33 = vpop.eup %15754  ;;  %15764 = vrcp.f32 %v11429_v26  ;;  %v11447_v34 = vadd.f32 1.0, %v15753_v31  ;;  %v15398_v20 = vld [vmem:[#allocation23 + $0xc8] ss:$76 sps:$4 sm:$0xff]   ;;  %v15409_v56 = vld [vmem:[#allocation23 + $0x16c] ss:$76 sps:$4 sm:$0xff]  }
 0xb00   :  { %v15757_v35 = vpop.eup %15756  ;;  %15766 = vrcp.f32 %v11445_v11  ;;  %v11446_v36 = vadd.f32 1.0, %v15755_v33  ;;  %10864 = vmatpush1.bf16.msra.mxu0 %v15356_v15  ;;  %v15404_v24 = vld [vmem:[#allocation23 + $0x160] ss:$76 sps:$4 sm:$0xff]   ;;  %v15407_v15 = vld [vmem:[#allocation23 + $0x168] ss:$76 sps:$4 sm:$0xff]  }
 0xb01   :  { %15768 = vrcp.f32 %v11447_v34  ;;  %v11448_v38 = vadd.f32 1.0, %v15757_v35  ;;  %10950 = vmatpush1.bf16.msra.mxu1 %v15359_v28  ;;  %10865 = vmatprep.subr.bf16.mxu0 %v15364_v29  ;;  %v15412_v25 = vld [vmem:[#allocation23 + $0x1fc] ss:$76 sps:$4 sm:$0xff]   ;;  %v15415_v26 = vld [vmem:[#allocation23 + $0x204] ss:$76 sps:$4 sm:$0xff]  }
 0xb02   :  { %15770 = vrcp.f32 %v11446_v36  ;;  %10951 = vmatprep.subr.bf16.mxu1 %v15367_v32  ;;  %v15410_v28 = vld [vmem:[#allocation23 + $0x1f8] ss:$76 sps:$4 sm:$0xff]   ;;  %v15413_v29 = vld [vmem:[#allocation23 + $0x200] ss:$76 sps:$4 sm:$0xff]   ;;  %v15421_v11 = vld [vmem:[#allocation23 + $0x29c] ss:$76 sps:$4 sm:$0xff]  }
 0xb03   :  { %15772 = vrcp.f32 %v11448_v38  ;;  %v15418_v31 = vld [vmem:[#allocation23 + $0x294] ss:$76 sps:$4 sm:$0xff]   ;;  %v15416_v32 = vld [vmem:[#allocation23 + $0x290] ss:$76 sps:$4 sm:$0xff]   ;;  %v15419_v33 = vld [vmem:[#allocation23 + $0x298] ss:$76 sps:$4 sm:$0xff]  }
 0xb04   :  { %10866 = vmatpush1.bf16.msra.mxu0 %v15362_v37  ;;  %v15424_v34 = vld [vmem:[#allocation23 + $0x32c] ss:$76 sps:$4 sm:$0xff]   ;;  %v15427_v35 = vld [vmem:[#allocation23 + $0x334] ss:$76 sps:$4 sm:$0xff]   ;;  %v15425_v37 = vld [vmem:[#allocation23 + $0x330] ss:$76 sps:$4 sm:$0xff]  }
 0xb05   :  { %10952 = vmatpush1.bf16.msra.mxu1 %v15365_v7  ;;  %10867 = vmatprep.subr.bf16.mxu0 %v15370_v39  ;;  %v15422_v36 = vld [vmem:[#allocation23 + $0x328] ss:$76 sps:$4 sm:$0xff]   ;;  %v15430_v38 = vld [vmem:[#allocation23 + $0x3c4] ss:$76 sps:$4 sm:$0xff]   ;;  %v15433_v7 = vld [vmem:[#allocation23 + $0x3cc] ss:$76 sps:$4 sm:$0xff]  }
 0xb06   :  { %v15759_v30 = vpop.eup %15758  ;;  %10953 = vmatprep.subr.bf16.mxu1 %v15373_v8  ;;  %v15428_v39 = vld [vmem:[#allocation23 + $0x3c0] ss:$76 sps:$4 sm:$0xff]   ;;  %v15431_v8 = vld [vmem:[#allocation23 + $0x3c8] ss:$76 sps:$4 sm:$0xff]  }
 0xb07   :  { %v15761_v41 = vpop.eup %15760 }
 0xb08   :  { %v15763_v42 = vpop.eup %15762  ;;  %10868 = vmatpush1.bf16.msra.mxu0 %v15368_v10  ;;  %v15436_v10 = vld [vmem:[#allocation23 + $0x45c] ss:$76 sps:$4 sm:$0xff]  }
 0xb09   :  { %v15765_v44 = vpop.eup %15764  ;;  %v13187_v45 = vpack.c.bf16 %v15763_v42, %v15759_v30  ;;  %10954 = vmatpush1.bf16.msra.mxu1 %v15371_v13  ;;  %10869 = vmatprep.subr.bf16.mxu0 %v15376_v40  ;;  %v15439_v13 = vld [vmem:[#allocation23 + $0x464] ss:$76 sps:$4 sm:$0xff]   ;;  %v15437_v30 = vld [vmem:[#allocation23 + $0x460] ss:$76 sps:$4 sm:$0xff]  }
 0xb0a   :  { %v15767_v49 = vpop.eup %15766  ;;  %v13188_v51 = vpack.c.bf16 %v15765_v44, %v15761_v41  ;;  %10955 = vmatprep.subr.bf16.mxu1 %v15379_v27  ;;  %v15434_v40 = vld [vmem:[#allocation23 + $0x458] ss:$76 sps:$4 sm:$0xff]   ;;  %v15442_v27 = vld [vmem:[#allocation23 + $0x4f4] ss:$76 sps:$4 sm:$0xff]   ;;  %v15445_v41 = vld [vmem:[#allocation23 + $0x4fc] ss:$76 sps:$4 sm:$0xff]  }
 0xb0b   :  { %v15769_v54 = vpop.eup %15768  ;;  %11656 = vst [vmem:[#allocation30] sm:$0xff] %v13187_v45  ;;  %v15440_v42 = vld [vmem:[#allocation23 + $0x4f0] ss:$76 sps:$4 sm:$0xff]   ;;  %v15448_v44 = vld [vmem:[#allocation23 + $0x58c] ss:$76 sps:$4 sm:$0xff]  }
 0xb0c   :  { %v15771_v55 = vpop.eup %15770  ;;  %11657 = vst [vmem:[#allocation30 + $0x8] sm:$0xff] %v13188_v51  ;;  %10870 = vmatpush1.bf16.msra.mxu0 %v15374_v43  ;;  %v15443_v43 = vld [vmem:[#allocation23 + $0x4f8] ss:$76 sps:$4 sm:$0xff]   ;;  %v15451_v45 = vld [vmem:[#allocation23 + $0x594] ss:$76 sps:$4 sm:$0xff]  }
 0xb0d   :  { %v15773_v60 = vpop.eup %15772  ;;  %v13197_v61 = vpack.c.bf16 %v15771_v55, %v15767_v49  ;;  %10956 = vmatpush1.bf16.msra.mxu1 %v15377_v46  ;;  %10871 = vmatprep.subr.bf16.mxu0 %v15382_v47  ;;  %v15446_v46 = vld [vmem:[#allocation23 + $0x588] ss:$76 sps:$4 sm:$0xff]   ;;  %v15449_v47 = vld [vmem:[#allocation23 + $0x590] ss:$76 sps:$4 sm:$0xff]   ;;  %v15457_v51 = vld [vmem:[#allocation23 + $0x62c] ss:$76 sps:$4 sm:$0xff]  }
 0xb0e   :  { %v13198_v1 = vpack.c.bf16 %v15773_v60, %v15769_v54  ;;  %10957 = vmatprep.subr.bf16.mxu1 %v15385_v52  ;;  %v15454_v49 = vld [vmem:[#allocation23 + $0x624] ss:$76 sps:$4 sm:$0xff]   ;;  %v15452_v52 = vld [vmem:[#allocation23 + $0x620] ss:$76 sps:$4 sm:$0xff]   ;;  %v15455_v54 = vld [vmem:[#allocation23 + $0x628] ss:$76 sps:$4 sm:$0xff]  }
 0xb0f   :  { %11666 = vst [vmem:[#allocation30 + $0x4c] sm:$0xff] %v13197_v61  ;;  %v15460_v55 = vld [vmem:[#allocation23 + $0x6bc] ss:$76 sps:$4 sm:$0xff]   ;;  %v15458_v60 = vld [vmem:[#allocation23 + $0x6b8] ss:$76 sps:$4 sm:$0xff]  }
 0xb10   :  { %11667 = vst [vmem:[#allocation30 + $0x54] sm:$0xff] %v13198_v1  ;;  %10872 = vmatpush1.bf16.msra.mxu0 %v15380_v58  ;;  %v15463_v58 = vld [vmem:[#allocation23 + $0x6c4] ss:$76 sps:$4 sm:$0xff]   ;;  %v15461_v61 = vld [vmem:[#allocation23 + $0x6c0] ss:$76 sps:$4 sm:$0xff]  }
 0xb11   :  { %10958 = vmatpush1.bf16.msra.mxu1 %v15383_v62  ;;  %10873 = vmatprep.subr.bf16.mxu0 %v15388_v63  ;;  %v15466_v62 = vld [vmem:[#allocation23 + $0x754] ss:$76 sps:$4 sm:$0xff]   ;;  %v15469_v63 = vld [vmem:[#allocation23 + $0x75c] ss:$76 sps:$4 sm:$0xff]  }
 0xb12   :  { %10959 = vmatprep.subr.bf16.mxu1 %v15391_v2  ;;  %v15464_v1 = vld [vmem:[#allocation23 + $0x750] ss:$76 sps:$4 sm:$0xff]   ;;  %v15467_v2 = vld [vmem:[#allocation23 + $0x758] ss:$76 sps:$4 sm:$0xff]  }
 0xb14   :  { %10874 = vmatpush1.bf16.msra.mxu0 %v15386_v3  ;;  %v15472_v3 = vld [vmem:[#allocation23 + $0x7ec] ss:$76 sps:$4 sm:$0xff]  }
 0xb15   :  { %10960 = vmatpush1.bf16.msra.mxu1 %v15389_v4  ;;  %10972 = vmatprep.subr.bf16.mxu0 %v15394_v5  ;;  %v15475_v4 = vld [vmem:[#allocation23 + $0x7f4] ss:$76 sps:$4 sm:$0xff]  }
 0xb16   :  { %11058 = vmatprep.subr.bf16.mxu1 %v15397_v6  ;;  %v15470_v5 = vld [vmem:[#allocation23 + $0x7e8] ss:$76 sps:$4 sm:$0xff]   ;;  %v15473_v6 = vld [vmem:[#allocation23 + $0x7f0] ss:$76 sps:$4 sm:$0xff]  }
 0xb17   :  { %10876 = vmatmul.mubr.bf16.vlgmr.msra.gmra.mrb[20].mxu0 %v16934_v21 }
 0xb18   :  { %10962 = vmatmul.mubr.bf16.vlgmr.msra.gmra.mrb[32].mxu1 %v16934_v21  ;;  %10973 = vmatpush1.bf16.msra.mxu0 %v15392_v9  ;;  %v15478_v9 = vld [vmem:[#allocation23 + $0x884] ss:$76 sps:$4 sm:$0xff]  }
 0xb19   :  { %11004 = vmatprep.mubr.bf16.mxu0 %v16936_v50  ;;  %11059 = vmatpush1.bf16.msra.mxu1 %v15395_v17  ;;  %v15481_v17 = vld [vmem:[#allocation23 + $0x88c] ss:$76 sps:$4 sm:$0xff]  }
 0xb1a   :  { %11090 = vmatprep.mubr.bf16.mxu1 %v16936_v50  ;;  %10974 = vmatprep.subr.bf16.mxu0 %v15400_v18  ;;  %v15476_v18 = vld [vmem:[#allocation23 + $0x880] ss:$76 sps:$4 sm:$0xff]  }
 0xb1b   :  { %11060 = vmatprep.subr.bf16.mxu1 %v15403_v19  ;;  %v15479_v19 = vld [vmem:[#allocation23 + $0x888] ss:$76 sps:$4 sm:$0xff]  }
 0xb1c   :  { %10975 = vmatpush1.bf16.msra.mxu0 %v15398_v20  ;;  %v15484_v20 = vld [vmem:[#allocation23 + $0x91c] ss:$76 sps:$4 sm:$0xff]  }
 0xb1d   :  { %11061 = vmatpush1.bf16.msra.mxu1 %v15401_v23  ;;  %10976 = vmatprep.subr.bf16.mxu0 %v15406_v53  ;;  %v15487_v23 = vld [vmem:[#allocation23 + $0x924] ss:$76 sps:$4 sm:$0xff]  }
 0xb1e   :  { %11062 = vmatprep.subr.bf16.mxu1 %v15409_v56  ;;  %v15482_v53 = vld [vmem:[#allocation23 + $0x918] ss:$76 sps:$4 sm:$0xff]   ;;  %v15485_v56 = vld [vmem:[#allocation23 + $0x920] ss:$76 sps:$4 sm:$0xff]  }
 0xb20   :  { %10977 = vmatpush1.bf16.msra.mxu0 %v15404_v24  ;;  %v15490_v24 = vld [vmem:[#allocation23 + $0x9b4] ss:$76 sps:$4 sm:$0xff]  }
 0xb21   :  { %11063 = vmatpush1.bf16.msra.mxu1 %v15407_v15  ;;  %10978 = vmatprep.subr.bf16.mxu0 %v15412_v25  ;;  %v15493_v15 = vld [vmem:[#allocation23 + $0x9bc] ss:$76 sps:$4 sm:$0xff]  }
 0xb22   :  { %11064 = vmatprep.subr.bf16.mxu1 %v15415_v26  ;;  %v15488_v25 = vld [vmem:[#allocation23 + $0x9b0] ss:$76 sps:$4 sm:$0xff]   ;;  %v15491_v26 = vld [vmem:[#allocation23 + $0x9b8] ss:$76 sps:$4 sm:$0xff]  }
 0xb24   :  { %10979 = vmatpush1.bf16.msra.mxu0 %v15410_v28  ;;  %v15496_v28 = vld [vmem:[#allocation23 + $0xa4c] ss:$76 sps:$4 sm:$0xff]  }
 0xb25   :  { %11065 = vmatpush1.bf16.msra.mxu1 %v15413_v29  ;;  %10980 = vmatprep.subr.bf16.mxu0 %v15418_v31  ;;  %v15499_v29 = vld [vmem:[#allocation23 + $0xa54] ss:$76 sps:$4 sm:$0xff]  }
 0xb26   :  { %11066 = vmatprep.subr.bf16.mxu1 %v15421_v11  ;;  %v15494_v31 = vld [vmem:[#allocation23 + $0xa48] ss:$76 sps:$4 sm:$0xff]   ;;  %v15497_v11 = vld [vmem:[#allocation23 + $0xa50] ss:$76 sps:$4 sm:$0xff]  }
 0xb28   :  { %10981 = vmatpush1.bf16.msra.mxu0 %v15416_v32  ;;  %v15502_v32 = vld [vmem:[#allocation23 + $0xae4] ss:$76 sps:$4 sm:$0xff]  }
 0xb29   :  { %11067 = vmatpush1.bf16.msra.mxu1 %v15419_v33  ;;  %10982 = vmatprep.subr.bf16.mxu0 %v15424_v34  ;;  %v15505_v33 = vld [vmem:[#allocation23 + $0xaec] ss:$76 sps:$4 sm:$0xff]  }
 0xb2a   :  { %11068 = vmatprep.subr.bf16.mxu1 %v15427_v35  ;;  %v15500_v34 = vld [vmem:[#allocation23 + $0xae0] ss:$76 sps:$4 sm:$0xff]   ;;  %v15503_v35 = vld [vmem:[#allocation23 + $0xae8] ss:$76 sps:$4 sm:$0xff]  }
 0xb2c   :  { %10983 = vmatpush1.bf16.msra.mxu0 %v15422_v36  ;;  %v15508_v36 = vld [vmem:[#allocation23 + $0xb7c] ss:$76 sps:$4 sm:$0xff]  }
 0xb2d   :  { %11069 = vmatpush1.bf16.msra.mxu1 %v15425_v37  ;;  %10984 = vmatprep.subr.bf16.mxu0 %v15430_v38  ;;  %v15511_v37 = vld [vmem:[#allocation23 + $0xb84] ss:$76 sps:$4 sm:$0xff]  }
 0xb2e   :  { %11070 = vmatprep.subr.bf16.mxu1 %v15433_v7  ;;  %v15506_v38 = vld [vmem:[#allocation23 + $0xb78] ss:$76 sps:$4 sm:$0xff]   ;;  %v15509_v7 = vld [vmem:[#allocation23 + $0xb80] ss:$76 sps:$4 sm:$0xff]  }
 0xb30   :  { %10985 = vmatpush1.bf16.msra.mxu0 %v15428_v39  ;;  %v15514_v39 = vld [vmem:[#allocation23 + $0xc14] ss:$76 sps:$4 sm:$0xff]  }
 0xb31   :  { %11071 = vmatpush1.bf16.msra.mxu1 %v15431_v8  ;;  %10986 = vmatprep.subr.bf16.mxu0 %v15436_v10  ;;  %v15517_v8 = vld [vmem:[#allocation23 + $0xc1c] ss:$76 sps:$4 sm:$0xff]   ;;  %v7307_v10 = vsub.s32 4, %v16805_v12 }
 0xb32   :  { %11072 = vmatprep.subr.bf16.mxu1 %v15439_v13  ;;  %v15512_v13 = vld [vmem:[#allocation23 + $0xc10] ss:$76 sps:$4 sm:$0xff]  }
 0xb34   :  { %10987 = vmatpush1.bf16.msra.mxu0 %v15434_v40  ;;  %v7315_v40 = vsub.s32 6, %v16805_v12 }
 0xb35   :  { %11073 = vmatpush1.bf16.msra.mxu1 %v15437_v30  ;;  %10988 = vmatprep.subr.bf16.mxu0 %v15442_v27  ;;  %v7311_v30 = vsub.s32 5, %v16805_v12  ;;  %v15515_v27 = vld [vmem:[#allocation23 + $0xc18] ss:$76 sps:$4 sm:$0xff]  }
 0xb36   :  { %11074 = vmatprep.subr.bf16.mxu1 %v15445_v41  ;;  %v7319_v41 = vsub.s32 7, %v16805_v12 }
 0xb38   :  { %10989 = vmatpush1.bf16.msra.mxu0 %v15440_v42  ;;  %v15520_v42 = vld [vmem:[#allocation23 + $0xcac] ss:$76 sps:$4 sm:$0xff]  }
 0xb39   :  { %11075 = vmatpush1.bf16.msra.mxu1 %v15443_v43  ;;  %10990 = vmatprep.subr.bf16.mxu0 %v15448_v44  ;;  %v15523_v43 = vld [vmem:[#allocation23 + $0xcb4] ss:$76 sps:$4 sm:$0xff]   ;;  %v7308_v44 = vrot.slane %v16962_v22, %v7307_v10 }
 0xb3a   :  { %11076 = vmatprep.subr.bf16.mxu1 %v15451_v45  ;;  %v7316_v45 = vrot.slane %v16962_v22, %v7315_v40 }
 0xb3c   :  { %10991 = vmatpush1.bf16.msra.mxu0 %v15446_v46  ;;  %v7312_v46 = vrot.slane %v16962_v22, %v7311_v30 }
 0xb3d   :  { %11077 = vmatpush1.bf16.msra.mxu1 %v15449_v47  ;;  %10992 = vmatprep.subr.bf16.mxu0 %v15454_v49  ;;  %v15518_v47 = vld [vmem:[#allocation23 + $0xca8] ss:$76 sps:$4 sm:$0xff]   ;;  %v7320_v49 = vrot.slane %v16962_v22, %v7319_v41 }
 0xb3e   :  { %11078 = vmatprep.subr.bf16.mxu1 %v15457_v51  ;;  %v15521_v51 = vld [vmem:[#allocation23 + $0xcb0] ss:$76 sps:$4 sm:$0xff]  }
 0xb40   :  { %10993 = vmatpush1.bf16.msra.mxu0 %v15452_v52  ;;  %v15526_v52 = vld [vmem:[#allocation23 + $0xd44] ss:$76 sps:$4 sm:$0xff]  }
 0xb41   :  { %11079 = vmatpush1.bf16.msra.mxu1 %v15455_v54  ;;  %10994 = vmatprep.subr.bf16.mxu0 %v15460_v55  ;;  %v15529_v55 = vld [vmem:[#allocation23 + $0xd4c] ss:$76 sps:$4 sm:$0xff]  }
 0xb42   :  { %11080 = vmatprep.subr.bf16.mxu1 %v15463_v58 }
 0xb44   :  { %10995 = vmatpush1.bf16.msra.mxu0 %v15458_v60 }
 0xb45   :  { %11081 = vmatpush1.bf16.msra.mxu1 %v15461_v61  ;;  %10996 = vmatprep.subr.bf16.mxu0 %v15466_v62  ;;  %v15524_v62 = vld [vmem:[#allocation23 + $0xd40] ss:$76 sps:$4 sm:$0xff]  }
 0xb46   :  { %11082 = vmatprep.subr.bf16.mxu1 %v15469_v63 }
 0xb48   :  { %10997 = vmatpush1.bf16.msra.mxu0 %v15464_v1 }
 0xb49   :  { %11083 = vmatpush1.bf16.msra.mxu1 %v15467_v2  ;;  %10998 = vmatprep.subr.bf16.mxu0 %v15472_v3 }
 0xb4a   :  { %11084 = vmatprep.subr.bf16.mxu1 %v15475_v4  ;;  %v15527_v4 = vld [vmem:[#allocation23 + $0xd48] ss:$76 sps:$4 sm:$0xff]  }
 0xb4c   :  { %10999 = vmatpush1.bf16.msra.mxu0 %v15470_v5  ;;  %v15532_v5 = vld [vmem:[#allocation23 + $0xddc] ss:$76 sps:$4 sm:$0xff]  }
 0xb4d   :  { %11085 = vmatpush1.bf16.msra.mxu1 %v15473_v6  ;;  %11000 = vmatprep.subr.bf16.mxu0 %v15478_v9 }
 0xb4e   :  { %11086 = vmatprep.subr.bf16.mxu1 %v15481_v17 }
 0xb50   :  { %11001 = vmatpush1.bf16.msra.mxu0 %v15476_v18 }
 0xb51   :  { %11087 = vmatpush1.bf16.msra.mxu1 %v15479_v19  ;;  %11002 = vmatprep.subr.bf16.mxu0 %v15484_v20  ;;  %v15535_v19 = vld [vmem:[#allocation23 + $0xde4] ss:$76 sps:$4 sm:$0xff]  }
 0xb52   :  { %11088 = vmatprep.subr.bf16.mxu1 %v15487_v23 }
 0xb54   :  { %11003 = vmatpush1.bf16.msra.mxu0 %v15482_v53 }
 0xb55   :  { %11089 = vmatpush1.bf16.msra.mxu1 %v15485_v56  ;;  %11015 = vmatprep.subr.bf16.mxu0 %v15490_v24 }
 0xb56   :  { %11101 = vmatprep.subr.bf16.mxu1 %v15493_v15 }
 0xb57   :  { %11005 = vmatmul.mubr.bf16.vlgmr.msra.gmra.mrb[24].mxu0 %v16932_v48 }
 0xb58   :  { %11091 = vmatmul.mubr.bf16.vlgmr.msra.gmra.mrb[36].mxu1 %v16932_v48  ;;  %11016 = vmatpush1.bf16.msra.mxu0 %v15488_v25 }
 0xb59   :  { %11047 = vmatprep.mubr.bf16.mxu0 %v16938_v0  ;;  %11102 = vmatpush1.bf16.msra.mxu1 %v15491_v26 }
 0xb5a   :  { %11133 = vmatprep.mubr.bf16.mxu1 %v16938_v0  ;;  %11017 = vmatprep.subr.bf16.mxu0 %v15496_v28 }
 0xb5b   :  { %11103 = vmatprep.subr.bf16.mxu1 %v15499_v29  ;;  %v15530_v29 = vld [vmem:[#allocation23 + $0xdd8] ss:$76 sps:$4 sm:$0xff]  }
 0xb5c   :  { %11018 = vmatpush1.bf16.msra.mxu0 %v15494_v31 }
 0xb5d   :  { %11104 = vmatpush1.bf16.msra.mxu1 %v15497_v11  ;;  %11019 = vmatprep.subr.bf16.mxu0 %v15502_v32  ;;  %v15533_v11 = vld [vmem:[#allocation23 + $0xde0] ss:$76 sps:$4 sm:$0xff]  }
 0xb5e   :  { %11105 = vmatprep.subr.bf16.mxu1 %v15505_v33  ;;  %v15538_v32 = vld [vmem:[#allocation23 + $0xe74] ss:$76 sps:$4 sm:$0xff]  }
 0xb60   :  { %11020 = vmatpush1.bf16.msra.mxu0 %v15500_v34  ;;  %v15541_v34 = vld [vmem:[#allocation23 + $0xe7c] ss:$76 sps:$4 sm:$0xff]  }
 0xb61   :  { %11106 = vmatpush1.bf16.msra.mxu1 %v15503_v35  ;;  %11021 = vmatprep.subr.bf16.mxu0 %v15508_v36  ;;  %v15536_v35 = vld [vmem:[#allocation23 + $0xe70] ss:$76 sps:$4 sm:$0xff]   ;;  %v15539_v36 = vld [vmem:[#allocation23 + $0xe78] ss:$76 sps:$4 sm:$0xff]  }
 0xb62   :  { %11107 = vmatprep.subr.bf16.mxu1 %v15511_v37  ;;  %v15544_v37 = vld [vmem:[#allocation23 + $0xf0c] ss:$76 sps:$4 sm:$0xff]  }
 0xb64   :  { %11022 = vmatpush1.bf16.msra.mxu0 %v15506_v38  ;;  %v15547_v38 = vld [vmem:[#allocation23 + $0xf14] ss:$76 sps:$4 sm:$0xff]  }
 0xb65   :  { %11108 = vmatpush1.bf16.msra.mxu1 %v15509_v7  ;;  %11023 = vmatprep.subr.bf16.mxu0 %v15514_v39  ;;  %v15542_v7 = vld [vmem:[#allocation23 + $0xf08] ss:$76 sps:$4 sm:$0xff]  }
 0xb66   :  { %11109 = vmatprep.subr.bf16.mxu1 %v15517_v8  ;;  %v15545_v8 = vld [vmem:[#allocation23 + $0xf10] ss:$76 sps:$4 sm:$0xff]  }
 0xb68   :  { %11024 = vmatpush1.bf16.msra.mxu0 %v15512_v13  ;;  %v15550_v13 = vld [vmem:[#allocation23 + $0xfa4] ss:$76 sps:$4 sm:$0xff]  }
 0xb69   :  { %11110 = vmatpush1.bf16.msra.mxu1 %v15515_v27  ;;  %11025 = vmatprep.subr.bf16.mxu0 %v15520_v42 }
 0xb6a   :  { %v10705_v54 = vpop.f32.mrb[16].mxu0  ;;  %11111 = vmatprep.subr.bf16.mxu1 %v15523_v43  ;;  %v15553_v43 = vld [vmem:[#allocation23 + $0xfac] ss:$76 sps:$4 sm:$0xff]  }
 0xb6b   :  { %v13467_v58 = vadd.f32 %v10705_v54, %v7308_v44  ;;  %v10791_v60 = vpop.f32.mrb[28].mxu1  ;;  %v10707_v61 = vpop.f32.mrb[17].mxu0  ;;  %v15551_v54 = vld [vmem:[#allocation23 + $0xfa8] ss:$76 sps:$4 sm:$0xff]  }
 0xb6c   :  { %v13471_v63 = vadd.f32 %v10791_v60, %v7316_v45  ;;  %v13468_v1 = vadd.f32 %v10707_v61, %v7312_v46  ;;  %v10793_v2 = vpop.f32.mrb[29].mxu1  ;;  %v10709_v3 = vpop.f32.mrb[18].mxu0  ;;  %11026 = vmatpush1.bf16.msra.mxu0 %v15518_v47  ;;  %v15559_v61 = vld [vmem:[#allocation23 + $0x1044] ss:$76 sps:$4 sm:$0xff]  }
 0xb6d   :  { %v13133_v6 = vmul.f32 -1.442695, %v13467_v58  ;;  %v13472_v9 = vadd.f32 %v10793_v2, %v7320_v49  ;;  %v13469_v22 = vadd.f32 %v10709_v3, %v7308_v44  ;;  %v10795_v17 = vpop.f32.mrb[30].mxu1  ;;  %11112 = vmatpush1.bf16.msra.mxu1 %v15521_v51  ;;  %v10711_v18 = vpop.f32.mrb[19].mxu0  ;;  %11027 = vmatprep.subr.bf16.mxu0 %v15526_v52  ;;  %v15554_v3 = vld [vmem:[#allocation23 + $0x1038] ss:$76 sps:$4 sm:$0xff]  }
 0xb6e   :  { %v13135_v20 = vmul.f32 -1.442695, %v13471_v63  ;;  %v13134_v23 = vmul.f32 -1.442695, %v13468_v1  ;;  %v13473_v53 = vadd.f32 %v10795_v17, %v7316_v45  ;;  %v13470_v56 = vadd.f32 %v10711_v18, %v7312_v46  ;;  %v10797_v24 = vpop.f32.mrb[31].mxu1  ;;  %11113 = vmatprep.subr.bf16.mxu1 %v15529_v55 }
 0xb6f   :  { %15774 = vpow2.f32 %v13133_v6  ;;  %v13136_v15 = vmul.f32 -1.442695, %v13472_v9  ;;  %v13152_v25 = vmul.f32 -1.442695, %v13469_v22  ;;  %v13474_v26 = vadd.f32 %v10797_v24, %v7320_v49  ;;  %v15548_v49 = vld [vmem:[#allocation23 + $0xfa0] ss:$76 sps:$4 sm:$0xff]  }
 0xb70   :  { %15776 = vpow2.f32 %v13135_v20  ;;  %v13154_v28 = vmul.f32 -1.442695, %v13473_v53  ;;  %11028 = vmatpush1.bf16.msra.mxu0 %v15524_v62  ;;  %v13153_v31 = vmul.f32 -1.442695, %v13470_v56  ;;  %v15556_v55 = vld [vmem:[#allocation23 + $0x103c] ss:$76 sps:$4 sm:$0xff]  }
 0xb71   :  { %15778 = vpow2.f32 %v13134_v23  ;;  %11114 = vmatpush1.bf16.msra.mxu1 %v15527_v4  ;;  %11029 = vmatprep.subr.bf16.mxu0 %v15532_v5  ;;  %v13155_v33 = vmul.f32 -1.442695, %v13474_v26  ;;  %v15557_v5 = vld [vmem:[#allocation23 + $0x1040] ss:$76 sps:$4 sm:$0xff]   ;;  %v15565_v9 = vld [vmem:[#allocation23 + $0x10dc] ss:$76 sps:$4 sm:$0xff]  }
 0xb72   :  { %15780 = vpow2.f32 %v13136_v15  ;;  %11115 = vmatprep.subr.bf16.mxu1 %v15535_v19  ;;  %v15562_v6 = vld [vmem:[#allocation23 + $0x10d4] ss:$76 sps:$4 sm:$0xff]   ;;  %v15560_v22 = vld [vmem:[#allocation23 + $0x10d0] ss:$76 sps:$4 sm:$0xff]   ;;  %v15563_v17 = vld [vmem:[#allocation23 + $0x10d8] ss:$76 sps:$4 sm:$0xff]  }
 0xb73   :  { %15782 = vpow2.f32 %v13152_v25  ;;  %v15568_v18 = vld [vmem:[#allocation23 + $0x116c] ss:$76 sps:$4 sm:$0xff]   ;;  %v15571_v20 = vld [vmem:[#allocation23 + $0x1174] ss:$76 sps:$4 sm:$0xff]   ;;  %v15569_v25 = vld [vmem:[#allocation23 + $0x1170] ss:$76 sps:$4 sm:$0xff]  }
 0xb74   :  { %15784 = vpow2.f32 %v13154_v28  ;;  %11030 = vmatpush1.bf16.msra.mxu0 %v15530_v29  ;;  %v15566_v56 = vld [vmem:[#allocation23 + $0x1168] ss:$76 sps:$4 sm:$0xff]   ;;  %v15574_v26 = vld [vmem:[#allocation23 + $0x1204] ss:$76 sps:$4 sm:$0xff]  }
 0xb75   :  { %15786 = vpow2.f32 %v13153_v31  ;;  %11116 = vmatpush1.bf16.msra.mxu1 %v15533_v11  ;;  %11031 = vmatprep.subr.bf16.mxu0 %v15538_v32  ;;  %v15577_v31 = vld [vmem:[#allocation23 + $0x120c] ss:$76 sps:$4 sm:$0xff]  }
 0xb76   :  { %15788 = vpow2.f32 %v13155_v33  ;;  %11117 = vmatprep.subr.bf16.mxu1 %v15541_v34  ;;  %v15572_v33 = vld [vmem:[#allocation23 + $0x1200] ss:$76 sps:$4 sm:$0xff]  }
 0xb78   :  { %11032 = vmatpush1.bf16.msra.mxu0 %v15536_v35 }
 0xb79   :  { %v15775_v39 = vpop.eup %15774  ;;  %11118 = vmatpush1.bf16.msra.mxu1 %v15539_v36  ;;  %11033 = vmatprep.subr.bf16.mxu0 %v15544_v37  ;;  %v15575_v36 = vld [vmem:[#allocation23 + $0x1208] ss:$76 sps:$4 sm:$0xff]  }
 0xb7a   :  { %v15777_v27 = vpop.eup %15776  ;;  %v11430_v42 = vadd.f32 1.0, %v15775_v39  ;;  %11119 = vmatprep.subr.bf16.mxu1 %v15547_v38  ;;  %v15580_v37 = vld [vmem:[#allocation23 + $0x129c] ss:$76 sps:$4 sm:$0xff]   ;;  %v15578_v39 = vld [vmem:[#allocation23 + $0x1298] ss:$76 sps:$4 sm:$0xff]  }
 0xb7b   :  { %v15779_v44 = vpop.eup %15778  ;;  %v11432_v45 = vadd.f32 1.0, %v15777_v27  ;;  %v15587_v27 = vld [vmem:[#allocation23 + $0x508] ss:$76 sps:$4 sm:$0xff]  }
 0xb7c   :  { %v15781_v46 = vpop.eup %15780  ;;  %15790 = vrcp.f32 %v11430_v42  ;;  %v11431_v47 = vadd.f32 1.0, %v15779_v44  ;;  %11034 = vmatpush1.bf16.msra.mxu0 %v15542_v7  ;;  %v15583_v7 = vld [vmem:[#allocation23 + $0x12a4] ss:$76 sps:$4 sm:$0xff]   ;;  %v15584_v42 = vld [vmem:[#allocation23 + $0x40] ss:$76 sps:$4 sm:$0xff]  }
 0xb7d   :  { %v15783_v51 = vpop.eup %15782  ;;  %15792 = vrcp.f32 %v11432_v45  ;;  %v11433_v52 = vadd.f32 1.0, %v15781_v46  ;;  %11120 = vmatpush1.bf16.msra.mxu1 %v15545_v8  ;;  %11035 = vmatprep.subr.bf16.mxu0 %v15550_v13  ;;  %v15581_v8 = vld [vmem:[#allocation23 + $0x12a0] ss:$76 sps:$4 sm:$0xff]   ;;  %v15586_v13 = vld [vmem:[#allocation23 + $0x44] ss:$76 sps:$4 sm:$0xff]  }
 0xb7e   :  { %v15785_v58 = vpop.eup %15784  ;;  %15794 = vrcp.f32 %v11431_v47  ;;  %v11449_v60 = vadd.f32 1.0, %v15783_v51  ;;  %11121 = vmatprep.subr.bf16.mxu1 %v15553_v43  ;;  %v15588_v43 = vld [vmem:[#allocation23 + $0x48] ss:$76 sps:$4 sm:$0xff]   ;;  %v15592_v45 = vld [vmem:[#allocation23 + $0x5a0] ss:$76 sps:$4 sm:$0xff]  }
 0xb7f   :  { %v15787_v62 = vpop.eup %15786  ;;  %15796 = vrcp.f32 %v11433_v52  ;;  %v11451_v63 = vadd.f32 1.0, %v15785_v58  ;;  %v15591_v44 = vld [vmem:[#allocation23 + $0xdc] ss:$76 sps:$4 sm:$0xff]   ;;  %v15589_v46 = vld [vmem:[#allocation23 + $0xd8] ss:$76 sps:$4 sm:$0xff]  }
 0xb80   :  { %v15789_v1 = vpop.eup %15788  ;;  %15798 = vrcp.f32 %v11449_v60  ;;  %v11450_v2 = vadd.f32 1.0, %v15787_v62  ;;  %11036 = vmatpush1.bf16.msra.mxu0 %v15548_v49  ;;  %v15593_v47 = vld [vmem:[#allocation23 + $0xe0] ss:$76 sps:$4 sm:$0xff]   ;;  %v15597_v51 = vld [vmem:[#allocation23 + $0x638] ss:$76 sps:$4 sm:$0xff]  }
 0xb81   :  { %15800 = vrcp.f32 %v11451_v63  ;;  %v11452_v4 = vadd.f32 1.0, %v15789_v1  ;;  %11122 = vmatpush1.bf16.msra.mxu1 %v15551_v54  ;;  %11037 = vmatprep.subr.bf16.mxu0 %v15556_v55  ;;  %v15596_v49 = vld [vmem:[#allocation23 + $0x174] ss:$76 sps:$4 sm:$0xff]   ;;  %v15594_v52 = vld [vmem:[#allocation23 + $0x170] ss:$76 sps:$4 sm:$0xff]  }
 0xb82   :  { %15802 = vrcp.f32 %v11450_v2  ;;  %11123 = vmatprep.subr.bf16.mxu1 %v15559_v61  ;;  %v15598_v54 = vld [vmem:[#allocation23 + $0x178] ss:$76 sps:$4 sm:$0xff]   ;;  %v15602_v58 = vld [vmem:[#allocation23 + $0x6d0] ss:$76 sps:$4 sm:$0xff]   ;;  %v15599_v60 = vld [vmem:[#allocation23 + $0x208] ss:$76 sps:$4 sm:$0xff]  }
 0xb83   :  { %15804 = vrcp.f32 %v11452_v4  ;;  %v15601_v55 = vld [vmem:[#allocation23 + $0x20c] ss:$76 sps:$4 sm:$0xff]   ;;  %v15603_v61 = vld [vmem:[#allocation23 + $0x210] ss:$76 sps:$4 sm:$0xff]   ;;  %v15607_v63 = vld [vmem:[#allocation23 + $0x768] ss:$76 sps:$4 sm:$0xff]  }
 0xb84   :  { %11038 = vmatpush1.bf16.msra.mxu0 %v15554_v3  ;;  %v15606_v62 = vld [vmem:[#allocation23 + $0x2a4] ss:$76 sps:$4 sm:$0xff]   ;;  %v15608_v1 = vld [vmem:[#allocation23 + $0x2a8] ss:$76 sps:$4 sm:$0xff]   ;;  %v15612_v3 = vld [vmem:[#allocation23 + $0x800] ss:$76 sps:$4 sm:$0xff]  }
 0xb85   :  { %11124 = vmatpush1.bf16.msra.mxu1 %v15557_v5  ;;  %11039 = vmatprep.subr.bf16.mxu0 %v15562_v6  ;;  %v15611_v2 = vld [vmem:[#allocation23 + $0x33c] ss:$76 sps:$4 sm:$0xff]   ;;  %v15609_v4 = vld [vmem:[#allocation23 + $0x338] ss:$76 sps:$4 sm:$0xff]   ;;  %v15613_v5 = vld [vmem:[#allocation23 + $0x340] ss:$76 sps:$4 sm:$0xff]  }
 0xb86   :  { %v15791_v19 = vpop.eup %15790  ;;  %11125 = vmatprep.subr.bf16.mxu1 %v15565_v9  ;;  %v15616_v6 = vld [vmem:[#allocation23 + $0x3d4] ss:$76 sps:$4 sm:$0xff]   ;;  %v15617_v9 = vld [vmem:[#allocation23 + $0x898] ss:$76 sps:$4 sm:$0xff]  }
 0xb87   :  { %v15793_v23 = vpop.eup %15792 }
 0xb88   :  { %v15795_v53 = vpop.eup %15794  ;;  %11040 = vmatpush1.bf16.msra.mxu0 %v15560_v22  ;;  %v15614_v22 = vld [vmem:[#allocation23 + $0x3d0] ss:$76 sps:$4 sm:$0xff]  }
 0xb89   :  { %v15797_v24 = vpop.eup %15796  ;;  %v13189_v15 = vpack.c.bf16 %v15795_v53, %v15791_v19  ;;  %11126 = vmatpush1.bf16.msra.mxu1 %v15563_v17  ;;  %11041 = vmatprep.subr.bf16.mxu0 %v15568_v18  ;;  %v15618_v17 = vld [vmem:[#allocation23 + $0x3d8] ss:$76 sps:$4 sm:$0xff]   ;;  %v15622_v19 = vld [vmem:[#allocation23 + $0x930] ss:$76 sps:$4 sm:$0xff]  }
 0xb8a   :  { %v15799_v28 = vpop.eup %15798  ;;  %v13190_v29 = vpack.c.bf16 %v15797_v24, %v15793_v23  ;;  %11127 = vmatprep.subr.bf16.mxu1 %v15571_v20  ;;  %v15621_v18 = vld [vmem:[#allocation23 + $0x46c] ss:$76 sps:$4 sm:$0xff]   ;;  %v15619_v20 = vld [vmem:[#allocation23 + $0x468] ss:$76 sps:$4 sm:$0xff]   ;;  %v15623_v23 = vld [vmem:[#allocation23 + $0x470] ss:$76 sps:$4 sm:$0xff]  }
 0xb8b   :  { %v15801_v11 = vpop.eup %15800  ;;  %11658 = vst [vmem:[#allocation30 + $0x10] sm:$0xff] %v13189_v15  ;;  %v15626_v53 = vld [vmem:[#allocation23 + $0x504] ss:$76 sps:$4 sm:$0xff]   ;;  %v15624_v24 = vld [vmem:[#allocation23 + $0x500] ss:$76 sps:$4 sm:$0xff]  }
 0xb8c   :  { %v15803_v32 = vpop.eup %15802  ;;  %11659 = vst [vmem:[#allocation30 + $0x18] sm:$0xff] %v13190_v29  ;;  %11042 = vmatpush1.bf16.msra.mxu0 %v15566_v56  ;;  %v15627_v56 = vld [vmem:[#allocation23 + $0xe88] ss:$76 sps:$4 sm:$0xff]   ;;  %v15633_v29 = vld [vmem:[#allocation23 + $0xa60] ss:$76 sps:$4 sm:$0xff]  }
 0xb8d   :  { %v15805_v34 = vpop.eup %15804  ;;  %v13199_v35 = vpack.c.bf16 %v15803_v32, %v15799_v28  ;;  %11128 = vmatpush1.bf16.msra.mxu1 %v15569_v25  ;;  %11043 = vmatprep.subr.bf16.mxu0 %v15574_v26  ;;  %v15628_v15 = vld [vmem:[#allocation23 + $0x9c8] ss:$76 sps:$4 sm:$0xff]   ;;  %v15632_v26 = vld [vmem:[#allocation23 + $0xf20] ss:$76 sps:$4 sm:$0xff]   ;;  %v15629_v28 = vld [vmem:[#allocation23 + $0x598] ss:$76 sps:$4 sm:$0xff]  }
 0xb8e   :  { %v13200_v38 = vpack.c.bf16 %v15805_v34, %v15801_v11  ;;  %11129 = vmatprep.subr.bf16.mxu1 %v15577_v31  ;;  %v15631_v25 = vld [vmem:[#allocation23 + $0x59c] ss:$76 sps:$4 sm:$0xff]   ;;  %v15636_v31 = vld [vmem:[#allocation23 + $0x634] ss:$76 sps:$4 sm:$0xff]   ;;  %v15637_v11 = vld [vmem:[#allocation23 + $0xfb8] ss:$76 sps:$4 sm:$0xff]  }
 0xb8f   :  { %11668 = vst [vmem:[#allocation30 + $0x5c] sm:$0xff] %v13199_v35  ;;  %v15634_v32 = vld [vmem:[#allocation23 + $0x630] ss:$76 sps:$4 sm:$0xff]   ;;  %v15641_v34 = vld [vmem:[#allocation23 + $0x6cc] ss:$76 sps:$4 sm:$0xff]  }
 0xb90   :  { %11669 = vst [vmem:[#allocation30 + $0x64] sm:$0xff] %v13200_v38  ;;  %11044 = vmatpush1.bf16.msra.mxu0 %v15572_v33  ;;  %v15638_v33 = vld [vmem:[#allocation23 + $0xaf8] ss:$76 sps:$4 sm:$0xff]   ;;  %v15642_v35 = vld [vmem:[#allocation23 + $0x1050] ss:$76 sps:$4 sm:$0xff]  }
 0xb91   :  { %11130 = vmatpush1.bf16.msra.mxu1 %v15575_v36  ;;  %11045 = vmatprep.subr.bf16.mxu0 %v15580_v37  ;;  %v15639_v36 = vld [vmem:[#allocation23 + $0x6c8] ss:$76 sps:$4 sm:$0xff]   ;;  %v15643_v37 = vld [vmem:[#allocation23 + $0xb90] ss:$76 sps:$4 sm:$0xff]  }
 0xb92   :  { %11131 = vmatprep.subr.bf16.mxu1 %v15583_v7  ;;  %v15646_v38 = vld [vmem:[#allocation23 + $0x764] ss:$76 sps:$4 sm:$0xff]   ;;  %v15647_v7 = vld [vmem:[#allocation23 + $0x10e8] ss:$76 sps:$4 sm:$0xff]  }
 0xb94   :  { %11046 = vmatpush1.bf16.msra.mxu0 %v15578_v39  ;;  %v15644_v39 = vld [vmem:[#allocation23 + $0x760] ss:$76 sps:$4 sm:$0xff]  }
 0xb95   :  { %11132 = vmatpush1.bf16.msra.mxu1 %v15581_v8  ;;  %11144 = vmatprep.subr.bf16.mxu0 %v15586_v13  ;;  %v15648_v8 = vld [vmem:[#allocation23 + $0xc28] ss:$76 sps:$4 sm:$0xff]  }
 0xb96   :  { %13265 = vmatprep.subr.bf16.mxu1 %v15587_v27  ;;  %v15651_v13 = vld [vmem:[#allocation23 + $0x7fc] ss:$76 sps:$4 sm:$0xff]   ;;  %v15652_v27 = vld [vmem:[#allocation23 + $0x1180] ss:$76 sps:$4 sm:$0xff]  }
 0xb97   :  { %11048 = vmatmul.mubr.bf16.vlgmr.msra.gmra.mrb[24].mxu0 %v16934_v21 }
 0xb98   :  { %11134 = vmatmul.mubr.bf16.vlgmr.msra.gmra.mrb[36].mxu1 %v16934_v21  ;;  %11145 = vmatpush1.bf16.msra.mxu0 %v15584_v42  ;;  %v15649_v42 = vld [vmem:[#allocation23 + $0x7f8] ss:$76 sps:$4 sm:$0xff]  }
 0xb99   :  { %11176 = vmatprep.mubr.bf16.mxu0 %v16936_v50  ;;  %13266 = vmatpush3.bf16.msra.mxu1 %v15588_v43  ;;  %v15653_v43 = vld [vmem:[#allocation23 + $0xcc0] ss:$76 sps:$4 sm:$0xff]  }
 0xb9a   :  { %11262 = vmatprep.mubr.bf16.mxu1 %v16936_v50  ;;  %11146 = vmatprep.subr.bf16.mxu0 %v15591_v44  ;;  %v15604_v50 = vld [vmem:[#allocation23 + $0x2a0] ss:$76 sps:$4 sm:$0xff]  }
 0xb9b   :  { %13267 = vmatprep.subr.bf16.mxu1 %v15592_v45  ;;  %v15656_v44 = vld [vmem:[#allocation23 + $0x894] ss:$76 sps:$4 sm:$0xff]   ;;  %v15657_v45 = vld [vmem:[#allocation23 + $0x1218] ss:$76 sps:$4 sm:$0xff]  }
 0xb9c   :  { %11147 = vmatpush1.bf16.msra.mxu0 %v15589_v46  ;;  %v15654_v46 = vld [vmem:[#allocation23 + $0x890] ss:$76 sps:$4 sm:$0xff]  }
 0xb9d   :  { %13268 = vmatpush3.bf16.msra.mxu1 %v15593_v47  ;;  %11148 = vmatprep.subr.bf16.mxu0 %v15596_v49  ;;  %v15658_v47 = vld [vmem:[#allocation23 + $0xd58] ss:$76 sps:$4 sm:$0xff]  }
 0xb9e   :  { %13269 = vmatprep.subr.bf16.mxu1 %v15597_v51  ;;  %v15661_v49 = vld [vmem:[#allocation23 + $0x92c] ss:$76 sps:$4 sm:$0xff]   ;;  %v15662_v51 = vld [vmem:[#allocation23 + $0x12b0] ss:$76 sps:$4 sm:$0xff]  }
 0xba0   :  { %11149 = vmatpush1.bf16.msra.mxu0 %v15594_v52  ;;  %v15659_v52 = vld [vmem:[#allocation23 + $0x928] ss:$76 sps:$4 sm:$0xff]  }
 0xba1   :  { %13270 = vmatpush3.bf16.msra.mxu1 %v15598_v54  ;;  %11150 = vmatprep.subr.bf16.mxu0 %v15601_v55  ;;  %v15663_v54 = vld [vmem:[#allocation23 + $0xdf0] ss:$76 sps:$4 sm:$0xff]  }
 0xba2   :  { %13271 = vmatprep.subr.bf16.mxu1 %v15602_v58  ;;  %v15666_v55 = vld [vmem:[#allocation23 + $0x9c4] ss:$76 sps:$4 sm:$0xff]   ;;  %v15664_v58 = vld [vmem:[#allocation23 + $0x9c0] ss:$76 sps:$4 sm:$0xff]  }
 0xba4   :  { %11151 = vmatpush1.bf16.msra.mxu0 %v15599_v60  ;;  %v15669_v60 = vld [vmem:[#allocation23 + $0xa5c] ss:$76 sps:$4 sm:$0xff]  }
 0xba5   :  { %13272 = vmatpush3.bf16.msra.mxu1 %v15603_v61  ;;  %11152 = vmatprep.subr.bf16.mxu0 %v15606_v62  ;;  %v15667_v61 = vld [vmem:[#allocation23 + $0xa58] ss:$76 sps:$4 sm:$0xff]   ;;  %v15672_v62 = vld [vmem:[#allocation23 + $0xaf4] ss:$76 sps:$4 sm:$0xff]  }
 0xba6   :  { %13273 = vmatprep.subr.bf16.mxu1 %v15607_v63  ;;  %v15670_v63 = vld [vmem:[#allocation23 + $0xaf0] ss:$76 sps:$4 sm:$0xff]  }
 0xba8   :  { %11153 = vmatpush1.bf16.msra.mxu0 %v15604_v50  ;;  %v15675_v50 = vld [vmem:[#allocation23 + $0xb8c] ss:$76 sps:$4 sm:$0xff]  }
 0xba9   :  { %13274 = vmatpush3.bf16.msra.mxu1 %v15608_v1  ;;  %11154 = vmatprep.subr.bf16.mxu0 %v15611_v2  ;;  %v15673_v1 = vld [vmem:[#allocation23 + $0xb88] ss:$76 sps:$4 sm:$0xff]   ;;  %v15678_v2 = vld [vmem:[#allocation23 + $0xc24] ss:$76 sps:$4 sm:$0xff]  }
 0xbaa   :  { %13275 = vmatprep.subr.bf16.mxu1 %v15612_v3  ;;  %v15676_v3 = vld [vmem:[#allocation23 + $0xc20] ss:$76 sps:$4 sm:$0xff]  }
 0xbac   :  { %11155 = vmatpush1.bf16.msra.mxu0 %v15609_v4  ;;  %v17005_v4 = vld [vmem:[#allocation24 + $0x8] sm:$0xff] }
 0xbad   :  { %13276 = vmatpush3.bf16.msra.mxu1 %v15613_v5  ;;  %11156 = vmatprep.subr.bf16.mxu0 %v15616_v6  ;;  %v7324_v5 = vrot.slane %v17005_v4, %v16808_v14  ;;  %v7328_v6 = vrot.slane %v17005_v4, %v16813_v16 }
 0xbae   :  { %13277 = vmatprep.subr.bf16.mxu1 %v15617_v9  ;;  %v15679_v9 = vld [vmem:[#allocation23 + $0xcb8] ss:$76 sps:$4 sm:$0xff]  }
 0xbb0   :  { %11157 = vmatpush1.bf16.msra.mxu0 %v15614_v22  ;;  %v7336_v22 = vrot.slane %v17005_v4, %v16827_v59 }
 0xbb1   :  { %13278 = vmatpush3.bf16.msra.mxu1 %v15618_v17  ;;  %11158 = vmatprep.subr.bf16.mxu0 %v15621_v18  ;;  %v15684_v17 = vld [vmem:[#allocation23 + $0xd54] ss:$76 sps:$4 sm:$0xff]  }
 0xbb2   :  { %13279 = vmatprep.subr.bf16.mxu1 %v15622_v19 }
 0xbb4   :  { %11159 = vmatpush1.bf16.msra.mxu0 %v15619_v20 }
 0xbb5   :  { %13280 = vmatpush3.bf16.msra.mxu1 %v15623_v23  ;;  %11160 = vmatprep.subr.bf16.mxu0 %v15626_v53 }
 0xbb6   :  { %13287 = vmatprep.subr.bf16.mxu1 %v15627_v56 }
 0xbb8   :  { %11263 = vmatmul.mubr.bf16.vlgmr.msra.gmra.mrb[40].mxu1 %v16932_v48  ;;  %11161 = vmatpush1.bf16.msra.mxu0 %v15624_v24 }
 0xbb9   :  { %13288 = vmatpush3.bf16.msra.mxu1 %v15628_v15  ;;  %11303 = vmatprep.mubr.bf16.mxu1 %v16938_v0 }
 0xbba   :  { %11162 = vmatprep.subr.bf16.mxu0 %v15631_v25  ;;  %13289 = vmatprep.subr.bf16.mxu1 %v15632_v26  ;;  %v15682_v25 = vld [vmem:[#allocation23 + $0xd50] ss:$76 sps:$4 sm:$0xff]  }
 0xbbc   :  { %11163 = vmatpush1.bf16.msra.mxu0 %v15629_v28 }
 0xbbd   :  { %13290 = vmatpush3.bf16.msra.mxu1 %v15633_v29  ;;  %11164 = vmatprep.subr.bf16.mxu0 %v15636_v31 }
 0xbbe   :  { %13291 = vmatprep.subr.bf16.mxu1 %v15637_v11 }
 0xbc0   :  { %11165 = vmatpush1.bf16.msra.mxu0 %v15634_v32  ;;  %v15687_v32 = vld [vmem:[#allocation23 + $0xdec] ss:$76 sps:$4 sm:$0xff]  }
 0xbc1   :  { %13292 = vmatpush3.bf16.msra.mxu1 %v15638_v33  ;;  %11166 = vmatprep.subr.bf16.mxu0 %v15641_v34 }
 0xbc2   :  { %13293 = vmatprep.subr.bf16.mxu1 %v15642_v35 }
 0xbc4   :  { %11167 = vmatpush1.bf16.msra.mxu0 %v15639_v36 }
 0xbc5   :  { %13294 = vmatpush3.bf16.msra.mxu1 %v15643_v37  ;;  %11168 = vmatprep.subr.bf16.mxu0 %v15646_v38 }
 0xbc6   :  { %13295 = vmatprep.subr.bf16.mxu1 %v15647_v7 }
 0xbc8   :  { %11169 = vmatpush1.bf16.msra.mxu0 %v15644_v39 }
 0xbc9   :  { %13296 = vmatpush3.bf16.msra.mxu1 %v15648_v8  ;;  %11170 = vmatprep.subr.bf16.mxu0 %v15651_v13  ;;  %v15685_v8 = vld [vmem:[#allocation23 + $0xde8] ss:$76 sps:$4 sm:$0xff]  }
 0xbca   :  { %13297 = vmatprep.subr.bf16.mxu1 %v15652_v27  ;;  %v15690_v27 = vld [vmem:[#allocation23 + $0xe84] ss:$76 sps:$4 sm:$0xff]  }
 0xbcc   :  { %11171 = vmatpush1.bf16.msra.mxu0 %v15649_v42 }
 0xbcd   :  { %13298 = vmatpush3.bf16.msra.mxu1 %v15653_v43  ;;  %11172 = vmatprep.subr.bf16.mxu0 %v15656_v44  ;;  %v15688_v43 = vld [vmem:[#allocation23 + $0xe80] ss:$76 sps:$4 sm:$0xff]   ;;  %v15693_v44 = vld [vmem:[#allocation23 + $0xf1c] ss:$76 sps:$4 sm:$0xff]  }
 0xbce   :  { %13299 = vmatprep.subr.bf16.mxu1 %v15657_v45  ;;  %v15691_v45 = vld [vmem:[#allocation23 + $0xf18] ss:$76 sps:$4 sm:$0xff]  }
 0xbd0   :  { %11173 = vmatpush1.bf16.msra.mxu0 %v15654_v46 }
 0xbd1   :  { %13300 = vmatpush3.bf16.msra.mxu1 %v15658_v47  ;;  %11174 = vmatprep.subr.bf16.mxu0 %v15661_v49  ;;  %v15696_v47 = vld [vmem:[#allocation23 + $0xfb4] ss:$76 sps:$4 sm:$0xff]  }
 0xbd2   :  { %13301 = vmatprep.subr.bf16.mxu1 %v15662_v51 }
 0xbd4   :  { %11175 = vmatpush1.bf16.msra.mxu0 %v15659_v52 }
 0xbd5   :  { %13302 = vmatpush3.bf16.msra.mxu1 %v15663_v54  ;;  %11187 = vmatprep.subr.bf16.mxu0 %v15666_v55 }
 0xbd7   :  { %11177 = vmatmul.mubr.bf16.vlgmr.msra.gmra.mrb[28].mxu0 %v16932_v48  ;;  %v15681_v48 = vld [vmem:[#allocation23 + $0xcbc] ss:$76 sps:$4 sm:$0xff]  }
 0xbd8   :  { %11304 = vmatmul.mubr.bf16.vlgmr.msra.gmra.mrb[44].mxu1 %v16934_v21  ;;  %11188 = vmatpush1.bf16.msra.mxu0 %v15664_v58 }
 0xbd9   :  { %11219 = vmatprep.mubr.bf16.mxu0 %v16938_v0  ;;  %11189 = vmatprep.subr.bf16.mxu0 %v15669_v60  ;;  %v7332_v0 = vrot.slane %v17005_v4, %v16824_v57  ;;  %v15694_v60 = vld [vmem:[#allocation23 + $0xfb0] ss:$76 sps:$4 sm:$0xff]  }
 0xbdc   :  { %11190 = vmatpush1.bf16.msra.mxu0 %v15667_v61 }
 0xbdd   :  { %11191 = vmatprep.subr.bf16.mxu0 %v15672_v62 }
 0xbe0   :  { %11192 = vmatpush1.bf16.msra.mxu0 %v15670_v63  ;;  %v15699_v63 = vld [vmem:[#allocation23 + $0x104c] ss:$76 sps:$4 sm:$0xff]  }
 0xbe1   :  { %11193 = vmatprep.subr.bf16.mxu0 %v15675_v50 }
 0xbe4   :  { %11194 = vmatpush1.bf16.msra.mxu0 %v15673_v1 }
 0xbe5   :  { %11195 = vmatprep.subr.bf16.mxu0 %v15678_v2 }
 0xbe8   :  { %11196 = vmatpush1.bf16.msra.mxu0 %v15676_v3 }
 0xbe9   :  { %11197 = vmatprep.subr.bf16.mxu0 %v15681_v48 }
 0xbea   :  { %v10877_v18 = vpop.f32.mrb[20].mxu0 }
 0xbeb   :  { %v13475_v19 = vadd.f32 %v10877_v18, %v7324_v5  ;;  %v10963_v20 = vpop.f32.mrb[32].mxu1  ;;  %v10879_v23 = vpop.f32.mrb[21].mxu0 }
 0xbec   :  { %v13479_v53 = vadd.f32 %v10963_v20, %v7332_v0  ;;  %v13476_v56 = vadd.f32 %v10879_v23, %v7328_v6  ;;  %v10965_v24 = vpop.f32.mrb[33].mxu1  ;;  %v10881_v15 = vpop.f32.mrb[22].mxu0  ;;  %11198 = vmatpush1.bf16.msra.mxu0 %v15679_v9  ;;  %v15702_v9 = vld [vmem:[#allocation23 + $0x10e4] ss:$76 sps:$4 sm:$0xff]  }
 0xbed   :  { %v13137_v26 = vmul.f32 -1.442695, %v13475_v19  ;;  %v13480_v28 = vadd.f32 %v10965_v24, %v7336_v22  ;;  %v13477_v29 = vadd.f32 %v10881_v15, %v7324_v5  ;;  %v10967_v31 = vpop.f32.mrb[34].mxu1  ;;  %v10883_v11 = vpop.f32.mrb[23].mxu0  ;;  %11199 = vmatprep.subr.bf16.mxu0 %v15684_v17  ;;  %v15705_v17 = vld [vmem:[#allocation23 + $0x117c] ss:$76 sps:$4 sm:$0xff]  }
 0xbee   :  { %v13139_v59 = vmul.f32 -1.442695, %v13479_v53  ;;  %v13138_v33 = vmul.f32 -1.442695, %v13476_v56  ;;  %v13481_v34 = vadd.f32 %v10967_v31, %v7332_v0  ;;  %v13478_v35 = vadd.f32 %v10883_v11, %v7328_v6  ;;  %v10969_v36 = vpop.f32.mrb[35].mxu1 }
 0xbef   :  { %15806 = vpow2.f32 %v13137_v26  ;;  %v13140_v37 = vmul.f32 -1.442695, %v13480_v28  ;;  %v13156_v38 = vmul.f32 -1.442695, %v13477_v29  ;;  %v13482_v7 = vadd.f32 %v10969_v36, %v7336_v22  ;;  %v15697_v0 = vld [vmem:[#allocation23 + $0x1048] ss:$76 sps:$4 sm:$0xff]  }
 0xbf0   :  { %15808 = vpow2.f32 %v13139_v59  ;;  %v13158_v39 = vmul.f32 -1.442695, %v13481_v34  ;;  %11200 = vmatpush1.bf16.msra.mxu0 %v15682_v25  ;;  %v13157_v13 = vmul.f32 -1.442695, %v13478_v35  ;;  %v15700_v22 = vld [vmem:[#allocation23 + $0x10e0] ss:$76 sps:$4 sm:$0xff]   ;;  %v7340_v34 = vrot.slane %v17005_v4, %v7307_v10 }
 0xbf1   :  { %15810 = vpow2.f32 %v13138_v33  ;;  %11201 = vmatprep.subr.bf16.mxu0 %v15687_v32  ;;  %v13159_v42 = vmul.f32 -1.442695, %v13482_v7  ;;  %v15703_v23 = vld [vmem:[#allocation23 + $0x1178] ss:$76 sps:$4 sm:$0xff]   ;;  %v15708_v24 = vld [vmem:[#allocation23 + $0x1214] ss:$76 sps:$4 sm:$0xff]   ;;  %v7348_v35 = vrot.slane %v17005_v4, %v7315_v40  ;;  %v7344_v36 = vrot.slane %v17005_v4, %v7311_v30 }
 0xbf2   :  { %15812 = vpow2.f32 %v13140_v37  ;;  %v15706_v29 = vld [vmem:[#allocation23 + $0x1210] ss:$76 sps:$4 sm:$0xff]   ;;  %v15711_v32 = vld [vmem:[#allocation23 + $0x12ac] ss:$76 sps:$4 sm:$0xff]   ;;  %v15709_v33 = vld [vmem:[#allocation23 + $0x12a8] ss:$76 sps:$4 sm:$0xff]   ;;  %v7352_v37 = vrot.slane %v17005_v4, %v7319_v41 }
 0xbf3   :  { %15814 = vpow2.f32 %v13156_v38 }
 0xbf4   :  { %15816 = vpow2.f32 %v13158_v39  ;;  %11202 = vmatpush1.bf16.msra.mxu0 %v15685_v8 }
 0xbf5   :  { %15818 = vpow2.f32 %v13157_v13  ;;  %11203 = vmatprep.subr.bf16.mxu0 %v15690_v27 }
 0xbf6   :  { %15820 = vpow2.f32 %v13159_v42 }
 0xbf8   :  { %11204 = vmatpush1.bf16.msra.mxu0 %v15688_v43 }
 0xbf9   :  { %v15807_v46 = vpop.eup %15806  ;;  %11205 = vmatprep.subr.bf16.mxu0 %v15693_v44 }
 0xbfa   :  { %v15809_v49 = vpop.eup %15808  ;;  %v11434_v51 = vadd.f32 1.0, %v15807_v46 }
 0xbfb   :  { %v15811_v52 = vpop.eup %15810  ;;  %v11436_v54 = vadd.f32 1.0, %v15809_v49 }
 0xbfc   :  { %v15813_v55 = vpop.eup %15812  ;;  %15822 = vrcp.f32 %v11434_v51  ;;  %v11435_v58 = vadd.f32 1.0, %v15811_v52  ;;  %11206 = vmatpush1.bf16.msra.mxu0 %v15691_v45 }
 0xbfd   :  { %v15815_v61 = vpop.eup %15814  ;;  %15824 = vrcp.f32 %v11436_v54  ;;  %v11437_v62 = vadd.f32 1.0, %v15813_v55  ;;  %11207 = vmatprep.subr.bf16.mxu0 %v15696_v47 }
 0xbfe   :  { %v15817_v50 = vpop.eup %15816  ;;  %15826 = vrcp.f32 %v11435_v58  ;;  %v11453_v1 = vadd.f32 1.0, %v15815_v61 }
 0xbff   :  { %v15819_v2 = vpop.eup %15818  ;;  %15828 = vrcp.f32 %v11437_v62  ;;  %v11455_v3 = vadd.f32 1.0, %v15817_v50 }
 0xc00   :  { %v15821_v48 = vpop.eup %15820  ;;  %15830 = vrcp.f32 %v11453_v1  ;;  %v11454_v5 = vadd.f32 1.0, %v15819_v2  ;;  %11208 = vmatpush1.bf16.msra.mxu0 %v15694_v60 }
 0xc01   :  { %15832 = vrcp.f32 %v11455_v3  ;;  %v11456_v6 = vadd.f32 1.0, %v15821_v48  ;;  %11209 = vmatprep.subr.bf16.mxu0 %v15699_v63 }
 0xc02   :  { %15834 = vrcp.f32 %v11454_v5 }
 0xc03   :  { %15836 = vrcp.f32 %v11456_v6 }
 0xc04   :  { %11210 = vmatpush1.bf16.msra.mxu0 %v15697_v0 }
 0xc05   :  { %11211 = vmatprep.subr.bf16.mxu0 %v15702_v9 }
 0xc06   :  { %v15823_v18 = vpop.eup %15822 }
 0xc07   :  { %v15825_v19 = vpop.eup %15824 }
 0xc08   :  { %v15827_v20 = vpop.eup %15826  ;;  %11212 = vmatpush1.bf16.msra.mxu0 %v15700_v22 }
 0xc09   :  { %v15829_v53 = vpop.eup %15828  ;;  %v13191_v56 = vpack.c.bf16 %v15827_v20, %v15823_v18  ;;  %11213 = vmatprep.subr.bf16.mxu0 %v15705_v17 }
 0xc0a   :  { %v15831_v15 = vpop.eup %15830  ;;  %v13192_v25 = vpack.c.bf16 %v15829_v53, %v15825_v19 }
 0xc0b   :  { %v15833_v26 = vpop.eup %15832  ;;  %11660 = vst [vmem:[#allocation30 + $0x20] sm:$0xff] %v13191_v56 }
 0xc0c   :  { %v15835_v28 = vpop.eup %15834  ;;  %11661 = vst [vmem:[#allocation30 + $0x28] sm:$0xff] %v13192_v25  ;;  %11214 = vmatpush1.bf16.msra.mxu0 %v15703_v23 }
 0xc0d   :  { %v15837_v31 = vpop.eup %15836  ;;  %v13201_v11 = vpack.c.bf16 %v15835_v28, %v15831_v15  ;;  %11215 = vmatprep.subr.bf16.mxu0 %v15708_v24 }
 0xc0e   :  { %v13202_v59 = vpack.c.bf16 %v15837_v31, %v15833_v26 }
 0xc0f   :  { %11670 = vst [vmem:[#allocation30 + $0x6c] sm:$0xff] %v13201_v11 }
 0xc10   :  { %11671 = vst [vmem:[#allocation30 + $0x74] sm:$0xff] %v13202_v59  ;;  %11216 = vmatpush1.bf16.msra.mxu0 %v15706_v29 }
 0xc11   :  { %11217 = vmatprep.subr.bf16.mxu0 %v15711_v32 }
 0xc14   :  { %11218 = vmatpush1.bf16.msra.mxu0 %v15709_v33 }
 0xc17   :  { %11220 = vmatmul.mubr.bf16.vlgmr.msra.gmra.mrb[28].mxu0 %v16934_v21 }
 0xc6a   :  { %v11049_v38 = vpop.f32.mrb[24].mxu0 }
 0xc6b   :  { %v13483_v7 = vadd.f32 %v11049_v38, %v7340_v34  ;;  %v11135_v39 = vpop.f32.mrb[36].mxu1  ;;  %v11051_v21 = vpop.f32.mrb[25].mxu0 }
 0xc6c   :  { %v13487_v8 = vadd.f32 %v11135_v39, %v7348_v35  ;;  %v13484_v13 = vadd.f32 %v11051_v21, %v7344_v36  ;;  %v11137_v27 = vpop.f32.mrb[37].mxu1  ;;  %v11053_v10 = vpop.f32.mrb[26].mxu0 }
 0xc6d   :  { %v13141_v42 = vmul.f32 -1.442695, %v13483_v7  ;;  %v13488_v43 = vadd.f32 %v11137_v27, %v7352_v37  ;;  %v13485_v44 = vadd.f32 %v11053_v10, %v7340_v34  ;;  %v11139_v40 = vpop.f32.mrb[38].mxu1  ;;  %v11055_v45 = vpop.f32.mrb[27].mxu0 }
 0xc6e   :  { %v13143_v46 = vmul.f32 -1.442695, %v13487_v8  ;;  %v13142_v47 = vmul.f32 -1.442695, %v13484_v13  ;;  %v13489_v30 = vadd.f32 %v11139_v40, %v7348_v35  ;;  %v13486_v49 = vadd.f32 %v11055_v45, %v7344_v36  ;;  %v11141_v12 = vpop.f32.mrb[39].mxu1 }
 0xc6f   :  { %15838 = vpow2.f32 %v13141_v42  ;;  %v13144_v41 = vmul.f32 -1.442695, %v13488_v43  ;;  %v13160_v4 = vmul.f32 -1.442695, %v13485_v44  ;;  %v13490_v51 = vadd.f32 %v11141_v12, %v7352_v37 }
 0xc70   :  { %15840 = vpow2.f32 %v13143_v46  ;;  %v13162_v52 = vmul.f32 -1.442695, %v13489_v30  ;;  %v13161_v54 = vmul.f32 -1.442695, %v13486_v49 }
 0xc71   :  { %15842 = vpow2.f32 %v13142_v47  ;;  %v13163_v55 = vmul.f32 -1.442695, %v13490_v51 }
 0xc72   :  { %15844 = vpow2.f32 %v13144_v41 }
 0xc73   :  { %15846 = vpow2.f32 %v13160_v4 }
 0xc74   :  { %15848 = vpow2.f32 %v13162_v52 }
 0xc75   :  { %15850 = vpow2.f32 %v13161_v54 }
 0xc76   :  { %15852 = vpow2.f32 %v13163_v55 }
 0xc79   :  { %v15839_v58 = vpop.eup %15838 }
 0xc7a   :  { %v15841_v60 = vpop.eup %15840  ;;  %v11438_v61 = vadd.f32 1.0, %v15839_v58 }
 0xc7b   :  { %v15843_v62 = vpop.eup %15842  ;;  %v11440_v63 = vadd.f32 1.0, %v15841_v60 }
 0xc7c   :  { %v15845_v50 = vpop.eup %15844  ;;  %15854 = vrcp.f32 %v11438_v61  ;;  %v11439_v1 = vadd.f32 1.0, %v15843_v62 }
 0xc7d   :  { %v15847_v2 = vpop.eup %15846  ;;  %15856 = vrcp.f32 %v11440_v63  ;;  %v11441_v3 = vadd.f32 1.0, %v15845_v50 }
 0xc7e   :  { %v15849_v48 = vpop.eup %15848  ;;  %15858 = vrcp.f32 %v11439_v1  ;;  %v11457_v5 = vadd.f32 1.0, %v15847_v2 }
 0xc7f   :  { %v15851_v0 = vpop.eup %15850  ;;  %15860 = vrcp.f32 %v11441_v3  ;;  %v11459_v6 = vadd.f32 1.0, %v15849_v48 }
 0xc80   :  { %v15853_v9 = vpop.eup %15852  ;;  %15862 = vrcp.f32 %v11457_v5  ;;  %v11458_v22 = vadd.f32 1.0, %v15851_v0 }
 0xc81   :  { %15864 = vrcp.f32 %v11459_v6  ;;  %v11460_v17 = vadd.f32 1.0, %v15853_v9 }
 0xc82   :  { %15866 = vrcp.f32 %v11458_v22 }
 0xc83   :  { %15868 = vrcp.f32 %v11460_v17 }
 0xc86   :  { %v15855_v18 = vpop.eup %15854 }
 0xc87   :  { %v15857_v19 = vpop.eup %15856 }
 0xc88   :  { %v15859_v20 = vpop.eup %15858 }
 0xc89   :  { %v15861_v23 = vpop.eup %15860  ;;  %v13193_v53 = vpack.c.bf16 %v15859_v20, %v15855_v18 }
 0xc8a   :  { %v15863_v56 = vpop.eup %15862  ;;  %v13194_v24 = vpack.c.bf16 %v15861_v23, %v15857_v19 }
 0xc8b   :  { %v15865_v15 = vpop.eup %15864  ;;  %11662 = vst [vmem:[#allocation30 + $0x30] sm:$0xff] %v13193_v53  ;;  %v13281_v25 = vpop.f32.mrb[40].mxu1 }
 0xc8c   :  { %v15867_v26 = vpop.eup %15866  ;;  %11663 = vst [vmem:[#allocation30 + $0x38] sm:$0xff] %v13194_v24  ;;  %v13282_v28 = vpop.f32.mrb[41].mxu1 }
 0xc8d   :  { %v15869_v29 = vpop.eup %15868  ;;  %v13203_v31 = vpack.c.bf16 %v15867_v26, %v15863_v56  ;;  %v13283_v11 = vadd.f32 %v13282_v28, %v13281_v25  ;;  %v13284_v32 = vpop.f32.mrb[42].mxu1 }
 0xc8e   :  { %v13204_v59 = vpack.c.bf16 %v15869_v29, %v15865_v15  ;;  %v13285_v33 = vpop.f32.mrb[43].mxu1 }
 0xc8f   :  { %11672 = vst [vmem:[#allocation30 + $0x7c] sm:$0xff] %v13203_v31  ;;  %v13286_v34 = vadd.f32 %v13285_v33, %v13284_v32 }
 0xc90   :  { %16280 = shalt.err (!%p16277_p0)
}
 0xc91   :  { %s16281_s18 = scalar_lea.hbm %s17092_s19, 256 }
 0xc92   :  { %p16282_p1 = scmp.ne.s32.totalorder %s17092_s19, %s16281_s18  ;;  %p16285_p2 = scmp.lt.u32.totalorder %s16281_s18, %s17092_s19 }
 0xc94   :  { %p16287_p3 = pnand %p16285_p2, %p16282_p1 }
 0xc96   :  { %16290 = shalt.err (!%p16287_p3)
}
 0xc97   :  { %11699 = dma.vmem_to_hbm [thread:$0]  %s11694_s9, 256, %s17092_s19, [#allocation32], %s17114_s1, %s17114_s1, %s16362_s2   ;;  %11673 = vst [vmem:[#allocation30 + $0x84] sm:$0xff] %v13204_v59 }
 0xc98   :  { %s16387_s26 = smov [#allocation33]  }
 0xc99   :  { %s11706_s29 = sshll.u32 %s16387_s26, 4  ;;  %s11707_s29 = int_to_ptr.vmem [resolvable:$true] %s11706_s29 }
 0xc9a   :  { %s16291_s24 = scalar_lea.vmem %s11707_s29, 128  ;;  %p16296_p5 = scmp.lt.s32.totalorder %s11707_s29, %s11707_s29 }
 0xc9b   :  { %p16292_p4 = scmp.ne.s32.totalorder %s11707_s29, %s16291_s24  ;;  %p16297_p6 = scmp.lt.s32.totalorder %s16291_s24, %s16291_s24 }
 0xc9d   :  { %p16298_p7 = por %p16297_p6, %p16296_p5 }
 0xc9f   :  { %p16299_p8 = pnand %p16298_p7, %p16292_p4 }
 0xca1   :  { %16302 = shalt.err (!%p16299_p8)
}
 0xca2   :  { %s17120_s15 = sld [smem:[#allocation51_spill]] }
 0xca8   :  { %s16303_s5 = scalar_lea.hbm %s17120_s15, 128 }
 0xca9   :  { %p16304_p9 = scmp.ne.s32.totalorder %s17120_s15, %s16303_s5  ;;  %p16307_p10 = scmp.lt.u32.totalorder %s16303_s5, %s17120_s15 }
 0xcab   :  { %p16309_p11 = pnand %p16307_p10, %p16304_p9 }
 0xcad   :  { %16312 = shalt.err (!%p16309_p11)
}
 0xcae   :  { %11709 = dma.vmem_to_hbm [thread:$0]  %s11707_s29, 128, %s17120_s15, [#allocation32]   ;;  %v7285_v35 = vld [vmem:[#allocation24 + $0x10] sm:$0x7]  ;;  %v13303_v37 = vpop.f32.mrb[44].mxu1 }
 0xcaf   :  { %v7364_v36 = vrot.slane %v7285_v35, %v16824_v57  ;;  %v13304_v38 = vpop.f32.mrb[45].mxu1  ;;  %v7356_v41 = vrot.slane %v7285_v35, %v16808_v14  ;;  %v7360_v4 = vrot.slane %v7285_v35, %v16813_v16  ;;  %s16388_s3 = smov [#allocation30]  }
 0xcb0   :  { %v13305_v39 = vadd.f32 %v13304_v38, %v13303_v37  ;;  %v13306_v21 = vpop.f32.mrb[46].mxu1  ;;  %s11681_s0 = sshll.u32 %s16388_s3, 4  ;;  %s11682_s0 = int_to_ptr.vmem [resolvable:$true] %s11681_s0 }
 0xcb1   :  { %v11265_v7 = vadd.f32 %v13283_v11, %v7364_v36  ;;  %v13307_v8 = vpop.f32.mrb[47].mxu1  ;;  %v11268_v13 = vadd.f32 %v13286_v34, %v7364_v36  ;;  %s16313_s23 = scalar_lea.vmem %s11682_s0, 2432  ;;  %p16318_p13 = scmp.lt.s32.totalorder %s11682_s0, %s11682_s0 }
 0xcb2   :  { %v13308_v10 = vadd.f32 %v13307_v8, %v13306_v21  ;;  %p16314_p12 = scmp.ne.s32.totalorder %s11682_s0, %s16313_s23  ;;  %p16319_p0 = scmp.lt.s32.totalorder %s16313_s23, %s16313_s23 }
 0xcb3   :  { %v11306_v27 = vadd.f32 %v13305_v39, %v11265_v7 }
 0xcb4   :  { %v11309_v43 = vadd.f32 %v13308_v10, %v11268_v13  ;;  %p16320_p1 = por %p16319_p0, %p16318_p13 }
 0xcb5   :  { %v13147_v42 = vmul.f32 -1.442695, %v11306_v27 }
 0xcb6   :  { %v13166_v44 = vmul.f32 -1.442695, %v11309_v43  ;;  %p16321_p2 = pnand %p16320_p1, %p16314_p12 }
 0xcb7   :  { %15870 = vpow2.f32 %v13147_v42 }
 0xcb8   :  { %15872 = vpow2.f32 %v13166_v44 }
 0xcc1   :  { %v15871_v40 = vpop.eup %15870 }
 0xcc2   :  { %v11444_v45 = vadd.f32 1.0, %v15871_v40  ;;  %v15873_v46 = vpop.eup %15872 }
 0xcc3   :  { %v11463_v47 = vadd.f32 1.0, %v15873_v46 }
 0xcc4   :  { %15874 = vrcp.f32 %v11444_v45 }
 0xcc5   :  { %15876 = vrcp.f32 %v11463_v47 }
 0xcce   :  { %v15875_v57 = vpop.eup %15874 }
 0xccf   :  { %v13196_v30 = vpack.c.bf16 %v15875_v57, %v15875_v57  ;;  %v15877_v49 = vpop.eup %15876 }
 0xcd0   :  { %v13206_v12 = vpack.c.bf16 %v15877_v49, %v15877_v49 }
 0xcd1   :  { %11665 = vst [vmem:[#allocation30 + $0x48] sm:$0xf] %v13196_v30 }
 0xcd2   :  { %11675 = vst [vmem:[#allocation30 + $0x94] sm:$0xf] %v13206_v12 }
 0xcea   :  { %v11221_v51 = vpop.f32.mrb[28].mxu0 }
 0xceb   :  { %v13491_v52 = vadd.f32 %v11221_v51, %v7356_v41  ;;  %v11223_v54 = vpop.f32.mrb[29].mxu0 }
 0xcec   :  { %v13492_v55 = vadd.f32 %v11223_v54, %v7360_v4  ;;  %v11225_v58 = vpop.f32.mrb[30].mxu0 }
 0xced   :  { %v13145_v60 = vmul.f32 -1.442695, %v13491_v52  ;;  %v13493_v61 = vadd.f32 %v11225_v58, %v7356_v41  ;;  %v11227_v62 = vpop.f32.mrb[31].mxu0 }
 0xcee   :  { %v13146_v63 = vmul.f32 -1.442695, %v13492_v55  ;;  %v13494_v50 = vadd.f32 %v11227_v62, %v7360_v4 }
 0xcef   :  { %15878 = vpow2.f32 %v13145_v60  ;;  %v13164_v1 = vmul.f32 -1.442695, %v13493_v61 }
 0xcf0   :  { %15880 = vpow2.f32 %v13146_v63  ;;  %v13165_v2 = vmul.f32 -1.442695, %v13494_v50 }
 0xcf1   :  { %15882 = vpow2.f32 %v13164_v1 }
 0xcf2   :  { %15884 = vpow2.f32 %v13165_v2 }
 0xcf9   :  { %v15879_v3 = vpop.eup %15878 }
 0xcfa   :  { %v15881_v14 = vpop.eup %15880  ;;  %v11442_v48 = vadd.f32 1.0, %v15879_v3 }
 0xcfb   :  { %v15883_v16 = vpop.eup %15882  ;;  %v11443_v5 = vadd.f32 1.0, %v15881_v14 }
 0xcfc   :  { %v15885_v0 = vpop.eup %15884  ;;  %15886 = vrcp.f32 %v11442_v48  ;;  %v11461_v6 = vadd.f32 1.0, %v15883_v16 }
 0xcfd   :  { %15888 = vrcp.f32 %v11443_v5  ;;  %v11462_v9 = vadd.f32 1.0, %v15885_v0 }
 0xcfe   :  { %15890 = vrcp.f32 %v11461_v6 }
 0xcff   :  { %15892 = vrcp.f32 %v11462_v9 }
 0xd06   :  { %v15887_v22 = vpop.eup %15886 }
 0xd07   :  { %v15889_v17 = vpop.eup %15888 }
 0xd08   :  { %v15891_v18 = vpop.eup %15890  ;;  %v13195_v19 = vpack.c.bf16 %v15889_v17, %v15887_v22 }
 0xd09   :  { %v15893_v20 = vpop.eup %15892 }
 0xd0a   :  { %11664 = vst [vmem:[#allocation30 + $0x40] sm:$0xff] %v13195_v19  ;;  %v13205_v23 = vpack.c.bf16 %v15893_v20, %v15891_v18 }
 0xd0c   :  { %11674 = vst [vmem:[#allocation30 + $0x8c] sm:$0xff] %v13205_v23 }
 0xd0d   :  { %16324 = shalt.err (!%p16321_p2)
}
 0xd0e   :  { %s17121_s9 = sld [smem:[#allocation50_spill]] }
 0xd14   :  { %s16325_s28 = scalar_lea.hbm %s17121_s9, 2432 }
 0xd15   :  { %p16326_p3 = scmp.ne.s32.totalorder %s17121_s9, %s16325_s28  ;;  %p16329_p4 = scmp.lt.u32.totalorder %s16325_s28, %s17121_s9 }
 0xd17   :  { %p16331_p5 = pnand %p16329_p4, %p16326_p3 }
 0xd19   :  { %16334 = shalt.err (!%p16331_p5)
}
 0xd1a   :  { %11687 = dma.vmem_to_hbm [thread:$0]  %s11682_s0, 2432, %s17121_s9, [#allocation5], %s16372_s16, %s16372_s16, %s16373_s25  }
 0xd1b   :  { %16353 = dma.done.wait [#allocation5], 2432  }
 0xd1c   :  { %16354 = vsyncadd [#allocation5], 4294964864 }
 0xd1d   :  { %16355 = dma.done.wait [#allocation32], 384  }
 0xd1e   :  { %16356 = vsyncadd [#allocation32], 4294966912 }
 0xd1f   :  { %11719 = vsyncpa [#allocation4], 1 }
 0xd20   :  { %11720 = vsyncpa [#allocation7], 1 }
 0xd21   :  { %11721 = vsyncpa [#allocation10], 1 }
 0xd22   :  { %11722 = vsyncpa [#allocation13], 1 }
 0xd23   :  { %11723 = vsyncpa [#allocation16], 1 }
 0xd24   :  { %11724 = vsyncpa [#allocation19], 1 }
 0xd25   :  { %11725 = vsyncpa [#allocation22], 1 }
 0xd26   :  { %11726 = vsyncpa [#allocation25], 1 }
 0xd27   :  { %11727 = vsyncpa [#allocation28], 1 }
 0xd28   :  { %11728 = vsyncpa [#allocation5], 1 }
 0xd29   :  { %11729 = vsyncpa [#allocation32], 1 }

</bundles_post_ra>
